<compile_context>
chip_gen: v7x
topology: tpu7x:2x2x1
jax: 0.10.0
libtpu: 0.0.40
codegen_flags: <defaults>
</compile_context>

<pallas_src>
import functools

import jax
import jax.numpy as jnp
from jax.experimental import pallas as pl
from jax.experimental.pallas import tpu as pltpu


def _mlp_kernel(x_ref,
                w1_ref, b1_ref,
                w2_ref, b2_ref,
                w3_ref, b3_ref,
                o_ref):
    """Fused forward (BatchNorm folded into W2'/b2' and w3'/b3'):
         h1 = relu(x @ W1 + b1)
         h2 = relu(h1 @ W2' + b2')
         o  = h2 @ w3' + b3'       (stored lane-dense as (tile_b//128, 128))
    """
    x = x_ref[...]                                            # (TB, 11) f32

    # layer_1 + ReLU  (BN1 folded into W2'/b2')
    h1 = jnp.dot(x, w1_ref[...], preferred_element_type=jnp.float32)
    h1 = jnp.maximum(h1 + b1_ref[...], 0.0)                   # (TB, 64)

    # layer_2 + ReLU  (BN2 folded into w3'/b3')
    h2 = jnp.dot(h1, w2_ref[...], preferred_element_type=jnp.float32)
    h2 = jnp.maximum(h2 + b2_ref[...], 0.0)                   # (TB, 64)

    # dropout: identity in eval mode.

    # layer_out, produced directly lane-dense: out[g, l] = <h2[g*128+l, :], w3>
    g, l = o_ref.shape                                        # (TB//128, 128)
    h = w2_ref.shape[1]                                       # 64
    h2r = h2.reshape(g, l, h)                                 # sublane split: layout no-op
    w3b = w3_ref[...].reshape(1, 1, h)                        # (1, 1, 64)
    out = jnp.sum(h2r * w3b, axis=-1)                         # (TB//128, 128)
    o_ref[...] = out + b3_ref[...]                            # broadcast (1,1) bias


@functools.partial(jax.jit, static_argnames=("tile_b",))
def nn_model_forward(x, params, tile_b=2048):
    """x: (B, 11) float32.  params: dict of deterministic weights.

    tile_b must be a multiple of 1024 (output block (tile_b//128, 128) keeps
    the (8, 128) tiling).  Any batch size B is accepted: the last input tile
    is a partial block handled by Pallas, and padded output rows are sliced
    off (no HBM pad-copy of x).
    """
    if tile_b % 1024 != 0:
        raise ValueError("tile_b must be a multiple of 1024")

    B, F_in = x.shape

    w1, b1 = params["w1"], params["b1"]            # (11,64), (1,64)
    s1, t1 = params["bn1_scale"], params["bn1_shift"]
    w2, b2 = params["w2"], params["b2"]            # (64,64), (1,64)
    s2, t2 = params["bn2_scale"], params["bn2_shift"]
    w3, b3 = params["w3"], params["b3"]            # (64,1), (1,1)

    # Fold BatchNorm (applied after the previous layer's ReLU, matching the
    # module: linear -> relu -> batchnorm -> next linear) into the following
    # linear layer:  (y*s + t) @ W + b == y @ (s[:,None] * W) + (t @ W + b)
    w2f = s1.reshape(-1, 1) * w2                   # (64, 64)
    b2f = b2 + t1 @ w2                             # (1, 64)
    w3f = (s2.reshape(-1, 1) * w3).reshape(1, -1)  # (1, 64) row vector
    b3f = b3 + t2 @ w3                             # (1, 1)

    H = w1.shape[1]

    n_tiles = pl.cdiv(B, tile_b)                   # partial last block OK
    rows_per_tile = tile_b // 128
    out_rows = n_tiles * rows_per_tile

    full = lambda shape: pl.BlockSpec(shape, lambda i: (0, 0))

    grid_spec = pltpu.PrefetchScalarGridSpec(
        num_scalar_prefetch=0,
        grid=(n_tiles,),
        in_specs=[
            pl.BlockSpec((tile_b, F_in), lambda i: (i, 0)),   # x tile (streamed)
            full((F_in, H)), full((1, H)),                    # W1, b1   (resident)
            full((H, H)),    full((1, H)),                    # W2', b2' (resident)
            full((1, H)),    full((1, 1)),                    # w3', b3' (resident)
        ],
        out_specs=pl.BlockSpec((rows_per_tile, 128), lambda i: (i, 0)),
    )

    out = pl.pallas_call(
        _mlp_kernel,
        out_shape=jax.ShapeDtypeStruct((out_rows, 128), jnp.float32),
        grid_spec=grid_spec,
        compiler_params=pltpu.CompilerParams(
            dimension_semantics=("parallel",),
            vmem_limit_bytes=32 * 1024 * 1024),
    )(x, w1, b1, w2f, b2f, w3f, b3f)

    # Row-major (out_rows, 128) is exactly batch order; drop padded rows.
    return out.reshape(-1)[:B].reshape(B, 1)


def init_params(key):
    """Deterministic parameter init mirroring the module's shapes."""
    ks = jax.random.split(key, 8)
    f32 = jnp.float32

    def lin(k, fan_in, fan_out):
        bound = 1.0 / jnp.sqrt(fan_in)
        kw, kb = jax.random.split(k)
        w = jax.random.uniform(kw, (fan_in, fan_out), f32, -bound, bound)
        b = jax.random.uniform(kb, (1, fan_out), f32, -bound, bound)
        return w, b

    w1, b1 = lin(ks[0], 11, 64)
    w2, b2 = lin(ks[1], 64, 64)
    w3, b3 = lin(ks[2], 64, 1)

    eps = 1e-5

    def bn(kg, kb, km, kv, n):
        gamma = 1.0 + 0.1 * jax.random.normal(kg, (1, n), f32)
        beta = 0.1 * jax.random.normal(kb, (1, n), f32)
        mean = 0.05 * jax.random.normal(km, (1, n), f32)
        var = 1.0 + 0.1 * jax.random.uniform(kv, (1, n), f32)
        scale = gamma / jnp.sqrt(var + eps)
        shift = beta - mean * scale
        return scale, shift

    bn1_scale, bn1_shift = bn(ks[3], ks[4], ks[5], ks[6], 64)
    k7a, k7b, k7c, k7d = jax.random.split(ks[7], 4)
    bn2_scale, bn2_shift = bn(k7a, k7b, k7c, k7d, 64)

    return dict(w1=w1, b1=b1, w2=w2, b2=b2, w3=w3, b3=b3,
                bn1_scale=bn1_scale, bn1_shift=bn1_shift,
                bn2_scale=bn2_scale, bn2_shift=bn2_shift)


def reference_forward(x, p):
    h1 = jnp.maximum(x @ p["w1"] + p["b1"], 0.0)
    h1 = h1 * p["bn1_scale"] + p["bn1_shift"]
    h2 = jnp.maximum(h1 @ p["w2"] + p["b2"], 0.0)
    h2 = h2 * p["bn2_scale"] + p["bn2_shift"]
    return h2 @ p["w3"] + p["b3"]


if __name__ == "__main__":
    key = jax.random.PRNGKey(0)
    k_x, k_p = jax.random.split(key)

    B = 16                                   # small demo batch (partial tile)
    x = jax.random.normal(k_x, (B, 11), jnp.float32)
    params = init_params(k_p)

    out = nn_model_forward(x, params, tile_b=2048)
    out = jax.block_until_ready(out)

    ref = reference_forward(x, params)
    assert out.shape == (B, 1)
    assert jnp.allclose(out, ref, atol=1e-4, rtol=1e-4), "mismatch vs reference"

    print("KERNEL_OK")
</pallas_src>

<mosaic_0001>
module attributes {stable_mosaic.version = 11 : i64} {
  func.func @_mlp_kernel(%arg0: i32, %arg1: memref<2048x11xf32, #tpu.memory_space<vmem>>, %arg2: memref<11x64xf32, #tpu.memory_space<vmem>>, %arg3: memref<1x64xf32, #tpu.memory_space<vmem>>, %arg4: memref<64x64xf32, #tpu.memory_space<vmem>>, %arg5: memref<1x64xf32, #tpu.memory_space<vmem>>, %arg6: memref<1x64xf32, #tpu.memory_space<vmem>>, %arg7: memref<1x1xf32, #tpu.memory_space<vmem>>, %arg8: memref<16x128xf32, #tpu.memory_space<vmem>>) attributes {dimension_semantics = [#tpu.dimension_semantics<parallel>], iteration_bounds = array<i64: 1>, scalar_prefetch = 0 : i64, scratch_operands = 0 : i64, tpu.core_type = #tpu.core_type<tc>, window_params = [{transform_indices = @transform_0, window_bounds = array<i64: 2048, 11>}, {pipeline_mode = #tpu.pipeline_mode<synchronous>, transform_indices = @transform_1, window_bounds = array<i64: 11, 64>}, {pipeline_mode = #tpu.pipeline_mode<synchronous>, transform_indices = @transform_2, window_bounds = array<i64: 1, 64>}, {pipeline_mode = #tpu.pipeline_mode<synchronous>, transform_indices = @transform_3, window_bounds = array<i64: 64, 64>}, {pipeline_mode = #tpu.pipeline_mode<synchronous>, transform_indices = @transform_4, window_bounds = array<i64: 1, 64>}, {pipeline_mode = #tpu.pipeline_mode<synchronous>, transform_indices = @transform_5, window_bounds = array<i64: 1, 64>}, {pipeline_mode = #tpu.pipeline_mode<synchronous>, transform_indices = @transform_6, window_bounds = array<i64: 1, 1>}, {transform_indices = @transform_7, window_bounds = array<i64: 16, 128>}]} {
    %c0 = arith.constant 0 : index
    %c0_0 = arith.constant 0 : index
    %0 = vector.load %arg1[%c0, %c0_0] : memref<2048x11xf32, #tpu.memory_space<vmem>>, vector<2048x11xf32>
    %c0_1 = arith.constant 0 : index
    %c0_2 = arith.constant 0 : index
    %1 = vector.load %arg2[%c0_1, %c0_2] : memref<11x64xf32, #tpu.memory_space<vmem>>, vector<11x64xf32>
    %cst = arith.constant dense<0.000000e+00> : vector<2048x64xf32>
    %2 = tpu.matmul %0, %1, %cst {dimension_numbers = #tpu.dot_dimension_numbers<[1], [0], [0], [1], [0, 0, 1, 1], [], []>} : vector<2048x11xf32>, vector<11x64xf32>, vector<2048x64xf32> -> vector<2048x64xf32>
    %c0_3 = arith.constant 0 : index
    %c0_4 = arith.constant 0 : index
    %3 = vector.load %arg3[%c0_3, %c0_4] : memref<1x64xf32, #tpu.memory_space<vmem>>, vector<1x64xf32>
    %4 = vector.broadcast %3 : vector<1x64xf32> to vector<2048x64xf32>
    %5 = arith.addf %2, %4 : vector<2048x64xf32>
    %cst_5 = arith.constant 0.000000e+00 : f32
    %6 = vector.broadcast %cst_5 : f32 to vector<2048x64xf32>
    %7 = arith.maximumf %5, %6 : vector<2048x64xf32>
    %c0_6 = arith.constant 0 : index
    %c0_7 = arith.constant 0 : index
    %8 = vector.load %arg4[%c0_6, %c0_7] : memref<64x64xf32, #tpu.memory_space<vmem>>, vector<64x64xf32>
    %cst_8 = arith.constant dense<0.000000e+00> : vector<2048x64xf32>
    %9 = tpu.matmul %7, %8, %cst_8 {dimension_numbers = #tpu.dot_dimension_numbers<[1], [0], [0], [1], [0, 0, 1, 1], [], []>} : vector<2048x64xf32>, vector<64x64xf32>, vector<2048x64xf32> -> vector<2048x64xf32>
    %c0_9 = arith.constant 0 : index
    %c0_10 = arith.constant 0 : index
    %10 = vector.load %arg5[%c0_9, %c0_10] : memref<1x64xf32, #tpu.memory_space<vmem>>, vector<1x64xf32>
    %11 = vector.broadcast %10 : vector<1x64xf32> to vector<2048x64xf32>
    %12 = arith.addf %9, %11 : vector<2048x64xf32>
    %cst_11 = arith.constant 0.000000e+00 : f32
    %13 = vector.broadcast %cst_11 : f32 to vector<2048x64xf32>
    %14 = arith.maximumf %12, %13 : vector<2048x64xf32>
    %15 = vector.shape_cast %14 : vector<2048x64xf32> to vector<16x128x64xf32>
    %c0_12 = arith.constant 0 : index
    %c0_13 = arith.constant 0 : index
    %16 = vector.load %arg6[%c0_12, %c0_13] : memref<1x64xf32, #tpu.memory_space<vmem>>, vector<1x64xf32>
    %17 = vector.shape_cast %16 : vector<1x64xf32> to vector<1x1x64xf32>
    %18 = vector.broadcast %17 : vector<1x1x64xf32> to vector<16x128x64xf32>
    %19 = arith.mulf %15, %18 : vector<16x128x64xf32>
    %cst_14 = arith.constant dense<0.000000e+00> : vector<16x128xf32>
    %20 = vector.multi_reduction <add>, %19, %cst_14 [2] : vector<16x128x64xf32> to vector<16x128xf32>
    %c0_15 = arith.constant 0 : index
    %c0_16 = arith.constant 0 : index
    %21 = vector.load %arg7[%c0_15, %c0_16] : memref<1x1xf32, #tpu.memory_space<vmem>>, vector<1x1xf32>
    %22 = vector.broadcast %21 : vector<1x1xf32> to vector<16x128xf32>
    %23 = arith.addf %20, %22 : vector<16x128xf32>
    %c0_17 = arith.constant 0 : index
    %c0_18 = arith.constant 0 : index
    %24 = vector.load %arg8[%c0_17, %c0_18] : memref<16x128xf32, #tpu.memory_space<vmem>>, vector<16x128xf32>
    tpu.vector_store %arg8[%c0_17, %c0_18], %23 {strides = array<i32>} : memref<16x128xf32, #tpu.memory_space<vmem>>, vector<16x128xf32>,
    return
  }
  func.func @transform_0(%arg0: i32) -> (i32, i32) {
    %c0_i32 = arith.constant 0 : i32
    %c0_i32_0 = arith.constant 0 : i32
    return %arg0, %c0_i32 : i32, i32
  }
  func.func @transform_1(%arg0: i32) -> (i32, i32) {
    %c0_i32 = arith.constant 0 : i32
    %c0_i32_0 = arith.constant 0 : i32
    %c0_i32_1 = arith.constant 0 : i32
    return %c0_i32, %c0_i32_0 : i32, i32
  }
  func.func @transform_2(%arg0: i32) -> (i32, i32) {
    %c0_i32 = arith.constant 0 : i32
    %c0_i32_0 = arith.constant 0 : i32
    %c0_i32_1 = arith.constant 0 : i32
    return %c0_i32, %c0_i32_0 : i32, i32
  }
  func.func @transform_3(%arg0: i32) -> (i32, i32) {
    %c0_i32 = arith.constant 0 : i32
    %c0_i32_0 = arith.constant 0 : i32
    %c0_i32_1 = arith.constant 0 : i32
    return %c0_i32, %c0_i32_0 : i32, i32
  }
  func.func @transform_4(%arg0: i32) -> (i32, i32) {
    %c0_i32 = arith.constant 0 : i32
    %c0_i32_0 = arith.constant 0 : i32
    %c0_i32_1 = arith.constant 0 : i32
    return %c0_i32, %c0_i32_0 : i32, i32
  }
  func.func @transform_5(%arg0: i32) -> (i32, i32) {
    %c0_i32 = arith.constant 0 : i32
    %c0_i32_0 = arith.constant 0 : i32
    %c0_i32_1 = arith.constant 0 : i32
    return %c0_i32, %c0_i32_0 : i32, i32
  }
  func.func @transform_6(%arg0: i32) -> (i32, i32) {
    %c0_i32 = arith.constant 0 : i32
    %c0_i32_0 = arith.constant 0 : i32
    %c0_i32_1 = arith.constant 0 : i32
    return %c0_i32, %c0_i32_0 : i32, i32
  }
  func.func @transform_7(%arg0: i32) -> (i32, i32) {
    %c0_i32 = arith.constant 0 : i32
    %c0_i32_0 = arith.constant 0 : i32
    return %arg0, %c0_i32 : i32, i32
  }
}

</mosaic_0001>

<bundles_post_ra>
// kernel: nn_model_forward.1
= control target key start
LH: loop header
LB: loop body
LE: loop exit
PB: predicated region body
PF: predicated region fallthrough
CT: control target
= control target key end

     0   :  { %vm1062_vm0 = vcmask 1042432   ;;  %vm293_vm1 = vcmask 89088   ;;  %vm9804_vm2 = vmmov 1   ;;  %vm2682_vm4 = vcmask 523264   ;;  %s13758_s1 = inlined_call_operand.vmem [shape: f32[11,64], index: 1, kind: input, shape index: {}]   ;;  %s13759_s0 = inlined_call_operand.vmem [shape: f32[16,11], index: 0, kind: input, shape index: {}]   ;;  %s13760_s3 = inlined_call_operand.vmem [shape: f32[64,64], index: 3, kind: input, shape index: {}]   ;;  %s13761_s2 = inlined_call_operand.vmem [shape: f32[1,64], index: 2, kind: input, shape index: {}]   ;;  %s13762_s6 = inlined_call_operand.<no memory space> [shape: f32[1,1], index: 6, kind: input, shape index: {}]   ;;  %s13763_s4 = inlined_call_operand.vmem [shape: f32[1,64], index: 4, kind: input, shape index: {}]   ;;  %s13764_s5 = inlined_call_operand.vmem [shape: f32[1,64], index: 5, kind: input, shape index: {}]   ;;  %s13765_s7 = inlined_call_operand.vmem [shape: f32[16,128], index: 7, kind: output, shape index: {}]  }
   0x1   :  { %v284_v0 = vld [vmem:[%s13758_s1] sm:$0xff]  ;;  %v285_v1 = vld [vmem:[%s13758_s1 + $0x8] sm:$0x7]  ;;  %vm9758_vm3 = vmpackc.low %vm1062_vm0, %vm9804_vm2  ;;  %vm6616_vm5 = vcmask 130112   ;;  %vm6623_vm6 = vcmask 195712   ;;  %vm6630_vm7 = vcmask 261312  }
   0x2   :  { %v9757_v2 = vpack.c.bf16 %v285_v1, %v284_v0  ;;  %v28_v3 = vld [vmem:[%s13759_s0] sm:$0xff]  ;;  %v29_v4 = vld [vmem:[%s13759_s0 + $0x8] sm:$0xff]  ;;  %v30_v5 = vld [vmem:[%s13759_s0 + $0x10] sm:$0xff]  ;;  %vm13786_vm8 = vcmask 326912   ;;  %vm6644_vm9 = vcmask 392512   ;;  %vm6651_vm10 = vcmask 458112  }
   0x3   :  { %8973 = vmatprep.mubr.msk.f32.mxu0 %vm293_vm1, %v28_v3  ;;  %v31_v6 = vld [vmem:[%s13759_s0 + $0x18] sm:$0xff]  ;;  %v32_v7 = vld [vmem:[%s13759_s0 + $0x20] sm:$0xff]  ;;  %v33_v8 = vld [vmem:[%s13759_s0 + $0x28] sm:$0xff]  ;;  %vm13789_vm11 = vcmask 523712   ;;  %vm13788_vm12 = vcmask 589312   ;;  %vm13787_vm13 = vcmask 654912  }
   0x4   :  { %9759 = vmatprep.subr.msk.bf16.mxu0 %vm9758_vm3, %v9757_v2  ;;  %v34_v9 = vld [vmem:[%s13759_s0 + $0x30] sm:$0xff]  ;;  %v2667_v10 = vld [vmem:[%s13760_s3] sm:$0xff]  ;;  %v2668_v11 = vld [vmem:[%s13760_s3 + $0x8] sm:$0xff]  ;;  %vm13790_vm14 = vcmask 720512   ;;  %vm13792_vm15 = vcmask 786112   ;;  %vm13791_vm0 = vcmask 851712  }
   0x5   :  { %9762 = vmatpush3.bf16.msk.msra.mxu0 %vm9758_vm3, %v9757_v2  ;;  %v9763_v12 = vpack.c.bf16 %v2668_v11, %v2667_v10  ;;  %v35_v13 = vld [vmem:[%s13759_s0 + $0x38] sm:$0xff]  ;;  %v36_v14 = vld [vmem:[%s13759_s0 + $0x40] sm:$0xff]  ;;  %v37_v15 = vld [vmem:[%s13759_s0 + $0x48] sm:$0xff]  ;;  %vm6707_vm2 = vcmask 982912   ;;  %vm6714_vm3 = vcmask 1048512  }
   0x6   :  { %v38_v16 = vld [vmem:[%s13759_s0 + $0x50] sm:$0xff]  ;;  %v39_v17 = vld [vmem:[%s13759_s0 + $0x58] sm:$0xff]  ;;  %v40_v18 = vld [vmem:[%s13759_s0 + $0x60] sm:$0xff] }
   0x7   :  { %9764 = vmatprep.subr.bf16.mxu0 %v9763_v12  ;;  %9779 = vmatprep.subr.bf16.mxu1 %v9763_v12  ;;  %v41_v19 = vld [vmem:[%s13759_s0 + $0x68] sm:$0xff]  ;;  %v42_v20 = vld [vmem:[%s13759_s0 + $0x70] sm:$0xff]  ;;  %v43_v21 = vld [vmem:[%s13759_s0 + $0x78] sm:$0xff] }
   0x8   :  { %8974 = vmatmul.mubr.msk.f32.vlgmr.msra.gmra.mrb[0].mxu0 %vm293_vm1, %v29_v4  ;;  %9783 = vmatpush3.bf16.msra.mxu1 %v9763_v12  ;;  %v44_v22 = vld [vmem:[%s13759_s0 + $0x80] sm:$0xff]  ;;  %v45_v23 = vld [vmem:[%s13759_s0 + $0x88] sm:$0xff]  ;;  %v46_v24 = vld [vmem:[%s13759_s0 + $0x90] sm:$0xff] }
   0x9   :  { %8976 = vmatprep.mubr.msk.f32.mxu0 %vm293_vm1, %v30_v5  ;;  %9766 = vmatpush3.bf16.msra.mxu0 %v9763_v12  ;;  %v47_v25 = vld [vmem:[%s13759_s0 + $0x98] sm:$0xff]  ;;  %v48_v26 = vld [vmem:[%s13759_s0 + $0xa0] sm:$0xff]  ;;  %v49_v27 = vld [vmem:[%s13759_s0 + $0xa8] sm:$0xff] }
   0xa   :  { %v50_v28 = vld [vmem:[%s13759_s0 + $0xb0] sm:$0xff]  ;;  %v51_v29 = vld [vmem:[%s13759_s0 + $0xb8] sm:$0xff]  ;;  %v52_v30 = vld [vmem:[%s13759_s0 + $0xc0] sm:$0xff] }
   0xb   :  { %v53_v31 = vld [vmem:[%s13759_s0 + $0xc8] sm:$0xff]  ;;  %v54_v32 = vld [vmem:[%s13759_s0 + $0xd0] sm:$0xff]  ;;  %v55_v33 = vld [vmem:[%s13759_s0 + $0xd8] sm:$0xff] }
   0xc   :  { %8977 = vmatmul.mubr.msk.f32.gmra.mrb[2].mxu0 %vm293_vm1, %v31_v6  ;;  %v56_v34 = vld [vmem:[%s13759_s0 + $0xe0] sm:$0xff]  ;;  %v57_v35 = vld [vmem:[%s13759_s0 + $0xe8] sm:$0xff]  ;;  %v58_v36 = vld [vmem:[%s13759_s0 + $0xf0] sm:$0xff] }
   0xd   :  { %8979 = vmatprep.mubr.msk.f32.mxu0 %vm293_vm1, %v32_v7  ;;  %v59_v37 = vld [vmem:[%s13759_s0 + $0xf8] sm:$0xff]  ;;  %v60_v38 = vld [vmem:[%s13759_s0 + $0x100] sm:$0xff]  ;;  %v61_v39 = vld [vmem:[%s13759_s0 + $0x108] sm:$0xff] }
   0xe   :  { %v62_v40 = vld [vmem:[%s13759_s0 + $0x110] sm:$0xff]  ;;  %v63_v41 = vld [vmem:[%s13759_s0 + $0x118] sm:$0xff]  ;;  %v64_v42 = vld [vmem:[%s13759_s0 + $0x120] sm:$0xff] }
   0xf   :  { %v2669_v43 = vld [vmem:[%s13760_s3 + $0x10] sm:$0xff]  ;;  %v2670_v44 = vld [vmem:[%s13760_s3 + $0x18] sm:$0xff]  ;;  %v65_v45 = vld [vmem:[%s13759_s0 + $0x128] sm:$0xff] }
  0x10   :  { %8980 = vmatmul.mubr.msk.f32.gmra.mrb[4].mxu0 %vm293_vm1, %v33_v8  ;;  %v9767_v46 = vpack.c.bf16 %v2670_v44, %v2669_v43  ;;  %v66_v47 = vld [vmem:[%s13759_s0 + $0x130] sm:$0xff]  ;;  %v67_v48 = vld [vmem:[%s13759_s0 + $0x138] sm:$0xff]  ;;  %v68_v49 = vld [vmem:[%s13759_s0 + $0x140] sm:$0xff] }
  0x11   :  { %8982 = vmatprep.mubr.msk.f32.mxu0 %vm293_vm1, %v34_v9  ;;  %v69_v50 = vld [vmem:[%s13759_s0 + $0x148] sm:$0xff]  ;;  %v70_v51 = vld [vmem:[%s13759_s0 + $0x150] sm:$0xff]  ;;  %v71_v52 = vld [vmem:[%s13759_s0 + $0x158] sm:$0xff] }
  0x12   :  { %9768 = vmatprep.subr.bf16.mxu0 %v9767_v46  ;;  %9780 = vmatprep.subr.bf16.mxu1 %v9767_v46  ;;  %v72_v53 = vld [vmem:[%s13759_s0 + $0x160] sm:$0xff]  ;;  %v2672_v55 = vld [vmem:[%s13760_s3 + $0x28] sm:$0xff]  ;;  %v74_v58 = vld [vmem:[%s13759_s0 + $0x170] sm:$0xff] }
  0x13   :  { %9784 = vmatpush3.bf16.msra.mxu1 %v9767_v46  ;;  %9770 = vmatpush3.bf16.msra.mxu0 %v9767_v46  ;;  %v2671_v54 = vld [vmem:[%s13760_s3 + $0x20] sm:$0xff]  ;;  %v73_v56 = vld [vmem:[%s13759_s0 + $0x168] sm:$0xff]  ;;  %v2673_v59 = vld [vmem:[%s13760_s3 + $0x30] sm:$0xff] }
  0x14   :  { %8983 = vmatmul.mubr.msk.f32.gmra.mrb[6].mxu0 %vm293_vm1, %v35_v13  ;;  %v9771_v57 = vpack.c.bf16 %v2672_v55, %v2671_v54  ;;  %v2674_v60 = vld [vmem:[%s13760_s3 + $0x38] sm:$0xff]  ;;  %v76_v63 = vld [vmem:[%s13759_s0 + $0x180] sm:$0xff]  ;;  %v77_v0 = vld [vmem:[%s13759_s0 + $0x188] sm:$0xff] }
  0x15   :  { %8985 = vmatprep.mubr.msk.f32.mxu0 %vm293_vm1, %v36_v14  ;;  %v9775_v61 = vpack.c.bf16 %v2674_v60, %v2673_v59  ;;  %v75_v62 = vld [vmem:[%s13759_s0 + $0x178] sm:$0xff]  ;;  %v78_v1 = vld [vmem:[%s13759_s0 + $0x190] sm:$0xff]  ;;  %v80_v3 = vld [vmem:[%s13759_s0 + $0x1a0] sm:$0xff] }
  0x16   :  { %9781 = vmatprep.subr.bf16.mxu1 %v9771_v57  ;;  %9772 = vmatprep.subr.bf16.mxu0 %v9771_v57  ;;  %v79_v2 = vld [vmem:[%s13759_s0 + $0x198] sm:$0xff]  ;;  %v81_v4 = vld [vmem:[%s13759_s0 + $0x1a8] sm:$0xff]  ;;  %v82_v5 = vld [vmem:[%s13759_s0 + $0x1b0] sm:$0xff] }
  0x17   :  { %9785 = vmatpush3.bf16.msra.mxu1 %v9771_v57  ;;  %9774 = vmatpush3.bf16.msra.mxu0 %v9771_v57  ;;  %v83_v6 = vld [vmem:[%s13759_s0 + $0x1b8] sm:$0xff]  ;;  %v84_v7 = vld [vmem:[%s13759_s0 + $0x1c0] sm:$0xff]  ;;  %v85_v8 = vld [vmem:[%s13759_s0 + $0x1c8] sm:$0xff] }
  0x18   :  { %8986 = vmatmul.mubr.msk.f32.gmra.mrb[8].mxu0 %vm293_vm1, %v37_v15  ;;  %9782 = vmatprep.subr.bf16.mxu1 %v9775_v61  ;;  %v86_v9 = vld [vmem:[%s13759_s0 + $0x1d0] sm:$0xff]  ;;  %v87_v10 = vld [vmem:[%s13759_s0 + $0x1d8] sm:$0xff]  ;;  %v88_v11 = vld [vmem:[%s13759_s0 + $0x1e0] sm:$0xff] }
  0x19   :  { %8988 = vmatprep.mubr.msk.f32.mxu0 %vm293_vm1, %v38_v16  ;;  %9776 = vmatprep.subr.bf16.mxu0 %v9775_v61  ;;  %v89_v12 = vld [vmem:[%s13759_s0 + $0x1e8] sm:$0xff]  ;;  %v90_v13 = vld [vmem:[%s13759_s0 + $0x1f0] sm:$0xff]  ;;  %v91_v14 = vld [vmem:[%s13759_s0 + $0x1f8] sm:$0xff] }
  0x1a   :  { %v92_v15 = vld [vmem:[%s13759_s0 + $0x200] sm:$0xff]  ;;  %v93_v16 = vld [vmem:[%s13759_s0 + $0x208] sm:$0xff]  ;;  %v123_v46 = vld [vmem:[%s13759_s0 + $0x2f8] sm:$0xff] }
  0x1b   :  { %9786 = vmatpush3.bf16.msra.mxu1 %v9775_v61  ;;  %9778 = vmatpush3.bf16.msra.mxu0 %v9775_v61  ;;  %v120_v43 = vld [vmem:[%s13759_s0 + $0x2e0] sm:$0xff]  ;;  %v121_v44 = vld [vmem:[%s13759_s0 + $0x2e8] sm:$0xff]  ;;  %v131_v54 = vld [vmem:[%s13759_s0 + $0x338] sm:$0xff] }
  0x1c   :  { %8989 = vmatmul.mubr.msk.f32.gmra.mrb[10].mxu0 %vm293_vm1, %v39_v17  ;;  %v94_v17 = vld [vmem:[%s13759_s0 + $0x210] sm:$0xff]  ;;  %v132_v55 = vld [vmem:[%s13759_s0 + $0x340] sm:$0xff] }
  0x1d   :  { %8991 = vmatprep.mubr.msk.f32.mxu0 %vm293_vm1, %v40_v18  ;;  %v95_v18 = vld [vmem:[%s13759_s0 + $0x218] sm:$0xff]  ;;  %v134_v57 = vld [vmem:[%s13759_s0 + $0x350] sm:$0xff]  ;;  %v136_v59 = vld [vmem:[%s13759_s0 + $0x360] sm:$0xff] }
  0x20   :  { %8992 = vmatmul.mubr.msk.f32.gmra.mrb[12].mxu0 %vm293_vm1, %v41_v19  ;;  %v96_v19 = vld [vmem:[%s13759_s0 + $0x220] sm:$0xff] }
  0x21   :  { %8994 = vmatprep.mubr.msk.f32.mxu0 %vm293_vm1, %v42_v20  ;;  %v97_v20 = vld [vmem:[%s13759_s0 + $0x228] sm:$0xff] }
  0x24   :  { %8995 = vmatmul.mubr.msk.f32.gmra.mrb[14].mxu0 %vm293_vm1, %v43_v21  ;;  %v98_v21 = vld [vmem:[%s13759_s0 + $0x230] sm:$0xff] }
  0x25   :  { %8997 = vmatprep.mubr.msk.f32.mxu0 %vm293_vm1, %v44_v22  ;;  %v99_v22 = vld [vmem:[%s13759_s0 + $0x238] sm:$0xff] }
  0x28   :  { %8998 = vmatmul.mubr.msk.f32.gmra.mrb[16].mxu0 %vm293_vm1, %v45_v23  ;;  %v100_v23 = vld [vmem:[%s13759_s0 + $0x240] sm:$0xff] }
  0x29   :  { %9000 = vmatprep.mubr.msk.f32.mxu0 %vm293_vm1, %v46_v24  ;;  %v101_v24 = vld [vmem:[%s13759_s0 + $0x248] sm:$0xff] }
  0x2c   :  { %9001 = vmatmul.mubr.msk.f32.gmra.mrb[18].mxu0 %vm293_vm1, %v47_v25  ;;  %v102_v25 = vld [vmem:[%s13759_s0 + $0x250] sm:$0xff] }
  0x2d   :  { %9003 = vmatprep.mubr.msk.f32.mxu0 %vm293_vm1, %v48_v26  ;;  %v103_v26 = vld [vmem:[%s13759_s0 + $0x258] sm:$0xff] }
  0x30   :  { %9004 = vmatmul.mubr.msk.f32.gmra.mrb[20].mxu0 %vm293_vm1, %v49_v27  ;;  %v104_v27 = vld [vmem:[%s13759_s0 + $0x260] sm:$0xff] }
  0x31   :  { %9006 = vmatprep.mubr.msk.f32.mxu0 %vm293_vm1, %v50_v28  ;;  %v105_v28 = vld [vmem:[%s13759_s0 + $0x268] sm:$0xff] }
  0x34   :  { %9007 = vmatmul.mubr.msk.f32.gmra.mrb[22].mxu0 %vm293_vm1, %v51_v29  ;;  %v106_v29 = vld [vmem:[%s13759_s0 + $0x270] sm:$0xff] }
  0x35   :  { %9009 = vmatprep.mubr.msk.f32.mxu0 %vm293_vm1, %v52_v30  ;;  %v107_v30 = vld [vmem:[%s13759_s0 + $0x278] sm:$0xff] }
  0x38   :  { %9010 = vmatmul.mubr.msk.f32.gmra.mrb[24].mxu0 %vm293_vm1, %v53_v31  ;;  %v108_v31 = vld [vmem:[%s13759_s0 + $0x280] sm:$0xff] }
  0x39   :  { %9012 = vmatprep.mubr.msk.f32.mxu0 %vm293_vm1, %v54_v32  ;;  %v109_v32 = vld [vmem:[%s13759_s0 + $0x288] sm:$0xff] }
  0x3c   :  { %9013 = vmatmul.mubr.msk.f32.gmra.mrb[26].mxu0 %vm293_vm1, %v55_v33  ;;  %v110_v33 = vld [vmem:[%s13759_s0 + $0x290] sm:$0xff] }
  0x3d   :  { %9015 = vmatprep.mubr.msk.f32.mxu0 %vm293_vm1, %v56_v34  ;;  %v111_v34 = vld [vmem:[%s13759_s0 + $0x298] sm:$0xff] }
  0x40   :  { %9016 = vmatmul.mubr.msk.f32.gmra.mrb[28].mxu0 %vm293_vm1, %v57_v35  ;;  %v112_v35 = vld [vmem:[%s13759_s0 + $0x2a0] sm:$0xff] }
  0x41   :  { %9018 = vmatprep.mubr.msk.f32.mxu0 %vm293_vm1, %v58_v36  ;;  %v113_v36 = vld [vmem:[%s13759_s0 + $0x2a8] sm:$0xff] }
  0x44   :  { %9019 = vmatmul.mubr.msk.f32.gmra.mrb[30].mxu0 %vm293_vm1, %v59_v37  ;;  %v114_v37 = vld [vmem:[%s13759_s0 + $0x2b0] sm:$0xff] }
  0x45   :  { %9021 = vmatprep.mubr.msk.f32.mxu0 %vm293_vm1, %v60_v38  ;;  %v115_v38 = vld [vmem:[%s13759_s0 + $0x2b8] sm:$0xff] }
  0x48   :  { %9022 = vmatmul.mubr.msk.f32.gmra.mrb[32].mxu0 %vm293_vm1, %v61_v39  ;;  %v116_v39 = vld [vmem:[%s13759_s0 + $0x2c0] sm:$0xff] }
  0x49   :  { %9024 = vmatprep.mubr.msk.f32.mxu0 %vm293_vm1, %v62_v40  ;;  %v117_v40 = vld [vmem:[%s13759_s0 + $0x2c8] sm:$0xff] }
  0x4c   :  { %9025 = vmatmul.mubr.msk.f32.gmra.mrb[34].mxu0 %vm293_vm1, %v63_v41  ;;  %v118_v41 = vld [vmem:[%s13759_s0 + $0x2d0] sm:$0xff] }
  0x4d   :  { %9027 = vmatprep.mubr.msk.f32.mxu0 %vm293_vm1, %v64_v42  ;;  %v119_v42 = vld [vmem:[%s13759_s0 + $0x2d8] sm:$0xff] }
  0x50   :  { %9028 = vmatmul.mubr.msk.f32.gmra.mrb[36].mxu0 %vm293_vm1, %v65_v45  ;;  %v122_v45 = vld [vmem:[%s13759_s0 + $0x2f0] sm:$0xff] }
  0x51   :  { %9030 = vmatprep.mubr.msk.f32.mxu0 %vm293_vm1, %v66_v47  ;;  %v124_v47 = vld [vmem:[%s13759_s0 + $0x300] sm:$0xff] }
  0x54   :  { %9031 = vmatmul.mubr.msk.f32.gmra.mrb[38].mxu0 %vm293_vm1, %v67_v48  ;;  %v125_v48 = vld [vmem:[%s13759_s0 + $0x308] sm:$0xff] }
  0x55   :  { %9033 = vmatprep.mubr.msk.f32.mxu0 %vm293_vm1, %v68_v49  ;;  %v126_v49 = vld [vmem:[%s13759_s0 + $0x310] sm:$0xff] }
  0x58   :  { %9034 = vmatmul.mubr.msk.f32.gmra.mrb[40].mxu0 %vm293_vm1, %v69_v50  ;;  %v127_v50 = vld [vmem:[%s13759_s0 + $0x318] sm:$0xff] }
  0x59   :  { %9036 = vmatprep.mubr.msk.f32.mxu0 %vm293_vm1, %v70_v51  ;;  %v128_v51 = vld [vmem:[%s13759_s0 + $0x320] sm:$0xff] }
  0x5c   :  { %9037 = vmatmul.mubr.msk.f32.gmra.mrb[42].mxu0 %vm293_vm1, %v71_v52  ;;  %v129_v52 = vld [vmem:[%s13759_s0 + $0x328] sm:$0xff] }
  0x5d   :  { %9039 = vmatprep.mubr.msk.f32.mxu0 %vm293_vm1, %v72_v53  ;;  %v130_v53 = vld [vmem:[%s13759_s0 + $0x330] sm:$0xff] }
  0x60   :  { %9040 = vmatmul.mubr.msk.f32.gmra.mrb[44].mxu0 %vm293_vm1, %v73_v56  ;;  %v133_v56 = vld [vmem:[%s13759_s0 + $0x348] sm:$0xff] }
  0x61   :  { %9042 = vmatprep.mubr.msk.f32.mxu0 %vm293_vm1, %v74_v58  ;;  %v135_v58 = vld [vmem:[%s13759_s0 + $0x358] sm:$0xff] }
  0x64   :  { %9043 = vmatmul.mubr.msk.f32.gmra.mrb[46].mxu0 %vm293_vm1, %v75_v62  ;;  %v137_v62 = vld [vmem:[%s13759_s0 + $0x368] sm:$0xff] }
  0x65   :  { %9045 = vmatprep.mubr.msk.f32.mxu0 %vm293_vm1, %v76_v63  ;;  %v138_v63 = vld [vmem:[%s13759_s0 + $0x370] sm:$0xff] }
  0x68   :  { %9046 = vmatmul.mubr.msk.f32.gmra.mrb[48].mxu0 %vm293_vm1, %v77_v0  ;;  %v10325_v0 = vld [vmem:[%s13761_s2] ss:$0 sm:$0xff] }
  0x69   :  { %9048 = vmatprep.mubr.msk.f32.mxu0 %vm293_vm1, %v78_v1 }
  0x6c   :  { %9049 = vmatmul.mubr.msk.f32.gmra.mrb[50].mxu0 %vm293_vm1, %v79_v2 }
  0x6d   :  { %9051 = vmatprep.mubr.msk.f32.mxu0 %vm293_vm1, %v80_v3 }
  0x70   :  { %9052 = vmatmul.mubr.msk.f32.gmra.mrb[52].mxu0 %vm293_vm1, %v81_v4 }
  0x71   :  { %9054 = vmatprep.mubr.msk.f32.mxu0 %vm293_vm1, %v82_v5  ;;  %v139_v5 = vld [vmem:[%s13759_s0 + $0x378] sm:$0xff] }
  0x74   :  { %9055 = vmatmul.mubr.msk.f32.gmra.mrb[54].mxu0 %vm293_vm1, %v83_v6  ;;  %v140_v6 = vld [vmem:[%s13759_s0 + $0x380] sm:$0xff] }
  0x75   :  { %9057 = vmatprep.mubr.msk.f32.mxu0 %vm293_vm1, %v84_v7 }
  0x78   :  { %9058 = vmatmul.mubr.msk.f32.gmra.mrb[56].mxu0 %vm293_vm1, %v85_v8 }
  0x79   :  { %9060 = vmatprep.mubr.msk.f32.mxu0 %vm293_vm1, %v86_v9 }
  0x7c   :  { %9061 = vmatmul.mubr.msk.f32.gmra.mrb[58].mxu0 %vm293_vm1, %v87_v10 }
  0x7d   :  { %9063 = vmatprep.mubr.msk.f32.mxu0 %vm293_vm1, %v88_v11 }
  0x80   :  { %9064 = vmatmul.mubr.msk.f32.gmra.mrb[60].mxu0 %vm293_vm1, %v89_v12 }
  0x81   :  { %9066 = vmatprep.mubr.msk.f32.mxu0 %vm293_vm1, %v90_v13  ;;  %v141_v13 = vld [vmem:[%s13759_s0 + $0x388] sm:$0xff] }
  0x84   :  { %9067 = vmatmul.mubr.msk.f32.gmra.mrb[62].mxu0 %vm293_vm1, %v91_v14 }
  0x85   :  { %9069 = vmatprep.mubr.msk.f32.mxu0 %vm293_vm1, %v92_v15  ;;  %v142_v15 = vld [vmem:[%s13759_s0 + $0x390] sm:$0xff] }
  0x88   :  { %9070 = vmatmul.mubr.msk.f32.gmra.mrb[64].mxu0 %vm293_vm1, %v93_v16 }
  0x89   :  { %9072 = vmatprep.mubr.msk.f32.mxu0 %vm293_vm1, %v94_v17 }
  0x8c   :  { %9073 = vmatmul.mubr.msk.f32.gmra.mrb[66].mxu0 %vm293_vm1, %v95_v18 }
  0x8d   :  { %9075 = vmatprep.mubr.msk.f32.mxu0 %vm293_vm1, %v96_v19 }
  0x90   :  { %9076 = vmatmul.mubr.msk.f32.gmra.mrb[68].mxu0 %vm293_vm1, %v97_v20 }
  0x91   :  { %9078 = vmatprep.mubr.msk.f32.mxu0 %vm293_vm1, %v98_v21  ;;  %v143_v21 = vld [vmem:[%s13759_s0 + $0x398] sm:$0xff] }
  0x94   :  { %9079 = vmatmul.mubr.msk.f32.gmra.mrb[70].mxu0 %vm293_vm1, %v99_v22 }
  0x95   :  { %9081 = vmatprep.mubr.msk.f32.mxu0 %vm293_vm1, %v100_v23  ;;  %v144_v23 = vld [vmem:[%s13759_s0 + $0x3a0] sm:$0xff] }
  0x98   :  { %9082 = vmatmul.mubr.msk.f32.gmra.mrb[72].mxu0 %vm293_vm1, %v101_v24 }
  0x99   :  { %9084 = vmatprep.mubr.msk.f32.mxu0 %vm293_vm1, %v102_v25 }
  0x9c   :  { %9085 = vmatmul.mubr.msk.f32.gmra.mrb[74].mxu0 %vm293_vm1, %v103_v26 }
  0x9d   :  { %9087 = vmatprep.mubr.msk.f32.mxu0 %vm293_vm1, %v104_v27 }
  0xa0   :  { %9088 = vmatmul.mubr.msk.f32.gmra.mrb[76].mxu0 %vm293_vm1, %v105_v28 }
  0xa1   :  { %9090 = vmatprep.mubr.msk.f32.mxu0 %vm293_vm1, %v106_v29  ;;  %v145_v29 = vld [vmem:[%s13759_s0 + $0x3a8] sm:$0xff] }
  0xa4   :  { %9091 = vmatmul.mubr.msk.f32.gmra.mrb[78].mxu0 %vm293_vm1, %v107_v30 }
  0xa5   :  { %9093 = vmatprep.mubr.msk.f32.mxu0 %vm293_vm1, %v108_v31  ;;  %v146_v31 = vld [vmem:[%s13759_s0 + $0x3b0] sm:$0xff] }
  0xa8   :  { %9094 = vmatmul.mubr.msk.f32.gmra.mrb[80].mxu0 %vm293_vm1, %v109_v32 }
  0xa9   :  { %9096 = vmatprep.mubr.msk.f32.mxu0 %vm293_vm1, %v110_v33 }
  0xac   :  { %9097 = vmatmul.mubr.msk.f32.gmra.mrb[82].mxu0 %vm293_vm1, %v111_v34 }
  0xad   :  { %9099 = vmatprep.mubr.msk.f32.mxu0 %vm293_vm1, %v112_v35 }
  0xb0   :  { %9100 = vmatmul.mubr.msk.f32.gmra.mrb[84].mxu0 %vm293_vm1, %v113_v36 }
  0xb1   :  { %9102 = vmatprep.mubr.msk.f32.mxu0 %vm293_vm1, %v114_v37  ;;  %v147_v37 = vld [vmem:[%s13759_s0 + $0x3b8] sm:$0xff] }
  0xb4   :  { %9103 = vmatmul.mubr.msk.f32.gmra.mrb[86].mxu0 %vm293_vm1, %v115_v38 }
  0xb5   :  { %9105 = vmatprep.mubr.msk.f32.mxu0 %vm293_vm1, %v116_v39  ;;  %v148_v39 = vld [vmem:[%s13759_s0 + $0x3c0] sm:$0xff] }
  0xb8   :  { %9106 = vmatmul.mubr.msk.f32.gmra.mrb[88].mxu0 %vm293_vm1, %v117_v40 }
  0xb9   :  { %9108 = vmatprep.mubr.msk.f32.mxu0 %vm293_vm1, %v118_v41 }
  0xbc   :  { %9109 = vmatmul.mubr.msk.f32.gmra.mrb[90].mxu0 %vm293_vm1, %v119_v42 }
  0xbd   :  { %9111 = vmatprep.mubr.msk.f32.mxu0 %vm293_vm1, %v120_v43 }
  0xc0   :  { %9112 = vmatmul.mubr.msk.f32.gmra.mrb[92].mxu0 %vm293_vm1, %v121_v44 }
  0xc1   :  { %9114 = vmatprep.mubr.msk.f32.mxu0 %vm293_vm1, %v122_v45  ;;  %v149_v45 = vld [vmem:[%s13759_s0 + $0x3c8] sm:$0xff] }
  0xc4   :  { %9115 = vmatmul.mubr.msk.f32.gmra.mrb[94].mxu0 %vm293_vm1, %v123_v46 }
  0xc5   :  { %9117 = vmatprep.mubr.msk.f32.mxu0 %vm293_vm1, %v124_v47  ;;  %v150_v47 = vld [vmem:[%s13759_s0 + $0x3d0] sm:$0xff] }
  0xc8   :  { %9118 = vmatmul.mubr.msk.f32.gmra.mrb[96].mxu0 %vm293_vm1, %v125_v48 }
  0xc9   :  { %9120 = vmatprep.mubr.msk.f32.mxu0 %vm293_vm1, %v126_v49 }
  0xcc   :  { %9121 = vmatmul.mubr.msk.f32.gmra.mrb[98].mxu0 %vm293_vm1, %v127_v50 }
  0xcd   :  { %9123 = vmatprep.mubr.msk.f32.mxu0 %vm293_vm1, %v128_v51 }
  0xd0   :  { %9124 = vmatmul.mubr.msk.f32.gmra.mrb[100].mxu0 %vm293_vm1, %v129_v52 }
  0xd1   :  { %9126 = vmatprep.mubr.msk.f32.mxu0 %vm293_vm1, %v130_v53  ;;  %v151_v53 = vld [vmem:[%s13759_s0 + $0x3d8] sm:$0xff] }
  0xd4   :  { %9127 = vmatmul.mubr.msk.f32.gmra.mrb[102].mxu0 %vm293_vm1, %v131_v54 }
  0xd5   :  { %9129 = vmatprep.mubr.msk.f32.mxu0 %vm293_vm1, %v132_v55  ;;  %v152_v55 = vld [vmem:[%s13759_s0 + $0x3e0] sm:$0xff] }
  0xd8   :  { %9130 = vmatmul.mubr.msk.f32.gmra.mrb[104].mxu0 %vm293_vm1, %v133_v56 }
  0xd9   :  { %9132 = vmatprep.mubr.msk.f32.mxu0 %vm293_vm1, %v134_v57 }
  0xdb   :  { %v10310_v60 = vpop.f32.mrb[0].mxu0 }
  0xdc   :  { %v10312_v61 = vpop.f32.mrb[1].mxu0  ;;  %9133 = vmatmul.mubr.msk.f32.gmra.mrb[106].mxu0 %vm293_vm1, %v135_v58 }
  0xdd   :  { %9135 = vmatprep.mubr.msk.f32.mxu0 %vm293_vm1, %v136_v59 }
  0xdf   :  { %v8978_v1 = vpop.f32.mrb[2].mxu0 }
  0xe0   :  { %v1148_v2 = vadd.f32 %v8978_v1, %v10325_v0  ;;  %v1142_v3 = vpop.f32.mrb[3].mxu0  ;;  %9136 = vmatmul.mubr.msk.f32.gmra.mrb[108].mxu0 %vm293_vm1, %v137_v62 }
  0xe1   :  { %v1143_v4 = vadd.f32 %v10325_v0, %v1142_v3  ;;  %9138 = vmatprep.mubr.msk.f32.mxu0 %vm293_vm1, %v138_v63  ;;  %v153_v63 = vld [vmem:[%s13759_s0 + $0x3e8] sm:$0xff] }
  0xe2   :  { %v2414_v9 = vmax.f32 %v1148_v2, 0.0  ;;  %v154_v2 = vld [vmem:[%s13759_s0 + $0x3f0] sm:$0xff] }
  0xe3   :  { %v2413_v7 = vmax.f32 %v1143_v4, 0.0  ;;  %v8981_v8 = vpop.f32.mrb[4].mxu0 }
  0xe4   :  { %v1158_v10 = vadd.f32 %v8981_v8, %v10325_v0  ;;  %v1152_v11 = vpop.f32.mrb[5].mxu0  ;;  %9139 = vmatmul.mubr.msk.f32.gmra.mrb[110].mxu0 %vm293_vm1, %v139_v5  ;;  %v155_v8 = vld [vmem:[%s13759_s0 + $0x3f8] sm:$0xff] }
  0xe5   :  { %v1153_v12 = vadd.f32 %v10325_v0, %v1152_v11  ;;  %9376 = vmatprep.mubr.msk.f32.mxu1 %vm2682_vm4, %v2413_v7  ;;  %9141 = vmatprep.mubr.msk.f32.mxu0 %vm293_vm1, %v140_v6 }
  0xe6   :  { %v2416_v14 = vmax.f32 %v1158_v10, 0.0  ;;  %9377 = vmatmul.mubr.msk.f32.vlgmr.msra.gmra.mrb[0].mxu1 %vm2682_vm4, %v2414_v9  ;;  %v156_v10 = vld [vmem:[%s13759_s0 + $0x400] sm:$0xff] }
  0xe7   :  { %v2415_v16 = vmax.f32 %v1153_v12, 0.0  ;;  %v8984_v17 = vpop.f32.mrb[6].mxu0 }
  0xe8   :  { %v1168_v18 = vadd.f32 %v8984_v17, %v10325_v0  ;;  %v1162_v19 = vpop.f32.mrb[7].mxu0  ;;  %9142 = vmatmul.mubr.msk.f32.gmra.mrb[112].mxu0 %vm293_vm1, %v141_v13 }
  0xe9   :  { %v1163_v20 = vadd.f32 %v10325_v0, %v1162_v19  ;;  %9379 = vmatprep.mubr.msk.f32.mxu1 %vm2682_vm4, %v2415_v16  ;;  %9144 = vmatprep.mubr.msk.f32.mxu0 %vm293_vm1, %v142_v15  ;;  %v157_v16 = vld [vmem:[%s13759_s0 + $0x408] sm:$0xff] }
  0xea   :  { %v2418_v22 = vmax.f32 %v1168_v18, 0.0  ;;  %9380 = vmatmul.mubr.msk.f32.gmra.mrb[2].mxu1 %vm2682_vm4, %v2416_v14  ;;  %v158_v18 = vld [vmem:[%s13759_s0 + $0x410] sm:$0xff] }
  0xeb   :  { %v2417_v24 = vmax.f32 %v1163_v20, 0.0  ;;  %v8987_v25 = vpop.f32.mrb[8].mxu0 }
  0xec   :  { %v1178_v26 = vadd.f32 %v8987_v25, %v10325_v0  ;;  %v1172_v27 = vpop.f32.mrb[9].mxu0  ;;  %9145 = vmatmul.mubr.msk.f32.gmra.mrb[114].mxu0 %vm293_vm1, %v143_v21 }
  0xed   :  { %v1173_v28 = vadd.f32 %v10325_v0, %v1172_v27  ;;  %9382 = vmatprep.mubr.msk.f32.mxu1 %vm2682_vm4, %v2417_v24  ;;  %9147 = vmatprep.mubr.msk.f32.mxu0 %vm293_vm1, %v144_v23  ;;  %v159_v24 = vld [vmem:[%s13759_s0 + $0x418] sm:$0xff] }
  0xee   :  { %v2420_v30 = vmax.f32 %v1178_v26, 0.0  ;;  %9383 = vmatmul.mubr.msk.f32.gmra.mrb[4].mxu1 %vm2682_vm4, %v2418_v22  ;;  %v160_v26 = vld [vmem:[%s13759_s0 + $0x420] sm:$0xff] }
  0xef   :  { %v2419_v32 = vmax.f32 %v1173_v28, 0.0  ;;  %v8990_v33 = vpop.f32.mrb[10].mxu0 }
  0xf0   :  { %v1188_v34 = vadd.f32 %v8990_v33, %v10325_v0  ;;  %v1182_v35 = vpop.f32.mrb[11].mxu0  ;;  %9148 = vmatmul.mubr.msk.f32.gmra.mrb[116].mxu0 %vm293_vm1, %v145_v29 }
  0xf1   :  { %v1183_v36 = vadd.f32 %v10325_v0, %v1182_v35  ;;  %9385 = vmatprep.mubr.msk.f32.mxu1 %vm2682_vm4, %v2419_v32  ;;  %9150 = vmatprep.mubr.msk.f32.mxu0 %vm293_vm1, %v146_v31  ;;  %v161_v32 = vld [vmem:[%s13759_s0 + $0x428] sm:$0xff] }
  0xf2   :  { %v2422_v38 = vmax.f32 %v1188_v34, 0.0  ;;  %9386 = vmatmul.mubr.msk.f32.gmra.mrb[6].mxu1 %vm2682_vm4, %v2420_v30  ;;  %v162_v34 = vld [vmem:[%s13759_s0 + $0x430] sm:$0xff] }
  0xf3   :  { %v2421_v40 = vmax.f32 %v1183_v36, 0.0  ;;  %v8993_v41 = vpop.f32.mrb[12].mxu0 }
  0xf4   :  { %v1198_v42 = vadd.f32 %v8993_v41, %v10325_v0  ;;  %v1192_v43 = vpop.f32.mrb[13].mxu0  ;;  %9151 = vmatmul.mubr.msk.f32.gmra.mrb[118].mxu0 %vm293_vm1, %v147_v37 }
  0xf5   :  { %v1193_v44 = vadd.f32 %v10325_v0, %v1192_v43  ;;  %9388 = vmatprep.mubr.msk.f32.mxu1 %vm2682_vm4, %v2421_v40  ;;  %9153 = vmatprep.mubr.msk.f32.mxu0 %vm293_vm1, %v148_v39  ;;  %v163_v40 = vld [vmem:[%s13759_s0 + $0x438] sm:$0xff] }
  0xf6   :  { %v2424_v46 = vmax.f32 %v1198_v42, 0.0  ;;  %9389 = vmatmul.mubr.msk.f32.gmra.mrb[8].mxu1 %vm2682_vm4, %v2422_v38  ;;  %v164_v42 = vld [vmem:[%s13759_s0 + $0x440] sm:$0xff] }
  0xf7   :  { %v2423_v48 = vmax.f32 %v1193_v44, 0.0  ;;  %v8996_v49 = vpop.f32.mrb[14].mxu0 }
  0xf8   :  { %v1208_v50 = vadd.f32 %v8996_v49, %v10325_v0  ;;  %v1202_v51 = vpop.f32.mrb[15].mxu0  ;;  %9154 = vmatmul.mubr.msk.f32.gmra.mrb[120].mxu0 %vm293_vm1, %v149_v45 }
  0xf9   :  { %v1203_v52 = vadd.f32 %v10325_v0, %v1202_v51  ;;  %9391 = vmatprep.mubr.msk.f32.mxu1 %vm2682_vm4, %v2423_v48  ;;  %9156 = vmatprep.mubr.msk.f32.mxu0 %vm293_vm1, %v150_v47  ;;  %v165_v48 = vld [vmem:[%s13759_s0 + $0x448] sm:$0xff] }
  0xfa   :  { %v2426_v54 = vmax.f32 %v1208_v50, 0.0  ;;  %9392 = vmatmul.mubr.msk.f32.gmra.mrb[10].mxu1 %vm2682_vm4, %v2424_v46  ;;  %v166_v50 = vld [vmem:[%s13759_s0 + $0x450] sm:$0xff] }
  0xfb   :  { %v2425_v56 = vmax.f32 %v1203_v52, 0.0  ;;  %v8999_v57 = vpop.f32.mrb[16].mxu0 }
  0xfc   :  { %v1218_v58 = vadd.f32 %v8999_v57, %v10325_v0  ;;  %v1212_v59 = vpop.f32.mrb[17].mxu0  ;;  %9157 = vmatmul.mubr.msk.f32.gmra.mrb[122].mxu0 %vm293_vm1, %v151_v53 }
  0xfd   :  { %v1213_v62 = vadd.f32 %v10325_v0, %v1212_v59  ;;  %9394 = vmatprep.mubr.msk.f32.mxu1 %vm2682_vm4, %v2425_v56  ;;  %9159 = vmatprep.mubr.msk.f32.mxu0 %vm293_vm1, %v152_v55  ;;  %v167_v56 = vld [vmem:[%s13759_s0 + $0x458] sm:$0xff] }
  0xfe   :  { %v2428_v1 = vmax.f32 %v1218_v58, 0.0  ;;  %9395 = vmatmul.mubr.msk.f32.gmra.mrb[12].mxu1 %vm2682_vm4, %v2426_v54  ;;  %v168_v58 = vld [vmem:[%s13759_s0 + $0x460] sm:$0xff] }
  0xff   :  { %v2427_v3 = vmax.f32 %v1213_v62, 0.0  ;;  %v9002_v4 = vpop.f32.mrb[18].mxu0 }
 0x100   :  { %v1228_v5 = vadd.f32 %v9002_v4, %v10325_v0  ;;  %v1222_v6 = vpop.f32.mrb[19].mxu0  ;;  %9160 = vmatmul.mubr.msk.f32.gmra.mrb[124].mxu0 %vm293_vm1, %v153_v63 }
 0x101   :  { %v1223_v7 = vadd.f32 %v10325_v0, %v1222_v6  ;;  %9397 = vmatprep.mubr.msk.f32.mxu1 %vm2682_vm4, %v2427_v3  ;;  %9162 = vmatprep.mubr.msk.f32.mxu0 %vm293_vm1, %v154_v2  ;;  %v169_v3 = vld [vmem:[%s13759_s0 + $0x468] sm:$0xff]  ;;  %v12_v6 = vstv %s13762_s6 }
 0x102   :  { %v2430_v9 = vmax.f32 %v1228_v5, 0.0  ;;  %9398 = vmatmul.mubr.msk.f32.gmra.mrb[14].mxu1 %vm2682_vm4, %v2428_v1  ;;  %v170_v5 = vld [vmem:[%s13759_s0 + $0x470] sm:$0xff]  ;;  %13 = vst [vmem:[#allocation2] sm:$0x1] %v12_v6 }
 0x103   :  { %v2429_v11 = vmax.f32 %v1223_v7, 0.0  ;;  %v9005_v12 = vpop.f32.mrb[20].mxu0 }
 0x104   :  { %v1238_v13 = vadd.f32 %v9005_v12, %v10325_v0  ;;  %v1232_v14 = vpop.f32.mrb[21].mxu0  ;;  %9163 = vmatmul.mubr.msk.f32.gmra.mrb[126].mxu0 %vm293_vm1, %v155_v8  ;;  %v171_v12 = vld [vmem:[%s13759_s0 + $0x478] sm:$0xff] }
 0x105   :  { %v1233_v15 = vadd.f32 %v10325_v0, %v1232_v14  ;;  %9400 = vmatprep.mubr.msk.f32.mxu1 %vm2682_vm4, %v2429_v11  ;;  %9165 = vmatprep.mubr.msk.f32.mxu0 %vm293_vm1, %v156_v10  ;;  %v172_v14 = vld [vmem:[%s13759_s0 + $0x480] sm:$0xff] }
 0x106   :  { %v2432_v17 = vmax.f32 %v1238_v13, 0.0  ;;  %9401 = vmatmul.mubr.msk.f32.gmra.mrb[16].mxu1 %vm2682_vm4, %v2430_v9 }
 0x107   :  { %v2431_v19 = vmax.f32 %v1233_v15, 0.0  ;;  %v9008_v20 = vpop.f32.mrb[22].mxu0 }
 0x108   :  { %v1248_v21 = vadd.f32 %v9008_v20, %v10325_v0  ;;  %v1242_v22 = vpop.f32.mrb[23].mxu0  ;;  %9166 = vmatmul.mubr.msk.f32.gmra.mrb[128].mxu0 %vm293_vm1, %v157_v16  ;;  %v173_v20 = vld [vmem:[%s13759_s0 + $0x488] sm:$0xff] }
 0x109   :  { %v1243_v23 = vadd.f32 %v10325_v0, %v1242_v22  ;;  %9403 = vmatprep.mubr.msk.f32.mxu1 %vm2682_vm4, %v2431_v19  ;;  %9168 = vmatprep.mubr.msk.f32.mxu0 %vm293_vm1, %v158_v18  ;;  %v174_v22 = vld [vmem:[%s13759_s0 + $0x490] sm:$0xff] }
 0x10a   :  { %v2434_v25 = vmax.f32 %v1248_v21, 0.0  ;;  %9404 = vmatmul.mubr.msk.f32.gmra.mrb[18].mxu1 %vm2682_vm4, %v2432_v17 }
 0x10b   :  { %v2433_v27 = vmax.f32 %v1243_v23, 0.0  ;;  %v9011_v28 = vpop.f32.mrb[24].mxu0  ;;  %v9805_v23 = vmov 0  }
 0x10c   :  { %v1258_v29 = vadd.f32 %v9011_v28, %v10325_v0  ;;  %v1252_v30 = vpop.f32.mrb[25].mxu0  ;;  %9169 = vmatmul.mubr.msk.f32.gmra.mrb[130].mxu0 %vm293_vm1, %v159_v24  ;;  %9789 = vset.pattern.permute.xlu0 %v9805_v23  ;;  %v8446_v24 = vld [vmem:[#allocation2] ss:$0 sm:$0xff] }
 0x10d   :  { %v1253_v31 = vadd.f32 %v10325_v0, %v1252_v30  ;;  %9406 = vmatprep.mubr.msk.f32.mxu1 %vm2682_vm4, %v2433_v27  ;;  %9171 = vmatprep.mubr.msk.f32.mxu0 %vm293_vm1, %v160_v26  ;;  %v175_v30 = vld [vmem:[%s13759_s0 + $0x498] sm:$0xff] }
 0x10e   :  { %v2436_v33 = vmax.f32 %v1258_v29, 0.0  ;;  %9407 = vmatmul.mubr.msk.f32.gmra.mrb[20].mxu1 %vm2682_vm4, %v2434_v25  ;;  %6090 = vperm.xlu0 %9789, %v8446_v24  }
 0x10f   :  { %v2435_v35 = vmax.f32 %v1253_v31, 0.0  ;;  %v9014_v36 = vpop.f32.mrb[26].mxu0 }
 0x110   :  { %v1268_v37 = vadd.f32 %v9014_v36, %v10325_v0  ;;  %v1262_v38 = vpop.f32.mrb[27].mxu0  ;;  %9172 = vmatmul.mubr.msk.f32.gmra.mrb[132].mxu0 %vm293_vm1, %v161_v32  ;;  %v176_v32 = vld [vmem:[%s13759_s0 + $0x4a0] sm:$0xff] }
 0x111   :  { %v1263_v39 = vadd.f32 %v10325_v0, %v1262_v38  ;;  %9409 = vmatprep.mubr.msk.f32.mxu1 %vm2682_vm4, %v2435_v35  ;;  %9174 = vmatprep.mubr.msk.f32.mxu0 %vm293_vm1, %v162_v34  ;;  %v177_v38 = vld [vmem:[%s13759_s0 + $0x4a8] sm:$0xff] }
 0x112   :  { %v2438_v41 = vmax.f32 %v1268_v37, 0.0  ;;  %9410 = vmatmul.mubr.msk.f32.gmra.mrb[22].mxu1 %vm2682_vm4, %v2436_v33 }
 0x113   :  { %v2437_v43 = vmax.f32 %v1263_v39, 0.0  ;;  %v9017_v44 = vpop.f32.mrb[28].mxu0 }
 0x114   :  { %v1278_v45 = vadd.f32 %v9017_v44, %v10325_v0  ;;  %v1272_v46 = vpop.f32.mrb[29].mxu0  ;;  %9175 = vmatmul.mubr.msk.f32.gmra.mrb[134].mxu0 %vm293_vm1, %v163_v40  ;;  %v178_v40 = vld [vmem:[%s13759_s0 + $0x4b0] sm:$0xff] }
 0x115   :  { %v1273_v47 = vadd.f32 %v10325_v0, %v1272_v46  ;;  %9412 = vmatprep.mubr.msk.f32.mxu1 %vm2682_vm4, %v2437_v43  ;;  %9177 = vmatprep.mubr.msk.f32.mxu0 %vm293_vm1, %v164_v42  ;;  %v179_v46 = vld [vmem:[%s13759_s0 + $0x4b8] sm:$0xff] }
 0x116   :  { %v2440_v49 = vmax.f32 %v1278_v45, 0.0  ;;  %9413 = vmatmul.mubr.msk.f32.gmra.mrb[24].mxu1 %vm2682_vm4, %v2438_v41 }
 0x117   :  { %v2439_v51 = vmax.f32 %v1273_v47, 0.0  ;;  %v9020_v52 = vpop.f32.mrb[30].mxu0 }
 0x118   :  { %v1288_v53 = vadd.f32 %v9020_v52, %v10325_v0  ;;  %v1282_v54 = vpop.f32.mrb[31].mxu0  ;;  %9178 = vmatmul.mubr.msk.f32.gmra.mrb[136].mxu0 %vm293_vm1, %v165_v48  ;;  %v180_v48 = vld [vmem:[%s13759_s0 + $0x4c0] sm:$0xff] }
 0x119   :  { %v1283_v55 = vadd.f32 %v10325_v0, %v1282_v54  ;;  %9415 = vmatprep.mubr.msk.f32.mxu1 %vm2682_vm4, %v2439_v51  ;;  %9180 = vmatprep.mubr.msk.f32.mxu0 %vm293_vm1, %v166_v50  ;;  %v181_v54 = vld [vmem:[%s13759_s0 + $0x4c8] sm:$0xff] }
 0x11a   :  { %v2442_v57 = vmax.f32 %v1288_v53, 0.0  ;;  %9416 = vmatmul.mubr.msk.f32.gmra.mrb[26].mxu1 %vm2682_vm4, %v2440_v49 }
 0x11b   :  { %v2441_v59 = vmax.f32 %v1283_v55, 0.0  ;;  %v9023_v62 = vpop.f32.mrb[32].mxu0 }
 0x11c   :  { %v1298_v63 = vadd.f32 %v9023_v62, %v10325_v0  ;;  %v1292_v1 = vpop.f32.mrb[33].mxu0  ;;  %9181 = vmatmul.mubr.msk.f32.gmra.mrb[138].mxu0 %vm293_vm1, %v167_v56  ;;  %v182_v56 = vld [vmem:[%s13759_s0 + $0x4d0] sm:$0xff] }
 0x11d   :  { %v1293_v2 = vadd.f32 %v10325_v0, %v1292_v1  ;;  %9418 = vmatprep.mubr.msk.f32.mxu1 %vm2682_vm4, %v2441_v59  ;;  %9183 = vmatprep.mubr.msk.f32.mxu0 %vm293_vm1, %v168_v58  ;;  %v183_v1 = vld [vmem:[%s13759_s0 + $0x4d8] sm:$0xff] }
 0x11e   :  { %v2444_v4 = vmax.f32 %v1298_v63, 0.0  ;;  %9419 = vmatmul.mubr.msk.f32.gmra.mrb[28].mxu1 %vm2682_vm4, %v2442_v57 }
 0x11f   :  { %v2443_v7 = vmax.f32 %v1293_v2, 0.0  ;;  %v9026_v8 = vpop.f32.mrb[34].mxu0 }
 0x120   :  { %v1308_v9 = vadd.f32 %v9026_v8, %v10325_v0  ;;  %v1302_v10 = vpop.f32.mrb[35].mxu0  ;;  %9184 = vmatmul.mubr.msk.f32.gmra.mrb[140].mxu0 %vm293_vm1, %v169_v3  ;;  %v184_v3 = vld [vmem:[%s13759_s0 + $0x4e0] sm:$0xff] }
 0x121   :  { %v1303_v11 = vadd.f32 %v10325_v0, %v1302_v10  ;;  %9421 = vmatprep.mubr.msk.f32.mxu1 %vm2682_vm4, %v2443_v7  ;;  %9186 = vmatprep.mubr.msk.f32.mxu0 %vm293_vm1, %v170_v5 }
 0x122   :  { %v2446_v13 = vmax.f32 %v1308_v9, 0.0  ;;  %9422 = vmatmul.mubr.msk.f32.gmra.mrb[30].mxu1 %vm2682_vm4, %v2444_v4  ;;  %v185_v9 = vld [vmem:[%s13759_s0 + $0x4e8] sm:$0xff] }
 0x123   :  { %v2445_v15 = vmax.f32 %v1303_v11, 0.0  ;;  %v9029_v16 = vpop.f32.mrb[36].mxu0  ;;  %v186_v11 = vld [vmem:[%s13759_s0 + $0x4f0] sm:$0xff] }
 0x124   :  { %v1318_v17 = vadd.f32 %v9029_v16, %v10325_v0  ;;  %v1312_v18 = vpop.f32.mrb[37].mxu0  ;;  %9187 = vmatmul.mubr.msk.f32.gmra.mrb[142].mxu0 %vm293_vm1, %v171_v12 }
 0x125   :  { %v1313_v19 = vadd.f32 %v10325_v0, %v1312_v18  ;;  %9424 = vmatprep.mubr.msk.f32.mxu1 %vm2682_vm4, %v2445_v15  ;;  %9189 = vmatprep.mubr.msk.f32.mxu0 %vm293_vm1, %v172_v14 }
 0x126   :  { %v2448_v21 = vmax.f32 %v1318_v17, 0.0  ;;  %9425 = vmatmul.mubr.msk.f32.gmra.mrb[32].mxu1 %vm2682_vm4, %v2446_v13  ;;  %v187_v17 = vld [vmem:[%s13759_s0 + $0x4f8] sm:$0xff] }
 0x127   :  { %v2447_v25 = vmax.f32 %v1313_v19, 0.0  ;;  %v9032_v26 = vpop.f32.mrb[38].mxu0  ;;  %v188_v19 = vld [vmem:[%s13759_s0 + $0x500] sm:$0xff] }
 0x128   :  { %v1328_v27 = vadd.f32 %v9032_v26, %v10325_v0  ;;  %v1322_v28 = vpop.f32.mrb[39].mxu0  ;;  %9190 = vmatmul.mubr.msk.f32.gmra.mrb[144].mxu0 %vm293_vm1, %v173_v20 }
 0x129   :  { %v1323_v29 = vadd.f32 %v10325_v0, %v1322_v28  ;;  %9427 = vmatprep.mubr.msk.f32.mxu1 %vm2682_vm4, %v2447_v25  ;;  %9192 = vmatprep.mubr.msk.f32.mxu0 %vm293_vm1, %v174_v22  ;;  %v189_v25 = vld [vmem:[%s13759_s0 + $0x508] sm:$0xff] }
 0x12a   :  { %v2450_v31 = vmax.f32 %v1328_v27, 0.0  ;;  %9428 = vmatmul.mubr.msk.f32.gmra.mrb[34].mxu1 %vm2682_vm4, %v2448_v21  ;;  %v190_v27 = vld [vmem:[%s13759_s0 + $0x510] sm:$0xff] }
 0x12b   :  { %v2449_v33 = vmax.f32 %v1323_v29, 0.0  ;;  %v9035_v34 = vpop.f32.mrb[40].mxu0 }
 0x12c   :  { %v1338_v35 = vadd.f32 %v9035_v34, %v10325_v0  ;;  %v1332_v36 = vpop.f32.mrb[41].mxu0  ;;  %9193 = vmatmul.mubr.msk.f32.gmra.mrb[146].mxu0 %vm293_vm1, %v175_v30 }
 0x12d   :  { %v1333_v37 = vadd.f32 %v10325_v0, %v1332_v36  ;;  %9430 = vmatprep.mubr.msk.f32.mxu1 %vm2682_vm4, %v2449_v33  ;;  %9195 = vmatprep.mubr.msk.f32.mxu0 %vm293_vm1, %v176_v32  ;;  %v191_v33 = vld [vmem:[%s13759_s0 + $0x518] sm:$0xff] }
 0x12e   :  { %v2452_v39 = vmax.f32 %v1338_v35, 0.0  ;;  %9431 = vmatmul.mubr.msk.f32.gmra.mrb[36].mxu1 %vm2682_vm4, %v2450_v31  ;;  %v192_v35 = vld [vmem:[%s13759_s0 + $0x520] sm:$0xff] }
 0x12f   :  { %v2451_v41 = vmax.f32 %v1333_v37, 0.0  ;;  %v9038_v42 = vpop.f32.mrb[42].mxu0 }
 0x130   :  { %v1348_v43 = vadd.f32 %v9038_v42, %v10325_v0  ;;  %v1342_v44 = vpop.f32.mrb[43].mxu0  ;;  %9196 = vmatmul.mubr.msk.f32.gmra.mrb[148].mxu0 %vm293_vm1, %v177_v38 }
 0x131   :  { %v1343_v45 = vadd.f32 %v10325_v0, %v1342_v44  ;;  %9433 = vmatprep.mubr.msk.f32.mxu1 %vm2682_vm4, %v2451_v41  ;;  %9198 = vmatprep.mubr.msk.f32.mxu0 %vm293_vm1, %v178_v40  ;;  %v193_v41 = vld [vmem:[%s13759_s0 + $0x528] sm:$0xff] }
 0x132   :  { %v2454_v47 = vmax.f32 %v1348_v43, 0.0  ;;  %9434 = vmatmul.mubr.msk.f32.gmra.mrb[38].mxu1 %vm2682_vm4, %v2452_v39  ;;  %v194_v43 = vld [vmem:[%s13759_s0 + $0x530] sm:$0xff] }
 0x133   :  { %v2453_v49 = vmax.f32 %v1343_v45, 0.0  ;;  %v9041_v50 = vpop.f32.mrb[44].mxu0 }
 0x134   :  { %v1358_v51 = vadd.f32 %v9041_v50, %v10325_v0  ;;  %v1352_v52 = vpop.f32.mrb[45].mxu0  ;;  %9199 = vmatmul.mubr.msk.f32.gmra.mrb[150].mxu0 %vm293_vm1, %v179_v46 }
 0x135   :  { %v1353_v53 = vadd.f32 %v10325_v0, %v1352_v52  ;;  %9436 = vmatprep.mubr.msk.f32.mxu1 %vm2682_vm4, %v2453_v49  ;;  %9201 = vmatprep.mubr.msk.f32.mxu0 %vm293_vm1, %v180_v48  ;;  %v195_v49 = vld [vmem:[%s13759_s0 + $0x538] sm:$0xff] }
 0x136   :  { %v2456_v55 = vmax.f32 %v1358_v51, 0.0  ;;  %9437 = vmatmul.mubr.msk.f32.gmra.mrb[40].mxu1 %vm2682_vm4, %v2454_v47  ;;  %v196_v51 = vld [vmem:[%s13759_s0 + $0x540] sm:$0xff] }
 0x137   :  { %v2455_v57 = vmax.f32 %v1353_v53, 0.0  ;;  %v9044_v58 = vpop.f32.mrb[46].mxu0 }
 0x138   :  { %v1368_v59 = vadd.f32 %v9044_v58, %v10325_v0  ;;  %v1362_v62 = vpop.f32.mrb[47].mxu0  ;;  %9202 = vmatmul.mubr.msk.f32.gmra.mrb[152].mxu0 %vm293_vm1, %v181_v54 }
 0x139   :  { %v1363_v63 = vadd.f32 %v10325_v0, %v1362_v62  ;;  %9439 = vmatprep.mubr.msk.f32.mxu1 %vm2682_vm4, %v2455_v57  ;;  %9204 = vmatprep.mubr.msk.f32.mxu0 %vm293_vm1, %v182_v56  ;;  %v197_v57 = vld [vmem:[%s13759_s0 + $0x548] sm:$0xff] }
 0x13a   :  { %v2458_v2 = vmax.f32 %v1368_v59, 0.0  ;;  %9440 = vmatmul.mubr.msk.f32.gmra.mrb[42].mxu1 %vm2682_vm4, %v2456_v55  ;;  %v198_v59 = vld [vmem:[%s13759_s0 + $0x550] sm:$0xff] }
 0x13b   :  { %v2457_v4 = vmax.f32 %v1363_v63, 0.0  ;;  %v9047_v5 = vpop.f32.mrb[48].mxu0 }
 0x13c   :  { %v1378_v6 = vadd.f32 %v9047_v5, %v10325_v0  ;;  %v1372_v7 = vpop.f32.mrb[49].mxu0  ;;  %9205 = vmatmul.mubr.msk.f32.gmra.mrb[154].mxu0 %vm293_vm1, %v183_v1 }
 0x13d   :  { %v1373_v8 = vadd.f32 %v10325_v0, %v1372_v7  ;;  %9442 = vmatprep.mubr.msk.f32.mxu1 %vm2682_vm4, %v2457_v4  ;;  %9207 = vmatprep.mubr.msk.f32.mxu0 %vm293_vm1, %v184_v3  ;;  %v199_v4 = vld [vmem:[%s13759_s0 + $0x558] sm:$0xff] }
 0x13e   :  { %v2460_v10 = vmax.f32 %v1378_v6, 0.0  ;;  %9443 = vmatmul.mubr.msk.f32.gmra.mrb[44].mxu1 %vm2682_vm4, %v2458_v2  ;;  %v200_v6 = vld [vmem:[%s13759_s0 + $0x560] sm:$0xff] }
 0x13f   :  { %v2459_v12 = vmax.f32 %v1373_v8, 0.0  ;;  %v9050_v13 = vpop.f32.mrb[50].mxu0 }
 0x140   :  { %v1388_v14 = vadd.f32 %v9050_v13, %v10325_v0  ;;  %v1382_v15 = vpop.f32.mrb[51].mxu0  ;;  %9208 = vmatmul.mubr.msk.f32.gmra.mrb[156].mxu0 %vm293_vm1, %v185_v9 }
 0x141   :  { %v1383_v16 = vadd.f32 %v10325_v0, %v1382_v15  ;;  %9445 = vmatprep.mubr.msk.f32.mxu1 %vm2682_vm4, %v2459_v12  ;;  %9210 = vmatprep.mubr.msk.f32.mxu0 %vm293_vm1, %v186_v11  ;;  %v201_v12 = vld [vmem:[%s13759_s0 + $0x568] sm:$0xff] }
 0x142   :  { %v2462_v18 = vmax.f32 %v1388_v14, 0.0  ;;  %9446 = vmatmul.mubr.msk.f32.gmra.mrb[46].mxu1 %vm2682_vm4, %v2460_v10  ;;  %v202_v14 = vld [vmem:[%s13759_s0 + $0x570] sm:$0xff] }
 0x143   :  { %v2461_v20 = vmax.f32 %v1383_v16, 0.0  ;;  %v9053_v21 = vpop.f32.mrb[52].mxu0 }
 0x144   :  { %v1398_v22 = vadd.f32 %v9053_v21, %v10325_v0  ;;  %v1392_v23 = vpop.f32.mrb[53].mxu0  ;;  %9211 = vmatmul.mubr.msk.f32.gmra.mrb[158].mxu0 %vm293_vm1, %v187_v17 }
 0x145   :  { %v1393_v24 = vadd.f32 %v10325_v0, %v1392_v23  ;;  %9448 = vmatprep.mubr.msk.f32.mxu1 %vm2682_vm4, %v2461_v20  ;;  %9213 = vmatprep.mubr.msk.f32.mxu0 %vm293_vm1, %v188_v19  ;;  %v203_v20 = vld [vmem:[%s13759_s0 + $0x578] sm:$0xff] }
 0x146   :  { %v2464_v26 = vmax.f32 %v1398_v22, 0.0  ;;  %9449 = vmatmul.mubr.msk.f32.gmra.mrb[48].mxu1 %vm2682_vm4, %v2462_v18  ;;  %v204_v22 = vld [vmem:[%s13759_s0 + $0x580] sm:$0xff] }
 0x147   :  { %v2463_v28 = vmax.f32 %v1393_v24, 0.0  ;;  %v9056_v29 = vpop.f32.mrb[54].mxu0 }
 0x148   :  { %v1408_v30 = vadd.f32 %v9056_v29, %v10325_v0  ;;  %v1402_v31 = vpop.f32.mrb[55].mxu0  ;;  %9214 = vmatmul.mubr.msk.f32.gmra.mrb[160].mxu0 %vm293_vm1, %v189_v25 }
 0x149   :  { %v1403_v32 = vadd.f32 %v10325_v0, %v1402_v31  ;;  %9451 = vmatprep.mubr.msk.f32.mxu1 %vm2682_vm4, %v2463_v28  ;;  %9216 = vmatprep.mubr.msk.f32.mxu0 %vm293_vm1, %v190_v27  ;;  %v205_v28 = vld [vmem:[%s13759_s0 + $0x588] sm:$0xff] }
 0x14a   :  { %v2466_v34 = vmax.f32 %v1408_v30, 0.0  ;;  %9452 = vmatmul.mubr.msk.f32.gmra.mrb[50].mxu1 %vm2682_vm4, %v2464_v26  ;;  %v206_v30 = vld [vmem:[%s13759_s0 + $0x590] sm:$0xff] }
 0x14b   :  { %v2465_v36 = vmax.f32 %v1403_v32, 0.0  ;;  %v9059_v37 = vpop.f32.mrb[56].mxu0 }
 0x14c   :  { %v1418_v38 = vadd.f32 %v9059_v37, %v10325_v0  ;;  %v1412_v39 = vpop.f32.mrb[57].mxu0  ;;  %9217 = vmatmul.mubr.msk.f32.gmra.mrb[162].mxu0 %vm293_vm1, %v191_v33 }
 0x14d   :  { %v1413_v40 = vadd.f32 %v10325_v0, %v1412_v39  ;;  %9454 = vmatprep.mubr.msk.f32.mxu1 %vm2682_vm4, %v2465_v36  ;;  %9219 = vmatprep.mubr.msk.f32.mxu0 %vm293_vm1, %v192_v35  ;;  %v207_v36 = vld [vmem:[%s13759_s0 + $0x598] sm:$0xff] }
 0x14e   :  { %v2468_v42 = vmax.f32 %v1418_v38, 0.0  ;;  %9455 = vmatmul.mubr.msk.f32.gmra.mrb[52].mxu1 %vm2682_vm4, %v2466_v34  ;;  %v208_v38 = vld [vmem:[%s13759_s0 + $0x5a0] sm:$0xff] }
 0x14f   :  { %v2467_v44 = vmax.f32 %v1413_v40, 0.0  ;;  %v9062_v45 = vpop.f32.mrb[58].mxu0 }
 0x150   :  { %v1428_v46 = vadd.f32 %v9062_v45, %v10325_v0  ;;  %v1422_v47 = vpop.f32.mrb[59].mxu0  ;;  %9220 = vmatmul.mubr.msk.f32.gmra.mrb[164].mxu0 %vm293_vm1, %v193_v41 }
 0x151   :  { %v1423_v48 = vadd.f32 %v10325_v0, %v1422_v47  ;;  %9457 = vmatprep.mubr.msk.f32.mxu1 %vm2682_vm4, %v2467_v44  ;;  %9222 = vmatprep.mubr.msk.f32.mxu0 %vm293_vm1, %v194_v43  ;;  %v209_v44 = vld [vmem:[%s13759_s0 + $0x5a8] sm:$0xff] }
 0x152   :  { %v2470_v50 = vmax.f32 %v1428_v46, 0.0  ;;  %9458 = vmatmul.mubr.msk.f32.gmra.mrb[54].mxu1 %vm2682_vm4, %v2468_v42  ;;  %v210_v46 = vld [vmem:[%s13759_s0 + $0x5b0] sm:$0xff] }
 0x153   :  { %v2469_v52 = vmax.f32 %v1423_v48, 0.0  ;;  %v9065_v53 = vpop.f32.mrb[60].mxu0 }
 0x154   :  { %v1438_v54 = vadd.f32 %v9065_v53, %v10325_v0  ;;  %v1432_v55 = vpop.f32.mrb[61].mxu0  ;;  %9223 = vmatmul.mubr.msk.f32.gmra.mrb[166].mxu0 %vm293_vm1, %v195_v49 }
 0x155   :  { %v1433_v56 = vadd.f32 %v10325_v0, %v1432_v55  ;;  %9460 = vmatprep.mubr.msk.f32.mxu1 %vm2682_vm4, %v2469_v52  ;;  %9225 = vmatprep.mubr.msk.f32.mxu0 %vm293_vm1, %v196_v51  ;;  %v211_v52 = vld [vmem:[%s13759_s0 + $0x5b8] sm:$0xff] }
 0x156   :  { %v2472_v58 = vmax.f32 %v1438_v54, 0.0  ;;  %9461 = vmatmul.mubr.msk.f32.gmra.mrb[56].mxu1 %vm2682_vm4, %v2470_v50  ;;  %v212_v54 = vld [vmem:[%s13759_s0 + $0x5c0] sm:$0xff] }
 0x157   :  { %v2471_v62 = vmax.f32 %v1433_v56, 0.0  ;;  %v9068_v63 = vpop.f32.mrb[62].mxu0 }
 0x158   :  { %v1448_v1 = vadd.f32 %v9068_v63, %v10325_v0  ;;  %v1442_v2 = vpop.f32.mrb[63].mxu0  ;;  %9226 = vmatmul.mubr.msk.f32.gmra.mrb[168].mxu0 %vm293_vm1, %v197_v57 }
 0x159   :  { %v1443_v3 = vadd.f32 %v10325_v0, %v1442_v2  ;;  %9463 = vmatprep.mubr.msk.f32.mxu1 %vm2682_vm4, %v2471_v62  ;;  %9228 = vmatprep.mubr.msk.f32.mxu0 %vm293_vm1, %v198_v59  ;;  %v213_v62 = vld [vmem:[%s13759_s0 + $0x5c8] sm:$0xff] }
 0x15a   :  { %v2474_v5 = vmax.f32 %v1448_v1, 0.0  ;;  %9464 = vmatmul.mubr.msk.f32.gmra.mrb[58].mxu1 %vm2682_vm4, %v2472_v58  ;;  %v214_v1 = vld [vmem:[%s13759_s0 + $0x5d0] sm:$0xff] }
 0x15b   :  { %v2473_v7 = vmax.f32 %v1443_v3, 0.0  ;;  %v9071_v8 = vpop.f32.mrb[64].mxu0 }
 0x15c   :  { %v1458_v9 = vadd.f32 %v9071_v8, %v10325_v0  ;;  %v1452_v10 = vpop.f32.mrb[65].mxu0  ;;  %9229 = vmatmul.mubr.msk.f32.gmra.mrb[170].mxu0 %vm293_vm1, %v199_v4 }
 0x15d   :  { %v1453_v11 = vadd.f32 %v10325_v0, %v1452_v10  ;;  %9466 = vmatprep.mubr.msk.f32.mxu1 %vm2682_vm4, %v2473_v7  ;;  %9231 = vmatprep.mubr.msk.f32.mxu0 %vm293_vm1, %v200_v6  ;;  %v215_v7 = vld [vmem:[%s13759_s0 + $0x5d8] sm:$0xff] }
 0x15e   :  { %v2476_v13 = vmax.f32 %v1458_v9, 0.0  ;;  %9467 = vmatmul.mubr.msk.f32.gmra.mrb[60].mxu1 %vm2682_vm4, %v2474_v5  ;;  %v216_v9 = vld [vmem:[%s13759_s0 + $0x5e0] sm:$0xff] }
 0x15f   :  { %v2475_v15 = vmax.f32 %v1453_v11, 0.0  ;;  %v9074_v16 = vpop.f32.mrb[66].mxu0 }
 0x160   :  { %v1468_v17 = vadd.f32 %v9074_v16, %v10325_v0  ;;  %v1462_v18 = vpop.f32.mrb[67].mxu0  ;;  %9232 = vmatmul.mubr.msk.f32.gmra.mrb[172].mxu0 %vm293_vm1, %v201_v12 }
 0x161   :  { %v1463_v19 = vadd.f32 %v10325_v0, %v1462_v18  ;;  %9469 = vmatprep.mubr.msk.f32.mxu1 %vm2682_vm4, %v2475_v15  ;;  %9234 = vmatprep.mubr.msk.f32.mxu0 %vm293_vm1, %v202_v14  ;;  %v217_v15 = vld [vmem:[%s13759_s0 + $0x5e8] sm:$0xff] }
 0x162   :  { %v2478_v21 = vmax.f32 %v1468_v17, 0.0  ;;  %9470 = vmatmul.mubr.msk.f32.gmra.mrb[62].mxu1 %vm2682_vm4, %v2476_v13  ;;  %v218_v17 = vld [vmem:[%s13759_s0 + $0x5f0] sm:$0xff] }
 0x163   :  { %v2477_v23 = vmax.f32 %v1463_v19, 0.0  ;;  %v9077_v24 = vpop.f32.mrb[68].mxu0 }
 0x164   :  { %v1478_v25 = vadd.f32 %v9077_v24, %v10325_v0  ;;  %v1472_v26 = vpop.f32.mrb[69].mxu0  ;;  %9235 = vmatmul.mubr.msk.f32.gmra.mrb[174].mxu0 %vm293_vm1, %v203_v20 }
 0x165   :  { %v1473_v27 = vadd.f32 %v10325_v0, %v1472_v26  ;;  %9472 = vmatprep.mubr.msk.f32.mxu1 %vm2682_vm4, %v2477_v23  ;;  %9237 = vmatprep.mubr.msk.f32.mxu0 %vm293_vm1, %v204_v22  ;;  %v219_v23 = vld [vmem:[%s13759_s0 + $0x5f8] sm:$0xff] }
 0x166   :  { %v2480_v29 = vmax.f32 %v1478_v25, 0.0  ;;  %9473 = vmatmul.mubr.msk.f32.gmra.mrb[64].mxu1 %vm2682_vm4, %v2478_v21  ;;  %v220_v25 = vld [vmem:[%s13759_s0 + $0x600] sm:$0xff] }
 0x167   :  { %v2479_v31 = vmax.f32 %v1473_v27, 0.0  ;;  %v9080_v32 = vpop.f32.mrb[70].mxu0 }
 0x168   :  { %v1488_v33 = vadd.f32 %v9080_v32, %v10325_v0  ;;  %v1482_v34 = vpop.f32.mrb[71].mxu0  ;;  %9238 = vmatmul.mubr.msk.f32.gmra.mrb[176].mxu0 %vm293_vm1, %v205_v28 }
 0x169   :  { %v1483_v35 = vadd.f32 %v10325_v0, %v1482_v34  ;;  %9475 = vmatprep.mubr.msk.f32.mxu1 %vm2682_vm4, %v2479_v31  ;;  %9240 = vmatprep.mubr.msk.f32.mxu0 %vm293_vm1, %v206_v30  ;;  %v221_v31 = vld [vmem:[%s13759_s0 + $0x608] sm:$0xff] }
 0x16a   :  { %v2482_v37 = vmax.f32 %v1488_v33, 0.0  ;;  %9476 = vmatmul.mubr.msk.f32.gmra.mrb[66].mxu1 %vm2682_vm4, %v2480_v29  ;;  %v222_v33 = vld [vmem:[%s13759_s0 + $0x610] sm:$0xff] }
 0x16b   :  { %v2481_v39 = vmax.f32 %v1483_v35, 0.0  ;;  %v9083_v40 = vpop.f32.mrb[72].mxu0 }
 0x16c   :  { %v1498_v41 = vadd.f32 %v9083_v40, %v10325_v0  ;;  %v1492_v42 = vpop.f32.mrb[73].mxu0  ;;  %9241 = vmatmul.mubr.msk.f32.gmra.mrb[178].mxu0 %vm293_vm1, %v207_v36 }
 0x16d   :  { %v1493_v43 = vadd.f32 %v10325_v0, %v1492_v42  ;;  %9478 = vmatprep.mubr.msk.f32.mxu1 %vm2682_vm4, %v2481_v39  ;;  %9243 = vmatprep.mubr.msk.f32.mxu0 %vm293_vm1, %v208_v38  ;;  %v223_v39 = vld [vmem:[%s13759_s0 + $0x618] sm:$0xff] }
 0x16e   :  { %v2484_v45 = vmax.f32 %v1498_v41, 0.0  ;;  %9479 = vmatmul.mubr.msk.f32.gmra.mrb[68].mxu1 %vm2682_vm4, %v2482_v37  ;;  %v224_v41 = vld [vmem:[%s13759_s0 + $0x620] sm:$0xff] }
 0x16f   :  { %v2483_v47 = vmax.f32 %v1493_v43, 0.0  ;;  %v9086_v48 = vpop.f32.mrb[74].mxu0 }
 0x170   :  { %v1508_v49 = vadd.f32 %v9086_v48, %v10325_v0  ;;  %v1502_v50 = vpop.f32.mrb[75].mxu0  ;;  %9244 = vmatmul.mubr.msk.f32.gmra.mrb[180].mxu0 %vm293_vm1, %v209_v44 }
 0x171   :  { %v1503_v51 = vadd.f32 %v10325_v0, %v1502_v50  ;;  %9481 = vmatprep.mubr.msk.f32.mxu1 %vm2682_vm4, %v2483_v47  ;;  %9246 = vmatprep.mubr.msk.f32.mxu0 %vm293_vm1, %v210_v46  ;;  %v225_v47 = vld [vmem:[%s13759_s0 + $0x628] sm:$0xff] }
 0x172   :  { %v2486_v53 = vmax.f32 %v1508_v49, 0.0  ;;  %9482 = vmatmul.mubr.msk.f32.gmra.mrb[70].mxu1 %vm2682_vm4, %v2484_v45  ;;  %v226_v49 = vld [vmem:[%s13759_s0 + $0x630] sm:$0xff] }
 0x173   :  { %v2485_v55 = vmax.f32 %v1503_v51, 0.0  ;;  %v9089_v56 = vpop.f32.mrb[76].mxu0 }
 0x174   :  { %v1518_v57 = vadd.f32 %v9089_v56, %v10325_v0  ;;  %v1512_v58 = vpop.f32.mrb[77].mxu0  ;;  %9247 = vmatmul.mubr.msk.f32.gmra.mrb[182].mxu0 %vm293_vm1, %v211_v52 }
 0x175   :  { %v1513_v59 = vadd.f32 %v10325_v0, %v1512_v58  ;;  %9484 = vmatprep.mubr.msk.f32.mxu1 %vm2682_vm4, %v2485_v55  ;;  %9249 = vmatprep.mubr.msk.f32.mxu0 %vm293_vm1, %v212_v54  ;;  %v227_v55 = vld [vmem:[%s13759_s0 + $0x638] sm:$0xff] }
 0x176   :  { %v2488_v63 = vmax.f32 %v1518_v57, 0.0  ;;  %9485 = vmatmul.mubr.msk.f32.gmra.mrb[72].mxu1 %vm2682_vm4, %v2486_v53  ;;  %v228_v57 = vld [vmem:[%s13759_s0 + $0x640] sm:$0xff] }
 0x177   :  { %v2487_v2 = vmax.f32 %v1513_v59, 0.0  ;;  %v9092_v3 = vpop.f32.mrb[78].mxu0 }
 0x178   :  { %v1528_v4 = vadd.f32 %v9092_v3, %v10325_v0  ;;  %v1522_v5 = vpop.f32.mrb[79].mxu0  ;;  %9250 = vmatmul.mubr.msk.f32.gmra.mrb[184].mxu0 %vm293_vm1, %v213_v62 }
 0x179   :  { %v1523_v6 = vadd.f32 %v10325_v0, %v1522_v5  ;;  %9487 = vmatprep.mubr.msk.f32.mxu1 %vm2682_vm4, %v2487_v2  ;;  %9252 = vmatprep.mubr.msk.f32.mxu0 %vm293_vm1, %v214_v1  ;;  %v229_v2 = vld [vmem:[%s13759_s0 + $0x648] sm:$0xff] }
 0x17a   :  { %v2490_v8 = vmax.f32 %v1528_v4, 0.0  ;;  %9488 = vmatmul.mubr.msk.f32.gmra.mrb[74].mxu1 %vm2682_vm4, %v2488_v63  ;;  %v230_v4 = vld [vmem:[%s13759_s0 + $0x650] sm:$0xff] }
 0x17b   :  { %v2489_v10 = vmax.f32 %v1523_v6, 0.0  ;;  %v9095_v11 = vpop.f32.mrb[80].mxu0 }
 0x17c   :  { %v1538_v12 = vadd.f32 %v9095_v11, %v10325_v0  ;;  %v1532_v13 = vpop.f32.mrb[81].mxu0  ;;  %9253 = vmatmul.mubr.msk.f32.gmra.mrb[186].mxu0 %vm293_vm1, %v215_v7 }
 0x17d   :  { %v1533_v14 = vadd.f32 %v10325_v0, %v1532_v13  ;;  %9490 = vmatprep.mubr.msk.f32.mxu1 %vm2682_vm4, %v2489_v10  ;;  %9255 = vmatprep.mubr.msk.f32.mxu0 %vm293_vm1, %v216_v9  ;;  %v231_v10 = vld [vmem:[%s13759_s0 + $0x658] sm:$0xff] }
 0x17e   :  { %v2492_v16 = vmax.f32 %v1538_v12, 0.0  ;;  %9491 = vmatmul.mubr.msk.f32.gmra.mrb[76].mxu1 %vm2682_vm4, %v2490_v8  ;;  %v232_v12 = vld [vmem:[%s13759_s0 + $0x660] sm:$0xff] }
 0x17f   :  { %v2491_v18 = vmax.f32 %v1533_v14, 0.0  ;;  %v9098_v19 = vpop.f32.mrb[82].mxu0 }
 0x180   :  { %v1548_v20 = vadd.f32 %v9098_v19, %v10325_v0  ;;  %v1542_v21 = vpop.f32.mrb[83].mxu0  ;;  %9256 = vmatmul.mubr.msk.f32.gmra.mrb[188].mxu0 %vm293_vm1, %v217_v15 }
 0x181   :  { %v1543_v22 = vadd.f32 %v10325_v0, %v1542_v21  ;;  %9493 = vmatprep.mubr.msk.f32.mxu1 %vm2682_vm4, %v2491_v18  ;;  %9258 = vmatprep.mubr.msk.f32.mxu0 %vm293_vm1, %v218_v17  ;;  %v233_v18 = vld [vmem:[%s13759_s0 + $0x668] sm:$0xff] }
 0x182   :  { %v2494_v24 = vmax.f32 %v1548_v20, 0.0  ;;  %9494 = vmatmul.mubr.msk.f32.gmra.mrb[78].mxu1 %vm2682_vm4, %v2492_v16  ;;  %v234_v20 = vld [vmem:[%s13759_s0 + $0x670] sm:$0xff] }
 0x183   :  { %v2493_v26 = vmax.f32 %v1543_v22, 0.0  ;;  %v9101_v27 = vpop.f32.mrb[84].mxu0 }
 0x184   :  { %v1558_v28 = vadd.f32 %v9101_v27, %v10325_v0  ;;  %v1552_v29 = vpop.f32.mrb[85].mxu0  ;;  %9259 = vmatmul.mubr.msk.f32.gmra.mrb[190].mxu0 %vm293_vm1, %v219_v23 }
 0x185   :  { %v1553_v30 = vadd.f32 %v10325_v0, %v1552_v29  ;;  %9496 = vmatprep.mubr.msk.f32.mxu1 %vm2682_vm4, %v2493_v26  ;;  %9261 = vmatprep.mubr.msk.f32.mxu0 %vm293_vm1, %v220_v25  ;;  %v10835_v0 = vld [vmem:[%s13761_s2] ss:$0 sm:$0xff]  ;;  %v235_v26 = vld [vmem:[%s13759_s0 + $0x678] sm:$0xff] }
 0x186   :  { %v2496_v32 = vmax.f32 %v1558_v28, 0.0  ;;  %9497 = vmatmul.mubr.msk.f32.gmra.mrb[80].mxu1 %vm2682_vm4, %v2494_v24  ;;  %v236_v28 = vld [vmem:[%s13759_s0 + $0x680] sm:$0xff] }
 0x187   :  { %v2495_v34 = vmax.f32 %v1553_v30, 0.0  ;;  %v9104_v35 = vpop.f32.mrb[86].mxu0 }
 0x188   :  { %v1568_v36 = vadd.f32 %v10835_v0, %v9104_v35  ;;  %v1562_v37 = vpop.f32.mrb[87].mxu0  ;;  %9262 = vmatmul.mubr.msk.f32.gmra.mrb[192].mxu0 %vm293_vm1, %v221_v31 }
 0x189   :  { %v1563_v38 = vadd.f32 %v10835_v0, %v1562_v37  ;;  %9499 = vmatprep.mubr.msk.f32.mxu1 %vm2682_vm4, %v2495_v34  ;;  %9264 = vmatprep.mubr.msk.f32.mxu0 %vm293_vm1, %v222_v33  ;;  %v237_v34 = vld [vmem:[%s13759_s0 + $0x688] sm:$0xff] }
 0x18a   :  { %v2498_v40 = vmax.f32 %v1568_v36, 0.0  ;;  %9500 = vmatmul.mubr.msk.f32.gmra.mrb[82].mxu1 %vm2682_vm4, %v2496_v32  ;;  %v238_v36 = vld [vmem:[%s13759_s0 + $0x690] sm:$0xff] }
 0x18b   :  { %v2497_v42 = vmax.f32 %v1563_v38, 0.0  ;;  %v9107_v43 = vpop.f32.mrb[88].mxu0 }
 0x18c   :  { %v1578_v44 = vadd.f32 %v10835_v0, %v9107_v43  ;;  %v1572_v45 = vpop.f32.mrb[89].mxu0  ;;  %9265 = vmatmul.mubr.msk.f32.gmra.mrb[194].mxu0 %vm293_vm1, %v223_v39 }
 0x18d   :  { %v1573_v46 = vadd.f32 %v10835_v0, %v1572_v45  ;;  %9502 = vmatprep.mubr.msk.f32.mxu1 %vm2682_vm4, %v2497_v42  ;;  %9267 = vmatprep.mubr.msk.f32.mxu0 %vm293_vm1, %v224_v41  ;;  %v239_v42 = vld [vmem:[%s13759_s0 + $0x698] sm:$0xff] }
 0x18e   :  { %v2500_v48 = vmax.f32 %v1578_v44, 0.0  ;;  %9503 = vmatmul.mubr.msk.f32.gmra.mrb[84].mxu1 %vm2682_vm4, %v2498_v40  ;;  %v240_v44 = vld [vmem:[%s13759_s0 + $0x6a0] sm:$0xff] }
 0x18f   :  { %v2499_v50 = vmax.f32 %v1573_v46, 0.0  ;;  %v9110_v51 = vpop.f32.mrb[90].mxu0 }
 0x190   :  { %v1588_v52 = vadd.f32 %v10835_v0, %v9110_v51  ;;  %v1582_v53 = vpop.f32.mrb[91].mxu0  ;;  %9268 = vmatmul.mubr.msk.f32.gmra.mrb[196].mxu0 %vm293_vm1, %v225_v47 }
 0x191   :  { %v1583_v54 = vadd.f32 %v10835_v0, %v1582_v53  ;;  %9505 = vmatprep.mubr.msk.f32.mxu1 %vm2682_vm4, %v2499_v50  ;;  %9270 = vmatprep.mubr.msk.f32.mxu0 %vm293_vm1, %v226_v49  ;;  %v241_v50 = vld [vmem:[%s13759_s0 + $0x6a8] sm:$0xff] }
 0x192   :  { %v2502_v56 = vmax.f32 %v1588_v52, 0.0  ;;  %9506 = vmatmul.mubr.msk.f32.gmra.mrb[86].mxu1 %vm2682_vm4, %v2500_v48  ;;  %v242_v52 = vld [vmem:[%s13759_s0 + $0x6b0] sm:$0xff] }
 0x193   :  { %v2501_v58 = vmax.f32 %v1583_v54, 0.0  ;;  %v9113_v59 = vpop.f32.mrb[92].mxu0 }
 0x194   :  { %v1598_v62 = vadd.f32 %v10835_v0, %v9113_v59  ;;  %v1592_v63 = vpop.f32.mrb[93].mxu0  ;;  %9271 = vmatmul.mubr.msk.f32.gmra.mrb[198].mxu0 %vm293_vm1, %v227_v55 }
 0x195   :  { %v1593_v1 = vadd.f32 %v10835_v0, %v1592_v63  ;;  %9508 = vmatprep.mubr.msk.f32.mxu1 %vm2682_vm4, %v2501_v58  ;;  %9273 = vmatprep.mubr.msk.f32.mxu0 %vm293_vm1, %v228_v57  ;;  %v243_v58 = vld [vmem:[%s13759_s0 + $0x6b8] sm:$0xff] }
 0x196   :  { %v2504_v3 = vmax.f32 %v1598_v62, 0.0  ;;  %9509 = vmatmul.mubr.msk.f32.gmra.mrb[88].mxu1 %vm2682_vm4, %v2502_v56  ;;  %v244_v62 = vld [vmem:[%s13759_s0 + $0x6c0] sm:$0xff] }
 0x197   :  { %v2503_v5 = vmax.f32 %v1593_v1, 0.0  ;;  %v9116_v6 = vpop.f32.mrb[94].mxu0 }
 0x198   :  { %v1608_v7 = vadd.f32 %v10835_v0, %v9116_v6  ;;  %v1602_v8 = vpop.f32.mrb[95].mxu0  ;;  %9274 = vmatmul.mubr.msk.f32.gmra.mrb[200].mxu0 %vm293_vm1, %v229_v2 }
 0x199   :  { %v1603_v9 = vadd.f32 %v10835_v0, %v1602_v8  ;;  %9511 = vmatprep.mubr.msk.f32.mxu1 %vm2682_vm4, %v2503_v5  ;;  %9276 = vmatprep.mubr.msk.f32.mxu0 %vm293_vm1, %v230_v4  ;;  %v245_v5 = vld [vmem:[%s13759_s0 + $0x6c8] sm:$0xff] }
 0x19a   :  { %v2506_v11 = vmax.f32 %v1608_v7, 0.0  ;;  %9512 = vmatmul.mubr.msk.f32.gmra.mrb[90].mxu1 %vm2682_vm4, %v2504_v3  ;;  %v246_v7 = vld [vmem:[%s13759_s0 + $0x6d0] sm:$0xff] }
 0x19b   :  { %v2505_v13 = vmax.f32 %v1603_v9, 0.0  ;;  %v9119_v14 = vpop.f32.mrb[96].mxu0 }
 0x19c   :  { %v1618_v15 = vadd.f32 %v10835_v0, %v9119_v14  ;;  %v1612_v16 = vpop.f32.mrb[97].mxu0  ;;  %9277 = vmatmul.mubr.msk.f32.gmra.mrb[202].mxu0 %vm293_vm1, %v231_v10  ;;  %v10984_v10 = vld [vmem:[%s13763_s4] ss:$0 sm:$0xff] }
 0x19d   :  { %v1613_v17 = vadd.f32 %v10835_v0, %v1612_v16  ;;  %9514 = vmatprep.mubr.msk.f32.mxu1 %vm2682_vm4, %v2505_v13  ;;  %9279 = vmatprep.mubr.msk.f32.mxu0 %vm293_vm1, %v232_v12 }
 0x19e   :  { %v2508_v19 = vmax.f32 %v1618_v15, 0.0  ;;  %9515 = vmatmul.mubr.msk.f32.gmra.mrb[92].mxu1 %vm2682_vm4, %v2506_v11  ;;  %v247_v15 = vld [vmem:[%s13759_s0 + $0x6d8] sm:$0xff] }
 0x19f   :  { %v2507_v21 = vmax.f32 %v1613_v17, 0.0  ;;  %v9122_v22 = vpop.f32.mrb[98].mxu0 }
 0x1a0   :  { %v1628_v23 = vadd.f32 %v10835_v0, %v9122_v22  ;;  %v1622_v24 = vpop.f32.mrb[99].mxu0  ;;  %9280 = vmatmul.mubr.msk.f32.gmra.mrb[204].mxu0 %vm293_vm1, %v233_v18 }
 0x1a1   :  { %v1623_v25 = vadd.f32 %v10835_v0, %v1622_v24  ;;  %9517 = vmatprep.mubr.msk.f32.mxu1 %vm2682_vm4, %v2507_v21  ;;  %9282 = vmatprep.mubr.msk.f32.mxu0 %vm293_vm1, %v234_v20 }
 0x1a2   :  { %v2510_v27 = vmax.f32 %v1628_v23, 0.0  ;;  %9518 = vmatmul.mubr.msk.f32.gmra.mrb[94].mxu1 %vm2682_vm4, %v2508_v19  ;;  %v248_v19 = vld [vmem:[%s13759_s0 + $0x6e0] sm:$0xff] }
 0x1a3   :  { %v2509_v29 = vmax.f32 %v1623_v25, 0.0  ;;  %v9125_v30 = vpop.f32.mrb[100].mxu0  ;;  %v11003_v23 = vld [vmem:[%s13764_s5] ss:$0 sm:$0xff] }
 0x1a4   :  { %v1638_v31 = vadd.f32 %v10835_v0, %v9125_v30  ;;  %v1632_v32 = vpop.f32.mrb[101].mxu0  ;;  %9283 = vmatmul.mubr.msk.f32.gmra.mrb[206].mxu0 %vm293_vm1, %v235_v26  ;;  %v249_v30 = vld [vmem:[%s13759_s0 + $0x6e8] sm:$0xff] }
 0x1a5   :  { %v1633_v33 = vadd.f32 %v10835_v0, %v1632_v32  ;;  %9520 = vmatprep.mubr.msk.f32.mxu1 %vm2682_vm4, %v2509_v29  ;;  %9285 = vmatprep.mubr.msk.f32.mxu0 %vm293_vm1, %v236_v28 }
 0x1a6   :  { %v2512_v35 = vmax.f32 %v1638_v31, 0.0  ;;  %9521 = vmatmul.mubr.msk.f32.gmra.mrb[96].mxu1 %vm2682_vm4, %v2510_v27 }
 0x1a7   :  { %v2511_v37 = vmax.f32 %v1633_v33, 0.0  ;;  %v9128_v38 = vpop.f32.mrb[102].mxu0 }
 0x1a8   :  { %v1648_v39 = vadd.f32 %v10835_v0, %v9128_v38  ;;  %v1642_v40 = vpop.f32.mrb[103].mxu0  ;;  %9286 = vmatmul.mubr.msk.f32.gmra.mrb[208].mxu0 %vm293_vm1, %v237_v34  ;;  %v250_v38 = vld [vmem:[%s13759_s0 + $0x6f0] sm:$0xff] }
 0x1a9   :  { %v1643_v41 = vadd.f32 %v10835_v0, %v1642_v40  ;;  %9523 = vmatprep.mubr.msk.f32.mxu1 %vm2682_vm4, %v2511_v37  ;;  %9288 = vmatprep.mubr.msk.f32.mxu0 %vm293_vm1, %v238_v36 }
 0x1aa   :  { %v2514_v43 = vmax.f32 %v1648_v39, 0.0  ;;  %9524 = vmatmul.mubr.msk.f32.gmra.mrb[98].mxu1 %vm2682_vm4, %v2512_v35 }
 0x1ab   :  { %v2513_v45 = vmax.f32 %v1643_v41, 0.0  ;;  %v9131_v46 = vpop.f32.mrb[104].mxu0 }
 0x1ac   :  { %v1658_v47 = vadd.f32 %v10835_v0, %v9131_v46  ;;  %v1652_v48 = vpop.f32.mrb[105].mxu0  ;;  %9289 = vmatmul.mubr.msk.f32.gmra.mrb[210].mxu0 %vm293_vm1, %v239_v42 }
 0x1ad   :  { %v1653_v49 = vadd.f32 %v10835_v0, %v1652_v48  ;;  %9526 = vmatprep.mubr.msk.f32.mxu1 %vm2682_vm4, %v2513_v45  ;;  %9291 = vmatprep.mubr.msk.f32.mxu0 %vm293_vm1, %v240_v44 }
 0x1ae   :  { %v2516_v51 = vmax.f32 %v1658_v47, 0.0  ;;  %9527 = vmatmul.mubr.msk.f32.gmra.mrb[100].mxu1 %vm2682_vm4, %v2514_v43  ;;  %v251_v47 = vld [vmem:[%s13759_s0 + $0x6f8] sm:$0xff] }
 0x1af   :  { %v2515_v53 = vmax.f32 %v1653_v49, 0.0  ;;  %v9134_v54 = vpop.f32.mrb[106].mxu0 }
 0x1b0   :  { %v1668_v55 = vadd.f32 %v10835_v0, %v9134_v54  ;;  %v1662_v56 = vpop.f32.mrb[107].mxu0  ;;  %9292 = vmatmul.mubr.msk.f32.gmra.mrb[212].mxu0 %vm293_vm1, %v241_v50 }
 0x1b1   :  { %v1663_v57 = vadd.f32 %v10835_v0, %v1662_v56  ;;  %9529 = vmatprep.mubr.msk.f32.mxu1 %vm2682_vm4, %v2515_v53  ;;  %9294 = vmatprep.mubr.msk.f32.mxu0 %vm293_vm1, %v242_v52 }
 0x1b2   :  { %v2518_v59 = vmax.f32 %v1668_v55, 0.0  ;;  %9530 = vmatmul.mubr.msk.f32.gmra.mrb[102].mxu1 %vm2682_vm4, %v2516_v51 }
 0x1b3   :  { %v2517_v63 = vmax.f32 %v1663_v57, 0.0  ;;  %v9137_v1 = vpop.f32.mrb[108].mxu0 }
 0x1b4   :  { %v1678_v2 = vadd.f32 %v10835_v0, %v9137_v1  ;;  %v1672_v3 = vpop.f32.mrb[109].mxu0  ;;  %9295 = vmatmul.mubr.msk.f32.gmra.mrb[214].mxu0 %vm293_vm1, %v243_v58 }
 0x1b5   :  { %v1673_v4 = vadd.f32 %v10835_v0, %v1672_v3  ;;  %9532 = vmatprep.mubr.msk.f32.mxu1 %vm2682_vm4, %v2517_v63  ;;  %9297 = vmatprep.mubr.msk.f32.mxu0 %vm293_vm1, %v244_v62 }
 0x1b6   :  { %v2520_v6 = vmax.f32 %v1678_v2, 0.0  ;;  %9533 = vmatmul.mubr.msk.f32.gmra.mrb[104].mxu1 %vm2682_vm4, %v2518_v59  ;;  %v252_v59 = vld [vmem:[%s13759_s0 + $0x700] sm:$0xff] }
 0x1b7   :  { %v2519_v8 = vmax.f32 %v1673_v4, 0.0  ;;  %v9140_v9 = vpop.f32.mrb[110].mxu0  ;;  %v253_v4 = vld [vmem:[%s13759_s0 + $0x708] sm:$0xff] }
 0x1b8   :  { %v1688_v11 = vadd.f32 %v10835_v0, %v9140_v9  ;;  %v1682_v12 = vpop.f32.mrb[111].mxu0  ;;  %9298 = vmatmul.mubr.msk.f32.gmra.mrb[216].mxu0 %vm293_vm1, %v245_v5 }
 0x1b9   :  { %v1683_v13 = vadd.f32 %v10835_v0, %v1682_v12  ;;  %v9378_v14 = vpop.f32.mrb[0].mxu1  ;;  %9535 = vmatprep.mubr.msk.f32.mxu1 %vm2682_vm4, %v2519_v8  ;;  %9300 = vmatprep.mubr.msk.f32.mxu0 %vm293_vm1, %v246_v7 }
 0x1ba   :  { %v2522_v16 = vmax.f32 %v1688_v11, 0.0  ;;  %v3533_v17 = vadd.f32 %v9378_v14, %v10984_v10  ;;  %v3527_v18 = vpop.f32.mrb[1].mxu1  ;;  %9536 = vmatmul.mubr.msk.f32.gmra.mrb[106].mxu1 %vm2682_vm4, %v2520_v6 }
 0x1bb   :  { %v2521_v20 = vmax.f32 %v1683_v13, 0.0  ;;  %v3528_v21 = vadd.f32 %v10984_v10, %v3527_v18  ;;  %v9143_v22 = vpop.f32.mrb[112].mxu0 }
 0x1bc   :  { %v4799_v24 = vmax.f32 %v3533_v17, 0.0  ;;  %v1698_v25 = vadd.f32 %v10835_v0, %v9143_v22  ;;  %v1692_v26 = vpop.f32.mrb[113].mxu0  ;;  %9301 = vmatmul.mubr.msk.f32.gmra.mrb[218].mxu0 %vm293_vm1, %v247_v15  ;;  %v254_v17 = vld [vmem:[%s13759_s0 + $0x710] sm:$0xff] }
 0x1bd   :  { %v4798_v27 = vmax.f32 %v3528_v21, 0.0  ;;  %v1693_v28 = vadd.f32 %v10835_v0, %v1692_v26  ;;  %v9381_v29 = vpop.f32.mrb[2].mxu1  ;;  %9538 = vmatprep.mubr.msk.f32.mxu1 %vm2682_vm4, %v2521_v20  ;;  %9303 = vmatprep.mubr.msk.f32.mxu0 %vm293_vm1, %v248_v19 }
 0x1be   :  { %v2524_v31 = vmax.f32 %v1698_v25, 0.0  ;;  %v3543_v32 = vadd.f32 %v9381_v29, %v10984_v10  ;;  %v3537_v33 = vpop.f32.mrb[3].mxu1  ;;  %9539 = vmatmul.mubr.msk.f32.gmra.mrb[108].mxu1 %vm2682_vm4, %v2522_v16  ;;  %v5062_v34 = vmul.f32 %v11003_v23, %v4799_v24  ;;  %v255_v24 = vld [vmem:[%s13759_s0 + $0x718] sm:$0xff] }
 0x1bf   :  { %v2523_v35 = vmax.f32 %v1693_v28, 0.0  ;;  %v3538_v36 = vadd.f32 %v10984_v10, %v3537_v33  ;;  %v9146_v37 = vpop.f32.mrb[114].mxu0  ;;  %v5061_v43 = vmul.f32 %v11003_v23, %v4798_v27 }
 0x1c0   :  { %v4801_v39 = vmax.f32 %v3543_v32, 0.0  ;;  %v1708_v40 = vadd.f32 %v10835_v0, %v9146_v37  ;;  %v1702_v41 = vpop.f32.mrb[115].mxu0  ;;  %9304 = vmatmul.mubr.msk.f32.gmra.mrb[220].mxu0 %vm293_vm1, %v249_v30  ;;  %v5324_v42 = vsel %vm2682_vm4, %v5062_v34, 0.0 }
 0x1c1   :  { %v4800_v44 = vmax.f32 %v3538_v36, 0.0  ;;  %v1703_v45 = vadd.f32 %v10835_v0, %v1702_v41  ;;  %9541 = vmatprep.mubr.msk.f32.mxu1 %vm2682_vm4, %v2523_v35  ;;  %5325 = vadd.xlane.f32.xlu1 %v5324_v42  ;;  %v9384_v46 = vpop.f32.mrb[4].mxu1  ;;  %v5321_v58 = vsel %vm2682_vm4, %v5061_v43, 0.0  ;;  %v256_v36 = vld [vmem:[%s13759_s0 + $0x720] sm:$0xff]  ;;  %v257_v42 = vld [vmem:[%s13759_s0 + $0x728] sm:$0xff] }
 0x1c2   :  { %v2526_v48 = vmax.f32 %v1708_v40, 0.0  ;;  %v3553_v49 = vadd.f32 %v9384_v46, %v10984_v10  ;;  %v3547_v50 = vpop.f32.mrb[5].mxu1  ;;  %9542 = vmatmul.mubr.msk.f32.gmra.mrb[110].mxu1 %vm2682_vm4, %v2524_v31  ;;  %9306 = vmatprep.mubr.msk.f32.mxu0 %vm293_vm1, %v250_v38  ;;  %v5064_v62 = vmul.f32 %v11003_v23, %v4801_v39 }
 0x1c3   :  { %v2525_v51 = vmax.f32 %v1703_v45, 0.0  ;;  %v3548_v52 = vadd.f32 %v10984_v10, %v3547_v50  ;;  %v9149_v53 = vpop.f32.mrb[116].mxu0  ;;  %v5063_v54 = vmul.f32 %v11003_v23, %v4800_v44 }
 0x1c4   :  { %v4803_v55 = vmax.f32 %v3553_v49, 0.0  ;;  %v1718_v56 = vadd.f32 %v10835_v0, %v9149_v53  ;;  %v1712_v57 = vpop.f32.mrb[117].mxu0  ;;  %9307 = vmatmul.mubr.msk.f32.gmra.mrb[222].mxu0 %vm293_vm1, %v251_v47  ;;  %v5330_v16 = vsel %vm2682_vm4, %v5064_v62, 0.0  ;;  %v259_v62 = vld [vmem:[%s13759_s0 + $0x738] sm:$0xff] }
 0x1c5   :  { %v4802_v63 = vmax.f32 %v3548_v52, 0.0  ;;  %v1713_v1 = vadd.f32 %v10835_v0, %v1712_v57  ;;  %v9387_v2 = vpop.f32.mrb[6].mxu1  ;;  %9544 = vmatprep.mubr.msk.f32.mxu1 %vm2682_vm4, %v2525_v51  ;;  %5322 = vadd.xlane.f32.xlu1 %v5321_v58  ;;  %v5327_v3 = vsel %vm2682_vm4, %v5063_v54, 0.0  ;;  %v258_v54 = vld [vmem:[%s13759_s0 + $0x730] sm:$0xff] }
 0x1c6   :  { %v2528_v5 = vmax.f32 %v1718_v56, 0.0  ;;  %v3563_v6 = vadd.f32 %v9387_v2, %v10984_v10  ;;  %v3557_v7 = vpop.f32.mrb[7].mxu1  ;;  %9545 = vmatmul.mubr.msk.f32.gmra.mrb[112].mxu1 %vm2682_vm4, %v2526_v48  ;;  %5328 = vadd.xlane.f32.xlu0 %v5327_v3  ;;  %v5066_v18 = vmul.f32 %v11003_v23, %v4803_v55 }
 0x1c7   :  { %v2527_v8 = vmax.f32 %v1713_v1, 0.0  ;;  %v3558_v9 = vadd.f32 %v10984_v10, %v3557_v7  ;;  %v9152_v11 = vpop.f32.mrb[118].mxu0  ;;  %9309 = vmatprep.mubr.msk.f32.mxu0 %vm293_vm1, %v252_v59  ;;  %v5065_v12 = vmul.f32 %v11003_v23, %v4802_v63 }
 0x1c8   :  { %v4805_v13 = vmax.f32 %v3563_v6, 0.0  ;;  %v1728_v14 = vadd.f32 %v10835_v0, %v9152_v11  ;;  %v1722_v15 = vpop.f32.mrb[119].mxu0  ;;  %9310 = vmatmul.mubr.msk.f32.gmra.mrb[224].mxu0 %vm293_vm1, %v253_v4  ;;  %v5336_v35 = vsel %vm2682_vm4, %v5066_v18, 0.0  ;;  %v261_v18 = vld [vmem:[%s13759_s0 + $0x748] sm:$0xff] }
 0x1c9   :  { %v4804_v19 = vmax.f32 %v3558_v9, 0.0  ;;  %v1723_v20 = vadd.f32 %v10835_v0, %v1722_v15  ;;  %v9390_v21 = vpop.f32.mrb[8].mxu1  ;;  %9547 = vmatprep.mubr.msk.f32.mxu1 %vm2682_vm4, %v2527_v8  ;;  %5331 = vadd.xlane.f32.xlu1 %v5330_v16  ;;  %v5333_v22 = vsel %vm2682_vm4, %v5065_v12, 0.0  ;;  %v260_v12 = vld [vmem:[%s13759_s0 + $0x740] sm:$0xff] }
 0x1ca   :  { %v2530_v25 = vmax.f32 %v1728_v14, 0.0  ;;  %v3573_v26 = vadd.f32 %v9390_v21, %v10984_v10  ;;  %v3567_v27 = vpop.f32.mrb[9].mxu1  ;;  %9548 = vmatmul.mubr.msk.f32.gmra.mrb[114].mxu1 %vm2682_vm4, %v2528_v5  ;;  %5334 = vadd.xlane.f32.xlu0 %v5333_v22  ;;  %v5068_v37 = vmul.f32 %v11003_v23, %v4805_v13 }
 0x1cb   :  { %v2529_v28 = vmax.f32 %v1723_v20, 0.0  ;;  %v3568_v29 = vadd.f32 %v10984_v10, %v3567_v27  ;;  %v9155_v30 = vpop.f32.mrb[120].mxu0  ;;  %9312 = vmatprep.mubr.msk.f32.mxu0 %vm293_vm1, %v254_v17  ;;  %v5067_v31 = vmul.f32 %v11003_v23, %v4804_v19 }
 0x1cc   :  { %v4807_v32 = vmax.f32 %v3573_v26, 0.0  ;;  %v1738_v33 = vadd.f32 %v10835_v0, %v9155_v30  ;;  %v1732_v34 = vpop.f32.mrb[121].mxu0  ;;  %9313 = vmatmul.mubr.msk.f32.gmra.mrb[226].mxu0 %vm293_vm1, %v255_v24  ;;  %v5342_v53 = vsel %vm2682_vm4, %v5068_v37, 0.0  ;;  %v263_v37 = vld [vmem:[%s13759_s0 + $0x758] sm:$0xff] }
 0x1cd   :  { %v4806_v38 = vmax.f32 %v3568_v29, 0.0  ;;  %v1733_v39 = vadd.f32 %v10835_v0, %v1732_v34  ;;  %v9393_v40 = vpop.f32.mrb[10].mxu1  ;;  %9550 = vmatprep.mubr.msk.f32.mxu1 %vm2682_vm4, %v2529_v28  ;;  %5337 = vadd.xlane.f32.xlu1 %v5336_v35  ;;  %v5339_v41 = vsel %vm2682_vm4, %v5067_v31, 0.0  ;;  %v262_v31 = vld [vmem:[%s13759_s0 + $0x750] sm:$0xff] }
 0x1ce   :  { %v2532_v43 = vmax.f32 %v1738_v33, 0.0  ;;  %v3583_v44 = vadd.f32 %v9393_v40, %v10984_v10  ;;  %v3577_v45 = vpop.f32.mrb[11].mxu1  ;;  %9551 = vmatmul.mubr.msk.f32.gmra.mrb[116].mxu1 %vm2682_vm4, %v2530_v25  ;;  %5340 = vadd.xlane.f32.xlu0 %v5339_v41  ;;  %v5070_v55 = vmul.f32 %v11003_v23, %v4807_v32 }
 0x1cf   :  { %v2531_v46 = vmax.f32 %v1733_v39, 0.0  ;;  %v3578_v47 = vadd.f32 %v10984_v10, %v3577_v45  ;;  %v9158_v48 = vpop.f32.mrb[122].mxu0  ;;  %9315 = vmatprep.mubr.msk.f32.mxu0 %vm293_vm1, %v256_v36  ;;  %v5069_v49 = vmul.f32 %v11003_v23, %v4806_v38 }
 0x1d0   :  { %v4809_v50 = vmax.f32 %v3583_v44, 0.0  ;;  %v1748_v51 = vadd.f32 %v10835_v0, %v9158_v48  ;;  %v1742_v52 = vpop.f32.mrb[123].mxu0  ;;  %9316 = vmatmul.mubr.msk.f32.gmra.mrb[228].mxu0 %vm293_vm1, %v257_v42  ;;  %v5348_v11 = vsel %vm2682_vm4, %v5070_v55, 0.0  ;;  %v265_v55 = vld [vmem:[%s13759_s0 + $0x768] sm:$0xff] }
 0x1d1   :  { %v4808_v56 = vmax.f32 %v3578_v47, 0.0  ;;  %v1743_v57 = vadd.f32 %v10835_v0, %v1742_v52  ;;  %v9396_v58 = vpop.f32.mrb[12].mxu1  ;;  %9553 = vmatprep.mubr.msk.f32.mxu1 %vm2682_vm4, %v2531_v46  ;;  %5343 = vadd.xlane.f32.xlu1 %v5342_v53  ;;  %v5345_v59 = vsel %vm2682_vm4, %v5069_v49, 0.0  ;;  %v264_v49 = vld [vmem:[%s13759_s0 + $0x760] sm:$0xff] }
 0x1d2   :  { %v2534_v63 = vmax.f32 %v1748_v51, 0.0  ;;  %v3593_v1 = vadd.f32 %v9396_v58, %v10984_v10  ;;  %v3587_v2 = vpop.f32.mrb[13].mxu1  ;;  %9554 = vmatmul.mubr.msk.f32.gmra.mrb[118].mxu1 %vm2682_vm4, %v2532_v43  ;;  %5346 = vadd.xlane.f32.xlu0 %v5345_v59  ;;  %v5072_v13 = vmul.f32 %v11003_v23, %v4809_v50 }
 0x1d3   :  { %v2533_v3 = vmax.f32 %v1743_v57, 0.0  ;;  %v3588_v4 = vadd.f32 %v10984_v10, %v3587_v2  ;;  %v9161_v5 = vpop.f32.mrb[124].mxu0  ;;  %9318 = vmatprep.mubr.msk.f32.mxu0 %vm293_vm1, %v258_v54  ;;  %v5071_v6 = vmul.f32 %v11003_v23, %v4808_v56 }
 0x1d4   :  { %v4811_v7 = vmax.f32 %v3593_v1, 0.0  ;;  %v1758_v8 = vadd.f32 %v10835_v0, %v9161_v5  ;;  %v1752_v9 = vpop.f32.mrb[125].mxu0  ;;  %9319 = vmatmul.mubr.msk.f32.gmra.mrb[230].mxu0 %vm293_vm1, %v259_v62  ;;  %v5354_v30 = vsel %vm2682_vm4, %v5072_v13, 0.0  ;;  %v267_v13 = vld [vmem:[%s13759_s0 + $0x778] sm:$0xff] }
 0x1d5   :  { %v4810_v14 = vmax.f32 %v3588_v4, 0.0  ;;  %v1753_v15 = vadd.f32 %v10835_v0, %v1752_v9  ;;  %v9399_v16 = vpop.f32.mrb[14].mxu1  ;;  %9556 = vmatprep.mubr.msk.f32.mxu1 %vm2682_vm4, %v2533_v3  ;;  %5349 = vadd.xlane.f32.xlu1 %v5348_v11  ;;  %v5351_v17 = vsel %vm2682_vm4, %v5071_v6, 0.0  ;;  %v266_v6 = vld [vmem:[%s13759_s0 + $0x770] sm:$0xff] }
 0x1d6   :  { %v2536_v19 = vmax.f32 %v1758_v8, 0.0  ;;  %v3603_v20 = vadd.f32 %v9399_v16, %v10984_v10  ;;  %v3597_v21 = vpop.f32.mrb[15].mxu1  ;;  %9557 = vmatmul.mubr.msk.f32.gmra.mrb[120].mxu1 %vm2682_vm4, %v2534_v63  ;;  %5352 = vadd.xlane.f32.xlu0 %v5351_v17  ;;  %v5074_v32 = vmul.f32 %v11003_v23, %v4811_v7 }
 0x1d7   :  { %v2535_v22 = vmax.f32 %v1753_v15, 0.0  ;;  %v3598_v24 = vadd.f32 %v10984_v10, %v3597_v21  ;;  %v9164_v25 = vpop.f32.mrb[126].mxu0  ;;  %9321 = vmatprep.mubr.msk.f32.mxu0 %vm293_vm1, %v260_v12  ;;  %v5073_v26 = vmul.f32 %v11003_v23, %v4810_v14 }
 0x1d8   :  { %v4813_v27 = vmax.f32 %v3603_v20, 0.0  ;;  %v1768_v28 = vadd.f32 %v10835_v0, %v9164_v25  ;;  %v1762_v29 = vpop.f32.mrb[127].mxu0  ;;  %9322 = vmatmul.mubr.msk.f32.gmra.mrb[232].mxu0 %vm293_vm1, %v261_v18  ;;  %v5360_v48 = vsel %vm2682_vm4, %v5074_v32, 0.0  ;;  %v269_v32 = vld [vmem:[%s13759_s0 + $0x788] sm:$0xff] }
 0x1d9   :  { %v4812_v33 = vmax.f32 %v3598_v24, 0.0  ;;  %v1763_v34 = vadd.f32 %v10835_v0, %v1762_v29  ;;  %v9402_v35 = vpop.f32.mrb[16].mxu1  ;;  %9559 = vmatprep.mubr.msk.f32.mxu1 %vm2682_vm4, %v2535_v22  ;;  %5355 = vadd.xlane.f32.xlu1 %v5354_v30  ;;  %v5357_v36 = vsel %vm2682_vm4, %v5073_v26, 0.0  ;;  %v268_v26 = vld [vmem:[%s13759_s0 + $0x780] sm:$0xff] }
 0x1da   :  { %v2538_v38 = vmax.f32 %v1768_v28, 0.0  ;;  %v3613_v39 = vadd.f32 %v9402_v35, %v10984_v10  ;;  %v3607_v40 = vpop.f32.mrb[17].mxu1  ;;  %9560 = vmatmul.mubr.msk.f32.gmra.mrb[122].mxu1 %vm2682_vm4, %v2536_v19  ;;  %5358 = vadd.xlane.f32.xlu0 %v5357_v36  ;;  %v5076_v50 = vmul.f32 %v11003_v23, %v4813_v27 }
 0x1db   :  { %v2537_v41 = vmax.f32 %v1763_v34, 0.0  ;;  %v3608_v42 = vadd.f32 %v10984_v10, %v3607_v40  ;;  %v9167_v43 = vpop.f32.mrb[128].mxu0  ;;  %9324 = vmatprep.mubr.msk.f32.mxu0 %vm293_vm1, %v262_v31  ;;  %v5075_v44 = vmul.f32 %v11003_v23, %v4812_v33 }
 0x1dc   :  { %v4815_v45 = vmax.f32 %v3613_v39, 0.0  ;;  %v1778_v46 = vadd.f32 %v10835_v0, %v9167_v43  ;;  %v1772_v47 = vpop.f32.mrb[129].mxu0  ;;  %9325 = vmatmul.mubr.msk.f32.gmra.mrb[234].mxu0 %vm293_vm1, %v263_v37  ;;  %v5366_v5 = vsel %vm2682_vm4, %v5076_v50, 0.0  ;;  %v271_v50 = vld [vmem:[%s13759_s0 + $0x798] sm:$0xff] }
 0x1dd   :  { %v4814_v51 = vmax.f32 %v3608_v42, 0.0  ;;  %v1773_v52 = vadd.f32 %v10835_v0, %v1772_v47  ;;  %v9405_v53 = vpop.f32.mrb[18].mxu1  ;;  %9562 = vmatprep.mubr.msk.f32.mxu1 %vm2682_vm4, %v2537_v41  ;;  %5361 = vadd.xlane.f32.xlu1 %v5360_v48  ;;  %v5363_v54 = vsel %vm2682_vm4, %v5075_v44, 0.0  ;;  %v270_v44 = vld [vmem:[%s13759_s0 + $0x790] sm:$0xff] }
 0x1de   :  { %v2540_v56 = vmax.f32 %v1778_v46, 0.0  ;;  %v3623_v57 = vadd.f32 %v9405_v53, %v10984_v10  ;;  %v3617_v58 = vpop.f32.mrb[19].mxu1  ;;  %9563 = vmatmul.mubr.msk.f32.gmra.mrb[124].mxu1 %vm2682_vm4, %v2538_v38  ;;  %5364 = vadd.xlane.f32.xlu0 %v5363_v54  ;;  %v5078_v7 = vmul.f32 %v11003_v23, %v4815_v45 }
 0x1df   :  { %v2539_v59 = vmax.f32 %v1773_v52, 0.0  ;;  %v3618_v62 = vadd.f32 %v10984_v10, %v3617_v58  ;;  %v9170_v63 = vpop.f32.mrb[130].mxu0  ;;  %9327 = vmatprep.mubr.msk.f32.mxu0 %vm293_vm1, %v264_v49  ;;  %v5077_v1 = vmul.f32 %v11003_v23, %v4814_v51 }
 0x1e0   :  { %v4817_v2 = vmax.f32 %v3623_v57, 0.0  ;;  %v1788_v3 = vadd.f32 %v10835_v0, %v9170_v63  ;;  %v1782_v4 = vpop.f32.mrb[131].mxu0  ;;  %9328 = vmatmul.mubr.msk.f32.gmra.mrb[236].mxu0 %vm293_vm1, %v265_v55  ;;  %v5372_v25 = vsel %vm2682_vm4, %v5078_v7, 0.0  ;;  %v273_v7 = vld [vmem:[%s13759_s0 + $0x7a8] sm:$0xff] }
 0x1e1   :  { %v4816_v8 = vmax.f32 %v3618_v62, 0.0  ;;  %v1783_v9 = vadd.f32 %v10835_v0, %v1782_v4  ;;  %v9408_v11 = vpop.f32.mrb[20].mxu1  ;;  %9565 = vmatprep.mubr.msk.f32.mxu1 %vm2682_vm4, %v2539_v59  ;;  %5367 = vadd.xlane.f32.xlu1 %v5366_v5  ;;  %v5369_v12 = vsel %vm2682_vm4, %v5077_v1, 0.0  ;;  %v272_v1 = vld [vmem:[%s13759_s0 + $0x7a0] sm:$0xff] }
 0x1e2   :  { %v2542_v14 = vmax.f32 %v1788_v3, 0.0  ;;  %v3633_v15 = vadd.f32 %v9408_v11, %v10984_v10  ;;  %v3627_v16 = vpop.f32.mrb[21].mxu1  ;;  %9566 = vmatmul.mubr.msk.f32.gmra.mrb[126].mxu1 %vm2682_vm4, %v2540_v56  ;;  %5370 = vadd.xlane.f32.xlu0 %v5369_v12  ;;  %v5080_v27 = vmul.f32 %v11003_v23, %v4817_v2 }
 0x1e3   :  { %v2541_v17 = vmax.f32 %v1783_v9, 0.0  ;;  %v3628_v18 = vadd.f32 %v10984_v10, %v3627_v16  ;;  %v9173_v19 = vpop.f32.mrb[132].mxu0  ;;  %9330 = vmatprep.mubr.msk.f32.mxu0 %vm293_vm1, %v266_v6  ;;  %v5079_v20 = vmul.f32 %v11003_v23, %v4816_v8 }
 0x1e4   :  { %v4819_v21 = vmax.f32 %v3633_v15, 0.0  ;;  %v1798_v22 = vadd.f32 %v10835_v0, %v9173_v19  ;;  %v1792_v24 = vpop.f32.mrb[133].mxu0  ;;  %9331 = vmatmul.mubr.msk.f32.gmra.mrb[238].mxu0 %vm293_vm1, %v267_v13  ;;  %v5378_v43 = vsel %vm2682_vm4, %v5080_v27, 0.0  ;;  %v275_v27 = vld [vmem:[%s13759_s0 + $0x7b8] sm:$0xff] }
 0x1e5   :  { %v4818_v28 = vmax.f32 %v3628_v18, 0.0  ;;  %v1793_v29 = vadd.f32 %v10835_v0, %v1792_v24  ;;  %v9411_v30 = vpop.f32.mrb[22].mxu1  ;;  %9568 = vmatprep.mubr.msk.f32.mxu1 %vm2682_vm4, %v2541_v17  ;;  %5373 = vadd.xlane.f32.xlu1 %v5372_v25  ;;  %v5375_v31 = vsel %vm2682_vm4, %v5079_v20, 0.0  ;;  %v274_v20 = vld [vmem:[%s13759_s0 + $0x7b0] sm:$0xff] }
 0x1e6   :  { %v2544_v33 = vmax.f32 %v1798_v22, 0.0  ;;  %v3643_v34 = vadd.f32 %v9411_v30, %v10984_v10  ;;  %v3637_v35 = vpop.f32.mrb[23].mxu1  ;;  %9569 = vmatmul.mubr.msk.f32.gmra.mrb[128].mxu1 %vm2682_vm4, %v2542_v14  ;;  %5376 = vadd.xlane.f32.xlu0 %v5375_v31  ;;  %v5082_v45 = vmul.f32 %v11003_v23, %v4819_v21 }
 0x1e7   :  { %v2543_v36 = vmax.f32 %v1793_v29, 0.0  ;;  %v3638_v37 = vadd.f32 %v10984_v10, %v3637_v35  ;;  %v9176_v38 = vpop.f32.mrb[134].mxu0  ;;  %9333 = vmatprep.mubr.msk.f32.mxu0 %vm293_vm1, %v268_v26  ;;  %v5081_v39 = vmul.f32 %v11003_v23, %v4818_v28 }
 0x1e8   :  { %v4821_v40 = vmax.f32 %v3643_v34, 0.0  ;;  %v1808_v41 = vadd.f32 %v10835_v0, %v9176_v38  ;;  %v1802_v42 = vpop.f32.mrb[135].mxu0  ;;  %9334 = vmatmul.mubr.msk.f32.gmra.mrb[240].mxu0 %vm293_vm1, %v269_v32  ;;  %v5384_v63 = vsel %vm2682_vm4, %v5082_v45, 0.0  ;;  %v277_v45 = vld [vmem:[%s13759_s0 + $0x7c8] sm:$0xff] }
 0x1e9   :  { %v4820_v46 = vmax.f32 %v3638_v37, 0.0  ;;  %v1803_v47 = vadd.f32 %v10835_v0, %v1802_v42  ;;  %v9414_v48 = vpop.f32.mrb[24].mxu1  ;;  %9571 = vmatprep.mubr.msk.f32.mxu1 %vm2682_vm4, %v2543_v36  ;;  %5379 = vadd.xlane.f32.xlu1 %v5378_v43  ;;  %v5381_v49 = vsel %vm2682_vm4, %v5081_v39, 0.0  ;;  %v276_v39 = vld [vmem:[%s13759_s0 + $0x7c0] sm:$0xff] }
 0x1ea   :  { %v2546_v51 = vmax.f32 %v1808_v41, 0.0  ;;  %v3653_v52 = vadd.f32 %v9414_v48, %v10984_v10  ;;  %v3647_v53 = vpop.f32.mrb[25].mxu1  ;;  %9572 = vmatmul.mubr.msk.f32.gmra.mrb[130].mxu1 %vm2682_vm4, %v2544_v33  ;;  %5382 = vadd.xlane.f32.xlu0 %v5381_v49  ;;  %v5084_v2 = vmul.f32 %v11003_v23, %v4821_v40 }
 0x1eb   :  { %v2545_v54 = vmax.f32 %v1803_v47, 0.0  ;;  %v3648_v55 = vadd.f32 %v10984_v10, %v3647_v53  ;;  %v9179_v56 = vpop.f32.mrb[136].mxu0  ;;  %9336 = vmatprep.mubr.msk.f32.mxu0 %vm293_vm1, %v270_v44  ;;  %v5083_v57 = vmul.f32 %v11003_v23, %v4820_v46  ;;  %v11271_v53 = vld [vmem:[%s13761_s2] ss:$0 sm:$0xff] }
 0x1ec   :  { %v4823_v58 = vmax.f32 %v3653_v52, 0.0  ;;  %v1818_v59 = vadd.f32 %v10835_v0, %v9179_v56  ;;  %v1812_v62 = vpop.f32.mrb[137].mxu0  ;;  %9337 = vmatmul.mubr.msk.f32.gmra.mrb[242].mxu0 %vm293_vm1, %v271_v50  ;;  %v5390_v19 = vsel %vm2682_vm4, %v5084_v2, 0.0  ;;  %v279_v2 = vld [vmem:[%s13759_s0 + $0x7d8] sm:$0xff] }
 0x1ed   :  { %v4822_v3 = vmax.f32 %v3648_v55, 0.0  ;;  %v1813_v4 = vadd.f32 %v10835_v0, %v1812_v62  ;;  %v9417_v5 = vpop.f32.mrb[26].mxu1  ;;  %9574 = vmatprep.mubr.msk.f32.mxu1 %vm2682_vm4, %v2545_v54  ;;  %5385 = vadd.xlane.f32.xlu1 %v5384_v63  ;;  %v5387_v6 = vsel %vm2682_vm4, %v5083_v57, 0.0  ;;  %v278_v57 = vld [vmem:[%s13759_s0 + $0x7d0] sm:$0xff] }
 0x1ee   :  { %v2548_v8 = vmax.f32 %v1818_v59, 0.0  ;;  %v3663_v9 = vadd.f32 %v9417_v5, %v10984_v10  ;;  %v3657_v11 = vpop.f32.mrb[27].mxu1  ;;  %9575 = vmatmul.mubr.msk.f32.gmra.mrb[132].mxu1 %vm2682_vm4, %v2546_v51  ;;  %5388 = vadd.xlane.f32.xlu0 %v5387_v6  ;;  %v5086_v21 = vmul.f32 %v11003_v23, %v4823_v58 }
 0x1ef   :  { %v2547_v12 = vmax.f32 %v1813_v4, 0.0  ;;  %v3658_v13 = vadd.f32 %v10984_v10, %v3657_v11  ;;  %v9182_v14 = vpop.f32.mrb[138].mxu0  ;;  %9339 = vmatprep.mubr.msk.f32.mxu0 %vm293_vm1, %v272_v1  ;;  %v5085_v15 = vmul.f32 %v11003_v23, %v4822_v3 }
 0x1f0   :  { %v4825_v16 = vmax.f32 %v3663_v9, 0.0  ;;  %v1828_v17 = vadd.f32 %v10835_v0, %v9182_v14  ;;  %v1822_v18 = vpop.f32.mrb[139].mxu0  ;;  %9340 = vmatmul.mubr.msk.f32.gmra.mrb[244].mxu0 %vm293_vm1, %v273_v7  ;;  %v5396_v38 = vsel %vm2682_vm4, %v5086_v21, 0.0  ;;  %v281_v21 = vld [vmem:[%s13759_s0 + $0x7e8] sm:$0xff] }
 0x1f1   :  { %v4824_v22 = vmax.f32 %v3658_v13, 0.0  ;;  %v1823_v24 = vadd.f32 %v10835_v0, %v1822_v18  ;;  %v9420_v25 = vpop.f32.mrb[28].mxu1  ;;  %9577 = vmatprep.mubr.msk.f32.mxu1 %vm2682_vm4, %v2547_v12  ;;  %5391 = vadd.xlane.f32.xlu1 %v5390_v19  ;;  %v5393_v26 = vsel %vm2682_vm4, %v5085_v15, 0.0  ;;  %v280_v15 = vld [vmem:[%s13759_s0 + $0x7e0] sm:$0xff] }
 0x1f2   :  { %v2550_v28 = vmax.f32 %v1828_v17, 0.0  ;;  %v3673_v29 = vadd.f32 %v9420_v25, %v10984_v10  ;;  %v3667_v30 = vpop.f32.mrb[29].mxu1  ;;  %9578 = vmatmul.mubr.msk.f32.gmra.mrb[134].mxu1 %vm2682_vm4, %v2548_v8  ;;  %5394 = vadd.xlane.f32.xlu0 %v5393_v26  ;;  %v5088_v40 = vmul.f32 %v11003_v23, %v4825_v16  ;;  %v1133_v26 = vadd.f32 %v11271_v53, %v10312_v61  ;;  %v282_v61 = vld [vmem:[%s13759_s0 + $0x7f0] sm:$0xff] }
 0x1f3   :  { %v2549_v31 = vmax.f32 %v1823_v24, 0.0  ;;  %v3668_v32 = vadd.f32 %v10984_v10, %v3667_v30  ;;  %v9185_v33 = vpop.f32.mrb[140].mxu0  ;;  %9342 = vmatprep.mubr.msk.f32.mxu0 %vm293_vm1, %v274_v20  ;;  %v5087_v34 = vmul.f32 %v11003_v23, %v4824_v22 }
 0x1f4   :  { %v4827_v35 = vmax.f32 %v3673_v29, 0.0  ;;  %v1838_v36 = vadd.f32 %v10835_v0, %v9185_v33  ;;  %v1832_v37 = vpop.f32.mrb[141].mxu0  ;;  %9343 = vmatmul.mubr.msk.f32.gmra.mrb[246].mxu0 %vm293_vm1, %v275_v27  ;;  %v5402_v56 = vsel %vm2682_vm4, %v5088_v40, 0.0  ;;  %v283_v40 = vld [vmem:[%s13759_s0 + $0x7f8] sm:$0xff] }
 0x1f5   :  { %v4826_v41 = vmax.f32 %v3668_v32, 0.0  ;;  %v1833_v42 = vadd.f32 %v10835_v0, %v1832_v37  ;;  %v9423_v43 = vpop.f32.mrb[30].mxu1  ;;  %9580 = vmatprep.mubr.msk.f32.mxu1 %vm2682_vm4, %v2549_v31  ;;  %5397 = vadd.xlane.f32.xlu1 %v5396_v38  ;;  %v5399_v44 = vsel %vm2682_vm4, %v5087_v34, 0.0 }
 0x1f6   :  { %v2552_v46 = vmax.f32 %v1838_v36, 0.0  ;;  %v3683_v47 = vadd.f32 %v9423_v43, %v10984_v10  ;;  %v3677_v48 = vpop.f32.mrb[31].mxu1  ;;  %9581 = vmatmul.mubr.msk.f32.gmra.mrb[136].mxu1 %vm2682_vm4, %v2550_v28  ;;  %5400 = vadd.xlane.f32.xlu0 %v5399_v44  ;;  %v5090_v58 = vmul.f32 %v11003_v23, %v4827_v35 }
 0x1f7   :  { %v2551_v49 = vmax.f32 %v1833_v42, 0.0  ;;  %v3678_v0 = vadd.f32 %v10984_v10, %v3677_v48  ;;  %v9188_v50 = vpop.f32.mrb[142].mxu0  ;;  %9345 = vmatprep.mubr.msk.f32.mxu0 %vm293_vm1, %v276_v39  ;;  %v5089_v51 = vmul.f32 %v11003_v23, %v4826_v41  ;;  %v1138_v41 = vadd.f32 %v11271_v53, %v10310_v60 }
 0x1f8   :  { %v4829_v52 = vmax.f32 %v3683_v47, 0.0  ;;  %v1848_v54 = vadd.f32 %v11271_v53, %v9188_v50  ;;  %v1842_v55 = vpop.f32.mrb[143].mxu0  ;;  %9346 = vmatmul.mubr.msk.f32.gmra.mrb[248].mxu0 %vm293_vm1, %v277_v45  ;;  %v5408_v14 = vsel %vm2682_vm4, %v5090_v58, 0.0  ;;  %v2411_v45 = vmax.f32 %v1133_v26, 0.0 }
 0x1f9   :  { %v4828_v59 = vmax.f32 %v3678_v0, 0.0  ;;  %v1843_v62 = vadd.f32 %v11271_v53, %v1842_v55  ;;  %v9426_v63 = vpop.f32.mrb[32].mxu1  ;;  %9583 = vmatprep.mubr.msk.f32.mxu1 %vm2682_vm4, %v2551_v49  ;;  %5403 = vadd.xlane.f32.xlu1 %v5402_v56  ;;  %v5405_v1 = vsel %vm2682_vm4, %v5089_v51, 0.0  ;;  %v2412_v58 = vmax.f32 %v1138_v41, 0.0 }
 0x1fa   :  { %v2554_v3 = vmax.f32 %v1848_v54, 0.0  ;;  %v3693_v4 = vadd.f32 %v9426_v63, %v10984_v10  ;;  %v3687_v5 = vpop.f32.mrb[33].mxu1  ;;  %9584 = vmatmul.mubr.msk.f32.gmra.mrb[138].mxu1 %vm2682_vm4, %v2552_v46  ;;  %5406 = vadd.xlane.f32.xlu0 %v5405_v1  ;;  %v5092_v16 = vmul.f32 %v11003_v23, %v4829_v52 }
 0x1fb   :  { %v2553_v6 = vmax.f32 %v1843_v62, 0.0  ;;  %v3688_v7 = vadd.f32 %v10984_v10, %v3687_v5  ;;  %v9191_v8 = vpop.f32.mrb[144].mxu0  ;;  %9348 = vmatprep.mubr.msk.f32.mxu0 %vm293_vm1, %v278_v57  ;;  %v5091_v9 = vmul.f32 %v11003_v23, %v4828_v59 }
 0x1fc   :  { %v4831_v11 = vmax.f32 %v3693_v4, 0.0  ;;  %v1858_v12 = vadd.f32 %v11271_v53, %v9191_v8  ;;  %v1852_v13 = vpop.f32.mrb[145].mxu0  ;;  %9349 = vmatmul.mubr.msk.f32.gmra.mrb[250].mxu0 %vm293_vm1, %v279_v2  ;;  %v5414_v34 = vsel %vm2682_vm4, %v5092_v16, 0.0 }
 0x1fd   :  { %v4830_v17 = vmax.f32 %v3688_v7, 0.0  ;;  %v1853_v18 = vadd.f32 %v11271_v53, %v1852_v13  ;;  %v9429_v19 = vpop.f32.mrb[34].mxu1  ;;  %9586 = vmatprep.mubr.msk.f32.mxu1 %vm2682_vm4, %v2553_v6  ;;  %5409 = vadd.xlane.f32.xlu1 %v5408_v14  ;;  %v5411_v20 = vsel %vm2682_vm4, %v5091_v9, 0.0 }
 0x1fe   :  { %v2556_v22 = vmax.f32 %v1858_v12, 0.0  ;;  %v3703_v24 = vadd.f32 %v9429_v19, %v10984_v10  ;;  %v3697_v25 = vpop.f32.mrb[35].mxu1  ;;  %9587 = vmatmul.mubr.msk.f32.gmra.mrb[140].mxu1 %vm2682_vm4, %v2554_v3  ;;  %5412 = vadd.xlane.f32.xlu0 %v5411_v20  ;;  %v5094_v35 = vmul.f32 %v11003_v23, %v4831_v11 }
 0x1ff   :  { %v2555_v27 = vmax.f32 %v1853_v18, 0.0  ;;  %v3698_v28 = vadd.f32 %v10984_v10, %v3697_v25  ;;  %v9194_v29 = vpop.f32.mrb[146].mxu0  ;;  %9351 = vmatprep.mubr.msk.f32.mxu0 %vm293_vm1, %v280_v15  ;;  %v5093_v30 = vmul.f32 %v11003_v23, %v4830_v17 }
 0x200   :  { %v4833_v31 = vmax.f32 %v3703_v24, 0.0  ;;  %v1868_v32 = vadd.f32 %v11271_v53, %v9194_v29  ;;  %v1862_v33 = vpop.f32.mrb[147].mxu0  ;;  %9352 = vmatmul.mubr.msk.f32.gmra.mrb[252].mxu0 %vm293_vm1, %v281_v21  ;;  %v5420_v51 = vsel %vm2682_vm4, %v5094_v35, 0.0 }
 0x201   :  { %v4832_v36 = vmax.f32 %v3698_v28, 0.0  ;;  %v1863_v37 = vadd.f32 %v11271_v53, %v1862_v33  ;;  %v9432_v38 = vpop.f32.mrb[36].mxu1  ;;  %9589 = vmatprep.mubr.msk.f32.mxu1 %vm2682_vm4, %v2555_v27  ;;  %5415 = vadd.xlane.f32.xlu1 %v5414_v34  ;;  %v5417_v39 = vsel %vm2682_vm4, %v5093_v30, 0.0 }
 0x202   :  { %v2558_v42 = vmax.f32 %v1868_v32, 0.0  ;;  %v3713_v43 = vadd.f32 %v9432_v38, %v10984_v10  ;;  %v3707_v44 = vpop.f32.mrb[37].mxu1  ;;  %9590 = vmatmul.mubr.msk.f32.gmra.mrb[142].mxu1 %vm2682_vm4, %v2556_v22  ;;  %5418 = vadd.xlane.f32.xlu0 %v5417_v39  ;;  %v5096_v52 = vmul.f32 %v11003_v23, %v4833_v31 }
 0x203   :  { %v2557_v46 = vmax.f32 %v1863_v37, 0.0  ;;  %v3708_v47 = vadd.f32 %v10984_v10, %v3707_v44  ;;  %v9197_v48 = vpop.f32.mrb[148].mxu0  ;;  %9354 = vmatprep.mubr.msk.f32.mxu0 %vm293_vm1, %v282_v61  ;;  %v5095_v49 = vmul.f32 %v11003_v23, %v4832_v36 }
 0x204   :  { %v4835_v0 = vmax.f32 %v3713_v43, 0.0  ;;  %v1878_v50 = vadd.f32 %v11271_v53, %v9197_v48  ;;  %v1872_v60 = vpop.f32.mrb[149].mxu0  ;;  %9355 = vmatmul.mubr.msk.f32.gmra.mrb[254].mxu0 %vm293_vm1, %v283_v40  ;;  %v5426_v8 = vsel %vm2682_vm4, %v5096_v52, 0.0  ;;  %vm6700_vm1 = vcmask 917312  }
 0x205   :  { %v4834_v54 = vmax.f32 %v3708_v47, 0.0  ;;  %v1873_v55 = vadd.f32 %v11271_v53, %v1872_v60  ;;  %v9435_v56 = vpop.f32.mrb[38].mxu1  ;;  %9592 = vmatprep.mubr.msk.f32.mxu1 %vm2682_vm4, %v2557_v46  ;;  %5421 = vadd.xlane.f32.xlu1 %v5420_v51  ;;  %v5423_v57 = vsel %vm2682_vm4, %v5095_v49, 0.0  ;;  %v11373_v47 = vld [vmem:[%s13763_s4] ss:$0 sm:$0xff] }
 0x206   :  { %v2560_v59 = vmax.f32 %v1878_v50, 0.0  ;;  %v3723_v62 = vadd.f32 %v9435_v56, %v10984_v10  ;;  %9373 = vmatprep.mubr.msk.f32.mxu0 %vm2682_vm4, %v2411_v45  ;;  %v3717_v63 = vpop.f32.mrb[39].mxu1  ;;  %9593 = vmatmul.mubr.msk.f32.gmra.mrb[144].mxu1 %vm2682_vm4, %v2558_v42  ;;  %v5098_v9 = vmul.f32 %v11003_v23, %v4835_v0 }
 0x207   :  { %v2559_v1 = vmax.f32 %v1873_v55, 0.0  ;;  %v3718_v2 = vadd.f32 %v10984_v10, %v3717_v63  ;;  %5424 = vadd.xlane.f32.xlu0 %v5423_v57  ;;  %v9200_v3 = vpop.f32.mrb[150].mxu0  ;;  %v5097_v4 = vmul.f32 %v11003_v23, %v4834_v54  ;;  %v11384_v57 = vld [vmem:[%s13764_s5] ss:$0 sm:$0xff] }
 0x208   :  { %v4837_v5 = vmax.f32 %v3723_v62, 0.0  ;;  %v1888_v6 = vadd.f32 %v11271_v53, %v9200_v3  ;;  %v1882_v7 = vpop.f32.mrb[151].mxu0  ;;  %9374 = vmatmul.mubr.msk.f32.vlgmr.msra.gmra.mrb[0].mxu0 %vm2682_vm4, %v2412_v58  ;;  %v5432_v26 = vsel %vm2682_vm4, %v5098_v9, 0.0 }
 0x209   :  { %v4836_v11 = vmax.f32 %v3718_v2, 0.0  ;;  %v1883_v12 = vadd.f32 %v11271_v53, %v1882_v7  ;;  %v9438_v13 = vpop.f32.mrb[40].mxu1  ;;  %9595 = vmatprep.mubr.msk.f32.mxu1 %vm2682_vm4, %v2559_v1  ;;  %5427 = vadd.xlane.f32.xlu1 %v5426_v8  ;;  %v5429_v14 = vsel %vm2682_vm4, %v5097_v4, 0.0 }
 0x20a   :  { %v2562_v15 = vmax.f32 %v1888_v6, 0.0  ;;  %v3733_v16 = vadd.f32 %v9438_v13, %v10984_v10  ;;  %v3727_v17 = vpop.f32.mrb[41].mxu1  ;;  %9596 = vmatmul.mubr.msk.f32.gmra.mrb[146].mxu1 %vm2682_vm4, %v2560_v59  ;;  %v5100_v27 = vmul.f32 %v11003_v23, %v4837_v5 }
 0x20b   :  { %v2561_v18 = vmax.f32 %v1883_v12, 0.0  ;;  %v3728_v19 = vadd.f32 %v10984_v10, %v3727_v17  ;;  %5430 = vadd.xlane.f32.xlu0 %v5429_v14  ;;  %v9203_v20 = vpop.f32.mrb[152].mxu0  ;;  %v5099_v21 = vmul.f32 %v11003_v23, %v4836_v11 }
 0x20c   :  { %v4839_v22 = vmax.f32 %v3733_v16, 0.0  ;;  %v1898_v24 = vadd.f32 %v11271_v53, %v9203_v20  ;;  %v1892_v25 = vpop.f32.mrb[153].mxu0  ;;  %v5438_v41 = vsel %vm2682_vm4, %v5100_v27, 0.0 }
 0x20d   :  { %v4838_v28 = vmax.f32 %v3728_v19, 0.0  ;;  %v1893_v29 = vadd.f32 %v11271_v53, %v1892_v25  ;;  %v9441_v30 = vpop.f32.mrb[42].mxu1  ;;  %9598 = vmatprep.mubr.msk.f32.mxu1 %vm2682_vm4, %v2561_v18  ;;  %5433 = vadd.xlane.f32.xlu1 %v5432_v26  ;;  %v5435_v31 = vsel %vm2682_vm4, %v5099_v21, 0.0 }
 0x20e   :  { %v2564_v32 = vmax.f32 %v1898_v24, 0.0  ;;  %v3743_v33 = vadd.f32 %v9441_v30, %v10984_v10  ;;  %v3737_v34 = vpop.f32.mrb[43].mxu1  ;;  %9599 = vmatmul.mubr.msk.f32.gmra.mrb[148].mxu1 %vm2682_vm4, %v2562_v15  ;;  %v5102_v42 = vmul.f32 %v11003_v23, %v4839_v22 }
 0x20f   :  { %v2563_v61 = vmax.f32 %v1893_v29, 0.0  ;;  %v3738_v35 = vadd.f32 %v10984_v10, %v3737_v34  ;;  %5436 = vadd.xlane.f32.xlu0 %v5435_v31  ;;  %v9206_v36 = vpop.f32.mrb[154].mxu0  ;;  %v5101_v37 = vmul.f32 %v11003_v23, %v4838_v28 }
 0x210   :  { %v4841_v38 = vmax.f32 %v3743_v33, 0.0  ;;  %v1908_v39 = vadd.f32 %v11271_v53, %v9206_v36  ;;  %v1902_v40 = vpop.f32.mrb[155].mxu0  ;;  %v5444_v56 = vsel %vm2682_vm4, %v5102_v42, 0.0 }
 0x211   :  { %v4840_v43 = vmax.f32 %v3738_v35, 0.0  ;;  %v1903_v44 = vadd.f32 %v11271_v53, %v1902_v40  ;;  %v9444_v45 = vpop.f32.mrb[44].mxu1  ;;  %9601 = vmatprep.mubr.msk.f32.mxu1 %vm2682_vm4, %v2563_v61  ;;  %5439 = vadd.xlane.f32.xlu1 %v5438_v41  ;;  %v5441_v10 = vsel %vm2682_vm4, %v5101_v37, 0.0 }
 0x212   :  { %v2566_v46 = vmax.f32 %v1908_v39, 0.0  ;;  %v3753_v48 = vadd.f32 %v11373_v47, %v9444_v45  ;;  %v3747_v49 = vpop.f32.mrb[45].mxu1  ;;  %9602 = vmatmul.mubr.msk.f32.gmra.mrb[150].mxu1 %vm2682_vm4, %v2564_v32  ;;  %v5104_v58 = vmul.f32 %v11384_v57, %v4841_v38 }
 0x213   :  { %v2565_v0 = vmax.f32 %v1903_v44, 0.0  ;;  %v3748_v50 = vadd.f32 %v11373_v47, %v3747_v49  ;;  %5442 = vadd.xlane.f32.xlu0 %v5441_v10  ;;  %v9209_v60 = vpop.f32.mrb[156].mxu0  ;;  %v5103_v51 = vmul.f32 %v11003_v23, %v4840_v43 }
 0x214   :  { %v4843_v52 = vmax.f32 %v3753_v48, 0.0  ;;  %v1918_v54 = vadd.f32 %v11271_v53, %v9209_v60  ;;  %v1912_v55 = vpop.f32.mrb[157].mxu0  ;;  %v5450_v12 = vsel %vm2682_vm4, %v5104_v58, 0.0 }
 0x215   :  { %v4842_v59 = vmax.f32 %v3748_v50, 0.0  ;;  %v1913_v62 = vadd.f32 %v11271_v53, %v1912_v55  ;;  %v9447_v63 = vpop.f32.mrb[46].mxu1  ;;  %9604 = vmatprep.mubr.msk.f32.mxu1 %vm2682_vm4, %v2565_v0  ;;  %5445 = vadd.xlane.f32.xlu1 %v5444_v56  ;;  %v5447_v23 = vsel %vm2682_vm4, %v5103_v51, 0.0 }
 0x216   :  { %v2568_v1 = vmax.f32 %v1918_v54, 0.0  ;;  %v3763_v2 = vadd.f32 %v11373_v47, %v9447_v63  ;;  %v3757_v3 = vpop.f32.mrb[47].mxu1  ;;  %9605 = vmatmul.mubr.msk.f32.gmra.mrb[152].mxu1 %vm2682_vm4, %v2566_v46  ;;  %v5106_v13 = vmul.f32 %v11384_v57, %v4843_v52 }
 0x217   :  { %v2567_v4 = vmax.f32 %v1913_v62, 0.0  ;;  %v3758_v5 = vadd.f32 %v11373_v47, %v3757_v3  ;;  %5448 = vadd.xlane.f32.xlu0 %v5447_v23  ;;  %v9212_v6 = vpop.f32.mrb[158].mxu0  ;;  %v5105_v7 = vmul.f32 %v11384_v57, %v4842_v59 }
 0x218   :  { %v4845_v8 = vmax.f32 %v3763_v2, 0.0  ;;  %v1928_v9 = vadd.f32 %v11271_v53, %v9212_v6  ;;  %v1922_v11 = vpop.f32.mrb[159].mxu0  ;;  %v5456_v29 = vsel %vm2682_vm4, %v5106_v13, 0.0 }
 0x219   :  { %v4844_v14 = vmax.f32 %v3758_v5, 0.0  ;;  %v1923_v15 = vadd.f32 %v11271_v53, %v1922_v11  ;;  %v9450_v16 = vpop.f32.mrb[48].mxu1  ;;  %9607 = vmatprep.mubr.msk.f32.mxu1 %vm2682_vm4, %v2567_v4  ;;  %5451 = vadd.xlane.f32.xlu1 %v5450_v12  ;;  %v5453_v17 = vsel %vm2682_vm4, %v5105_v7, 0.0 }
 0x21a   :  { %v2570_v18 = vmax.f32 %v1928_v9, 0.0  ;;  %v3773_v19 = vadd.f32 %v11373_v47, %v9450_v16  ;;  %v3767_v20 = vpop.f32.mrb[49].mxu1  ;;  %9608 = vmatmul.mubr.msk.f32.gmra.mrb[154].mxu1 %vm2682_vm4, %v2568_v1  ;;  %v5108_v30 = vmul.f32 %v11384_v57, %v4845_v8 }
 0x21b   :  { %v2569_v21 = vmax.f32 %v1923_v15, 0.0  ;;  %v3768_v22 = vadd.f32 %v11373_v47, %v3767_v20  ;;  %5454 = vadd.xlane.f32.xlu0 %v5453_v17  ;;  %v9215_v24 = vpop.f32.mrb[160].mxu0  ;;  %v5107_v25 = vmul.f32 %v11384_v57, %v4844_v14 }
 0x21c   :  { %v4847_v26 = vmax.f32 %v3773_v19, 0.0  ;;  %v1938_v27 = vadd.f32 %v11271_v53, %v9215_v24  ;;  %v1932_v28 = vpop.f32.mrb[161].mxu0  ;;  %v5462_v44 = vsel %vm2682_vm4, %v5108_v30, 0.0 }
 0x21d   :  { %v4846_v31 = vmax.f32 %v3768_v22, 0.0  ;;  %v1933_v32 = vadd.f32 %v11271_v53, %v1932_v28  ;;  %v9453_v33 = vpop.f32.mrb[50].mxu1  ;;  %9610 = vmatprep.mubr.msk.f32.mxu1 %vm2682_vm4, %v2569_v21  ;;  %5457 = vadd.xlane.f32.xlu1 %v5456_v29  ;;  %v5459_v34 = vsel %vm2682_vm4, %v5107_v25, 0.0 }
 0x21e   :  { %v2572_v61 = vmax.f32 %v1938_v27, 0.0  ;;  %v3783_v35 = vadd.f32 %v11373_v47, %v9453_v33  ;;  %v3777_v36 = vpop.f32.mrb[51].mxu1  ;;  %9611 = vmatmul.mubr.msk.f32.gmra.mrb[156].mxu1 %vm2682_vm4, %v2570_v18  ;;  %v5110_v45 = vmul.f32 %v11384_v57, %v4847_v26 }
 0x21f   :  { %v2571_v37 = vmax.f32 %v1933_v32, 0.0  ;;  %v3778_v38 = vadd.f32 %v11373_v47, %v3777_v36  ;;  %5460 = vadd.xlane.f32.xlu0 %v5459_v34  ;;  %v9218_v39 = vpop.f32.mrb[162].mxu0  ;;  %v5109_v40 = vmul.f32 %v11384_v57, %v4846_v31 }
 0x220   :  { %v4849_v41 = vmax.f32 %v3783_v35, 0.0  ;;  %v1948_v42 = vadd.f32 %v11271_v53, %v9218_v39  ;;  %v1942_v43 = vpop.f32.mrb[163].mxu0  ;;  %v5468_v62 = vsel %vm2682_vm4, %v5110_v45, 0.0 }
 0x221   :  { %v4848_v10 = vmax.f32 %v3778_v38, 0.0  ;;  %v1943_v46 = vadd.f32 %v11271_v53, %v1942_v43  ;;  %v9456_v48 = vpop.f32.mrb[52].mxu1  ;;  %9613 = vmatprep.mubr.msk.f32.mxu1 %vm2682_vm4, %v2571_v37  ;;  %5463 = vadd.xlane.f32.xlu1 %v5462_v44  ;;  %v5465_v49 = vsel %vm2682_vm4, %v5109_v40, 0.0 }
 0x222   :  { %v2574_v0 = vmax.f32 %v1948_v42, 0.0  ;;  %v3793_v50 = vadd.f32 %v11373_v47, %v9456_v48  ;;  %v3787_v60 = vpop.f32.mrb[53].mxu1  ;;  %9614 = vmatmul.mubr.msk.f32.gmra.mrb[158].mxu1 %vm2682_vm4, %v2572_v61  ;;  %v5112_v63 = vmul.f32 %v11384_v57, %v4849_v41 }
 0x223   :  { %v2573_v51 = vmax.f32 %v1943_v46, 0.0  ;;  %v3788_v52 = vadd.f32 %v11373_v47, %v3787_v60  ;;  %5466 = vadd.xlane.f32.xlu0 %v5465_v49  ;;  %v9221_v54 = vpop.f32.mrb[164].mxu0  ;;  %v5111_v55 = vmul.f32 %v11384_v57, %v4848_v10 }
 0x224   :  { %v4851_v56 = vmax.f32 %v3793_v50, 0.0  ;;  %v1958_v58 = vadd.f32 %v11271_v53, %v9221_v54  ;;  %v1952_v59 = vpop.f32.mrb[165].mxu0  ;;  %v5474_v15 = vsel %vm2682_vm4, %v5112_v63, 0.0 }
 0x225   :  { %v4850_v23 = vmax.f32 %v3788_v52, 0.0  ;;  %v1953_v1 = vadd.f32 %v11271_v53, %v1952_v59  ;;  %v9459_v2 = vpop.f32.mrb[54].mxu1  ;;  %9616 = vmatprep.mubr.msk.f32.mxu1 %vm2682_vm4, %v2573_v51  ;;  %5469 = vadd.xlane.f32.xlu1 %v5468_v62  ;;  %v5471_v3 = vsel %vm2682_vm4, %v5111_v55, 0.0 }
 0x226   :  { %v2576_v4 = vmax.f32 %v1958_v58, 0.0  ;;  %v3803_v5 = vadd.f32 %v11373_v47, %v9459_v2  ;;  %v3797_v6 = vpop.f32.mrb[55].mxu1  ;;  %9617 = vmatmul.mubr.msk.f32.gmra.mrb[160].mxu1 %vm2682_vm4, %v2574_v0  ;;  %v5114_v16 = vmul.f32 %v11384_v57, %v4851_v56 }
 0x227   :  { %v2575_v7 = vmax.f32 %v1953_v1, 0.0  ;;  %v3798_v8 = vadd.f32 %v11373_v47, %v3797_v6  ;;  %5472 = vadd.xlane.f32.xlu0 %v5471_v3  ;;  %v9224_v9 = vpop.f32.mrb[166].mxu0  ;;  %v5113_v11 = vmul.f32 %v11384_v57, %v4850_v23 }
 0x228   :  { %v4853_v12 = vmax.f32 %v3803_v5, 0.0  ;;  %v1968_v13 = vadd.f32 %v11271_v53, %v9224_v9  ;;  %v1962_v14 = vpop.f32.mrb[167].mxu0  ;;  %v5480_v32 = vsel %vm2682_vm4, %v5114_v16, 0.0 }
 0x229   :  { %v4852_v17 = vmax.f32 %v3798_v8, 0.0  ;;  %v1963_v18 = vadd.f32 %v11271_v53, %v1962_v14  ;;  %v9462_v19 = vpop.f32.mrb[56].mxu1  ;;  %9619 = vmatprep.mubr.msk.f32.mxu1 %vm2682_vm4, %v2575_v7  ;;  %5475 = vadd.xlane.f32.xlu1 %v5474_v15  ;;  %v5477_v20 = vsel %vm2682_vm4, %v5113_v11, 0.0 }
 0x22a   :  { %v2578_v21 = vmax.f32 %v1968_v13, 0.0  ;;  %v3813_v22 = vadd.f32 %v11373_v47, %v9462_v19  ;;  %v3807_v24 = vpop.f32.mrb[57].mxu1  ;;  %9620 = vmatmul.mubr.msk.f32.gmra.mrb[162].mxu1 %vm2682_vm4, %v2576_v4  ;;  %v5116_v33 = vmul.f32 %v11384_v57, %v4853_v12 }
 0x22b   :  { %v2577_v25 = vmax.f32 %v1963_v18, 0.0  ;;  %v3808_v26 = vadd.f32 %v11373_v47, %v3807_v24  ;;  %5478 = vadd.xlane.f32.xlu0 %v5477_v20  ;;  %v9227_v27 = vpop.f32.mrb[168].mxu0  ;;  %v5115_v28 = vmul.f32 %v11384_v57, %v4852_v17 }
 0x22c   :  { %v4855_v29 = vmax.f32 %v3813_v22, 0.0  ;;  %v1978_v30 = vadd.f32 %v11271_v53, %v9227_v27  ;;  %v1972_v31 = vpop.f32.mrb[169].mxu0  ;;  %v5486_v46 = vsel %vm2682_vm4, %v5116_v33, 0.0 }
 0x22d   :  { %v4854_v34 = vmax.f32 %v3808_v26, 0.0  ;;  %v1973_v61 = vadd.f32 %v11271_v53, %v1972_v31  ;;  %v9465_v35 = vpop.f32.mrb[58].mxu1  ;;  %9622 = vmatprep.mubr.msk.f32.mxu1 %vm2682_vm4, %v2577_v25  ;;  %5481 = vadd.xlane.f32.xlu1 %v5480_v32  ;;  %v5483_v36 = vsel %vm2682_vm4, %v5115_v28, 0.0 }
 0x22e   :  { %v2580_v37 = vmax.f32 %v1978_v30, 0.0  ;;  %v3823_v38 = vadd.f32 %v11373_v47, %v9465_v35  ;;  %v3817_v39 = vpop.f32.mrb[59].mxu1  ;;  %9623 = vmatmul.mubr.msk.f32.gmra.mrb[164].mxu1 %vm2682_vm4, %v2578_v21  ;;  %v5118_v48 = vmul.f32 %v11384_v57, %v4855_v29 }
 0x22f   :  { %v2579_v40 = vmax.f32 %v1973_v61, 0.0  ;;  %v3818_v41 = vadd.f32 %v11373_v47, %v3817_v39  ;;  %5484 = vadd.xlane.f32.xlu0 %v5483_v36  ;;  %v9230_v42 = vpop.f32.mrb[170].mxu0  ;;  %v5117_v43 = vmul.f32 %v11384_v57, %v4854_v34 }
 0x230   :  { %v4857_v44 = vmax.f32 %v3823_v38, 0.0  ;;  %v1988_v45 = vadd.f32 %v11271_v53, %v9230_v42  ;;  %v1982_v10 = vpop.f32.mrb[171].mxu0  ;;  %v5492_v1 = vsel %vm2682_vm4, %v5118_v48, 0.0 }
 0x231   :  { %v4856_v49 = vmax.f32 %v3818_v41, 0.0  ;;  %v1983_v0 = vadd.f32 %v11271_v53, %v1982_v10  ;;  %v9468_v50 = vpop.f32.mrb[60].mxu1  ;;  %9625 = vmatprep.mubr.msk.f32.mxu1 %vm2682_vm4, %v2579_v40  ;;  %5487 = vadd.xlane.f32.xlu1 %v5486_v46  ;;  %v5489_v60 = vsel %vm2682_vm4, %v5117_v43, 0.0 }
 0x232   :  { %v2582_v51 = vmax.f32 %v1988_v45, 0.0  ;;  %v3833_v52 = vadd.f32 %v11373_v47, %v9468_v50  ;;  %v3827_v54 = vpop.f32.mrb[61].mxu1  ;;  %9626 = vmatmul.mubr.msk.f32.gmra.mrb[166].mxu1 %vm2682_vm4, %v2580_v37  ;;  %v5120_v2 = vmul.f32 %v11384_v57, %v4857_v44 }
 0x233   :  { %v2581_v55 = vmax.f32 %v1983_v0, 0.0  ;;  %v3828_v56 = vadd.f32 %v11373_v47, %v3827_v54  ;;  %5490 = vadd.xlane.f32.xlu0 %v5489_v60  ;;  %v9233_v58 = vpop.f32.mrb[172].mxu0  ;;  %v5119_v59 = vmul.f32 %v11384_v57, %v4856_v49 }
 0x234   :  { %v4859_v62 = vmax.f32 %v3833_v52, 0.0  ;;  %v1998_v63 = vadd.f32 %v11271_v53, %v9233_v58  ;;  %v1992_v23 = vpop.f32.mrb[173].mxu0  ;;  %v5498_v18 = vsel %vm2682_vm4, %v5120_v2, 0.0 }
 0x235   :  { %v4858_v3 = vmax.f32 %v3828_v56, 0.0  ;;  %v1993_v4 = vadd.f32 %v11271_v53, %v1992_v23  ;;  %v9471_v5 = vpop.f32.mrb[62].mxu1  ;;  %9628 = vmatprep.mubr.msk.f32.mxu1 %vm2682_vm4, %v2581_v55  ;;  %5493 = vadd.xlane.f32.xlu1 %v5492_v1  ;;  %v5495_v6 = vsel %vm2682_vm4, %v5119_v59, 0.0  ;;  %v6605_v59 = vlaneseq }
 0x236   :  { %v2584_v7 = vmax.f32 %v1998_v63, 0.0  ;;  %v3843_v8 = vadd.f32 %v11373_v47, %v9471_v5  ;;  %v3837_v9 = vpop.f32.mrb[63].mxu1  ;;  %9629 = vmatmul.mubr.msk.f32.gmra.mrb[168].mxu1 %vm2682_vm4, %v2582_v51  ;;  %v5122_v19 = vmul.f32 %v11384_v57, %v4859_v62 }
 0x237   :  { %v2583_v11 = vmax.f32 %v1993_v4, 0.0  ;;  %v3838_v12 = vadd.f32 %v11373_v47, %v3837_v9  ;;  %5496 = vadd.xlane.f32.xlu0 %v5495_v6  ;;  %v9236_v13 = vpop.f32.mrb[174].mxu0  ;;  %v5121_v14 = vmul.f32 %v11384_v57, %v4858_v3 }
 0x238   :  { %v4861_v15 = vmax.f32 %v3843_v8, 0.0  ;;  %v2008_v16 = vadd.f32 %v11271_v53, %v9236_v13  ;;  %v2002_v17 = vpop.f32.mrb[175].mxu0  ;;  %v5504_v61 = vsel %vm2682_vm4, %v5122_v19, 0.0 }
 0x239   :  { %v4860_v20 = vmax.f32 %v3838_v12, 0.0  ;;  %v2003_v21 = vadd.f32 %v11271_v53, %v2002_v17  ;;  %v9474_v22 = vpop.f32.mrb[64].mxu1  ;;  %9631 = vmatprep.mubr.msk.f32.mxu1 %vm2682_vm4, %v2583_v11  ;;  %5499 = vadd.xlane.f32.xlu1 %v5498_v18  ;;  %v5501_v24 = vsel %vm2682_vm4, %v5121_v14, 0.0 }
 0x23a   :  { %v2586_v25 = vmax.f32 %v2008_v16, 0.0  ;;  %v3853_v26 = vadd.f32 %v11373_v47, %v9474_v22  ;;  %v3847_v27 = vpop.f32.mrb[65].mxu1  ;;  %9632 = vmatmul.mubr.msk.f32.gmra.mrb[170].mxu1 %vm2682_vm4, %v2584_v7  ;;  %v5124_v35 = vmul.f32 %v11384_v57, %v4861_v15  ;;  %v11512_v15 = vand.u32 127, %v6605_v59 }
 0x23b   :  { %v2585_v28 = vmax.f32 %v2003_v21, 0.0  ;;  %v3848_v29 = vadd.f32 %v11373_v47, %v3847_v27  ;;  %5502 = vadd.xlane.f32.xlu0 %v5501_v24  ;;  %v9239_v30 = vpop.f32.mrb[176].mxu0  ;;  %v5123_v31 = vmul.f32 %v11384_v57, %v4860_v20 }
 0x23c   :  { %v4863_v32 = vmax.f32 %v3853_v26, 0.0  ;;  %v2018_v33 = vadd.f32 %v11271_v53, %v9239_v30  ;;  %v2012_v34 = vpop.f32.mrb[177].mxu0  ;;  %v5510_v0 = vsel %vm2682_vm4, %v5124_v35, 0.0  ;;  %v11522_v30 = vshrl.u32 %v6605_v59, 7 }
 0x23d   :  { %v4862_v36 = vmax.f32 %v3848_v29, 0.0  ;;  %v2013_v37 = vadd.f32 %v11271_v53, %v2012_v34  ;;  %v9477_v38 = vpop.f32.mrb[66].mxu1  ;;  %9634 = vmatprep.mubr.msk.f32.mxu1 %vm2682_vm4, %v2585_v28  ;;  %5505 = vadd.xlane.f32.xlu1 %v5504_v61  ;;  %v5507_v39 = vsel %vm2682_vm4, %v5123_v31, 0.0  ;;  %v6625_v34 = vadd.s32 4294967272, %v11512_v15 }
 0x23e   :  { %v2588_v40 = vmax.f32 %v2018_v33, 0.0  ;;  %v3863_v41 = vadd.f32 %v11373_v47, %v9477_v38  ;;  %v3857_v42 = vpop.f32.mrb[67].mxu1  ;;  %9635 = vmatmul.mubr.msk.f32.gmra.mrb[172].mxu1 %vm2682_vm4, %v2586_v25  ;;  %v5126_v50 = vmul.f32 %v11384_v57, %v4863_v32  ;;  %v6618_v61 = vadd.s32 4294967280, %v11512_v15 }
 0x23f   :  { %v2587_v43 = vmax.f32 %v2013_v37, 0.0  ;;  %v3858_v44 = vadd.f32 %v11373_v47, %v3857_v42  ;;  %5508 = vadd.xlane.f32.xlu0 %v5507_v39  ;;  %v9242_v45 = vpop.f32.mrb[178].mxu0  ;;  %v5125_v10 = vmul.f32 %v11384_v57, %v4862_v36 }
 0x240   :  { %v4865_v46 = vmax.f32 %v3863_v41, 0.0  ;;  %v2028_v48 = vadd.f32 %v11271_v53, %v9242_v45  ;;  %v2022_v49 = vpop.f32.mrb[179].mxu0  ;;  %v5516_v5 = vsel %vm2682_vm4, %v5126_v50, 0.0 }
 0x241   :  { %v4864_v60 = vmax.f32 %v3858_v44, 0.0  ;;  %v2023_v51 = vadd.f32 %v11271_v53, %v2022_v49  ;;  %v9480_v52 = vpop.f32.mrb[68].mxu1  ;;  %9637 = vmatprep.mubr.msk.f32.mxu1 %vm2682_vm4, %v2587_v43  ;;  %5511 = vadd.xlane.f32.xlu1 %v5510_v0  ;;  %v5513_v54 = vsel %vm2682_vm4, %v5125_v10, 0.0  ;;  %v6632_v49 = vadd.s32 4294967264, %v11512_v15 }
 0x242   :  { %v2590_v55 = vmax.f32 %v2028_v48, 0.0  ;;  %v3873_v56 = vadd.f32 %v11373_v47, %v9480_v52  ;;  %v3867_v58 = vpop.f32.mrb[69].mxu1  ;;  %9638 = vmatmul.mubr.msk.f32.gmra.mrb[174].mxu1 %vm2682_vm4, %v2588_v40  ;;  %v5128_v6 = vmul.f32 %v11384_v57, %v4865_v46  ;;  %v11535_v46 = vpop.permute.xlu0 %6090 }
 0x243   :  { %v2589_v62 = vmax.f32 %v2023_v51, 0.0  ;;  %v3868_v63 = vadd.f32 %v11373_v47, %v3867_v58  ;;  %5514 = vadd.xlane.f32.xlu0 %v5513_v54  ;;  %v9245_v23 = vpop.f32.mrb[180].mxu0  ;;  %v5127_v1 = vmul.f32 %v11384_v57, %v4864_v60  ;;  %v11542_v60 = vsub.s32 %v6625_v34, %v11522_v30 }
 0x244   :  { %v4867_v2 = vmax.f32 %v3873_v56, 0.0  ;;  %v2038_v3 = vadd.f32 %v11271_v53, %v9245_v23  ;;  %v2032_v4 = vpop.f32.mrb[181].mxu0  ;;  %v5522_v24 = vsel %vm2682_vm4, %v5128_v6, 0.0  ;;  %v11547_v54 = vsub.s32 %v6618_v61, %v11522_v30 }
 0x245   :  { %v4866_v7 = vmax.f32 %v3868_v63, 0.0  ;;  %v2033_v8 = vadd.f32 %v11271_v53, %v2032_v4  ;;  %v9483_v9 = vpop.f32.mrb[70].mxu1  ;;  %9640 = vmatprep.mubr.msk.f32.mxu1 %vm2682_vm4, %v2589_v62  ;;  %5517 = vadd.xlane.f32.xlu1 %v5516_v5  ;;  %v5519_v11 = vsel %vm2682_vm4, %v5127_v1, 0.0  ;;  %v6639_v62 = vadd.s32 4294967256, %v11512_v15 }
 0x246   :  { %v2592_v12 = vmax.f32 %v2038_v3, 0.0  ;;  %v3883_v13 = vadd.f32 %v11373_v47, %v9483_v9  ;;  %v3877_v14 = vpop.f32.mrb[71].mxu1  ;;  %9641 = vmatmul.mubr.msk.f32.gmra.mrb[176].mxu1 %vm2682_vm4, %v2590_v55  ;;  %v5130_v25 = vmul.f32 %v11384_v57, %v4867_v2  ;;  %v6660_v34 = vadd.s32 4294967232, %v11512_v15 }
 0x247   :  { %v2591_v16 = vmax.f32 %v2033_v8, 0.0  ;;  %v3878_v17 = vadd.f32 %v11373_v47, %v3877_v14  ;;  %5520 = vadd.xlane.f32.xlu0 %v5519_v11  ;;  %v9248_v18 = vpop.f32.mrb[182].mxu0  ;;  %v5129_v19 = vmul.f32 %v11384_v57, %v4866_v7  ;;  %v11559_v8 = vsub.s32 %v6632_v49, %v11522_v30 }
 0x248   :  { %v4869_v20 = vmax.f32 %v3883_v13, 0.0  ;;  %v2048_v21 = vadd.f32 %v11271_v53, %v9248_v18  ;;  %v2042_v22 = vpop.f32.mrb[183].mxu0  ;;  %v5528_v42 = vsel %vm2682_vm4, %v5130_v25, 0.0  ;;  %v6646_v14 = vadd.s32 4294967248, %v11512_v15 }
 0x249   :  { %v4868_v26 = vmax.f32 %v3878_v17, 0.0  ;;  %v2043_v27 = vadd.f32 %v11271_v53, %v2042_v22  ;;  %v9486_v28 = vpop.f32.mrb[72].mxu1  ;;  %9643 = vmatprep.mubr.msk.f32.mxu1 %vm2682_vm4, %v2591_v16  ;;  %5523 = vadd.xlane.f32.xlu1 %v5522_v24  ;;  %v5525_v29 = vsel %vm2682_vm4, %v5129_v19, 0.0  ;;  %v6653_v16 = vadd.s32 4294967240, %v11512_v15 }
 0x24a   :  { %v2594_v31 = vmax.f32 %v2048_v21, 0.0  ;;  %v3893_v32 = vadd.f32 %v11373_v47, %v9486_v28  ;;  %v3887_v33 = vpop.f32.mrb[73].mxu1  ;;  %9644 = vmatmul.mubr.msk.f32.gmra.mrb[178].mxu1 %vm2682_vm4, %v2592_v12  ;;  %v5132_v43 = vmul.f32 %v11384_v57, %v4869_v20  ;;  %v11572_v22 = vsub.s32 %v6639_v62, %v11522_v30 }
 0x24b   :  { %v2593_v35 = vmax.f32 %v2043_v27, 0.0  ;;  %v3888_v36 = vadd.f32 %v11373_v47, %v3887_v33  ;;  %5526 = vadd.xlane.f32.xlu0 %v5525_v29  ;;  %v9251_v37 = vpop.f32.mrb[184].mxu0  ;;  %v5131_v38 = vmul.f32 %v11384_v57, %v4868_v26 }
 0x24c   :  { %v4871_v39 = vmax.f32 %v3893_v32, 0.0  ;;  %v2058_v40 = vadd.f32 %v11271_v53, %v9251_v37  ;;  %v2052_v41 = vpop.f32.mrb[185].mxu0  ;;  %v5534_v2 = vsel %vm2682_vm4, %v5132_v43, 0.0 }
 0x24d   :  { %v4870_v44 = vmax.f32 %v3888_v36, 0.0  ;;  %v2053_v45 = vadd.f32 %v11271_v53, %v2052_v41  ;;  %v9489_v10 = vpop.f32.mrb[74].mxu1  ;;  %9646 = vmatprep.mubr.msk.f32.mxu1 %vm2682_vm4, %v2593_v35  ;;  %5529 = vadd.xlane.f32.xlu1 %v5528_v42  ;;  %v5531_v48 = vsel %vm2682_vm4, %v5131_v38, 0.0  ;;  %v11586_v38 = vsub.s32 %v6646_v14, %v11522_v30 }
 0x24e   :  { %v2596_v0 = vmax.f32 %v2058_v40, 0.0  ;;  %v3903_v50 = vadd.f32 %v11373_v47, %v9489_v10  ;;  %9647 = vmatmul.mubr.msk.f32.gmra.mrb[180].mxu1 %vm2682_vm4, %v2594_v31  ;;  %v11544_v51 = vpop.xlane.xlu1 %5325  ;;  %v3897_v52 = vpop.f32.mrb[75].mxu1  ;;  %v5134_v3 = vmul.f32 %v11384_v57, %v4871_v39  ;;  %v11599_v10 = vld [vmem:[%s13761_s2] ss:$0 sm:$0xff] }
 0x24f   :  { %v2595_v55 = vmax.f32 %v2053_v45, 0.0  ;;  %v3898_v56 = vadd.f32 %v11373_v47, %v3897_v52  ;;  %5532 = vadd.xlane.f32.xlu0 %v5531_v48  ;;  %v9254_v58 = vpop.f32.mrb[186].mxu0  ;;  %v5133_v59 = vmul.f32 %v11384_v57, %v4870_v44  ;;  %v6667_v44 = vadd.s32 4294967224, %v11512_v15 }
 0x250   :  { %v4873_v63 = vmax.f32 %v3903_v50, 0.0  ;;  %v2068_v23 = vadd.f32 %v11271_v53, %v9254_v58  ;;  %v2062_v1 = vpop.f32.mrb[187].mxu0  ;;  %v5540_v27 = vsel %vm2682_vm4, %v5134_v3, 0.0  ;;  %v6681_v3 = vadd.s32 4294967208, %v11512_v15 }
 0x251   :  { %v4872_v4 = vmax.f32 %v3898_v56, 0.0  ;;  %v2063_v5 = vadd.f32 %v11271_v53, %v2062_v1  ;;  %v9492_v6 = vpop.f32.mrb[76].mxu1  ;;  %9649 = vmatprep.mubr.msk.f32.mxu1 %vm2682_vm4, %v2595_v55  ;;  %5535 = vadd.xlane.f32.xlu1 %v5534_v2  ;;  %v5537_v7 = vsel %vm2682_vm4, %v5133_v59, 0.0  ;;  %v11608_v59 = vsub.s32 %v6660_v34, %v11522_v30 }
 0x252   :  { %v2598_v9 = vmax.f32 %v2068_v23, 0.0  ;;  %v3913_v11 = vadd.f32 %v11373_v47, %v9492_v6  ;;  %v3907_v12 = vpop.f32.mrb[77].mxu1  ;;  %9650 = vmatmul.mubr.msk.f32.gmra.mrb[182].mxu1 %vm2682_vm4, %v2596_v0  ;;  %v11563_v13 = vpop.xlane.xlu1 %5322  ;;  %v5136_v28 = vmul.f32 %v11384_v57, %v4873_v63  ;;  %v6674_v2 = vadd.s32 4294967216, %v11512_v15 }
 0x253   :  { %v2597_v17 = vmax.f32 %v2063_v5, 0.0  ;;  %v3908_v18 = vadd.f32 %v11373_v47, %v3907_v12  ;;  %5538 = vadd.xlane.f32.xlu0 %v5537_v7  ;;  %v9257_v19 = vpop.f32.mrb[188].mxu0  ;;  %v11568_v20 = vpop.xlane.xlu0 %5328  ;;  %v5135_v21 = vmul.f32 %v11384_v57, %v4872_v4 }
 0x254   :  { %v4875_v24 = vmax.f32 %v3913_v11, 0.0  ;;  %v2078_v25 = vadd.f32 %v11271_v53, %v9257_v19  ;;  %v2072_v26 = vpop.f32.mrb[189].mxu0  ;;  %v5546_v0 = vsel %vm2682_vm4, %v5136_v28, 0.0  ;;  %v11621_v11 = vsub.s32 %v6667_v44, %v11522_v30 }
 0x255   :  { %v4874_v29 = vmax.f32 %v3908_v18, 0.0  ;;  %v2073_v31 = vadd.f32 %v11271_v53, %v2072_v26  ;;  %v9495_v32 = vpop.f32.mrb[78].mxu1  ;;  %9652 = vmatprep.mubr.msk.f32.mxu1 %vm2682_vm4, %v2597_v17  ;;  %5541 = vadd.xlane.f32.xlu1 %v5540_v27  ;;  %v5543_v33 = vsel %vm2682_vm4, %v5135_v21, 0.0  ;;  %v11589_v53 = vsub.s32 %v6653_v16, %v11522_v30 }
 0x256   :  { %v2600_v61 = vmax.f32 %v2078_v25, 0.0  ;;  %v3923_v35 = vadd.f32 %v11373_v47, %v9495_v32  ;;  %v3917_v36 = vpop.f32.mrb[79].mxu1  ;;  %9653 = vmatmul.mubr.msk.f32.gmra.mrb[184].mxu1 %vm2682_vm4, %v2598_v9  ;;  %v11583_v37 = vpop.xlane.xlu1 %5331  ;;  %v5138_v50 = vmul.f32 %v11384_v57, %v4875_v24  ;;  %v6688_v26 = vadd.s32 4294967200, %v11512_v15 }
 0x257   :  { %v2599_v39 = vmax.f32 %v2073_v31, 0.0  ;;  %v3918_v40 = vadd.f32 %v11373_v47, %v3917_v36  ;;  %5544 = vadd.xlane.f32.xlu0 %v5543_v33  ;;  %v9260_v41 = vpop.f32.mrb[190].mxu0  ;;  %v11592_v42 = vpop.xlane.xlu0 %5334  ;;  %v5137_v43 = vmul.f32 %v11384_v57, %v4874_v29  ;;  %v11635_v32 = vsub.s32 %v6674_v2, %v11522_v30 }
 0x258   :  { %v4877_v45 = vmax.f32 %v3923_v35, 0.0  ;;  %v2088_v48 = vadd.f32 %v11599_v10, %v9260_v41  ;;  %v2082_v49 = vpop.f32.mrb[191].mxu0  ;;  %v5552_v17 = vsel %vm2682_vm4, %v5138_v50, 0.0  ;;  %v11638_v33 = vsub.s32 %v6681_v3, %v11522_v30 }
 0x259   :  { %v4876_v52 = vmax.f32 %v3918_v40, 0.0  ;;  %v2083_v55 = vadd.f32 %v11599_v10, %v2082_v49  ;;  %v9498_v56 = vpop.f32.mrb[80].mxu1  ;;  %9655 = vmatprep.mubr.msk.f32.mxu1 %vm2682_vm4, %v2599_v39  ;;  %5547 = vadd.xlane.f32.xlu1 %v5546_v0  ;;  %v5549_v58 = vsel %vm2682_vm4, %v5137_v43, 0.0  ;;  %v6695_v40 = vadd.s32 4294967192, %v11512_v15 }
 0x25a   :  { %v2602_v62 = vmax.f32 %v2088_v48, 0.0  ;;  %v3933_v63 = vadd.f32 %v11373_v47, %v9498_v56  ;;  %v3927_v23 = vpop.f32.mrb[81].mxu1  ;;  %9656 = vmatmul.mubr.msk.f32.gmra.mrb[186].mxu1 %vm2682_vm4, %v2600_v61  ;;  %v11612_v1 = vpop.xlane.xlu1 %5337  ;;  %v5140_v18 = vmul.f32 %v11384_v57, %v4877_v45  ;;  %v6709_v2 = vadd.s32 4294967176, %v11512_v15 }
 0x25b   :  { %v2601_v4 = vmax.f32 %v2083_v55, 0.0  ;;  %v3928_v5 = vadd.f32 %v11373_v47, %v3927_v23  ;;  %5550 = vadd.xlane.f32.xlu0 %v5549_v58  ;;  %v9263_v6 = vpop.f32.mrb[192].mxu0  ;;  %v11617_v7 = vpop.xlane.xlu0 %5340  ;;  %v5139_v9 = vmul.f32 %v11384_v57, %v4876_v52  ;;  %v11652_v55 = vsub.s32 %v6688_v26, %v11522_v30 }
 0x25c   :  { %v4879_v12 = vmax.f32 %v3933_v63, 0.0  ;;  %v2098_v14 = vadd.f32 %v11599_v10, %v9263_v6  ;;  %v2092_v16 = vpop.f32.mrb[193].mxu0  ;;  %v5558_v45 = vsel %vm2682_vm4, %v5140_v18, 0.0  ;;  %v6702_v23 = vadd.s32 4294967184, %v11512_v15 }
 0x25d   :  { %v4878_v19 = vmax.f32 %v3928_v5, 0.0  ;;  %v2093_v21 = vadd.f32 %v11599_v10, %v2092_v16  ;;  %v9501_v24 = vpop.f32.mrb[82].mxu1  ;;  %9658 = vmatprep.mubr.msk.f32.mxu1 %vm2682_vm4, %v2601_v4  ;;  %5553 = vadd.xlane.f32.xlu1 %v5552_v17  ;;  %v5555_v25 = vsel %vm2682_vm4, %v5139_v9, 0.0 }
 0x25e   :  { %v2604_v27 = vmax.f32 %v2098_v14, 0.0  ;;  %v3943_v28 = vadd.f32 %v11373_v47, %v9501_v24  ;;  %v3937_v29 = vpop.f32.mrb[83].mxu1  ;;  %9659 = vmatmul.mubr.msk.f32.gmra.mrb[188].mxu1 %vm2682_vm4, %v2602_v62  ;;  %v11632_v31 = vpop.xlane.xlu1 %5343  ;;  %v5142_v48 = vmul.f32 %v11384_v57, %v4879_v12  ;;  %v11665_v12 = vsub.s32 %v6695_v40, %v11522_v30 }
 0x25f   :  { %v2603_v34 = vmax.f32 %v2093_v21, 0.0  ;;  %v3938_v61 = vadd.f32 %v11373_v47, %v3937_v29  ;;  %5556 = vadd.xlane.f32.xlu0 %v5555_v25  ;;  %v9266_v35 = vpop.f32.mrb[194].mxu0  ;;  %v11641_v36 = vpop.xlane.xlu0 %5346  ;;  %v5141_v39 = vmul.f32 %v11384_v57, %v4878_v19 }
 0x260   :  { %v4881_v41 = vmax.f32 %v3943_v28, 0.0  ;;  %v2108_v43 = vadd.f32 %v11599_v10, %v9266_v35  ;;  %v2102_v44 = vpop.f32.mrb[195].mxu0  ;;  %v5564_v18 = vsel %vm2682_vm4, %v5142_v48, 0.0  ;;  %v11679_v35 = vsub.s32 %v6702_v23, %v11522_v30 }
 0x261   :  { %v4880_v49 = vmax.f32 %v3938_v61, 0.0  ;;  %v2103_v0 = vadd.f32 %v11599_v10, %v2102_v44  ;;  %v9504_v50 = vpop.f32.mrb[84].mxu1  ;;  %9661 = vmatprep.mubr.msk.f32.mxu1 %vm2682_vm4, %v2603_v34  ;;  %5559 = vadd.xlane.f32.xlu1 %v5558_v45  ;;  %v5561_v52 = vsel %vm2682_vm4, %v5141_v39, 0.0  ;;  %v11682_v39 = vsub.s32 %v6709_v2, %v11522_v30 }
 0x262   :  { %v2606_v56 = vmax.f32 %v2108_v43, 0.0  ;;  %v3953_v58 = vadd.f32 %v11373_v47, %v9504_v50  ;;  %v3947_v62 = vpop.f32.mrb[85].mxu1  ;;  %9662 = vmatmul.mubr.msk.f32.gmra.mrb[190].mxu1 %vm2682_vm4, %v2604_v27  ;;  %v11656_v63 = vpop.xlane.xlu1 %5349  ;;  %v5144_v19 = vmul.f32 %v11384_v57, %v4881_v41  ;;  %v6611_v27 = vadd.s32 4294967288, %v11512_v15 }
 0x263   :  { %v2605_v3 = vmax.f32 %v2103_v0, 0.0  ;;  %v3948_v4 = vadd.f32 %v11373_v47, %v3947_v62  ;;  %5562 = vadd.xlane.f32.xlu0 %v5561_v52  ;;  %v9269_v5 = vpop.f32.mrb[196].mxu0  ;;  %v11661_v6 = vpop.xlane.xlu0 %5352  ;;  %v5143_v9 = vmul.f32 %v11384_v57, %v4880_v49  ;;  %13794 = vst [vmem:[#allocation3_spill] sm:$0xff] %v11682_v39  ;;  %v11690_v48 = vsub.s32 %v11512_v15, %v11522_v30 }
 0x264   :  { %v4883_v14 = vmax.f32 %v3953_v58, 0.0  ;;  %v2118_v16 = vadd.f32 %v11599_v10, %v9269_v5  ;;  %v2112_v17 = vpop.f32.mrb[197].mxu0  ;;  %v5570_v52 = vsel %vm2682_vm4, %v5144_v19, 0.0  ;;  %v11699_v15 = vsub.s32 %v6611_v27, %v11522_v30 }
 0x265   :  { %v4882_v21 = vmax.f32 %v3948_v4, 0.0  ;;  %v2113_v24 = vadd.f32 %v11599_v10, %v2112_v17  ;;  %v9507_v25 = vpop.f32.mrb[86].mxu1  ;;  %9664 = vmatprep.mubr.msk.f32.mxu1 %vm2682_vm4, %v2605_v3  ;;  %5565 = vadd.xlane.f32.xlu1 %v5564_v18  ;;  %v5567_v26 = vsel %vm2682_vm4, %v5143_v9, 0.0  ;;  %13795 = vst [vmem:[#allocation4_spill] sm:$0xff] %v11690_v48 }
 0x266   :  { %v2608_v28 = vmax.f32 %v2118_v16, 0.0  ;;  %v3963_v29 = vadd.f32 %v11373_v47, %v9507_v25  ;;  %v3957_v34 = vpop.f32.mrb[87].mxu1  ;;  %9665 = vmatmul.mubr.msk.f32.gmra.mrb[192].mxu1 %vm2682_vm4, %v2606_v56  ;;  %v11676_v61 = vpop.xlane.xlu1 %5355  ;;  %v5146_v56 = vmul.f32 %v11384_v57, %v4883_v14  ;;  %13796 = vst [vmem:[#allocation5_spill] sm:$0xff] %v11699_v15 }
 0x267   :  { %v2607_v40 = vmax.f32 %v2113_v24, 0.0  ;;  %v3958_v41 = vadd.f32 %v11373_v47, %v3957_v34  ;;  %5568 = vadd.xlane.f32.xlu0 %v5567_v26  ;;  %v9272_v43 = vpop.f32.mrb[198].mxu0  ;;  %v11685_v44 = vpop.xlane.xlu0 %5358  ;;  %v5145_v45 = vmul.f32 %v11384_v57, %v4882_v21 }
 0x268   :  { %v4885_v49 = vmax.f32 %v3963_v29, 0.0  ;;  %v2128_v0 = vadd.f32 %v11599_v10, %v9272_v43  ;;  %v2122_v50 = vpop.f32.mrb[199].mxu0  ;;  %v5576_v27 = vsel %vm2682_vm4, %v5146_v56, 0.0 }
 0x269   :  { %v4884_v58 = vmax.f32 %v3958_v41, 0.0  ;;  %v2123_v62 = vadd.f32 %v11599_v10, %v2122_v50  ;;  %v9510_v23 = vpop.f32.mrb[88].mxu1  ;;  %9667 = vmatprep.mubr.msk.f32.mxu1 %vm2682_vm4, %v2607_v40  ;;  %5571 = vadd.xlane.f32.xlu1 %v5570_v52  ;;  %v5573_v2 = vsel %vm2682_vm4, %v5145_v45, 0.0  ;;  %v11717_v41 = vld [vmem:[%s13763_s4] ss:$0 sm:$0xff] }
 0x26a   :  { %v2610_v3 = vmax.f32 %v2128_v0, 0.0  ;;  %v3973_v4 = vadd.f32 %v11373_v47, %v9510_v23  ;;  %v3967_v5 = vpop.f32.mrb[89].mxu1  ;;  %9668 = vmatmul.mubr.msk.f32.gmra.mrb[194].mxu1 %vm2682_vm4, %v2608_v28  ;;  %v11703_v9 = vpop.xlane.xlu1 %5361  ;;  %v5148_v14 = vmul.f32 %v11384_v57, %v4885_v49 }
 0x26b   :  { %13797 = vst [vmem:[#allocation6_spill] sm:$0xff] %v11703_v9  ;;  %v2609_v16 = vmax.f32 %v2123_v62, 0.0  ;;  %v3968_v17 = vadd.f32 %v11373_v47, %v3967_v5  ;;  %5574 = vadd.xlane.f32.xlu0 %v5573_v2  ;;  %v9275_v18 = vpop.f32.mrb[200].mxu0  ;;  %v5365_v19 = vpop.xlane.xlu0 %5364  ;;  %v5147_v30 = vmul.f32 %v11384_v57, %v4884_v58  ;;  %v11728_v2 = vld [vmem:[%s13764_s5] ss:$0 sm:$0xff] }
 0x26c   :  { %v4887_v21 = vmax.f32 %v3973_v4, 0.0  ;;  %v2138_v24 = vadd.f32 %v11599_v10, %v9275_v18  ;;  %v6109_v25 = vadd.f32 %v11535_v46, %v5365_v19  ;;  %v2132_v26 = vpop.f32.mrb[201].mxu0  ;;  %v5582_v0 = vsel %vm2682_vm4, %v5148_v14, 0.0 }
 0x26d   :  { %v4886_v28 = vmax.f32 %v3968_v17, 0.0  ;;  %v2133_v29 = vadd.f32 %v11599_v10, %v2132_v26  ;;  %v9513_v34 = vpop.f32.mrb[90].mxu1  ;;  %9670 = vmatprep.mubr.msk.f32.mxu1 %vm2682_vm4, %v2609_v16  ;;  %5577 = vadd.xlane.f32.xlu1 %v5576_v27  ;;  %v5579_v47 = vsel %vm2682_vm4, %v5147_v30, 0.0 }
 0x26e   :  { %v2612_v40 = vmax.f32 %v2138_v24, 0.0  ;;  %v3983_v43 = vadd.f32 %v11717_v41, %v9513_v34  ;;  %v3977_v45 = vpop.f32.mrb[91].mxu1  ;;  %9671 = vmatmul.mubr.msk.f32.gmra.mrb[196].mxu1 %vm2682_vm4, %v2610_v3  ;;  %v5368_v49 = vpop.xlane.xlu1 %5367  ;;  %v5150_v50 = vmul.f32 %v11384_v57, %v4887_v21  ;;  %v6719_v4 = vrot.slane %v6109_v25, %v11690_v48 }
 0x26f   :  { %v2611_v52 = vmax.f32 %v2133_v29, 0.0  ;;  %v3978_v56 = vadd.f32 %v11717_v41, %v3977_v45  ;;  %5580 = vadd.xlane.f32.xlu0 %v5579_v47  ;;  %v6110_v58 = vadd.f32 %v11535_v46, %v5368_v49  ;;  %v9278_v62 = vpop.f32.mrb[202].mxu0  ;;  %v5371_v23 = vpop.xlane.xlu0 %5370  ;;  %v5149_v3 = vmul.f32 %v11728_v2, %v4886_v28 }
 0x270   :  { %v4889_v5 = vmax.f32 %v3983_v43, 0.0  ;;  %v2148_v57 = vadd.f32 %v11599_v10, %v9278_v62  ;;  %v6111_v14 = vadd.f32 %v11535_v46, %v5371_v23  ;;  %v2142_v16 = vpop.f32.mrb[203].mxu0  ;;  %v5588_v29 = vsel %vm2682_vm4, %v5150_v50, 0.0 }
 0x271   :  { %v4888_v17 = vmax.f32 %v3978_v56, 0.0  ;;  %v6723_v18 = vrot.slane %v6110_v58, %v11699_v15  ;;  %v2143_v19 = vadd.f32 %v11599_v10, %v2142_v16  ;;  %v9516_v30 = vpop.f32.mrb[92].mxu1  ;;  %9673 = vmatprep.mubr.msk.f32.mxu1 %vm2682_vm4, %v2611_v52  ;;  %5583 = vadd.xlane.f32.xlu1 %v5582_v0  ;;  %v5585_v21 = vsel %vm2682_vm4, %v5149_v3, 0.0 }
 0x272   :  { %v2614_v24 = vmax.f32 %v2148_v57, 0.0  ;;  %v6728_v25 = vrot.slane %v6111_v14, %v11547_v54  ;;  %v11740_v26 = vadd.f32 %v11717_v41, %v9516_v30  ;;  %v3987_v27 = vpop.f32.mrb[93].mxu1  ;;  %9674 = vmatmul.mubr.msk.f32.gmra.mrb[198].mxu1 %vm2682_vm4, %v2612_v40  ;;  %v5374_v28 = vpop.xlane.xlu1 %5373  ;;  %v5152_v50 = vmul.f32 %v11728_v2, %v4889_v5 }
 0x273   :  { %v6724_v34 = vsel %vm6616_vm5, %v6723_v18, %v6719_v4  ;;  %v2613_v47 = vmax.f32 %v2143_v19, 0.0  ;;  %v3988_v43 = vadd.f32 %v11717_v41, %v3987_v27  ;;  %5586 = vadd.xlane.f32.xlu0 %v5585_v21  ;;  %v6112_v45 = vadd.f32 %v11535_v46, %v5374_v28  ;;  %v9281_v49 = vpop.f32.mrb[204].mxu0  ;;  %v5377_v0 = vpop.xlane.xlu0 %5376 }
 0x274   :  { %v6729_v52 = vsel %vm6623_vm6, %v6728_v25, %v6724_v34  ;;  %v2158_v56 = vadd.f32 %v11599_v10, %v9281_v49  ;;  %v6113_v40 = vadd.f32 %v11535_v46, %v5377_v0  ;;  %v2152_v58 = vpop.f32.mrb[205].mxu0  ;;  %v5151_v57 = vmul.f32 %v11728_v2, %v4888_v17 }
 0x275   :  { %v4890_v62 = vmax.f32 %v3988_v43, 0.0  ;;  %v6733_v23 = vrot.slane %v6112_v45, %v11542_v60  ;;  %v2153_v3 = vadd.f32 %v11599_v10, %v2152_v58  ;;  %v9519_v4 = vpop.f32.mrb[94].mxu1  ;;  %9676 = vmatprep.mubr.msk.f32.mxu1 %vm2682_vm4, %v2613_v47  ;;  %5589 = vadd.xlane.f32.xlu1 %v5588_v29  ;;  %v4891_v14 = vmax.f32 %v11740_v26, 0.0 }
 0x276   :  { %v2616_v16 = vmax.f32 %v2158_v56, 0.0  ;;  %v6738_v18 = vrot.slane %v6113_v40, %v11559_v8  ;;  %v11758_v19 = vadd.f32 %v11717_v41, %v9519_v4  ;;  %v3997_v5 = vpop.f32.mrb[95].mxu1  ;;  %9677 = vmatmul.mubr.msk.f32.gmra.mrb[200].mxu1 %vm2682_vm4, %v2614_v24  ;;  %v5380_v30 = vpop.xlane.xlu1 %5379  ;;  %v5591_v17 = vsel %vm2682_vm4, %v5151_v57, 0.0 }
 0x277   :  { %v6734_v21 = vsel %vm6630_vm7, %v6733_v23, %v6729_v52  ;;  %v2615_v25 = vmax.f32 %v2153_v3, 0.0  ;;  %v3998_v27 = vadd.f32 %v11717_v41, %v3997_v5  ;;  %v9284_v28 = vpop.f32.mrb[206].mxu0  ;;  %v5383_v26 = vpop.xlane.xlu0 %5382  ;;  %5592 = vadd.xlane.f32.xlu0 %v5591_v17  ;;  %v6114_v34 = vadd.f32 %v11535_v46, %v5380_v30 }
 0x278   :  { %v6739_v29 = vsel %vm13786_vm8, %v6738_v18, %v6734_v21  ;;  %v2168_v47 = vadd.f32 %v11599_v10, %v9284_v28  ;;  %v2162_v43 = vpop.f32.mrb[207].mxu0  ;;  %v5594_v24 = vsel %vm2682_vm4, %v5152_v50, 0.0  ;;  %v6115_v45 = vadd.f32 %v11535_v46, %v5383_v26 }
 0x279   :  { %v2163_v49 = vadd.f32 %v11599_v10, %v2162_v43  ;;  %v9522_v0 = vpop.f32.mrb[96].mxu1  ;;  %9679 = vmatprep.mubr.msk.f32.mxu1 %vm2682_vm4, %v2615_v25  ;;  %5595 = vadd.xlane.f32.xlu1 %v5594_v24  ;;  %v5153_v52 = vmul.f32 %v11728_v2, %v4890_v62  ;;  %v4892_v56 = vmax.f32 %v3998_v27, 0.0  ;;  %v6743_v40 = vrot.slane %v6114_v34, %v11572_v22 }
 0x27a   :  { %v2618_v58 = vmax.f32 %v2168_v47, 0.0  ;;  %v4013_v23 = vadd.f32 %v11717_v41, %v9522_v0  ;;  %v4007_v3 = vpop.f32.mrb[97].mxu1  ;;  %9680 = vmatmul.mubr.msk.f32.gmra.mrb[202].mxu1 %vm2682_vm4, %v2616_v16  ;;  %v5386_v50 = vpop.xlane.xlu1 %5385  ;;  %v6748_v4 = vrot.slane %v6115_v45, %v11586_v38  ;;  %v5154_v62 = vmul.f32 %v11728_v2, %v4891_v14 }
 0x27b   :  { %v2617_v57 = vmax.f32 %v2163_v49, 0.0  ;;  %v5597_v18 = vsel %vm2682_vm4, %v5153_v52, 0.0  ;;  %v9287_v5 = vpop.f32.mrb[208].mxu0  ;;  %v5389_v30 = vpop.xlane.xlu0 %5388  ;;  %v6744_v21 = vsel %vm6644_vm9, %v6743_v40, %v6739_v29  ;;  %v4008_v25 = vadd.f32 %v11717_v41, %v4007_v3 }
 0x27c   :  { %5598 = vadd.xlane.f32.xlu0 %v5597_v18  ;;  %v6116_v27 = vadd.f32 %v11535_v46, %v5386_v50  ;;  %v2178_v16 = vadd.f32 %v11599_v10, %v9287_v5  ;;  %v2172_v17 = vpop.f32.mrb[209].mxu0  ;;  %v4893_v28 = vmax.f32 %v11758_v19, 0.0  ;;  %v6749_v26 = vsel %vm6651_vm10, %v6748_v4, %v6744_v21 }
 0x27d   :  { %v6117_v34 = vadd.f32 %v11535_v46, %v5389_v30  ;;  %v2173_v47 = vadd.f32 %v11599_v10, %v2172_v17  ;;  %v9525_v43 = vpop.f32.mrb[98].mxu1  ;;  %9682 = vmatprep.mubr.msk.f32.mxu1 %vm2682_vm4, %v2617_v57  ;;  %v4895_v14 = vmax.f32 %v4013_v23, 0.0  ;;  %v5600_v40 = vsel %vm2682_vm4, %v5154_v62, 0.0 }
 0x27e   :  { %v6753_v29 = vrot.slane %v6116_v27, %v11589_v53  ;;  %v2620_v24 = vmax.f32 %v2178_v16, 0.0  ;;  %v4023_v45 = vadd.f32 %v11717_v41, %v9525_v43  ;;  %v4017_v49 = vpop.f32.mrb[99].mxu1  ;;  %9683 = vmatmul.mubr.msk.f32.gmra.mrb[204].mxu1 %vm2682_vm4, %v2618_v58  ;;  %v5392_v0 = vpop.xlane.xlu1 %5391  ;;  %v4894_v23 = vmax.f32 %v4008_v25, 0.0  ;;  %5601 = vadd.xlane.f32.xlu1 %v5600_v40 }
 0x27f   :  { %v6758_v19 = vrot.slane %v6117_v34, %v11608_v59  ;;  %v2619_v52 = vmax.f32 %v2173_v47, 0.0  ;;  %v4018_v3 = vadd.f32 %v11717_v41, %v4017_v49  ;;  %v9290_v50 = vpop.f32.mrb[210].mxu0  ;;  %v5395_v4 = vpop.xlane.xlu0 %5394  ;;  %v5155_v18 = vmul.f32 %v11728_v2, %v4892_v56 }
 0x280   :  { %v6754_v57 = vsel %vm13789_vm11, %v6753_v29, %v6749_v26  ;;  %v6118_v58 = vadd.f32 %v11535_v46, %v5392_v0  ;;  %v2182_v5 = vpop.f32.mrb[211].mxu0  ;;  %v2188_v27 = vadd.f32 %v11599_v10, %v9290_v50  ;;  %v6119_v62 = vadd.f32 %v11535_v46, %v5395_v4 }
 0x281   :  { %v6759_v30 = vsel %vm13788_vm12, %v6758_v19, %v6754_v57  ;;  %v4896_v21 = vmax.f32 %v4018_v3, 0.0  ;;  %v9528_v16 = vpop.f32.mrb[100].mxu1  ;;  %9685 = vmatprep.mubr.msk.f32.mxu1 %vm2682_vm4, %v2619_v52  ;;  %v5158_v25 = vmul.f32 %v11728_v2, %v4895_v14  ;;  %v5603_v17 = vsel %vm2682_vm4, %v5155_v18, 0.0 }
 0x282   :  { %v6763_v26 = vrot.slane %v6118_v58, %v11621_v11  ;;  %v2183_v56 = vadd.f32 %v11599_v10, %v2182_v5  ;;  %v4027_v34 = vpop.f32.mrb[101].mxu1  ;;  %9686 = vmatmul.mubr.msk.f32.gmra.mrb[206].mxu1 %vm2682_vm4, %v2620_v24  ;;  %v5398_v47 = vpop.xlane.xlu1 %5397  ;;  %v4897_v43 = vmax.f32 %v4023_v45, 0.0  ;;  %5604 = vadd.xlane.f32.xlu0 %v5603_v17  ;;  %v2622_v29 = vmax.f32 %v2188_v27, 0.0 }
 0x283   :  { %v6768_v49 = vrot.slane %v6119_v62, %v11635_v32  ;;  %v4033_v0 = vadd.f32 %v11717_v41, %v9528_v16  ;;  %v9293_v19 = vpop.f32.mrb[212].mxu0  ;;  %v5401_v52 = vpop.xlane.xlu0 %5400  ;;  %v5156_v3 = vmul.f32 %v11728_v2, %v4893_v28  ;;  %v4028_v50 = vadd.f32 %v11717_v41, %v4027_v34 }
 0x284   :  { %v6764_v14 = vsel %vm13787_vm13, %v6763_v26, %v6759_v30  ;;  %v2621_v40 = vmax.f32 %v2183_v56, 0.0  ;;  %v2192_v4 = vpop.f32.mrb[213].mxu0  ;;  %v5159_v24 = vmul.f32 %v11728_v2, %v4896_v21  ;;  %v5157_v57 = vmul.f32 %v11728_v2, %v4894_v23 }
 0x285   :  { %v6769_v45 = vsel %vm13790_vm14, %v6768_v49, %v6764_v14  ;;  %v6120_v18 = vadd.f32 %v11535_v46, %v5398_v47  ;;  %v9531_v58 = vpop.f32.mrb[102].mxu1  ;;  %v5606_v5 = vsel %vm2682_vm4, %v5156_v3, 0.0  ;;  %v4898_v27 = vmax.f32 %v4028_v50, 0.0 }
 0x286   :  { %v2198_v30 = vadd.f32 %v11599_v10, %v9293_v19  ;;  %v6121_v28 = vadd.f32 %v11535_v46, %v5401_v52  ;;  %9688 = vmatprep.mubr.msk.f32.mxu1 %vm2682_vm4, %v2621_v40  ;;  %v4037_v62 = vpop.f32.mrb[103].mxu1  ;;  %v5404_v16 = vpop.xlane.xlu1 %5403  ;;  %v5160_v21 = vmul.f32 %v11728_v2, %v4897_v43  ;;  %5607 = vadd.xlane.f32.xlu1 %v5606_v5  ;;  %v5609_v17 = vsel %vm2682_vm4, %v5157_v57, 0.0 }
 0x287   :  { %v6773_v23 = vrot.slane %v6120_v18, %v11638_v33  ;;  %v2193_v26 = vadd.f32 %v11599_v10, %v2192_v4  ;;  %9689 = vmatmul.mubr.msk.f32.gmra.mrb[208].mxu1 %vm2682_vm4, %v2622_v29  ;;  %v9296_v56 = vpop.f32.mrb[214].mxu0  ;;  %v5407_v34 = vpop.xlane.xlu0 %5406  ;;  %v4899_v47 = vmax.f32 %v4033_v0, 0.0  ;;  %5610 = vadd.xlane.f32.xlu0 %v5609_v17  ;;  %v4043_v52 = vadd.f32 %v11717_v41, %v9531_v58 }
 0x288   :  { %v2624_v49 = vmax.f32 %v2198_v30, 0.0  ;;  %v6778_v19 = vrot.slane %v6121_v28, %v11652_v55  ;;  %v2202_v14 = vpop.f32.mrb[215].mxu0  ;;  %v5161_v43 = vmul.f32 %v11728_v2, %v4898_v27  ;;  %v4038_v50 = vadd.f32 %v11717_v41, %v4037_v62 }
 0x289   :  { %v6774_v40 = vsel %vm13792_vm15, %v6773_v23, %v6769_v45  ;;  %v2623_v3 = vmax.f32 %v2193_v26, 0.0  ;;  %v9534_v4 = vpop.f32.mrb[104].mxu1  ;;  %v5612_v0 = vsel %vm2682_vm4, %v5158_v25, 0.0  ;;  %v5615_v57 = vsel %vm2682_vm4, %v5159_v24, 0.0 }
 0x28a   :  { %v6779_v29 = vsel %vm13791_vm0, %v6778_v19, %v6774_v40  ;;  %v6122_v18 = vadd.f32 %v11535_v46, %v5404_v16  ;;  %v4047_v5 = vpop.f32.mrb[105].mxu1  ;;  %v5410_v58 = vpop.xlane.xlu1 %5409  ;;  %5613 = vadd.xlane.f32.xlu1 %v5612_v0  ;;  %v4900_v30 = vmax.f32 %v4038_v50, 0.0  ;;  %v2208_v27 = vadd.f32 %v11599_v10, %v9296_v56 }
 0x28b   :  { %v6123_v45 = vadd.f32 %v11535_v46, %v5407_v34  ;;  %v2203_v28 = vadd.f32 %v11599_v10, %v2202_v14  ;;  %9691 = vmatprep.mubr.msk.f32.mxu1 %vm2682_vm4, %v2623_v3  ;;  %v9299_v62 = vpop.f32.mrb[216].mxu0  ;;  %v5413_v17 = vpop.xlane.xlu0 %5412  ;;  %v5162_v25 = vmul.f32 %v11728_v2, %v4899_v47  ;;  %v4901_v23 = vmax.f32 %v4043_v52, 0.0  ;;  %5616 = vadd.xlane.f32.xlu0 %v5615_v57 }
 0x28c   :  { %v6783_v24 = vrot.slane %v6122_v18, %v11665_v12  ;;  %v4053_v16 = vadd.f32 %v11717_v41, %v9534_v4  ;;  %9692 = vmatmul.mubr.msk.f32.gmra.mrb[210].mxu1 %vm2682_vm4, %v2624_v49  ;;  %v2212_v26 = vpop.f32.mrb[217].mxu0  ;;  %v2626_v56 = vmax.f32 %v2208_v27, 0.0  ;;  %v5618_v14 = vsel %vm2682_vm4, %v5160_v21, 0.0 }
 0x28d   :  { %v6788_v34 = vrot.slane %v6123_v45, %v11679_v35  ;;  %v2625_v19 = vmax.f32 %v2203_v28, 0.0  ;;  %v9537_v40 = vpop.f32.mrb[106].mxu1  ;;  %v4048_v47 = vadd.f32 %v11717_v41, %v4047_v5  ;;  %v5621_v52 = vsel %vm2682_vm4, %v5161_v43, 0.0 }
 0x28e   :  { %v6784_v3 = vsel %vm6700_vm1, %v6783_v24, %v6779_v29  ;;  %v4903_v50 = vmax.f32 %v4053_v16, 0.0  ;;  %v4057_v0 = vpop.f32.mrb[107].mxu1  ;;  %v5416_v57 = vpop.xlane.xlu1 %5415  ;;  %v5163_v4 = vmul.f32 %v11728_v2, %v4900_v30  ;;  %5619 = vadd.xlane.f32.xlu1 %v5618_v14  ;;  %v6124_v18 = vadd.f32 %v11535_v46, %v5410_v58 }
 0x28f   :  { %v6789_v49 = vsel %vm6707_vm2, %v6788_v34, %v6784_v3  ;;  %v2218_v27 = vadd.f32 %v11599_v10, %v9299_v62  ;;  %v9302_v21 = vpop.f32.mrb[218].mxu0  ;;  %v5419_v45 = vpop.xlane.xlu0 %5418  ;;  %v5164_v29 = vmul.f32 %v11728_v2, %v4901_v23  ;;  %v4902_v28 = vmax.f32 %v4048_v47, 0.0  ;;  %5622 = vadd.xlane.f32.xlu0 %v5621_v52  ;;  %9694 = vmatprep.mubr.msk.f32.mxu1 %vm2682_vm4, %v2625_v19 }
 0x290   :  { %v6125_v5 = vadd.f32 %v11535_v46, %v5413_v17  ;;  %v2213_v43 = vadd.f32 %v11599_v10, %v2212_v26  ;;  %v2222_v30 = vpop.f32.mrb[219].mxu0  ;;  %v5166_v24 = vmul.f32 %v11728_v2, %v4903_v50  ;;  %v6793_v16 = vrot.slane %v6124_v18, %v11682_v39  ;;  %9695 = vmatmul.mubr.msk.f32.gmra.mrb[212].mxu1 %vm2682_vm4, %v2626_v56 }
 0x291   :  { %v2628_v58 = vmax.f32 %v2218_v27, 0.0  ;;  %v4063_v62 = vadd.f32 %v11717_v41, %v9537_v40  ;;  %v9540_v34 = vpop.f32.mrb[108].mxu1  ;;  %v5165_v23 = vmul.f32 %v11728_v2, %v4902_v28  ;;  %v5624_v17 = vsel %vm2682_vm4, %v5162_v25, 0.0 }
 0x292   :  { %v2627_v14 = vmax.f32 %v2213_v43, 0.0  ;;  %v4058_v26 = vadd.f32 %v11717_v41, %v4057_v0  ;;  %v4067_v3 = vpop.f32.mrb[109].mxu1  ;;  %v5422_v19 = vpop.xlane.xlu1 %5421  ;;  %v11861_v47 = vsel %vm6714_vm3, %v6793_v16, %v6789_v49  ;;  %5625 = vadd.xlane.f32.xlu1 %v5624_v17  ;;  %v5627_v50 = vsel %vm2682_vm4, %v5163_v4, 0.0 }
 0x293   :  { %13798 = vst [vmem:[#allocation7_spill] sm:$0xff] %v11861_v47  ;;  %v6126_v40 = vadd.f32 %v11535_v46, %v5416_v57  ;;  %v2228_v56 = vadd.f32 %v11599_v10, %v9302_v21  ;;  %v9305_v52 = vpop.f32.mrb[220].mxu0  ;;  %v6798_v18 = vrot.slane %v6125_v5, %v11690_v48  ;;  %5628 = vadd.xlane.f32.xlu0 %v5627_v50  ;;  %v4905_v43 = vmax.f32 %v4063_v62, 0.0 }
 0x294   :  { %v4904_v27 = vmax.f32 %v4058_v26, 0.0  ;;  %v6127_v25 = vadd.f32 %v11535_v46, %v5419_v45  ;;  %v2223_v0 = vadd.f32 %v11599_v10, %v2222_v30  ;;  %9697 = vmatprep.mubr.msk.f32.mxu1 %vm2682_vm4, %v2627_v14  ;;  %v5425_v49 = vpop.xlane.xlu0 %5424  ;;  %v2232_v28 = vpop.f32.mrb[221].mxu0  ;;  %v4073_v57 = vadd.f32 %v11717_v41, %v9540_v34 }
 0x295   :  { %v6802_v4 = vrot.slane %v6126_v40, %v11699_v15  ;;  %v2630_v16 = vmax.f32 %v2228_v56, 0.0  ;;  %9698 = vmatmul.mubr.msk.f32.gmra.mrb[214].mxu1 %vm2682_vm4, %v2628_v58  ;;  %v9543_v21 = vpop.f32.mrb[110].mxu1  ;;  %v5630_v45 = vsel %vm2682_vm4, %v5164_v29, 0.0  ;;  %v4068_v30 = vadd.f32 %v11717_v41, %v4067_v3 }
 0x296   :  { %v6807_v5 = vrot.slane %v6127_v25, %v11547_v54  ;;  %v2629_v17 = vmax.f32 %v2223_v0, 0.0  ;;  %v4077_v26 = vpop.f32.mrb[111].mxu1  ;;  %v5428_v14 = vpop.xlane.xlu1 %5427  ;;  %v5167_v50 = vmul.f32 %v11728_v2, %v4904_v27  ;;  %5631 = vadd.xlane.f32.xlu1 %v5630_v45  ;;  %v5633_v40 = vsel %vm2682_vm4, %v5165_v23, 0.0 }
 0x297   :  { %v6803_v62 = vsel %vm6616_vm5, %v6802_v4, %v6798_v18  ;;  %v6128_v34 = vadd.f32 %v11535_v46, %v5422_v19  ;;  %v9308_v58 = vpop.f32.mrb[222].mxu0  ;;  %v4906_v25 = vmax.f32 %v4068_v30, 0.0  ;;  %5634 = vadd.xlane.f32.xlu0 %v5633_v40  ;;  %v2238_v29 = vadd.f32 %v11599_v10, %v9305_v52 }
 0x298   :  { %v6808_v56 = vsel %vm6623_vm6, %v6807_v5, %v6803_v62  ;;  %v6129_v3 = vadd.f32 %v11535_v46, %v5425_v49  ;;  %9700 = vmatprep.mubr.msk.f32.mxu1 %vm2682_vm4, %v2629_v17  ;;  %v5431_v0 = vpop.xlane.xlu0 %5430  ;;  %v2242_v27 = vpop.f32.mrb[223].mxu0  ;;  %v5168_v18 = vmul.f32 %v11728_v2, %v4905_v43  ;;  %v2233_v23 = vadd.f32 %v11599_v10, %v2232_v28 }
 0x299   :  { %v6812_v4 = vrot.slane %v6128_v34, %v11542_v60  ;;  %v4083_v19 = vadd.f32 %v11717_v41, %v9543_v21  ;;  %9701 = vmatmul.mubr.msk.f32.gmra.mrb[216].mxu1 %vm2682_vm4, %v2630_v16  ;;  %v9546_v5 = vpop.f32.mrb[112].mxu1  ;;  %v4907_v45 = vmax.f32 %v4073_v57, 0.0  ;;  %v2632_v30 = vmax.f32 %v2238_v29, 0.0 }
 0x29a   :  { %v6817_v52 = vrot.slane %v6129_v3, %v11559_v8  ;;  %v5636_v49 = vsel %vm2682_vm4, %v5166_v24, 0.0  ;;  %v4087_v17 = vpop.f32.mrb[113].mxu1  ;;  %v5434_v62 = vpop.xlane.xlu1 %5433  ;;  %v5169_v40 = vmul.f32 %v11728_v2, %v4906_v25  ;;  %v2631_v34 = vmax.f32 %v2233_v23, 0.0 }
 0x29b   :  { %v6813_v43 = vsel %vm6630_vm7, %v6812_v4, %v6808_v56  ;;  %5637 = vadd.xlane.f32.xlu1 %v5636_v49  ;;  %v4078_v28 = vadd.f32 %v11717_v41, %v4077_v26  ;;  %v9311_v21 = vpop.f32.mrb[224].mxu0  ;;  %v5639_v57 = vsel %vm2682_vm4, %v5167_v50, 0.0  ;;  %v6130_v29 = vadd.f32 %v11535_v46, %v5428_v14 }
 0x29c   :  { %v6818_v16 = vsel %vm13786_vm8, %v6817_v52, %v6813_v43  ;;  %v2248_v3 = vadd.f32 %v11599_v10, %v9308_v58  ;;  %v5437_v24 = vpop.xlane.xlu0 %5436  ;;  %v2252_v47 = vpop.f32.mrb[225].mxu0  ;;  %v4909_v48 = vmax.f32 %v4083_v19, 0.0  ;;  %5640 = vadd.xlane.f32.xlu0 %v5639_v57  ;;  %v6131_v56 = vadd.f32 %v11535_v46, %v5431_v0  ;;  %9703 = vmatprep.mubr.msk.f32.mxu1 %vm2682_vm4, %v2631_v34 }
 0x29d   :  { %v4908_v39 = vmax.f32 %v4078_v28, 0.0  ;;  %v2243_v25 = vadd.f32 %v11599_v10, %v2242_v27  ;;  %v9549_v26 = vpop.f32.mrb[114].mxu1  ;;  %v6822_v4 = vrot.slane %v6130_v29, %v11572_v22  ;;  %v4093_v50 = vadd.f32 %v11717_v41, %v9546_v5  ;;  %9704 = vmatmul.mubr.msk.f32.gmra.mrb[218].mxu1 %vm2682_vm4, %v2632_v30 }
 0x29e   :  { %v2634_v23 = vmax.f32 %v2248_v3, 0.0  ;;  %v5642_v14 = vsel %vm2682_vm4, %v5168_v18, 0.0  ;;  %v4097_v58 = vpop.f32.mrb[115].mxu1  ;;  %v5440_v19 = vpop.xlane.xlu1 %5439  ;;  %v5170_v52 = vmul.f32 %v11728_v2, %v4907_v45  ;;  %v6827_v0 = vrot.slane %v6131_v56, %v11586_v38 }
 0x29f   :  { %v2633_v49 = vmax.f32 %v2243_v25, 0.0  ;;  %5643 = vadd.xlane.f32.xlu1 %v5642_v14  ;;  %v4088_v27 = vadd.f32 %v11717_v41, %v4087_v17  ;;  %v9314_v43 = vpop.f32.mrb[226].mxu0  ;;  %v5171_v34 = vmul.f32 %v11728_v2, %v4908_v39  ;;  %v6823_v28 = vsel %vm6644_vm9, %v6822_v4, %v6818_v16 }
 0x2a0   :  { %v5645_v5 = vsel %vm2682_vm4, %v5169_v40, 0.0  ;;  %v6132_v18 = vadd.f32 %v11535_v46, %v5434_v62  ;;  %v5443_v30 = vpop.xlane.xlu0 %5442  ;;  %v2262_v57 = vpop.f32.mrb[227].mxu0  ;;  %v6828_v29 = vsel %vm6651_vm10, %v6827_v0, %v6823_v28  ;;  %v2258_v3 = vadd.f32 %v11599_v10, %v9311_v21 }
 0x2a1   :  { %v4910_v45 = vmax.f32 %v4088_v27, 0.0  ;;  %5646 = vadd.xlane.f32.xlu0 %v5645_v5  ;;  %v6133_v56 = vadd.f32 %v11535_v46, %v5437_v24  ;;  %9706 = vmatprep.mubr.msk.f32.mxu1 %vm2682_vm4, %v2633_v49  ;;  %v9552_v17 = vpop.f32.mrb[116].mxu1  ;;  %v5172_v39 = vmul.f32 %v11728_v2, %v4909_v48  ;;  %v4911_v16 = vmax.f32 %v4093_v50, 0.0 }
 0x2a2   :  { %v6832_v40 = vrot.slane %v6132_v18, %v11589_v53  ;;  %v2253_v62 = vadd.f32 %v11599_v10, %v2252_v47  ;;  %9707 = vmatmul.mubr.msk.f32.gmra.mrb[220].mxu1 %vm2682_vm4, %v2634_v23  ;;  %v4107_v25 = vpop.f32.mrb[117].mxu1  ;;  %v11920_v4 = vpop.xlane.xlu1 %5445  ;;  %v2636_v14 = vmax.f32 %v2258_v3, 0.0  ;;  %v4103_v24 = vadd.f32 %v11717_v41, %v9549_v26 }
 0x2a3   :  { %v6837_v21 = vrot.slane %v6133_v56, %v11608_v59  ;;  %v5648_v0 = vsel %vm2682_vm4, %v5170_v52, 0.0  ;;  %v9317_v49 = vpop.f32.mrb[228].mxu0  ;;  %v5173_v48 = vmul.f32 %v11728_v2, %v4910_v45  ;;  %v4098_v47 = vadd.f32 %v11717_v41, %v4097_v58  ;;  %v11938_v58 = vld [vmem:[%s13761_s2] ss:$0 sm:$0xff] }
 0x2a4   :  { %v6833_v50 = vsel %vm13789_vm11, %v6832_v40, %v6828_v29  ;;  %v2635_v27 = vmax.f32 %v2253_v62, 0.0  ;;  %5649 = vadd.xlane.f32.xlu1 %v5648_v0  ;;  %v11928_v23 = vpop.xlane.xlu0 %5448  ;;  %v2272_v28 = vpop.f32.mrb[229].mxu0  ;;  %v5651_v18 = vsel %vm2682_vm4, %v5171_v34, 0.0  ;;  %v6134_v26 = vadd.f32 %v11535_v46, %v5440_v19 }
 0x2a5   :  { %v6838_v5 = vsel %vm13788_vm12, %v6837_v21, %v6833_v50  ;;  %v2268_v52 = vadd.f32 %v11599_v10, %v9314_v43  ;;  %v9555_v3 = vpop.f32.mrb[118].mxu1  ;;  %v4912_v56 = vmax.f32 %v4098_v47, 0.0  ;;  %5652 = vadd.xlane.f32.xlu0 %v5651_v18  ;;  %v6135_v29 = vadd.f32 %v11535_v46, %v5443_v30 }
 0x2a6   :  { %v2263_v45 = vadd.f32 %v11938_v58, %v2262_v57  ;;  %9709 = vmatprep.mubr.msk.f32.mxu1 %vm2682_vm4, %v2635_v27  ;;  %v4117_v40 = vpop.f32.mrb[119].mxu1  ;;  %v11942_v34 = vpop.xlane.xlu1 %5451  ;;  %v5174_v19 = vmul.f32 %v11728_v2, %v4911_v16  ;;  %v6842_v10 = vrot.slane %v6134_v26, %v11621_v11  ;;  %v5654_v62 = vsel %vm2682_vm4, %v5172_v39, 0.0 }
 0x2a7   :  { %v2638_v43 = vmax.f32 %v2268_v52, 0.0  ;;  %9710 = vmatmul.mubr.msk.f32.gmra.mrb[222].mxu1 %vm2682_vm4, %v2636_v14  ;;  %v9320_v30 = vpop.f32.mrb[230].mxu0  ;;  %v4913_v21 = vmax.f32 %v4103_v24, 0.0  ;;  %v6847_v0 = vrot.slane %v6135_v29, %v11635_v32  ;;  %v4108_v57 = vadd.f32 %v11717_v41, %v4107_v25 }
 0x2a8   :  { %v2637_v50 = vmax.f32 %v2263_v45, 0.0  ;;  %5655 = vadd.xlane.f32.xlu1 %v5654_v62  ;;  %v11950_v27 = vpop.xlane.xlu0 %5454  ;;  %v2282_v47 = vpop.f32.mrb[231].mxu0  ;;  %v6843_v16 = vsel %vm13787_vm13, %v6842_v10, %v6838_v5  ;;  %v4113_v18 = vadd.f32 %v11717_v41, %v9552_v17  ;;  %v5657_v26 = vsel %vm2682_vm4, %v5173_v48, 0.0 }
 0x2a9   :  { %13799 = vst [vmem:[#allocation8_spill] sm:$0xff] %v11950_v27  ;;  %v9558_v39 = vpop.f32.mrb[120].mxu1  ;;  %v5175_v14 = vmul.f32 %v11728_v2, %v4912_v56  ;;  %v11957_v24 = vsel %vm13790_vm14, %v6847_v0, %v6843_v16  ;;  %v4914_v52 = vmax.f32 %v4108_v57, 0.0  ;;  %5658 = vadd.xlane.f32.xlu0 %v5657_v26  ;;  %v2278_v29 = vadd.f32 %v11938_v58, %v9317_v49 }
 0x2aa   :  { %13800 = vst [vmem:[#allocation9_spill] sm:$0xff] %v11957_v24  ;;  %9712 = vmatprep.mubr.msk.f32.mxu1 %vm2682_vm4, %v2637_v50  ;;  %v4127_v25 = vpop.f32.mrb[121].mxu1  ;;  %v11961_v45 = vpop.xlane.xlu1 %5457  ;;  %v2273_v5 = vadd.f32 %v11938_v58, %v2272_v28  ;;  %v5176_v48 = vmul.f32 %v11728_v2, %v4913_v21  ;;  %v5660_v10 = vsel %vm2682_vm4, %v5174_v19, 0.0  ;;  %v4915_v57 = vmax.f32 %v4113_v18, 0.0 }
 0x2ab   :  { %13801 = vst [vmem:[#allocation10_spill] sm:$0xff] %v11961_v45  ;;  %9713 = vmatmul.mubr.msk.f32.gmra.mrb[224].mxu1 %vm2682_vm4, %v2638_v43  ;;  %v9323_v17 = vpop.f32.mrb[232].mxu0  ;;  %v2640_v56 = vmax.f32 %v2278_v29, 0.0  ;;  %v4123_v50 = vadd.f32 %v11717_v41, %v9555_v3  ;;  %v4118_v16 = vadd.f32 %v11717_v41, %v4117_v40  ;;  %v5177_v28 = vmul.f32 %v11728_v2, %v4914_v52 }
 0x2ac   :  { %v11967_v62 = vpop.xlane.xlu0 %5460  ;;  %v2292_v0 = vpop.f32.mrb[233].mxu0  ;;  %v2639_v49 = vmax.f32 %v2273_v5, 0.0  ;;  %5661 = vadd.xlane.f32.xlu1 %v5660_v10  ;;  %v5663_v43 = vsel %vm2682_vm4, %v5175_v14, 0.0  ;;  %v2288_v21 = vadd.f32 %v11938_v58, %v9320_v30  ;;  %v2283_v18 = vadd.f32 %v11938_v58, %v2282_v47 }
 0x2ad   :  { %13802 = vst [vmem:[#allocation11_spill] sm:$0xff] %v11967_v62  ;;  %v9561_v26 = vpop.f32.mrb[122].mxu1  ;;  %v4916_v19 = vmax.f32 %v4118_v16, 0.0  ;;  %5664 = vadd.xlane.f32.xlu0 %v5663_v43  ;;  %v5666_v40 = vsel %vm2682_vm4, %v5176_v48, 0.0  ;;  %v5178_v30 = vmul.f32 %v11728_v2, %v4915_v57  ;;  %v4917_v10 = vmax.f32 %v4123_v50, 0.0 }
 0x2ae   :  { %v4137_v29 = vpop.f32.mrb[123].mxu1  ;;  %v11974_v45 = vpop.xlane.xlu1 %5463  ;;  %9715 = vmatprep.mubr.msk.f32.mxu1 %vm2682_vm4, %v2639_v49  ;;  %v2642_v5 = vmax.f32 %v2288_v21, 0.0  ;;  %v2641_v15 = vmax.f32 %v2283_v18, 0.0  ;;  %v4128_v16 = vadd.f32 %v11717_v41, %v4127_v25  ;;  %v4133_v47 = vadd.f32 %v11717_v41, %v9558_v39 }
 0x2af   :  { %v9326_v3 = vpop.f32.mrb[234].mxu0  ;;  %9716 = vmatmul.mubr.msk.f32.gmra.mrb[226].mxu1 %vm2682_vm4, %v2640_v56  ;;  %v5669_v49 = vsel %vm2682_vm4, %v5177_v28, 0.0  ;;  %v5179_v48 = vmul.f32 %v11728_v2, %v4916_v19  ;;  %v2293_v50 = vadd.f32 %v11938_v58, %v2292_v0  ;;  %v5180_v28 = vmul.f32 %v11728_v2, %v4917_v10 }
 0x2b0   :  { %v11980_v52 = vpop.xlane.xlu0 %5466  ;;  %v2302_v14 = vpop.f32.mrb[235].mxu0  ;;  %5667 = vadd.xlane.f32.xlu1 %v5666_v40  ;;  %v4918_v56 = vmax.f32 %v4128_v16, 0.0  ;;  %9718 = vmatprep.mubr.msk.f32.mxu1 %vm2682_vm4, %v2641_v15  ;;  %v4143_v40 = vadd.f32 %v11717_v41, %v9561_v26  ;;  %v5672_v19 = vsel %vm2682_vm4, %v5178_v30, 0.0  ;;  %v4138_v15 = vadd.f32 %v11717_v41, %v4137_v29 }
 0x2b1   :  { %13803 = vst [vmem:[#allocation12_spill] sm:$0xff] %v11980_v52  ;;  %v9564_v43 = vpop.f32.mrb[124].mxu1  ;;  %5670 = vadd.xlane.f32.xlu0 %v5669_v49  ;;  %v2298_v52 = vadd.f32 %v11938_v58, %v9323_v17  ;;  %v4919_v49 = vmax.f32 %v4133_v47, 0.0  ;;  %v2643_v17 = vmax.f32 %v2293_v50, 0.0  ;;  %v2308_v10 = vadd.f32 %v11938_v58, %v9326_v3 }
 0x2b2   :  { %v4147_v21 = vpop.f32.mrb[125].mxu1  ;;  %v11986_v62 = vpop.xlane.xlu1 %5469  ;;  %v4920_v27 = vmax.f32 %v4138_v15, 0.0  ;;  %v2303_v26 = vadd.f32 %v11938_v58, %v2302_v14  ;;  %v4921_v29 = vmax.f32 %v4143_v40, 0.0 }
 0x2b3   :  { %13804 = vst [vmem:[#allocation13_spill] sm:$0xff] %v11986_v62  ;;  %v9329_v57 = vpop.f32.mrb[236].mxu0  ;;  %9719 = vmatmul.mubr.msk.f32.gmra.mrb[228].mxu1 %vm2682_vm4, %v2642_v5  ;;  %v2644_v18 = vmax.f32 %v2298_v52, 0.0  ;;  %v5181_v5 = vmul.f32 %v11728_v2, %v4918_v56  ;;  %v2646_v50 = vmax.f32 %v2308_v10, 0.0 }
 0x2b4   :  { %v11993_v25 = vpop.xlane.xlu0 %5472  ;;  %v2312_v39 = vpop.f32.mrb[237].mxu0  ;;  %5673 = vadd.xlane.f32.xlu1 %v5672_v19  ;;  %9721 = vmatprep.mubr.msk.f32.mxu1 %vm2682_vm4, %v2643_v17  ;;  %v5678_v19 = vsel %vm2682_vm4, %v5180_v28, 0.0  ;;  %v2645_v3 = vmax.f32 %v2303_v26, 0.0  ;;  %v5183_v17 = vmul.f32 %v11728_v2, %v4920_v27  ;;  %v2318_v28 = vadd.f32 %v11938_v58, %v9329_v57 }
 0x2b5   :  { %13805 = vst [vmem:[#allocation14_spill] sm:$0xff] %v11993_v25  ;;  %v9567_v16 = vpop.f32.mrb[126].mxu1  ;;  %v5675_v25 = vsel %vm2682_vm4, %v5179_v48, 0.0  ;;  %v5182_v48 = vmul.f32 %v11728_v2, %v4919_v49  ;;  %v5681_v40 = vsel %vm2682_vm4, %v5181_v5, 0.0 }
 0x2b6   :  { %v4157_v62 = vpop.f32.mrb[127].mxu1  ;;  %v11999_v0 = vpop.xlane.xlu1 %5475  ;;  %5676 = vadd.xlane.f32.xlu0 %v5675_v25  ;;  %v4148_v25 = vadd.f32 %v11717_v41, %v4147_v21  ;;  %v5184_v21 = vmul.f32 %v11728_v2, %v4921_v29  ;;  %v4163_v5 = vadd.f32 %v11717_v41, %v9567_v16  ;;  %v5687_v29 = vsel %vm2682_vm4, %v5183_v17, 0.0 }
 0x2b7   :  { %13806 = vst [vmem:[#allocation15_spill] sm:$0xff] %v11999_v0  ;;  %v9332_v52 = vpop.f32.mrb[238].mxu0  ;;  %9722 = vmatmul.mubr.msk.f32.gmra.mrb[230].mxu1 %vm2682_vm4, %v2644_v18  ;;  %v5684_v57 = vsel %vm2682_vm4, %v5182_v48, 0.0 }
 0x2b8   :  { %v12006_v30 = vpop.xlane.xlu0 %5478  ;;  %v2322_v47 = vpop.f32.mrb[239].mxu0  ;;  %5679 = vadd.xlane.f32.xlu1 %v5678_v19  ;;  %v4922_v18 = vmax.f32 %v4148_v25, 0.0  ;;  %9724 = vmatprep.mubr.msk.f32.mxu1 %vm2682_vm4, %v2645_v3  ;;  %v2313_v19 = vadd.f32 %v11938_v58, %v2312_v39  ;;  %v4158_v25 = vadd.f32 %v11717_v41, %v4157_v62 }
 0x2b9   :  { %13807 = vst [vmem:[#allocation16_spill] sm:$0xff] %v12006_v30  ;;  %v9570_v56 = vpop.f32.mrb[128].mxu1  ;;  %v4153_v30 = vadd.f32 %v11717_v41, %v9564_v43  ;;  %v2648_v43 = vmax.f32 %v2318_v28, 0.0  ;;  %v2328_v28 = vadd.f32 %v11938_v58, %v9332_v52  ;;  %v2323_v41 = vadd.f32 %v11938_v58, %v2322_v47  ;;  %v12044_v47 = vld [vmem:[%s13763_s4] ss:$0 sm:$0xff] }
 0x2ba   :  { %v4167_v15 = vpop.f32.mrb[129].mxu1  ;;  %v12012_v14 = vpop.xlane.xlu1 %5481  ;;  %5682 = vadd.xlane.f32.xlu0 %v5681_v40  ;;  %v5185_v39 = vmul.f32 %v11728_v2, %v4922_v18 }
 0x2bb   :  { %13808 = vst [vmem:[#allocation17_spill] sm:$0xff] %v12012_v14  ;;  %v9335_v10 = vpop.f32.mrb[240].mxu0  ;;  %9725 = vmatmul.mubr.msk.f32.gmra.mrb[232].mxu1 %vm2682_vm4, %v2646_v50  ;;  %v4923_v3 = vmax.f32 %v4153_v30, 0.0  ;;  %v4924_v50 = vmax.f32 %v4158_v25, 0.0  ;;  %v4925_v30 = vmax.f32 %v4163_v5, 0.0  ;;  %v2649_v52 = vmax.f32 %v2323_v41, 0.0 }
 0x2bc   :  { %v12019_v49 = vpop.xlane.xlu0 %5484  ;;  %v2332_v26 = vpop.f32.mrb[241].mxu0  ;;  %5685 = vadd.xlane.f32.xlu1 %v5684_v57  ;;  %v5690_v57 = vsel %vm2682_vm4, %v5184_v21, 0.0  ;;  %v12050_v21 = vld [vmem:[%s13764_s5] ss:$0 sm:$0xff] }
 0x2bd   :  { %13809 = vst [vmem:[#allocation18_spill] sm:$0xff] %v12019_v49  ;;  %v9573_v27 = vpop.f32.mrb[130].mxu1  ;;  %v2647_v49 = vmax.f32 %v2313_v19, 0.0  ;;  %v2650_v19 = vmax.f32 %v2328_v28, 0.0  ;;  %v5186_v25 = vmul.f32 %v11728_v2, %v4923_v3  ;;  %v5693_v2 = vsel %vm2682_vm4, %v5185_v39, 0.0 }
 0x2be   :  { %v4177_v40 = vpop.f32.mrb[131].mxu1  ;;  %v12027_v14 = vpop.xlane.xlu1 %5487  ;;  %5688 = vadd.xlane.f32.xlu0 %v5687_v29  ;;  %v4173_v29 = vadd.f32 %v12044_v47, %v9570_v56  ;;  %v2338_v3 = vadd.f32 %v11938_v58, %v9335_v10  ;;  %v4183_v10 = vadd.f32 %v12044_v47, %v9573_v27 }
 0x2bf   :  { %13810 = vst [vmem:[#allocation19_spill] sm:$0xff] %v12027_v14  ;;  %v9338_v0 = vpop.f32.mrb[242].mxu0  ;;  %9727 = vmatprep.mubr.msk.f32.mxu1 %vm2682_vm4, %v2647_v49  ;;  %v4168_v49 = vadd.f32 %v12044_v47, %v4167_v15 }
 0x2c0   :  { %v12032_v16 = vpop.xlane.xlu0 %5490  ;;  %v2342_v48 = vpop.f32.mrb[243].mxu0  ;;  %9728 = vmatmul.mubr.msk.f32.gmra.mrb[234].mxu1 %vm2682_vm4, %v2648_v43  ;;  %5691 = vadd.xlane.f32.xlu1 %v5690_v57  ;;  %v5187_v43 = vmul.f32 %v12050_v21, %v4924_v50  ;;  %v2652_v39 = vmax.f32 %v2338_v3, 0.0  ;;  %v4927_v14 = vmax.f32 %v4173_v29, 0.0  ;;  %v2348_v3 = vadd.f32 %v11938_v58, %v9338_v0 }
 0x2c1   :  { %13811 = vst [vmem:[#allocation20_spill] sm:$0xff] %v12032_v16  ;;  %v9576_v62 = vpop.f32.mrb[132].mxu1  ;;  %v4926_v57 = vmax.f32 %v4168_v49, 0.0  ;;  %9730 = vmatprep.mubr.msk.f32.mxu1 %vm2682_vm4, %v2649_v52  ;;  %v2333_v16 = vadd.f32 %v11938_v58, %v2332_v26  ;;  %v4178_v49 = vadd.f32 %v12044_v47, %v4177_v40 }
 0x2c2   :  { %v4187_v17 = vpop.f32.mrb[133].mxu1  ;;  %v12038_v18 = vpop.xlane.xlu1 %5493  ;;  %5694 = vadd.xlane.f32.xlu0 %v5693_v2 }
 0x2c3   :  { %13812 = vst [vmem:[#allocation21_spill] sm:$0xff] %v12038_v18  ;;  %v9341_v5 = vpop.f32.mrb[244].mxu0  ;;  %v5188_v18 = vmul.f32 %v12050_v21, %v4925_v30  ;;  %v2651_v52 = vmax.f32 %v2333_v16, 0.0  ;;  %v5699_v30 = vsel %vm2682_vm4, %v5187_v43, 0.0  ;;  %v4928_v9 = vmax.f32 %v4178_v49, 0.0 }
 0x2c4   :  { %v12056_v28 = vpop.xlane.xlu0 %5496  ;;  %v2352_v41 = vpop.f32.mrb[245].mxu0  ;;  %9731 = vmatmul.mubr.msk.f32.gmra.mrb[236].mxu1 %vm2682_vm4, %v2650_v19  ;;  %v5189_v19 = vmul.f32 %v12050_v21, %v4926_v57  ;;  %v4929_v16 = vmax.f32 %v4183_v10, 0.0  ;;  %v5190_v57 = vmul.f32 %v12050_v21, %v4927_v14  ;;  %v4188_v0 = vadd.f32 %v12044_v47, %v4187_v17 }
 0x2c5   :  { %13813 = vst [vmem:[#allocation22_spill] sm:$0xff] %v12056_v28  ;;  %v9579_v15 = vpop.f32.mrb[134].mxu1  ;;  %v5696_v28 = vsel %vm2682_vm4, %v5186_v25, 0.0  ;;  %v2343_v25 = vadd.f32 %v11938_v58, %v2342_v48  ;;  %9733 = vmatprep.mubr.msk.f32.mxu1 %vm2682_vm4, %v2651_v52  ;;  %v5702_v43 = vsel %vm2682_vm4, %v5188_v18, 0.0  ;;  %v5191_v52 = vmul.f32 %v12050_v21, %v4928_v9 }
 0x2c6   :  { %v4197_v50 = vpop.f32.mrb[135].mxu1  ;;  %v12062_v56 = vpop.xlane.xlu1 %5499  ;;  %5697 = vadd.xlane.f32.xlu1 %v5696_v28  ;;  %5700 = vadd.xlane.f32.xlu0 %v5699_v30  ;;  %v2654_v28 = vmax.f32 %v2348_v3, 0.0  ;;  %v5705_v10 = vsel %vm2682_vm4, %v5189_v19, 0.0  ;;  %v2358_v18 = vadd.f32 %v11938_v58, %v9341_v5  ;;  %v5192_v17 = vmul.f32 %v12050_v21, %v4929_v16 }
 0x2c7   :  { %13814 = vst [vmem:[#allocation23_spill] sm:$0xff] %v12062_v56  ;;  %v9344_v2 = vpop.f32.mrb[246].mxu0  ;;  %v2653_v49 = vmax.f32 %v2343_v25, 0.0  ;;  %v4203_v19 = vadd.f32 %v12044_v47, %v9579_v15  ;;  %v5708_v5 = vsel %vm2682_vm4, %v5190_v57, 0.0  ;;  %v5711_v16 = vsel %vm2682_vm4, %v5191_v52, 0.0 }
 0x2c8   :  { %v12068_v24 = vpop.xlane.xlu0 %5502  ;;  %v2362_v26 = vpop.f32.mrb[247].mxu0  ;;  %9734 = vmatmul.mubr.msk.f32.gmra.mrb[238].mxu1 %vm2682_vm4, %v2652_v39  ;;  %v4930_v39 = vmax.f32 %v4188_v0, 0.0  ;;  %v4198_v0 = vadd.f32 %v12044_v47, %v4197_v50  ;;  %v2368_v15 = vadd.f32 %v11938_v58, %v9344_v2 }
 0x2c9   :  { %13815 = vst [vmem:[#allocation24_spill] sm:$0xff] %v12068_v24  ;;  %v9582_v27 = vpop.f32.mrb[136].mxu1  ;;  %9736 = vmatprep.mubr.msk.f32.mxu1 %vm2682_vm4, %v2653_v49  ;;  %v2363_v50 = vadd.f32 %v11938_v58, %v2362_v26 }
 0x2ca   :  { %v4207_v40 = vpop.f32.mrb[137].mxu1  ;;  %v12074_v29 = vpop.xlane.xlu1 %5505  ;;  %5703 = vadd.xlane.f32.xlu1 %v5702_v43  ;;  %5706 = vadd.xlane.f32.xlu0 %v5705_v10  ;;  %v2353_v43 = vadd.f32 %v11938_v58, %v2352_v41  ;;  %v5193_v41 = vmul.f32 %v12050_v21, %v4930_v39  ;;  %v2658_v52 = vmax.f32 %v2368_v15, 0.0  ;;  %v5714_v39 = vsel %vm2682_vm4, %v5192_v17, 0.0 }
 0x2cb   :  { %13816 = vst [vmem:[#allocation25_spill] sm:$0xff] %v12074_v29  ;;  %v9347_v24 = vpop.f32.mrb[248].mxu0  ;;  %v4193_v29 = vadd.f32 %v12044_v47, %v9576_v62  ;;  %v2656_v62 = vmax.f32 %v2358_v18, 0.0 }
 0x2cc   :  { %v12080_v30 = vpop.xlane.xlu0 %5508  ;;  %v2372_v48 = vpop.f32.mrb[249].mxu0  ;;  %9737 = vmatmul.mubr.msk.f32.gmra.mrb[240].mxu1 %vm2682_vm4, %v2654_v28  ;;  %v2655_v56 = vmax.f32 %v2353_v43, 0.0  ;;  %v4932_v28 = vmax.f32 %v4198_v0, 0.0  ;;  %v4933_v43 = vmax.f32 %v4203_v19, 0.0  ;;  %v2378_v17 = vadd.f32 %v11938_v58, %v9347_v24 }
 0x2cd   :  { %13817 = vst [vmem:[#allocation26_spill] sm:$0xff] %v12080_v30  ;;  %v9585_v3 = vpop.f32.mrb[138].mxu1  ;;  %v4931_v30 = vmax.f32 %v4193_v29, 0.0 }
 0x2ce   :  { %v4217_v14 = vpop.f32.mrb[139].mxu1  ;;  %v12087_v25 = vpop.xlane.xlu1 %5511  ;;  %5709 = vadd.xlane.f32.xlu1 %v5708_v5  ;;  %5712 = vadd.xlane.f32.xlu0 %v5711_v16  ;;  %v4213_v5 = vadd.f32 %v12044_v47, %v9582_v27  ;;  %v5195_v19 = vmul.f32 %v12050_v21, %v4932_v28  ;;  %v5717_v27 = vsel %vm2682_vm4, %v5193_v41, 0.0  ;;  %v5196_v28 = vmul.f32 %v12050_v21, %v4933_v43 }
 0x2cf   :  { %13818 = vst [vmem:[#allocation27_spill] sm:$0xff] %v12087_v25  ;;  %v9350_v9 = vpop.f32.mrb[250].mxu0  ;;  %9739 = vmatprep.mubr.msk.f32.mxu1 %vm2682_vm4, %v2655_v56  ;;  %v5194_v16 = vmul.f32 %v12050_v21, %v4931_v30  ;;  %v4208_v56 = vadd.f32 %v12044_v47, %v4207_v40  ;;  %v12133_v40 = vadd.f32 %v11535_v46, %v11544_v51 }
 0x2d0   :  { %v12095_v10 = vpop.xlane.xlu0 %5514  ;;  %v2382_v49 = vpop.f32.mrb[251].mxu0  ;;  %9740 = vmatmul.mubr.msk.f32.gmra.mrb[242].mxu1 %vm2682_vm4, %v2656_v62  ;;  %v2373_v41 = vadd.f32 %v11938_v58, %v2372_v48  ;;  %v5723_v48 = vsel %vm2682_vm4, %v5195_v19, 0.0 }
 0x2d1   :  { %13819 = vst [vmem:[#allocation28_spill] sm:$0xff] %v12095_v10  ;;  %v12098_v25 = vpop.f32.mrb[140].mxu1  ;;  %13823 = vst [vmem:[#allocation32_spill] sm:$0xff] %v12133_v40 }
 0x2d2   :  { %v12102_v18 = vpop.f32.mrb[141].mxu1  ;;  %v12104_v57 = vpop.xlane.xlu1 %5517  ;;  %5715 = vadd.xlane.f32.xlu1 %v5714_v39  ;;  %5718 = vadd.xlane.f32.xlu0 %v5717_v27  ;;  %v5720_v27 = vsel %vm2682_vm4, %v5194_v16, 0.0  ;;  %v2383_v16 = vadd.f32 %v11938_v58, %v2382_v49  ;;  %v4233_v49 = vadd.f32 %v12044_v47, %v12098_v25 }
 0x2d3   :  { %13820 = vst [vmem:[#allocation29_spill] sm:$0xff] %v12104_v57  ;;  %v12108_v29 = vpop.f32.mrb[252].mxu0  ;;  %v2657_v57 = vmax.f32 %v2363_v50, 0.0  ;;  %v4935_v50 = vmax.f32 %v4213_v5, 0.0  ;;  %v2659_v5 = vmax.f32 %v2373_v41, 0.0 }
 0x2d4   :  { %v12113_v0 = vpop.xlane.xlu0 %5520  ;;  %v12115_v2 = vpop.f32.mrb[253].mxu0 }
 0x2d5   :  { %13821 = vst [vmem:[#allocation30_spill] sm:$0xff] %v12113_v0  ;;  %v12119_v26 = vpop.f32.mrb[142].mxu1  ;;  %v4934_v0 = vmax.f32 %v4208_v56, 0.0  ;;  %9742 = vmatprep.mubr.msk.f32.mxu1 %vm2682_vm4, %v2657_v57  ;;  %v2660_v56 = vmax.f32 %v2378_v17, 0.0  ;;  %v4223_v57 = vadd.f32 %v12044_v47, %v9585_v3  ;;  %v2388_v3 = vadd.f32 %v11938_v58, %v9350_v9 }
 0x2d6   :  { %v12124_v15 = vpop.f32.mrb[143].mxu1  ;;  %v12126_v62 = vpop.xlane.xlu1 %5523  ;;  %9743 = vmatmul.mubr.msk.f32.gmra.mrb[244].mxu1 %vm2682_vm4, %v2658_v52  ;;  %5721 = vadd.xlane.f32.xlu1 %v5720_v27 }
 0x2d7   :  { %13822 = vst [vmem:[#allocation31_spill] sm:$0xff] %v12126_v62  ;;  %v12129_v30 = vpop.f32.mrb[254].mxu0  ;;  %v4218_v62 = vadd.f32 %v12044_v47, %v4217_v14  ;;  %v5197_v43 = vmul.f32 %v12050_v21, %v4934_v0  ;;  %5724 = vadd.xlane.f32.xlu0 %v5723_v48  ;;  %v12160_v0 = vadd.f32 %v11535_v46, %v11563_v13  ;;  %v4937_v9 = vmax.f32 %v4223_v57, 0.0 }
 0x2d8   :  { %v12138_v24 = vpop.xlane.xlu0 %5526  ;;  %v12140_v39 = vpop.f32.mrb[255].mxu0  ;;  %9745 = vmatprep.mubr.msk.f32.mxu1 %vm2682_vm4, %v2659_v5  ;;  %v2662_v27 = vmax.f32 %v2388_v3, 0.0  ;;  %v5726_v48 = vsel %vm2682_vm4, %v5196_v28, 0.0  ;;  %v2661_v13 = vmax.f32 %v2383_v16, 0.0  ;;  %v4228_v5 = vadd.f32 %v12044_v47, %v12102_v18 }
 0x2d9   :  { %13824 = vst [vmem:[#allocation33_spill] sm:$0xff] %v12138_v24  ;;  %v12145_v51 = vpop.f32.mrb[144].mxu1  ;;  %v4936_v10 = vmax.f32 %v4218_v62, 0.0  ;;  %13825 = vst [vmem:[#allocation34_spill] sm:$0xff] %v12160_v0  ;;  %v5198_v62 = vmul.f32 %v12050_v21, %v4935_v50  ;;  %v5729_v40 = vsel %vm2682_vm4, %v5197_v43, 0.0  ;;  %v12184_v28 = vadd.f32 %v11535_v46, %v11568_v20 }
 0x2da   :  { %v12149_v52 = vpop.f32.mrb[145].mxu1  ;;  %v12151_v24 = vpop.xlane.xlu1 %5529  ;;  %9746 = vmatmul.mubr.msk.f32.gmra.mrb[246].mxu1 %vm2682_vm4, %v2660_v56  ;;  %5727 = vadd.xlane.f32.xlu1 %v5726_v48  ;;  %v12188_v56 = vadd.f32 %v11535_v46, %v11583_v37  ;;  %v2398_v18 = vadd.f32 %v11938_v58, %v12108_v29  ;;  %v12197_v43 = vadd.f32 %v11535_v46, %v11592_v42  ;;  %v4938_v3 = vmax.f32 %v4228_v5, 0.0 }
 0x2db   :  { %v12154_v17 = vpop.f32.mrb[0].mxu0  ;;  %13827 = vst [vmem:[#allocation36_spill] sm:$0xff] %v12184_v28  ;;  %v5199_v25 = vmul.f32 %v12050_v21, %v4936_v10  ;;  %5730 = vadd.xlane.f32.xlu0 %v5729_v40  ;;  %v2393_v20 = vadd.f32 %v11938_v58, %v12115_v2  ;;  %9748 = vmatprep.mubr.msk.f32.mxu1 %vm2682_vm4, %v2661_v13  ;;  %v4939_v2 = vmax.f32 %v4233_v49, 0.0  ;;  %v5732_v13 = vsel %vm2682_vm4, %v5198_v62, 0.0 }
 0x2dc   :  { %v12164_v19 = vpop.xlane.xlu0 %5532  ;;  %v12166_v41 = vpop.f32.mrb[1].mxu0  ;;  %13828 = vst [vmem:[#allocation37_spill] sm:$0xff] %v12188_v56  ;;  %13829 = vst [vmem:[#allocation38_spill] sm:$0xff] %v12197_v43  ;;  %v12206_v10 = vadd.f32 %v11535_v46, %v11612_v1  ;;  %v12210_v29 = vadd.f32 %v11535_v46, %v11617_v7  ;;  %v5200_v40 = vmul.f32 %v12050_v21, %v4937_v9  ;;  %v2664_v42 = vmax.f32 %v2398_v18, 0.0 }
 0x2dd   :  { %13826 = vst [vmem:[#allocation35_spill] sm:$0xff] %v12164_v19  ;;  %v12171_v14 = vpop.f32.mrb[146].mxu1  ;;  %v2663_v48 = vmax.f32 %v2393_v20, 0.0  ;;  %v4238_v5 = vadd.f32 %v12044_v47, %v12124_v15  ;;  %v5735_v49 = vsel %vm2682_vm4, %v5199_v25, 0.0  ;;  %v5201_v15 = vmul.f32 %v12050_v21, %v4938_v3 }
 0x2de   :  { %v12178_v19 = vpop.f32.mrb[147].mxu1  ;;  %v12180_v50 = vpop.xlane.xlu1 %5535  ;;  %13830 = vst [vmem:[#allocation39_spill] sm:$0xff] %v12206_v10  ;;  %13831 = vst [vmem:[#allocation40_spill] sm:$0xff] %v12210_v29  ;;  %9749 = vmatmul.mubr.msk.f32.gmra.mrb[248].mxu1 %vm2682_vm4, %v2662_v27  ;;  %v4243_v27 = vadd.f32 %v12044_v47, %v12119_v26  ;;  %5733 = vadd.xlane.f32.xlu1 %v5732_v13  ;;  %v2408_v20 = vadd.f32 %v11938_v58, %v12129_v30  ;;  %v5738_v26 = vsel %vm2682_vm4, %v5200_v40, 0.0 }
 0x2df   :  { %v4940_v18 = vmax.f32 %v4238_v5, 0.0  ;;  %5736 = vadd.xlane.f32.xlu0 %v5735_v49  ;;  %9751 = vmatprep.mubr.msk.f32.mxu1 %vm2682_vm4, %v2663_v48  ;;  %v12244_v13 = vadd.f32 %v11535_v46, %v11632_v31  ;;  %v2403_v3 = vadd.f32 %v11938_v58, %v12140_v39  ;;  %v5202_v48 = vmul.f32 %v12050_v21, %v4939_v2 }
 0x2e0   :  { %v12202_v37 = vpop.xlane.xlu0 %5538  ;;  %v2666_v5 = vmax.f32 %v2408_v20, 0.0  ;;  %v4253_v49 = vadd.f32 %v12044_v47, %v12145_v51  ;;  %v12261_v31 = vadd.f32 %v11535_v46, %v11641_v36  ;;  %v4941_v58 = vmax.f32 %v4243_v27, 0.0 }
 0x2e1   :  { %v12214_v16 = vpop.f32.mrb[148].mxu1  ;;  %13832 = vst [vmem:[#allocation41_spill] sm:$0xff] %v12244_v13  ;;  %v2665_v39 = vmax.f32 %v2403_v3, 0.0  ;;  %v12267_v2 = vadd.f32 %v11535_v46, %v11656_v63  ;;  %v12271_v51 = vadd.f32 %v11535_v46, %v11661_v6  ;;  %v5203_v40 = vmul.f32 %v12050_v21, %v4940_v18 }
 0x2e2   :  { %v12219_v1 = vpop.f32.mrb[149].mxu1  ;;  %v12221_v57 = vpop.xlane.xlu1 %5541  ;;  %9752 = vmatmul.mubr.msk.f32.gmra.mrb[250].mxu1 %vm2682_vm4, %v2664_v42  ;;  %13833 = vst [vmem:[#allocation42_spill] sm:$0xff] %v12261_v31  ;;  %5739 = vadd.xlane.f32.xlu1 %v5738_v26  ;;  %v4248_v42 = vadd.f32 %v12044_v47, %v12149_v52  ;;  %v5741_v20 = vsel %vm2682_vm4, %v5201_v15, 0.0  ;;  %v12279_v27 = vadd.f32 %v11535_v46, %v11676_v61  ;;  %v4943_v61 = vmax.f32 %v4253_v49, 0.0  ;;  %v13844_v31 = vld [vmem:[#allocation11_spill] sm:$0xff] }
 0x2e3   :  { %13834 = vst [vmem:[#allocation43_spill] sm:$0xff] %v12267_v2  ;;  %13835 = vst [vmem:[#allocation44_spill] sm:$0xff] %v12271_v51  ;;  %v6136_v52 = vadd.f32 %v11535_v46, %v11920_v4  ;;  %5742 = vadd.xlane.f32.xlu0 %v5741_v20  ;;  %v3523_v63 = vadd.f32 %v12044_v47, %v12154_v17  ;;  %9754 = vmatprep.mubr.msk.f32.mxu1 %vm2682_vm4, %v2665_v39  ;;  %v5744_v3 = vsel %vm2682_vm4, %v5202_v48, 0.0 }
 0x2e4   :  { %v12236_v7 = vpop.xlane.xlu0 %5544  ;;  %13837 = vst [vmem:[#allocation46_spill] sm:$0xff] %v12279_v27  ;;  %v4942_v26 = vmax.f32 %v4248_v42, 0.0  ;;  %v12292_v18 = vadd.f32 %v11535_v46, %v11685_v44  ;;  %v5204_v39 = vmul.f32 %v12050_v21, %v4941_v58  ;;  %v4263_v44 = vadd.f32 %v12044_v47, %v12171_v14 }
 0x2e5   :  { %v12249_v30 = vpop.f32.mrb[150].mxu1  ;;  %v4797_v49 = vmax.f32 %v3523_v63, 0.0  ;;  %v5747_v15 = vsel %vm2682_vm4, %v5203_v40, 0.0  ;;  %v6852_v14 = vrot.slane %v6136_v52, %v11638_v33  ;;  %v6138_v40 = vadd.f32 %v11535_v46, %v11942_v34 }
 0x2e6   :  { %v12255_v25 = vpop.f32.mrb[151].mxu1  ;;  %v12257_v62 = vpop.xlane.xlu1 %5547  ;;  %13838 = vst [vmem:[#allocation47_spill] sm:$0xff] %v12292_v18  ;;  %9755 = vmatmul.mubr.msk.f32.gmra.mrb[252].mxu1 %vm2682_vm4, %v2666_v5  ;;  %v5205_v20 = vmul.f32 %v12050_v21, %v4942_v26  ;;  %5745 = vadd.xlane.f32.xlu1 %v5744_v3  ;;  %v3518_v5 = vadd.f32 %v12044_v47, %v12166_v41  ;;  %v4945_v17 = vmax.f32 %v4263_v44, 0.0  ;;  %v13840_v18 = vld [vmem:[#allocation6_spill] sm:$0xff]  ;;  %v13842_v44 = vld [vmem:[#allocation9_spill] sm:$0xff] }
 0x2e7   :  { %v6137_v3 = vadd.f32 %v11535_v46, %v11928_v23  ;;  %5748 = vadd.xlane.f32.xlu0 %v5747_v15  ;;  %v6142_v58 = vadd.f32 %v11535_v46, %v11974_v45  ;;  %v5206_v48 = vmul.f32 %v12050_v21, %v4943_v61  ;;  %v4273_v23 = vadd.f32 %v12044_v47, %v12214_v16 }
 0x2e8   :  { %v12275_v36 = vpop.xlane.xlu0 %5550  ;;  %v5750_v15 = vsel %vm2682_vm4, %v5204_v39, 0.0  ;;  %v5753_v41 = vsel %vm2682_vm4, %v5205_v20, 0.0  ;;  %v12339_v34 = vadd.f32 %v11535_v46, %v13840_v18  ;;  %v5060_v45 = vmul.f32 %v12050_v21, %v4797_v49  ;;  %v13843_v39 = vld [vmem:[#allocation8_spill] sm:$0xff] }
 0x2e9   :  { %13836 = vst [vmem:[#allocation45_spill] sm:$0xff] %v12275_v36  ;;  %v12286_v6 = vpop.f32.mrb[152].mxu1  ;;  %v4796_v27 = vmax.f32 %v3518_v5, 0.0  ;;  %v4258_v61 = vadd.f32 %v12044_v47, %v12178_v19  ;;  %v6853_v2 = vsel %vm13792_vm15, %v6852_v14, %v13842_v44  ;;  %v6857_v16 = vrot.slane %v6137_v3, %v11652_v55  ;;  %v13845_v5 = vld [vmem:[#allocation5_spill] sm:$0xff] }
 0x2ea   :  { %v12296_v4 = vpop.f32.mrb[153].mxu1  ;;  %v12298_v42 = vpop.xlane.xlu1 %5553  ;;  %13841 = vst [vmem:[#allocation6_spill] sm:$0xff] %v12339_v34  ;;  %5751 = vadd.xlane.f32.xlu1 %v5750_v15  ;;  %v6139_v20 = vadd.f32 %v11535_v46, %v13843_v39  ;;  %v6141_v18 = vadd.f32 %v11535_v46, %v13844_v31  ;;  %v6862_v49 = vrot.slane %v6138_v40, %v11665_v12  ;;  %v13846_v15 = vld [vmem:[#allocation12_spill] sm:$0xff]  ;;  %v4947_v10 = vmax.f32 %v4273_v23, 0.0  ;;  %v13847_v40 = vld [vmem:[#allocation3_spill] sm:$0xff]  ;;  %v13848_v23 = vld [vmem:[#allocation10_spill] sm:$0xff] }
 0x2eb   :  { %13839 = vst [vmem:[#allocation48_spill] sm:$0xff] %v12298_v42  ;;  %5754 = vadd.xlane.f32.xlu0 %v5753_v41  ;;  %v6881_v19 = vrot.slane %v6142_v58, %v13845_v5  ;;  %v6143_v29 = vadd.f32 %v11535_v46, %v13846_v15  ;;  %v4268_v14 = vadd.f32 %v12044_v47, %v12219_v1  ;;  %v5756_v41 = vsel %vm2682_vm4, %v5206_v48, 0.0 }
 0x2ec   :  { %v12311_v9 = vpop.xlane.xlu0 %5556  ;;  %v5208_v39 = vmul.f32 %v12050_v21, %v4945_v17  ;;  %v4283_v31 = vadd.f32 %v12044_v47, %v12249_v30  ;;  %v5059_v43 = vmul.f32 %v12050_v21, %v4796_v27  ;;  %v4944_v15 = vmax.f32 %v4258_v61, 0.0  ;;  %v13849_v30 = vld [vmem:[#allocation4_spill] sm:$0xff] }
 0x2ed   :  { %v12320_v63 = vpop.f32.mrb[154].mxu1  ;;  %v5318_v1 = vsel %vm2682_vm4, %v5060_v45, 0.0  ;;  %v6858_v28 = vsel %vm13791_vm0, %v6857_v16, %v6853_v2  ;;  %v6867_v17 = vrot.slane %v6139_v20, %v11679_v35  ;;  %v12373_v0 = vadd.f32 %v11535_v46, %v13848_v23 }
 0x2ee   :  { %v12329_v26 = vpop.f32.mrb[155].mxu1  ;;  %v12331_v52 = vpop.xlane.xlu1 %5559  ;;  %5757 = vadd.xlane.f32.xlu1 %v5756_v41  ;;  %v6877_v48 = vrot.slane %v6141_v18, %v13849_v30  ;;  %v6863_v27 = vsel %vm6700_vm1, %v6862_v49, %v6858_v28  ;;  %v6886_v61 = vrot.slane %v6143_v29, %v11547_v54  ;;  %v4946_v41 = vmax.f32 %v4268_v14, 0.0 }
 0x2ef   :  { %5319 = vadd.xlane.f32.xlu0 %v5318_v1  ;;  %v4293_v45 = vadd.f32 %v12044_v47, %v12286_v6  ;;  %v5210_v23 = vmul.f32 %v12050_v21, %v4947_v10  ;;  %v4949_v58 = vmax.f32 %v4283_v31, 0.0  ;;  %v5762_v18 = vsel %vm2682_vm4, %v5208_v39, 0.0  ;;  %v13851_v10 = vld [vmem:[#allocation14_spill] sm:$0xff] }
 0x2f0   :  { %v5563_v51 = vpop.xlane.xlu0 %5562  ;;  %v6882_v20 = vsel %vm6616_vm5, %v6881_v19, %v6877_v48  ;;  %v5207_v1 = vmul.f32 %v12050_v21, %v4944_v15  ;;  %v4278_v28 = vadd.f32 %v12044_v47, %v12255_v25  ;;  %v5315_v29 = vsel %vm2682_vm4, %v5059_v43, 0.0  ;;  %v13850_v19 = vld [vmem:[#allocation13_spill] sm:$0xff] }
 0x2f1   :  { %v12351_v13 = vpop.f32.mrb[156].mxu1  ;;  %v6173_v6 = vadd.f32 %v11535_v46, %v12311_v9  ;;  %v12394_v14 = vsel %vm6707_vm2, %v6867_v17, %v6863_v27  ;;  %v12400_v39 = vadd.f32 %v11535_v46, %v13850_v19  ;;  %v4288_v25 = vadd.f32 %v12044_v47, %v12296_v4 }
 0x2f2   :  { %v12359_v3 = vpop.f32.mrb[157].mxu1  ;;  %v5566_v44 = vpop.xlane.xlu1 %5565  ;;  %5763 = vadd.xlane.f32.xlu1 %v5762_v18  ;;  %v12407_v43 = vsel %vm6623_vm6, %v6886_v61, %v6882_v20  ;;  %v5209_v9 = vmul.f32 %v12050_v21, %v4946_v41  ;;  %v4951_v15 = vmax.f32 %v4293_v45, 0.0  ;;  %v6174_v17 = vadd.f32 %v11535_v46, %v12331_v52 }
 0x2f3   :  { %5316 = vadd.xlane.f32.xlu0 %v5315_v29  ;;  %v5212_v18 = vmul.f32 %v12050_v21, %v4949_v58  ;;  %v4303_v4 = vadd.f32 %v12044_v47, %v12320_v63  ;;  %v5768_v29 = vsel %vm2682_vm4, %v5210_v23, 0.0  ;;  %v6175_v19 = vadd.f32 %v11535_v46, %v5563_v51 }
 0x2f4   :  { %v5569_v56 = vpop.xlane.xlu0 %5568  ;;  %v4948_v61 = vmax.f32 %v4278_v28, 0.0  ;;  %v7035_v20 = vrot.slane %v6173_v6, %v13849_v30  ;;  %v7039_v41 = vrot.slane %v6174_v17, %v13845_v5  ;;  %v5759_v52 = vsel %vm2682_vm4, %v5207_v1, 0.0 }
 0x2f5   :  { %v12376_v42 = vpop.f32.mrb[158].mxu1  ;;  %v12424_v34 = vadd.f32 %v11535_v46, %v13851_v10  ;;  %v4950_v58 = vmax.f32 %v4288_v25, 0.0  ;;  %v7044_v63 = vrot.slane %v6175_v19, %v11547_v54  ;;  %v6176_v23 = vadd.f32 %v11535_v46, %v5566_v44 }
 0x2f6   :  { %v12382_v2 = vpop.f32.mrb[159].mxu1  ;;  %v5572_v16 = vpop.xlane.xlu1 %5571  ;;  %5769 = vadd.xlane.f32.xlu1 %v5768_v29  ;;  %v5214_v28 = vmul.f32 %v12050_v21, %v4951_v15  ;;  %v4298_v6 = vadd.f32 %v12044_v47, %v12329_v26  ;;  %v7040_v1 = vsel %vm6616_vm5, %v7039_v41, %v7035_v20  ;;  %v6177_v17 = vadd.f32 %v11535_v46, %v5569_v56 }
 0x2f7   :  { %5760 = vadd.xlane.f32.xlu0 %v5759_v52  ;;  %v4953_v25 = vmax.f32 %v4303_v4, 0.0  ;;  %v4313_v19 = vadd.f32 %v12044_v47, %v12351_v13  ;;  %v5774_v44 = vsel %vm2682_vm4, %v5212_v18, 0.0  ;;  %v7049_v52 = vrot.slane %v6176_v23, %v11542_v60 }
 0x2f8   :  { %v5575_v49 = vpop.xlane.xlu0 %5574  ;;  %v5211_v15 = vmul.f32 %v12050_v21, %v4948_v61  ;;  %v7045_v36 = vsel %vm6623_vm6, %v7044_v63, %v7040_v1  ;;  %v5765_v26 = vsel %vm2682_vm4, %v5209_v9, 0.0  ;;  %v7054_v56 = vrot.slane %v6177_v17, %v11559_v8 }
 0x2f9   :  { %v12404_v31 = vpop.f32.mrb[160].mxu1  ;;  %v6891_v4 = vrot.slane %v12400_v39, %v11542_v60  ;;  %v5213_v41 = vmul.f32 %v12050_v21, %v4950_v58  ;;  %v7050_v13 = vsel %vm6630_vm7, %v7049_v52, %v7045_v36  ;;  %v6178_v18 = vadd.f32 %v11535_v46, %v5572_v16 }
 0x2fa   :  { %v12412_v48 = vpop.f32.mrb[161].mxu1  ;;  %v5578_v27 = vpop.xlane.xlu1 %5577  ;;  %5775 = vadd.xlane.f32.xlu1 %v5774_v44  ;;  %v4952_v61 = vmax.f32 %v4298_v6, 0.0  ;;  %v4308_v63 = vadd.f32 %v12044_v47, %v12359_v3  ;;  %v4323_v9 = vadd.f32 %v12044_v47, %v12376_v42  ;;  %v6179_v1 = vadd.f32 %v11535_v46, %v5575_v49 }
 0x2fb   :  { %5766 = vadd.xlane.f32.xlu0 %v5765_v26  ;;  %v5216_v58 = vmul.f32 %v12050_v21, %v4953_v25  ;;  %v4955_v36 = vmax.f32 %v4313_v19, 0.0  ;;  %v5780_v44 = vsel %vm2682_vm4, %v5214_v28, 0.0  ;;  %v7059_v16 = vrot.slane %v6178_v18, %v11572_v22 }
 0x2fc   :  { %v5581_v45 = vpop.xlane.xlu0 %5580  ;;  %v7055_v6 = vsel %vm13786_vm8, %v7054_v56, %v7050_v13  ;;  %v5771_v3 = vsel %vm2682_vm4, %v5211_v15, 0.0  ;;  %v7064_v52 = vrot.slane %v6179_v1, %v11586_v38  ;;  %v6180_v42 = vadd.f32 %v11535_v46, %v5578_v27 }
 0x2fd   :  { %v12428_v51 = vpop.f32.mrb[162].mxu1  ;;  %v6896_v49 = vrot.slane %v12424_v34, %v11559_v8  ;;  %v7060_v26 = vsel %vm6644_vm9, %v7059_v16, %v7055_v6  ;;  %v4333_v28 = vadd.f32 %v12044_v47, %v12404_v31  ;;  %v6181_v25 = vadd.f32 %v11535_v46, %v5581_v45 }
 0x2fe   :  { %v12435_v29 = vpop.f32.mrb[163].mxu1  ;;  %v5584_v10 = vpop.xlane.xlu1 %5583  ;;  %5781 = vadd.xlane.f32.xlu1 %v5780_v44  ;;  %v5215_v15 = vmul.f32 %v12050_v21, %v4952_v61  ;;  %v4954_v13 = vmax.f32 %v4308_v63, 0.0  ;;  %v4957_v18 = vmax.f32 %v4323_v9, 0.0  ;;  %v7069_v27 = vrot.slane %v6180_v42, %v11589_v53 }
 0x2ff   :  { %5772 = vadd.xlane.f32.xlu0 %v5771_v3  ;;  %v5218_v44 = vmul.f32 %v12050_v21, %v4955_v36  ;;  %v7065_v16 = vsel %vm6651_vm10, %v7064_v52, %v7060_v26  ;;  %v5786_v6 = vsel %vm2682_vm4, %v5216_v58, 0.0  ;;  %v7074_v31 = vrot.slane %v6181_v25, %v11608_v59 }
 0x300   :  { %v5587_v20 = vpop.xlane.xlu0 %5586  ;;  %v4318_v45 = vadd.f32 %v12044_v47, %v12382_v2  ;;  %v7070_v61 = vsel %vm13789_vm11, %v7069_v27, %v7065_v16  ;;  %v5777_v63 = vsel %vm2682_vm4, %v5213_v41, 0.0  ;;  %v6182_v9 = vadd.f32 %v11535_v46, %v5584_v10 }
 0x301   :  { %v12450_v23 = vpop.f32.mrb[164].mxu1  ;;  %v12489_v36 = vsel %vm6630_vm7, %v6891_v4, %v12407_v43  ;;  %v4959_v52 = vmax.f32 %v4333_v28, 0.0  ;;  %v4328_v58 = vadd.f32 %v12044_v47, %v12412_v48  ;;  %v6183_v42 = vadd.f32 %v11535_v46, %v5587_v20 }
 0x302   :  { %v12457_v17 = vpop.f32.mrb[165].mxu1  ;;  %v5590_v39 = vpop.xlane.xlu1 %5589  ;;  %5787 = vadd.xlane.f32.xlu1 %v5786_v6  ;;  %v5217_v26 = vmul.f32 %v12050_v21, %v4954_v13  ;;  %v5220_v41 = vmul.f32 %v12050_v21, %v4957_v18  ;;  %v4343_v10 = vadd.f32 %v12044_v47, %v12428_v51  ;;  %v7079_v25 = vrot.slane %v6182_v9, %v11621_v11  ;;  %v13852_v6 = vld [vmem:[#allocation15_spill] sm:$0xff] }
 0x303   :  { %5778 = vadd.xlane.f32.xlu0 %v5777_v63  ;;  %v7075_v28 = vsel %vm13788_vm12, %v7074_v31, %v7070_v61  ;;  %v5792_v48 = vsel %vm2682_vm4, %v5218_v44, 0.0  ;;  %v7084_v20 = vrot.slane %v6183_v42, %v11635_v32  ;;  %v6184_v27 = vadd.f32 %v11535_v46, %v5590_v39 }
 0x304   :  { %v5593_v19 = vpop.xlane.xlu0 %5592  ;;  %v4956_v16 = vmax.f32 %v4318_v45, 0.0  ;;  %v7080_v13 = vsel %vm13787_vm13, %v7079_v25, %v7075_v28  ;;  %v5783_v18 = vsel %vm2682_vm4, %v5215_v15, 0.0  ;;  %v12512_v63 = vadd.f32 %v11535_v46, %v13852_v6 }
 0x305   :  { %v12472_v56 = vpop.f32.mrb[166].mxu1  ;;  %v6185_v51 = vadd.f32 %v11535_v46, %v5593_v19  ;;  %v5222_v31 = vmul.f32 %v12050_v21, %v4959_v52  ;;  %v4958_v61 = vmax.f32 %v4328_v58, 0.0  ;;  %v7089_v44 = vrot.slane %v6184_v27, %v11638_v33 }
 0x306   :  { %v12476_v1 = vpop.f32.mrb[167].mxu1  ;;  %v5596_v3 = vpop.xlane.xlu1 %5595  ;;  %5793 = vadd.xlane.f32.xlu1 %v5792_v48  ;;  %v4961_v39 = vmax.f32 %v4343_v10, 0.0  ;;  %v4338_v45 = vadd.f32 %v12044_v47, %v12435_v29  ;;  %v7085_v15 = vsel %vm13790_vm14, %v7084_v20, %v7080_v13  ;;  %v4353_v52 = vadd.f32 %v12044_v47, %v12450_v23 }
 0x307   :  { %5784 = vadd.xlane.f32.xlu0 %v5783_v18  ;;  %v7094_v19 = vrot.slane %v6185_v51, %v11652_v55  ;;  %v5798_v58 = vsel %vm2682_vm4, %v5220_v41, 0.0  ;;  %v7090_v28 = vsel %vm13792_vm15, %v7089_v44, %v7085_v15  ;;  %v6186_v48 = vadd.f32 %v11535_v46, %v5596_v3  ;;  %v13853_v18 = vld [vmem:[#allocation16_spill] sm:$0xff] }
 0x308   :  { %v5219_v10 = vmul.f32 %v12050_v21, %v4956_v16  ;;  %v5789_v29 = vsel %vm2682_vm4, %v5217_v26, 0.0  ;;  %v12535_v51 = vadd.f32 %v11535_v46, %v13853_v18  ;;  %v5221_v23 = vmul.f32 %v12050_v21, %v4958_v61 }
 0x309   :  { %v12494_v2 = vpop.f32.mrb[168].mxu1  ;;  %v5599_v43 = vpop.xlane.xlu0 %5598  ;;  %v7095_v20 = vsel %vm13791_vm0, %v7094_v19, %v7090_v28  ;;  %v4348_v41 = vadd.f32 %v12044_v47, %v12457_v17  ;;  %v7099_v3 = vrot.slane %v6186_v48, %v11665_v12  ;;  %v4960_v26 = vmax.f32 %v4338_v45, 0.0 }
 0x30a   :  { %v12501_v4 = vpop.f32.mrb[169].mxu1  ;;  %5799 = vadd.xlane.f32.xlu1 %v5798_v58  ;;  %v6187_v27 = vadd.f32 %v11535_v46, %v5599_v43  ;;  %v4363_v6 = vadd.f32 %v12044_v47, %v12472_v56  ;;  %v5224_v61 = vmul.f32 %v12050_v21, %v4961_v39  ;;  %v4963_v19 = vmax.f32 %v4353_v52, 0.0 }
 0x30b   :  { %v5602_v42 = vpop.xlane.xlu1 %5601  ;;  %5790 = vadd.xlane.f32.xlu0 %v5789_v29  ;;  %v5804_v17 = vsel %vm2682_vm4, %v5222_v31, 0.0  ;;  %v7100_v58 = vsel %vm6700_vm1, %v7099_v3, %v7095_v20  ;;  %v5795_v28 = vsel %vm2682_vm4, %v5219_v10, 0.0  ;;  %v6897_v39 = vsel %vm13786_vm8, %v6896_v49, %v12489_v36 }
 0x30c   :  { %v7104_v43 = vrot.slane %v6187_v27, %v11679_v35  ;;  %v6188_v44 = vadd.f32 %v11535_v46, %v5602_v42  ;;  %v6901_v31 = vrot.slane %v12512_v63, %v11572_v22  ;;  %v6906_v42 = vrot.slane %v12535_v51, %v11586_v38 }
 0x30d   :  { %v12516_v9 = vpop.f32.mrb[170].mxu1  ;;  %v4962_v52 = vmax.f32 %v4348_v41, 0.0  ;;  %v5223_v27 = vmul.f32 %v12050_v21, %v4960_v26  ;;  %v5226_v36 = vmul.f32 %v12050_v21, %v4963_v19  ;;  %v4373_v63 = vadd.f32 %v12044_v47, %v12494_v2 }
 0x30e   :  { %v12522_v25 = vpop.f32.mrb[171].mxu1  ;;  %5805 = vadd.xlane.f32.xlu1 %v5804_v17  ;;  %v7105_v45 = vsel %vm6707_vm2, %v7104_v43, %v7100_v58  ;;  %v7109_v56 = vrot.slane %v6188_v44, %v13847_v40  ;;  %v5810_v51 = vsel %vm2682_vm4, %v5224_v61, 0.0  ;;  %v4358_v3 = vadd.f32 %v12044_v47, %v12476_v1 }
 0x30f   :  { %v5605_v13 = vpop.xlane.xlu0 %5604  ;;  %5796 = vadd.xlane.f32.xlu0 %v5795_v28  ;;  %v5801_v26 = vsel %vm2682_vm4, %v5221_v23, 0.0  ;;  %v6902_v19 = vsel %vm6644_vm9, %v6901_v31, %v6897_v39  ;;  %v5225_v17 = vmul.f32 %v12050_v21, %v4962_v52  ;;  %v4383_v23 = vadd.f32 %v12044_v47, %v12516_v9 }
 0x310   :  { %v6189_v48 = vadd.f32 %v11535_v46, %v5605_v13  ;;  %v4965_v13 = vmax.f32 %v4363_v6, 0.0  ;;  %v12569_v18 = vsel %vm6714_vm3, %v7109_v56, %v7105_v45  ;;  %v5816_v39 = vsel %vm2682_vm4, %v5226_v36, 0.0 }
 0x311   :  { %v12541_v16 = vpop.f32.mrb[172].mxu1  ;;  %v5807_v9 = vsel %vm2682_vm4, %v5223_v27, 0.0  ;;  %v4378_v27 = vadd.f32 %v12044_v47, %v12522_v25  ;;  %v5813_v25 = vsel %vm2682_vm4, %v5225_v17, 0.0 }
 0x312   :  { %v12547_v15 = vpop.f32.mrb[173].mxu1  ;;  %5811 = vadd.xlane.f32.xlu1 %v5810_v51  ;;  %v7114_v6 = vrot.slane %v6189_v48, %v13849_v30  ;;  %v5228_v1 = vmul.f32 %v12050_v21, %v4965_v13  ;;  %v4368_v13 = vadd.f32 %v12044_v47, %v12501_v4  ;;  %v4969_v4 = vmax.f32 %v4383_v23, 0.0 }
 0x313   :  { %v5608_v29 = vpop.xlane.xlu1 %5607  ;;  %5802 = vadd.xlane.f32.xlu0 %v5801_v26  ;;  %v13854_v26 = vld [vmem:[#allocation17_spill] sm:$0xff] }
 0x314   :  { %v5611_v10 = vpop.xlane.xlu0 %5610  ;;  %v6190_v34 = vadd.f32 %v11535_v46, %v5608_v29  ;;  %v4967_v29 = vmax.f32 %v4373_v63, 0.0  ;;  %v6148_v63 = vadd.f32 %v11535_v46, %v13854_v26 }
 0x315   :  { %v12565_v20 = vpop.f32.mrb[174].mxu1  ;;  %v6191_v41 = vadd.f32 %v11535_v46, %v5611_v10  ;;  %v4964_v10 = vmax.f32 %v4358_v3, 0.0 }
 0x316   :  { %v12572_v49 = vpop.f32.mrb[175].mxu1  ;;  %v7118_v43 = vrot.slane %v6190_v34, %v13845_v5  ;;  %5817 = vadd.xlane.f32.xlu1 %v5816_v39 }
 0x317   :  { %v5614_v44 = vpop.xlane.xlu1 %5613  ;;  %v7123_v2 = vrot.slane %v6191_v41, %v11547_v54  ;;  %v6907_v41 = vsel %vm6651_vm10, %v6906_v42, %v6902_v19  ;;  %5808 = vadd.xlane.f32.xlu0 %v5807_v9  ;;  %v5230_v19 = vmul.f32 %v12050_v21, %v4967_v29  ;;  %v5227_v23 = vmul.f32 %v12050_v21, %v4964_v10  ;;  %v13855_v9 = vld [vmem:[#allocation18_spill] sm:$0xff] }
 0x318   :  { %v6192_v61 = vadd.f32 %v11535_v46, %v5614_v44  ;;  %v5617_v58 = vpop.xlane.xlu0 %5616  ;;  %v7119_v45 = vsel %vm6616_vm5, %v7118_v43, %v7114_v6  ;;  %v6149_v29 = vadd.f32 %v11535_v46, %v13855_v9  ;;  %v12635_v21 = vld [vmem:[%s13764_s5] ss:$0 sm:$0xff]  ;;  %v4968_v10 = vmax.f32 %v4378_v27, 0.0 }
 0x319   :  { %v12588_v28 = vpop.f32.mrb[176].mxu1  ;;  %v6193_v56 = vadd.f32 %v11535_v46, %v5617_v58  ;;  %v7124_v31 = vsel %vm6623_vm6, %v7123_v2, %v7119_v45  ;;  %v5822_v58 = vsel %vm2682_vm4, %v5228_v1, 0.0  ;;  %v5232_v17 = vmul.f32 %v12635_v21, %v4969_v4 }
 0x31a   :  { %v12595_v48 = vpop.f32.mrb[177].mxu1  ;;  %v7128_v52 = vrot.slane %v6192_v61, %v11542_v60  ;;  %v4393_v61 = vadd.f32 %v12044_v47, %v12541_v16  ;;  %5823 = vadd.xlane.f32.xlu1 %v5822_v58 }
 0x31b   :  { %v7133_v34 = vrot.slane %v6193_v56, %v11559_v8  ;;  %v5620_v51 = vpop.xlane.xlu1 %5619  ;;  %v4966_v56 = vmax.f32 %v4368_v13, 0.0  ;;  %5814 = vadd.xlane.f32.xlu0 %v5813_v25  ;;  %v6916_v25 = vrot.slane %v6149_v29, %v11608_v59  ;;  %v5834_v29 = vsel %vm2682_vm4, %v5232_v17, 0.0 }
 0x31c   :  { %v7129_v36 = vsel %vm6630_vm7, %v7128_v52, %v7124_v31  ;;  %v6194_v6 = vadd.f32 %v11535_v46, %v5620_v51  ;;  %v5623_v3 = vpop.xlane.xlu0 %5622  ;;  %v6911_v52 = vrot.slane %v6148_v63, %v11589_v53  ;;  %v4971_v63 = vmax.f32 %v4393_v61, 0.0 }
 0x31d   :  { %v12609_v43 = vpop.f32.mrb[178].mxu1  ;;  %v7134_v44 = vsel %vm13786_vm8, %v7133_v34, %v7129_v36  ;;  %v6195_v2 = vadd.f32 %v11535_v46, %v5623_v3  ;;  %v12645_v36 = vld [vmem:[%s13763_s4] ss:$0 sm:$0xff]  ;;  %v5828_v3 = vsel %vm2682_vm4, %v5230_v19, 0.0  ;;  %v5229_v27 = vmul.f32 %v12635_v21, %v4966_v56 }
 0x31e   :  { %v12615_v42 = vpop.f32.mrb[179].mxu1  ;;  %v7138_v45 = vrot.slane %v6194_v6, %v11572_v22  ;;  %v4403_v6 = vadd.f32 %v12645_v36, %v12565_v20  ;;  %5829 = vadd.xlane.f32.xlu1 %v5828_v3 }
 0x31f   :  { %v7143_v39 = vrot.slane %v6195_v2, %v11586_v38  ;;  %v5626_v31 = vpop.xlane.xlu1 %5625  ;;  %v5819_v2 = vsel %vm2682_vm4, %v5227_v23, 0.0 }
 0x320   :  { %v7139_v47 = vsel %vm6644_vm9, %v7138_v45, %v7134_v44  ;;  %v6196_v16 = vadd.f32 %v11535_v46, %v5626_v31  ;;  %v5629_v1 = vpop.xlane.xlu0 %5628  ;;  %v4388_v44 = vadd.f32 %v12645_v36, %v12547_v15  ;;  %v6912_v45 = vsel %vm13789_vm11, %v6911_v52, %v6907_v41  ;;  %5820 = vadd.xlane.f32.xlu0 %v5819_v2  ;;  %v13857_v2 = vld [vmem:[#allocation20_spill] sm:$0xff] }
 0x321   :  { %v12630_v34 = vpop.f32.mrb[180].mxu1  ;;  %v7144_v13 = vsel %vm6651_vm10, %v7143_v39, %v7139_v47  ;;  %v6197_v51 = vadd.f32 %v11535_v46, %v5629_v1  ;;  %v5231_v31 = vmul.f32 %v12635_v21, %v4968_v10  ;;  %v4413_v15 = vadd.f32 %v12645_v36, %v12588_v28 }
 0x322   :  { %v12640_v26 = vpop.f32.mrb[181].mxu1  ;;  %v7148_v4 = vrot.slane %v6196_v16, %v11589_v53  ;;  %v5234_v41 = vmul.f32 %v12635_v21, %v4971_v63  ;;  %v4973_v52 = vmax.f32 %v4403_v6, 0.0  ;;  %v4970_v1 = vmax.f32 %v4388_v44, 0.0  ;;  %5835 = vadd.xlane.f32.xlu1 %v5834_v29 }
 0x323   :  { %v7153_v61 = vrot.slane %v6197_v51, %v11608_v59  ;;  %v5632_v58 = vpop.xlane.xlu1 %5631  ;;  %v4398_v10 = vadd.f32 %v12645_v36, %v12572_v49  ;;  %v5825_v28 = vsel %vm2682_vm4, %v5229_v27, 0.0  ;;  %v6917_v3 = vsel %vm13788_vm12, %v6916_v25, %v6912_v45 }
 0x324   :  { %v7149_v20 = vsel %vm13789_vm11, %v7148_v4, %v7144_v13  ;;  %v6198_v19 = vadd.f32 %v11535_v46, %v5632_v58  ;;  %v5635_v39 = vpop.xlane.xlu0 %5634  ;;  %v13856_v4 = vld [vmem:[#allocation19_spill] sm:$0xff]  ;;  %5826 = vadd.xlane.f32.xlu0 %v5825_v28  ;;  %v12683_v49 = vadd.f32 %v11535_v46, %v13857_v2  ;;  %v4975_v27 = vmax.f32 %v4413_v15, 0.0 }
 0x325   :  { %v9651_v56 = vpop.f32.mrb[182].mxu1  ;;  %v7154_v23 = vsel %vm13788_vm12, %v7153_v61, %v7149_v20  ;;  %v6199_v9 = vadd.f32 %v11535_v46, %v5635_v39  ;;  %v6150_v63 = vadd.f32 %v11535_v46, %v13856_v4  ;;  %v4423_v61 = vadd.f32 %v12645_v36, %v12609_v43 }
 0x326   :  { %v12665_v47 = vpop.f32.mrb[183].mxu1  ;;  %v7158_v16 = vrot.slane %v6198_v19, %v11621_v11  ;;  %v5236_v20 = vmul.f32 %v12635_v21, %v4973_v52  ;;  %v5840_v19 = vsel %vm2682_vm4, %v5234_v41, 0.0  ;;  %v4972_v29 = vmax.f32 %v4398_v10, 0.0 }
 0x327   :  { %v7163_v13 = vrot.slane %v6199_v9, %v11635_v32  ;;  %v5233_v9 = vmul.f32 %v12635_v21, %v4970_v1  ;;  %v4408_v15 = vadd.f32 %v12645_v36, %v12595_v48  ;;  %5841 = vadd.xlane.f32.xlu1 %v5840_v19  ;;  %v5831_v43 = vsel %vm2682_vm4, %v5231_v31, 0.0 }
 0x328   :  { %v5638_v51 = vpop.xlane.xlu1 %5637  ;;  %v7159_v17 = vsel %vm13787_vm13, %v7158_v16, %v7154_v23  ;;  %v6921_v28 = vrot.slane %v6150_v63, %v11621_v11  ;;  %5832 = vadd.xlane.f32.xlu0 %v5831_v43  ;;  %v5238_v1 = vmul.f32 %v12635_v21, %v4975_v27  ;;  %v4977_v10 = vmax.f32 %v4423_v61, 0.0 }
 0x329   :  { %v6200_v6 = vadd.f32 %v11535_v46, %v5638_v51  ;;  %v12679_v44 = vpop.f32.mrb[184].mxu1  ;;  %v7164_v58 = vsel %vm13790_vm14, %v7163_v13, %v7159_v17  ;;  %v5641_v45 = vpop.xlane.xlu0 %5640  ;;  %v4418_v48 = vadd.f32 %v12645_v36, %v12615_v42  ;;  %v4433_v31 = vadd.f32 %v12645_v36, %v12630_v34 }
 0x32a   :  { %v12688_v25 = vpop.f32.mrb[185].mxu1  ;;  %v6201_v23 = vadd.f32 %v11535_v46, %v5641_v45  ;;  %v5846_v17 = vsel %vm2682_vm4, %v5236_v20, 0.0  ;;  %v6926_v27 = vrot.slane %v12683_v49, %v11635_v32  ;;  %v5235_v61 = vmul.f32 %v12635_v21, %v4972_v29  ;;  %v13858_v45 = vld [vmem:[#allocation21_spill] sm:$0xff] }
 0x32b   :  { %v7168_v39 = vrot.slane %v6200_v6, %v11638_v33  ;;  %v4974_v42 = vmax.f32 %v4408_v15, 0.0  ;;  %5847 = vadd.xlane.f32.xlu1 %v5846_v17  ;;  %v5837_v34 = vsel %vm2682_vm4, %v5233_v9, 0.0  ;;  %v6152_v19 = vadd.f32 %v11535_v46, %v13858_v45 }
 0x32c   :  { %v5644_v16 = vpop.xlane.xlu1 %5643  ;;  %v7173_v41 = vrot.slane %v6201_v23, %v11652_v55  ;;  %5838 = vadd.xlane.f32.xlu0 %v5837_v34  ;;  %v4443_v20 = vadd.f32 %v12645_v36, %v9651_v56  ;;  %v6922_v49 = vsel %vm13787_vm13, %v6921_v28, %v6917_v3  ;;  %v5240_v29 = vmul.f32 %v12635_v21, %v4977_v10 }
 0x32d   :  { %v7169_v52 = vsel %vm13792_vm15, %v7168_v39, %v7164_v58  ;;  %v6202_v13 = vadd.f32 %v11535_v46, %v5644_v16  ;;  %v12702_v51 = vpop.f32.mrb[186].mxu1  ;;  %v4976_v15 = vmax.f32 %v4418_v48, 0.0  ;;  %v4428_v56 = vadd.f32 %v12645_v36, %v12640_v26 }
 0x32e   :  { %v5647_v4 = vpop.xlane.xlu0 %5646  ;;  %v12709_v63 = vpop.f32.mrb[187].mxu1  ;;  %v7174_v6 = vsel %vm13791_vm0, %v7173_v41, %v7169_v52  ;;  %v4979_v41 = vmax.f32 %v4433_v31, 0.0  ;;  %v5843_v3 = vsel %vm2682_vm4, %v5235_v61, 0.0  ;;  %v6931_v48 = vrot.slane %v6152_v19, %v11638_v33  ;;  %v13859_v31 = vld [vmem:[#allocation22_spill] sm:$0xff] }
 0x32f   :  { %v7178_v2 = vrot.slane %v6202_v13, %v11665_v12  ;;  %v6203_v58 = vadd.f32 %v11535_v46, %v5647_v4  ;;  %v5852_v13 = vsel %vm2682_vm4, %v5238_v1, 0.0  ;;  %v4981_v26 = vmax.f32 %v4443_v20, 0.0 }
 0x330   :  { %5853 = vadd.xlane.f32.xlu1 %v5852_v13  ;;  %5844 = vadd.xlane.f32.xlu0 %v5843_v3  ;;  %v4453_v1 = vadd.f32 %v12645_v36, %v12679_v44  ;;  %v5239_v61 = vmul.f32 %v12635_v21, %v4976_v15  ;;  %v5242_v20 = vmul.f32 %v12635_v21, %v4979_v41 }
 0x331   :  { %v7179_v39 = vsel %vm6700_vm1, %v7178_v2, %v7174_v6  ;;  %v7183_v23 = vrot.slane %v6203_v58, %v11679_v35  ;;  %v5650_v43 = vpop.xlane.xlu1 %5649  ;;  %v12724_v16 = vpop.f32.mrb[188].mxu1  ;;  %v5237_v6 = vmul.f32 %v12635_v21, %v4974_v42  ;;  %v6153_v2 = vadd.f32 %v11535_v46, %v13859_v31 }
 0x332   :  { %v6204_v9 = vadd.f32 %v11535_v46, %v5650_v43  ;;  %v12729_v52 = vpop.f32.mrb[189].mxu1  ;;  %v5653_v17 = vpop.xlane.xlu0 %5652  ;;  %v6927_v42 = vsel %vm13790_vm14, %v6926_v27, %v6922_v49  ;;  %v4438_v44 = vadd.f32 %v12645_v36, %v12665_v47  ;;  %v5858_v43 = vsel %vm2682_vm4, %v5240_v29, 0.0 }
 0x333   :  { %v7184_v4 = vsel %vm6707_vm2, %v7183_v23, %v7179_v39  ;;  %v6205_v10 = vadd.f32 %v11535_v46, %v5653_v17  ;;  %v4978_v23 = vmax.f32 %v4428_v56, 0.0  ;;  %v5849_v27 = vsel %vm2682_vm4, %v5237_v6, 0.0 }
 0x334   :  { %v7188_v28 = vrot.slane %v6204_v9, %v13847_v40  ;;  %5859 = vadd.xlane.f32.xlu1 %v5858_v43  ;;  %v6936_v41 = vrot.slane %v6153_v2, %v11652_v55  ;;  %v5244_v56 = vmul.f32 %v12635_v21, %v4981_v26  ;;  %v4983_v17 = vmax.f32 %v4453_v1, 0.0  ;;  %5850 = vadd.xlane.f32.xlu0 %v5849_v27  ;;  %v13861_v26 = vld [vmem:[#allocation23_spill] sm:$0xff] }
 0x335   :  { %v5656_v58 = vpop.xlane.xlu1 %5655  ;;  %v12744_v34 = vpop.f32.mrb[190].mxu1  ;;  %v7193_v49 = vrot.slane %v6205_v10, %v13849_v30  ;;  %v4448_v29 = vadd.f32 %v12645_v36, %v12688_v25  ;;  %v4463_v6 = vadd.f32 %v12645_v36, %v12702_v51  ;;  %v13860_v31 = vrot.slane %v12373_v0, %v13847_v40 }
 0x336   :  { %v12749_v45 = vsel %vm6714_vm3, %v7188_v28, %v7184_v4  ;;  %v6206_v19 = vadd.f32 %v11535_v46, %v5656_v58  ;;  %v12752_v39 = vpop.f32.mrb[191].mxu1  ;;  %v5659_v9 = vpop.xlane.xlu0 %5658  ;;  %v6932_v4 = vsel %vm13792_vm15, %v6931_v48, %v6927_v42  ;;  %v6154_v25 = vadd.f32 %v11535_v46, %v13861_v26 }
 0x337   :  { %v6207_v13 = vadd.f32 %v11535_v46, %v5659_v9  ;;  %v12780_v2 = vsel %vm6714_vm3, %v13860_v31, %v12394_v14  ;;  %v5864_v1 = vsel %vm2682_vm4, %v5242_v20, 0.0  ;;  %v5241_v58 = vmul.f32 %v12635_v21, %v4978_v23  ;;  %v13862_v31 = vld [vmem:[#allocation24_spill] sm:$0xff] }
 0x338   :  { %v7197_v15 = vrot.slane %v6206_v19, %v13845_v5  ;;  %v4980_v42 = vmax.f32 %v4438_v44, 0.0  ;;  %5865 = vadd.xlane.f32.xlu1 %v5864_v1  ;;  %v5855_v19 = vsel %vm2682_vm4, %v5239_v61, 0.0  ;;  %v6937_v0 = vsel %vm13791_vm0, %v6936_v41, %v6932_v4 }
 0x339   :  { %v12765_v47 = vpop.f32.mrb[192].mxu1  ;;  %v7202_v28 = vrot.slane %v6207_v13, %v11547_v54  ;;  %v5662_v10 = vpop.xlane.xlu1 %5661  ;;  %v4458_v14 = vadd.f32 %v12645_v36, %v12709_v63  ;;  %5856 = vadd.xlane.f32.xlu0 %v5855_v19  ;;  %v5246_v23 = vmul.f32 %v12635_v21, %v4983_v17  ;;  %v4982_v44 = vmax.f32 %v4448_v29, 0.0 }
 0x33a   :  { %v7198_v3 = vsel %vm6616_vm5, %v7197_v15, %v7193_v49  ;;  %v12773_v48 = vpop.f32.mrb[193].mxu1  ;;  %v6208_v51 = vadd.f32 %v11535_v46, %v5662_v10  ;;  %v5665_v9 = vpop.xlane.xlu0 %5664  ;;  %v4985_v15 = vmax.f32 %v4463_v6, 0.0  ;;  %v5870_v61 = vsel %vm2682_vm4, %v5244_v56, 0.0 }
 0x33b   :  { %v7203_v43 = vsel %vm6623_vm6, %v7202_v28, %v7198_v3  ;;  %v6209_v20 = vadd.f32 %v11535_v46, %v5665_v9  ;;  %v4473_v4 = vadd.f32 %v12645_v36, %v12724_v16  ;;  %v6941_v10 = vrot.slane %v6154_v25, %v11665_v12 }
 0x33c   :  { %v7207_v27 = vrot.slane %v6208_v51, %v11542_v60  ;;  %v12808_v17 = vadd.f32 %v11535_v46, %v13862_v31  ;;  %v5243_v56 = vmul.f32 %v12635_v21, %v4980_v42  ;;  %5871 = vadd.xlane.f32.xlu1 %v5870_v61  ;;  %v5861_v29 = vsel %vm2682_vm4, %v5241_v58, 0.0 }
 0x33d   :  { %v12794_v49 = vpop.f32.mrb[194].mxu1  ;;  %v5668_v13 = vpop.xlane.xlu1 %5667  ;;  %v7212_v41 = vrot.slane %v6209_v20, %v11559_v8  ;;  %v4984_v26 = vmax.f32 %v4458_v14, 0.0  ;;  %5862 = vadd.xlane.f32.xlu0 %v5861_v29  ;;  %v5245_v25 = vmul.f32 %v12635_v21, %v4982_v44  ;;  %v4468_v42 = vadd.f32 %v12645_v36, %v12729_v52 }
 0x33e   :  { %v12798_v3 = vpop.f32.mrb[195].mxu1  ;;  %v7208_v63 = vsel %vm6630_vm7, %v7207_v27, %v7203_v43  ;;  %v6210_v28 = vadd.f32 %v11535_v46, %v5668_v13  ;;  %v5671_v6 = vpop.xlane.xlu0 %5670  ;;  %v5248_v43 = vmul.f32 %v12635_v21, %v4985_v15  ;;  %v5876_v58 = vsel %vm2682_vm4, %v5246_v23, 0.0 }
 0x33f   :  { %v7213_v16 = vsel %vm13786_vm8, %v7212_v41, %v7208_v63  ;;  %v6211_v51 = vadd.f32 %v11535_v46, %v5671_v6  ;;  %v4987_v14 = vmax.f32 %v4473_v4, 0.0  ;;  %v4483_v27 = vadd.f32 %v12645_v36, %v12744_v34  ;;  %v13863_v4 = vld [vmem:[#allocation25_spill] sm:$0xff]  ;;  %v13864_v34 = vld [vmem:[#allocation27_spill] sm:$0xff] }
 0x340   :  { %v7217_v1 = vrot.slane %v6210_v28, %v11572_v22  ;;  %v12829_v44 = vsel %vm6700_vm1, %v6941_v10, %v6937_v0  ;;  %v6946_v15 = vrot.slane %v12808_v17, %v11679_v35  ;;  %5877 = vadd.xlane.f32.xlu1 %v5876_v58  ;;  %v5867_v52 = vsel %vm2682_vm4, %v5243_v56, 0.0 }
 0x341   :  { %v12815_v19 = vpop.f32.mrb[196].mxu1  ;;  %v7222_v61 = vrot.slane %v6211_v51, %v11586_v38  ;;  %v5674_v13 = vpop.xlane.xlu1 %5673  ;;  %v12837_v63 = vadd.f32 %v11535_v46, %v13863_v4  ;;  %v6158_v41 = vadd.f32 %v11535_v46, %v13864_v34  ;;  %v5247_v28 = vmul.f32 %v12635_v21, %v4984_v26  ;;  %5868 = vadd.xlane.f32.xlu0 %v5867_v52  ;;  %v13866_v4 = vld [vmem:[#allocation28_spill] sm:$0xff] }
 0x342   :  { %v12822_v9 = vpop.f32.mrb[197].mxu1  ;;  %v7218_v20 = vsel %vm6644_vm9, %v7217_v1, %v7213_v16  ;;  %v6212_v23 = vadd.f32 %v11535_v46, %v5674_v13  ;;  %v4986_v29 = vmax.f32 %v4468_v42, 0.0  ;;  %v5882_v56 = vsel %vm2682_vm4, %v5248_v43, 0.0 }
 0x343   :  { %v7223_v0 = vsel %vm6651_vm10, %v7222_v61, %v7218_v20  ;;  %v5677_v10 = vpop.xlane.xlu0 %5676  ;;  %v5250_v51 = vmul.f32 %v12635_v21, %v4987_v14  ;;  %v4989_v58 = vmax.f32 %v4483_v27, 0.0  ;;  %v4493_v26 = vadd.f32 %v12645_v36, %v12765_v47 }
 0x344   :  { %v7227_v6 = vrot.slane %v6212_v23, %v11589_v53  ;;  %v6213_v16 = vadd.f32 %v11535_v46, %v5677_v10  ;;  %v5873_v20 = vsel %vm2682_vm4, %v5245_v25, 0.0  ;;  %v4478_v42 = vadd.f32 %v12645_v36, %v12752_v39  ;;  %5883 = vadd.xlane.f32.xlu1 %v5882_v56  ;;  %v13865_v23 = vld [vmem:[#allocation26_spill] sm:$0xff] }
 0x345   :  { %v12843_v31 = vpop.f32.mrb[198].mxu1  ;;  %v5680_v61 = vpop.xlane.xlu1 %5679  ;;  %v6157_v14 = vadd.f32 %v11535_v46, %v13865_v23  ;;  %v6960_v27 = vrot.slane %v6158_v41, %v13845_v5  ;;  %v6159_v47 = vadd.f32 %v11535_v46, %v13866_v4  ;;  %5874 = vadd.xlane.f32.xlu0 %v5873_v20  ;;  %v4503_v25 = vadd.f32 %v12645_v36, %v12794_v49 }
 0x346   :  { %v12848_v1 = vpop.f32.mrb[199].mxu1  ;;  %v7228_v43 = vsel %vm13789_vm11, %v7227_v6, %v7223_v0  ;;  %v7232_v13 = vrot.slane %v6213_v16, %v11608_v59  ;;  %v6214_v52 = vadd.f32 %v11535_v46, %v5680_v61  ;;  %v5879_v56 = vsel %vm2682_vm4, %v5247_v28, 0.0 }
 0x347   :  { %v5683_v39 = vpop.xlane.xlu0 %5682  ;;  %v5249_v41 = vmul.f32 %v12635_v21, %v4986_v29  ;;  %v5252_v20 = vmul.f32 %v12635_v21, %v4989_v58  ;;  %v4991_v61 = vmax.f32 %v4493_v26, 0.0  ;;  %v5888_v49 = vsel %vm2682_vm4, %v5250_v51, 0.0 }
 0x348   :  { %v7233_v0 = vsel %vm13788_vm12, %v7232_v13, %v7228_v43  ;;  %v7237_v10 = vrot.slane %v6214_v52, %v11621_v11  ;;  %v6215_v6 = vadd.f32 %v11535_v46, %v5683_v39  ;;  %v4988_v23 = vmax.f32 %v4478_v42, 0.0  ;;  %5889 = vadd.xlane.f32.xlu1 %v5888_v49 }
 0x349   :  { %v12866_v34 = vpop.f32.mrb[200].mxu1  ;;  %v4488_v4 = vadd.f32 %v12645_v36, %v12773_v48  ;;  %v5686_v13 = vpop.xlane.xlu1 %5685  ;;  %v6956_v52 = vrot.slane %v6157_v14, %v13849_v30  ;;  %v6965_v39 = vrot.slane %v6159_v47, %v11547_v54  ;;  %v4993_v29 = vmax.f32 %v4503_v25, 0.0  ;;  %5880 = vadd.xlane.f32.xlu0 %v5879_v56 }
 0x34a   :  { %v12872_v16 = vpop.f32.mrb[201].mxu1  ;;  %v7238_v43 = vsel %vm13787_vm13, %v7237_v10, %v7233_v0  ;;  %v7242_v28 = vrot.slane %v6215_v6, %v11635_v32  ;;  %v6216_v58 = vadd.f32 %v11535_v46, %v5686_v13  ;;  %v4498_v48 = vadd.f32 %v12645_v36, %v12798_v3  ;;  %v13867_v13 = vld [vmem:[#allocation29_spill] sm:$0xff] }
 0x34b   :  { %v5689_v26 = vpop.xlane.xlu0 %5688  ;;  %v4513_v0 = vadd.f32 %v12645_v36, %v12815_v19  ;;  %v6961_v47 = vsel %vm6616_vm5, %v6960_v27, %v6956_v52  ;;  %v5254_v25 = vmul.f32 %v12635_v21, %v4991_v61  ;;  %v5894_v56 = vsel %vm2682_vm4, %v5252_v20, 0.0 }
 0x34c   :  { %v7243_v42 = vsel %vm13790_vm14, %v7242_v28, %v7238_v43  ;;  %v6217_v10 = vadd.f32 %v11535_v46, %v5689_v26  ;;  %v7247_v6 = vrot.slane %v6216_v58, %v11638_v33  ;;  %v5251_v49 = vmul.f32 %v12635_v21, %v4988_v23  ;;  %5895 = vadd.xlane.f32.xlu1 %v5894_v56 }
 0x34d   :  { %v12884_v51 = vpop.f32.mrb[202].mxu1  ;;  %v4990_v3 = vmax.f32 %v4488_v4, 0.0  ;;  %v5885_v43 = vsel %vm2682_vm4, %v5249_v41, 0.0  ;;  %v5692_v28 = vpop.xlane.xlu1 %5691  ;;  %v6160_v26 = vadd.f32 %v11535_v46, %v13867_v13  ;;  %v4508_v27 = vadd.f32 %v12645_v36, %v12822_v9 }
 0x34e   :  { %v12892_v14 = vpop.f32.mrb[203].mxu1  ;;  %v7252_v19 = vrot.slane %v6217_v10, %v11652_v55  ;;  %v7248_v61 = vsel %vm13792_vm15, %v7247_v6, %v7243_v42  ;;  %5886 = vadd.xlane.f32.xlu0 %v5885_v43  ;;  %v6218_v20 = vadd.f32 %v11535_v46, %v5692_v28  ;;  %v5256_v23 = vmul.f32 %v12635_v21, %v4993_v29  ;;  %v13868_v28 = vld [vmem:[#allocation30_spill] sm:$0xff] }
 0x34f   :  { %v4992_v4 = vmax.f32 %v4498_v48, 0.0  ;;  %v4995_v41 = vmax.f32 %v4513_v0, 0.0  ;;  %v5695_v10 = vpop.xlane.xlu0 %5694  ;;  %v4523_v13 = vadd.f32 %v12645_v36, %v12843_v31  ;;  %v5900_v9 = vsel %vm2682_vm4, %v5254_v25, 0.0 }
 0x350   :  { %v7253_v58 = vsel %vm13791_vm0, %v7252_v19, %v7248_v61  ;;  %v7257_v42 = vrot.slane %v6218_v20, %v11665_v12  ;;  %v6219_v6 = vadd.f32 %v11535_v46, %v5695_v10  ;;  %v6966_v43 = vsel %vm6623_vm6, %v6965_v39, %v6961_v47  ;;  %5901 = vadd.xlane.f32.xlu1 %v5900_v9 }
 0x351   :  { %v12907_v52 = vpop.f32.mrb[204].mxu1  ;;  %v6161_v29 = vadd.f32 %v11535_v46, %v13868_v28  ;;  %v5253_v48 = vmul.f32 %v12635_v21, %v4990_v3  ;;  %v5891_v0 = vsel %vm2682_vm4, %v5251_v49, 0.0  ;;  %v6970_v19 = vrot.slane %v6160_v26, %v11542_v60 }
 0x352   :  { %v12911_v56 = vpop.f32.mrb[205].mxu1  ;;  %v4994_v61 = vmax.f32 %v4508_v27, 0.0  ;;  %v7258_v31 = vsel %vm6700_vm1, %v7257_v42, %v7253_v58  ;;  %5892 = vadd.xlane.f32.xlu0 %v5891_v0  ;;  %v7262_v25 = vrot.slane %v6219_v6, %v11679_v35  ;;  %v5255_v39 = vmul.f32 %v12635_v21, %v4992_v4 }
 0x353   :  { %v5698_v20 = vpop.xlane.xlu1 %5697  ;;  %v5258_v47 = vmul.f32 %v12635_v21, %v4995_v41  ;;  %v5906_v3 = vsel %vm2682_vm4, %v5256_v23, 0.0  ;;  %v5701_v49 = vpop.xlane.xlu0 %5700  ;;  %v4997_v26 = vmax.f32 %v4523_v13, 0.0  ;;  %v4518_v27 = vadd.f32 %v12645_v36, %v12848_v1  ;;  %v13869_v13 = vld [vmem:[#allocation31_spill] sm:$0xff]  ;;  %v13870_v1 = vld [vmem:[#allocation33_spill] sm:$0xff] }
 0x354   :  { %v6220_v9 = vadd.f32 %v11535_v46, %v5698_v20  ;;  %v7263_v58 = vsel %vm6707_vm2, %v7262_v25, %v7258_v31  ;;  %v4533_v42 = vadd.f32 %v12645_v36, %v12866_v34  ;;  %v6975_v4 = vrot.slane %v6161_v29, %v11559_v8  ;;  %5907 = vadd.xlane.f32.xlu1 %v5906_v3 }
 0x355   :  { %v12926_v10 = vpop.f32.mrb[206].mxu1  ;;  %v5897_v23 = vsel %vm2682_vm4, %v5253_v48, 0.0  ;;  %v6221_v6 = vadd.f32 %v11535_v46, %v5701_v49  ;;  %v6971_v0 = vsel %vm6630_vm7, %v6970_v19, %v6966_v43  ;;  %v6162_v20 = vadd.f32 %v11535_v46, %v13869_v13 }
 0x356   :  { %v12932_v28 = vpop.f32.mrb[207].mxu1  ;;  %v7267_v41 = vrot.slane %v6220_v9, %v13847_v40  ;;  %v12948_v31 = vadd.f32 %v11535_v46, %v13870_v1  ;;  %v5257_v34 = vmul.f32 %v12635_v21, %v4994_v61  ;;  %5898 = vadd.xlane.f32.xlu0 %v5897_v23  ;;  %v4543_v48 = vadd.f32 %v12645_v36, %v12884_v51 }
 0x357   :  { %v5704_v29 = vpop.xlane.xlu1 %5703  ;;  %v5903_v43 = vsel %vm2682_vm4, %v5255_v39, 0.0  ;;  %v5260_v9 = vmul.f32 %v12635_v21, %v4997_v26  ;;  %v4996_v49 = vmax.f32 %v4518_v27, 0.0  ;;  %v4999_v13 = vmax.f32 %v4533_v42, 0.0  ;;  %v5707_v23 = vpop.xlane.xlu0 %5706 }
 0x358   :  { %v12952_v25 = vsel %vm6714_vm3, %v7267_v41, %v7263_v58  ;;  %v6222_v3 = vadd.f32 %v11535_v46, %v5704_v29  ;;  %v5912_v61 = vsel %vm2682_vm4, %v5258_v47, 0.0  ;;  %v4528_v58 = vadd.f32 %v12645_v36, %v12872_v16 }
 0x359   :  { %v7272_v51 = vrot.slane %v6221_v6, %v13849_v30  ;;  %5913 = vadd.xlane.f32.xlu1 %v5912_v61  ;;  %v6223_v39 = vadd.f32 %v11535_v46, %v5707_v23  ;;  %v6976_v29 = vsel %vm13786_vm8, %v6975_v4, %v6971_v0  ;;  %v6980_v26 = vrot.slane %v6162_v20, %v11572_v22 }
 0x35a   :  { %v12958_v19 = vpop.f32.mrb[208].mxu1  ;;  %v7276_v41 = vrot.slane %v6222_v3, %v13845_v5  ;;  %v6985_v47 = vrot.slane %v12948_v31, %v11586_v38  ;;  %5904 = vadd.xlane.f32.xlu0 %v5903_v43  ;;  %v5909_v27 = vsel %vm2682_vm4, %v5257_v34, 0.0  ;;  %v5001_v42 = vmax.f32 %v4543_v48, 0.0 }
 0x35b   :  { %v12962_v1 = vpop.f32.mrb[209].mxu1  ;;  %v7281_v6 = vrot.slane %v6223_v39, %v11547_v54  ;;  %v4553_v3 = vadd.f32 %v12645_v36, %v12907_v52  ;;  %v5710_v61 = vpop.xlane.xlu1 %5709  ;;  %v5259_v23 = vmul.f32 %v12635_v21, %v4996_v49  ;;  %v5262_v4 = vmul.f32 %v12635_v21, %v4999_v13  ;;  %v13871_v39 = vld [vmem:[#allocation35_spill] sm:$0xff] }
 0x35c   :  { %v7277_v16 = vsel %vm6616_vm5, %v7276_v41, %v7272_v51  ;;  %v5918_v0 = vsel %vm2682_vm4, %v5260_v9, 0.0  ;;  %v6224_v20 = vadd.f32 %v11535_v46, %v5710_v61  ;;  %v5713_v31 = vpop.xlane.xlu0 %5712  ;;  %v4998_v34 = vmax.f32 %v4528_v58, 0.0 }
 0x35d   :  { %v4538_v48 = vadd.f32 %v12645_v36, %v12892_v14  ;;  %v7282_v51 = vsel %vm6623_vm6, %v7281_v6, %v7277_v16  ;;  %5919 = vadd.xlane.f32.xlu1 %v5918_v0  ;;  %v6225_v52 = vadd.f32 %v11535_v46, %v5713_v31  ;;  %v6981_v49 = vsel %vm6644_vm9, %v6980_v26, %v6976_v29 }
 0x35e   :  { %v6164_v9 = vadd.f32 %v11535_v46, %v12151_v24  ;;  %v4548_v13 = vadd.f32 %v12645_v36, %v12911_v56  ;;  %v7286_v58 = vrot.slane %v6224_v20, %v11542_v60  ;;  %5910 = vadd.xlane.f32.xlu0 %v5909_v27  ;;  %v6165_v14 = vadd.f32 %v11535_v46, %v13871_v39 }
 0x35f   :  { %v9693_v43 = vpop.f32.mrb[210].mxu1  ;;  %v5264_v16 = vmul.f32 %v12635_v21, %v5001_v42  ;;  %v5003_v6 = vmax.f32 %v4553_v3, 0.0  ;;  %v7291_v61 = vrot.slane %v6225_v52, %v11559_v8  ;;  %v5716_v0 = vpop.xlane.xlu1 %5715  ;;  %v4563_v24 = vadd.f32 %v12645_v36, %v12926_v10 }
 0x360   :  { %v12986_v41 = vpop.f32.mrb[211].mxu1  ;;  %v7287_v29 = vsel %vm6630_vm7, %v7286_v58, %v7282_v51  ;;  %v5924_v26 = vsel %vm2682_vm4, %v5262_v4, 0.0  ;;  %v6226_v56 = vadd.f32 %v11535_v46, %v5716_v0  ;;  %v5261_v27 = vmul.f32 %v12635_v21, %v4998_v34  ;;  %v5719_v3 = vpop.xlane.xlu0 %5718 }
 0x361   :  { %v5000_v20 = vmax.f32 %v4538_v48, 0.0  ;;  %v7292_v31 = vsel %vm13786_vm8, %v7291_v61, %v7287_v29  ;;  %5925 = vadd.xlane.f32.xlu1 %v5924_v26  ;;  %v5915_v42 = vsel %vm2682_vm4, %v5259_v23, 0.0  ;;  %v6990_v39 = vrot.slane %v6164_v9, %v11589_v53 }
 0x362   :  { %v5002_v51 = vmax.f32 %v4548_v13, 0.0  ;;  %v7296_v58 = vrot.slane %v6226_v56, %v11572_v22  ;;  %5916 = vadd.xlane.f32.xlu0 %v5915_v42  ;;  %v6227_v10 = vadd.f32 %v11535_v46, %v5719_v3  ;;  %v6986_v34 = vsel %vm6651_vm10, %v6985_v47, %v6981_v49 }
 0x363   :  { %v9696_v52 = vpop.f32.mrb[212].mxu1  ;;  %v5266_v48 = vmul.f32 %v12635_v21, %v5003_v6  ;;  %v4558_v61 = vadd.f32 %v12645_v36, %v12932_v28  ;;  %v5930_v23 = vsel %vm2682_vm4, %v5264_v16, 0.0  ;;  %v5005_v0 = vmax.f32 %v4563_v24, 0.0  ;;  %v5722_v26 = vpop.xlane.xlu1 %5721 }
 0x364   :  { %v13009_v4 = vpop.f32.mrb[213].mxu1  ;;  %v7297_v9 = vsel %vm6644_vm9, %v7296_v58, %v7292_v31  ;;  %v7301_v13 = vrot.slane %v6227_v10, %v11586_v38  ;;  %v4573_v29 = vadd.f32 %v12645_v36, %v12958_v19  ;;  %v6995_v56 = vrot.slane %v6165_v14, %v11608_v59  ;;  %v5725_v6 = vpop.xlane.xlu0 %5724 }
 0x365   :  { %v5263_v47 = vmul.f32 %v12635_v21, %v5000_v20  ;;  %5931 = vadd.xlane.f32.xlu1 %v5930_v23  ;;  %v6228_v49 = vadd.f32 %v11535_v46, %v5722_v26  ;;  %v5921_v28 = vsel %vm2682_vm4, %v5261_v27, 0.0  ;;  %v6991_v24 = vsel %vm13789_vm11, %v6990_v39, %v6986_v34 }
 0x366   :  { %v6166_v31 = vadd.f32 %v11535_v46, %v12180_v50  ;;  %v5265_v42 = vmul.f32 %v12635_v21, %v5002_v51  ;;  %5922 = vadd.xlane.f32.xlu0 %v5921_v28  ;;  %v6229_v19 = vadd.f32 %v11535_v46, %v5725_v6  ;;  %v5004_v20 = vmax.f32 %v4558_v61, 0.0 }
 0x367   :  { %v7306_v3 = vrot.slane %v6228_v49, %v11589_v53  ;;  %v4583_v58 = vadd.f32 %v12645_v36, %v9693_v43  ;;  %v5936_v27 = vsel %vm2682_vm4, %v5266_v48, 0.0  ;;  %v5268_v10 = vmul.f32 %v12635_v21, %v5005_v0  ;;  %v5728_v51 = vpop.xlane.xlu1 %5727 }
 0x368   :  { %v9699_v16 = vpop.f32.mrb[214].mxu1  ;;  %v7302_v39 = vsel %vm6651_vm10, %v7301_v13, %v7297_v9  ;;  %v5007_v34 = vmax.f32 %v4573_v29, 0.0  ;;  %v7311_v50 = vrot.slane %v6229_v19, %v11608_v59  ;;  %v4568_v23 = vadd.f32 %v12645_v36, %v12962_v1  ;;  %v5731_v49 = vpop.xlane.xlu0 %5730 }
 0x369   :  { %v13029_v14 = vpop.f32.mrb[215].mxu1  ;;  %v7307_v26 = vsel %vm13789_vm11, %v7306_v3, %v7302_v39  ;;  %5937 = vadd.xlane.f32.xlu1 %v5936_v27  ;;  %v6230_v61 = vadd.f32 %v11535_v46, %v5728_v51  ;;  %v5927_v43 = vsel %vm2682_vm4, %v5263_v47, 0.0  ;;  %v6996_v0 = vsel %vm13788_vm12, %v6995_v56, %v6991_v24 }
 0x36a   :  { %v7000_v9 = vrot.slane %v6166_v31, %v11621_v11  ;;  %v6167_v13 = vadd.f32 %v11535_v46, %v12202_v37  ;;  %5928 = vadd.xlane.f32.xlu0 %v5927_v43  ;;  %v6231_v29 = vadd.f32 %v11535_v46, %v5731_v49  ;;  %v5267_v28 = vmul.f32 %v12635_v21, %v5004_v20 }
 0x36b   :  { %v5009_v6 = vmax.f32 %v4583_v58, 0.0  ;;  %v7316_v19 = vrot.slane %v6230_v61, %v11621_v11  ;;  %v5933_v47 = vsel %vm2682_vm4, %v5265_v42, 0.0  ;;  %v5270_v3 = vmul.f32 %v12635_v21, %v5007_v34  ;;  %v5734_v58 = vpop.xlane.xlu1 %5733 }
 0x36c   :  { %v9702_v48 = vpop.f32.mrb[216].mxu1  ;;  %v7312_v56 = vsel %vm13788_vm12, %v7311_v50, %v7307_v26  ;;  %v4593_v24 = vadd.f32 %v12645_v36, %v9696_v52  ;;  %v5942_v37 = vsel %vm2682_vm4, %v5268_v10, 0.0  ;;  %v5006_v31 = vmax.f32 %v4568_v23, 0.0  ;;  %v5737_v10 = vpop.xlane.xlu0 %5736 }
 0x36d   :  { %v13047_v1 = vpop.f32.mrb[217].mxu1  ;;  %v4578_v27 = vadd.f32 %v12645_v36, %v12986_v41  ;;  %v7317_v39 = vsel %vm13787_vm13, %v7316_v19, %v7312_v56  ;;  %v7321_v20 = vrot.slane %v6231_v29, %v11635_v32  ;;  %5943 = vadd.xlane.f32.xlu1 %v5942_v37  ;;  %v7001_v42 = vsel %vm13787_vm13, %v7000_v9, %v6996_v0 }
 0x36e   :  { %v7005_v34 = vrot.slane %v6167_v13, %v11635_v32  ;;  %v6168_v50 = vadd.f32 %v11535_v46, %v12221_v57  ;;  %v6232_v52 = vadd.f32 %v11535_v46, %v5734_v58  ;;  %5934 = vadd.xlane.f32.xlu0 %v5933_v47  ;;  %v5272_v41 = vmul.f32 %v12635_v21, %v5009_v6 }
 0x36f   :  { %v4588_v23 = vadd.f32 %v12645_v36, %v13009_v4  ;;  %v6233_v26 = vadd.f32 %v11535_v46, %v5737_v10  ;;  %v4603_v61 = vadd.f32 %v12645_v36, %v9699_v16  ;;  %v5011_v49 = vmax.f32 %v4593_v24, 0.0  ;;  %v5740_v19 = vpop.xlane.xlu1 %5739 }
 0x370   :  { %v9705_v51 = vpop.f32.mrb[218].mxu1  ;;  %v7326_v0 = vrot.slane %v6232_v52, %v11638_v33  ;;  %v5948_v57 = vsel %vm2682_vm4, %v5270_v3, 0.0  ;;  %v5939_v9 = vsel %vm2682_vm4, %v5267_v28, 0.0  ;;  %v5269_v13 = vmul.f32 %v12635_v21, %v5006_v31 }
 0x371   :  { %v13070_v43 = vpop.f32.mrb[219].mxu1  ;;  %v5008_v29 = vmax.f32 %v4578_v27, 0.0  ;;  %v7322_v6 = vsel %vm13790_vm14, %v7321_v20, %v7317_v39  ;;  %v7331_v4 = vrot.slane %v6233_v26, %v11652_v55  ;;  %5949 = vadd.xlane.f32.xlu1 %v5948_v57  ;;  %v7010_v16 = vrot.slane %v6168_v50, %v11638_v33  ;;  %v5743_v27 = vpop.xlane.xlu0 %5742 }
 0x372   :  { %v6169_v47 = vadd.f32 %v11535_v46, %v12236_v7  ;;  %v7327_v56 = vsel %vm13792_vm15, %v7326_v0, %v7322_v6  ;;  %v6234_v3 = vadd.f32 %v11535_v46, %v5740_v19  ;;  %5940 = vadd.xlane.f32.xlu0 %v5939_v9  ;;  %v5010_v24 = vmax.f32 %v4588_v23, 0.0 }
 0x373   :  { %v5013_v37 = vmax.f32 %v4603_v61, 0.0  ;;  %v4598_v31 = vadd.f32 %v12645_v36, %v13029_v14  ;;  %v5954_v39 = vsel %vm2682_vm4, %v5272_v41, 0.0  ;;  %v5274_v58 = vmul.f32 %v12635_v21, %v5011_v49  ;;  %v5746_v14 = vpop.xlane.xlu1 %5745 }
 0x374   :  { %v7336_v7 = vrot.slane %v6234_v3, %v11665_v12  ;;  %v6235_v50 = vadd.f32 %v11535_v46, %v5743_v27  ;;  %v4613_v52 = vadd.f32 %v12645_v36, %v9702_v48  ;;  %v7006_v10 = vsel %vm13790_vm14, %v7005_v34, %v7001_v42 }
 0x375   :  { %v13083_v28 = vpop.f32.mrb[220].mxu1  ;;  %v5271_v23 = vmul.f32 %v12635_v21, %v5008_v29  ;;  %v7332_v26 = vsel %vm13791_vm0, %v7331_v4, %v7327_v56  ;;  %5955 = vadd.xlane.f32.xlu1 %v5954_v39  ;;  %v5945_v61 = vsel %vm2682_vm4, %v5269_v13, 0.0  ;;  %v7015_v41 = vrot.slane %v6169_v47, %v11652_v55  ;;  %v5749_v29 = vpop.xlane.xlu0 %5748  ;;  %v13872_v39 = vld [vmem:[#allocation45_spill] sm:$0xff] }
 0x376   :  { %v4627_v20 = vpop.f32.mrb[221].mxu1  ;;  %v7337_v49 = vsel %vm6700_vm1, %v7336_v7, %v7332_v26  ;;  %v7341_v0 = vrot.slane %v6235_v50, %v11679_v35  ;;  %v6236_v57 = vadd.f32 %v11535_v46, %v5746_v14  ;;  %5946 = vadd.xlane.f32.xlu0 %v5945_v61  ;;  %v7011_v48 = vsel %vm13792_vm15, %v7010_v16, %v7006_v10 }
 0x377   :  { %v5273_v42 = vmul.f32 %v12635_v21, %v5010_v24  ;;  %v5276_v34 = vmul.f32 %v12635_v21, %v5013_v37  ;;  %v5012_v9 = vmax.f32 %v4598_v31, 0.0  ;;  %v5015_v4 = vmax.f32 %v4613_v52, 0.0  ;;  %v5752_v7 = vpop.xlane.xlu1 %5751 }
 0x378   :  { %v7346_v13 = vrot.slane %v6236_v57, %v13847_v40  ;;  %v4623_v19 = vadd.f32 %v12645_v36, %v9705_v51  ;;  %v5960_v47 = vsel %vm2682_vm4, %v5274_v58, 0.0  ;;  %v7342_v3 = vsel %vm6707_vm2, %v7341_v0, %v7337_v49 }
 0x379   :  { %v4608_v16 = vadd.f32 %v12645_v36, %v13047_v1  ;;  %v6237_v24 = vadd.f32 %v11535_v46, %v5749_v29  ;;  %5961 = vadd.xlane.f32.xlu1 %v5960_v47  ;;  %v5951_v37 = vsel %vm2682_vm4, %v5271_v23, 0.0  ;;  %v7016_v31 = vsel %vm13791_vm0, %v7015_v41, %v7011_v48  ;;  %v5755_v52 = vpop.xlane.xlu0 %5754 }
 0x37a   :  { %v9711_v6 = vpop.f32.mrb[222].mxu1  ;;  %v6170_v27 = vadd.f32 %v11535_v46, %v12257_v62  ;;  %v6171_v51 = vadd.f32 %v11535_v46, %v13872_v39  ;;  %v13117_v58 = vsel %vm6714_vm3, %v7346_v13, %v7342_v3  ;;  %5952 = vadd.xlane.f32.xlu0 %v5951_v37  ;;  %v5275_v1 = vmul.f32 %v12635_v21, %v5012_v9  ;;  %v13873_v13 = vld [vmem:[#allocation48_spill] sm:$0xff] }
 0x37b   :  { %v4637_v56 = vpop.f32.mrb[223].mxu1  ;;  %v6238_v50 = vadd.f32 %v11535_v46, %v5752_v7  ;;  %v5966_v10 = vsel %vm2682_vm4, %v5276_v34, 0.0  ;;  %v5957_v23 = vsel %vm2682_vm4, %v5273_v42, 0.0  ;;  %v5278_v62 = vmul.f32 %v12635_v21, %v5015_v4  ;;  %v5758_v29 = vpop.xlane.xlu1 %5757 }
 0x37c   :  { %v5017_v14 = vmax.f32 %v4623_v19, 0.0  ;;  %v6239_v61 = vadd.f32 %v11535_v46, %v5755_v52  ;;  %v4628_v41 = vadd.f32 %v12645_v36, %v4627_v20  ;;  %v5014_v0 = vmax.f32 %v4608_v16, 0.0  ;;  %v13136_v20 = vld [vmem:[%s13763_s4] ss:$0 sm:$0xff] }
 0x37d   :  { %v7351_v57 = vrot.slane %v6237_v24, %v13849_v30  ;;  %v4618_v48 = vadd.f32 %v12645_v36, %v13070_v43  ;;  %v7355_v9 = vrot.slane %v6238_v50, %v13845_v5  ;;  %5967 = vadd.xlane.f32.xlu1 %v5966_v10  ;;  %v7020_v42 = vrot.slane %v6170_v27, %v11665_v12  ;;  %v5320_v47 = vpop.xlane.xlu0 %5319  ;;  %v13147_v16 = vld [vmem:[%s13764_s5] ss:$0 sm:$0xff] }
 0x37e   :  { %v9714_v26 = vpop.f32.mrb[224].mxu1  ;;  %v7025_v34 = vrot.slane %v6171_v51, %v11679_v35  ;;  %v7360_v21 = vrot.slane %v6239_v61, %v11547_v54  ;;  %5958 = vadd.xlane.f32.xlu0 %v5957_v23  ;;  %v4638_v4 = vadd.f32 %v13136_v20, %v4637_v56  ;;  %v6172_v36 = vadd.f32 %v11535_v46, %v13873_v13 }
 0x37f   :  { %v4647_v49 = vpop.f32.mrb[225].mxu1  ;;  %v7356_v43 = vsel %vm6616_vm5, %v7355_v9, %v7351_v57  ;;  %v6240_v19 = vadd.f32 %v11535_v46, %v5758_v29  ;;  %v5963_v3 = vsel %vm2682_vm4, %v5275_v1, 0.0  ;;  %v5280_v24 = vmul.f32 %v13147_v16, %v5017_v14  ;;  %v5764_v61 = vpop.xlane.xlu1 %5763 }
 0x380   :  { %v7361_v37 = vsel %vm6623_vm6, %v7360_v21, %v7356_v43  ;;  %v5018_v56 = vmax.f32 %v4628_v41, 0.0  ;;  %v5972_v27 = vsel %vm2682_vm4, %v5278_v62, 0.0  ;;  %v5277_v51 = vmul.f32 %v13147_v16, %v5014_v0 }
 0x381   :  { %v5016_v7 = vmax.f32 %v4618_v48, 0.0  ;;  %v7365_v50 = vrot.slane %v6240_v19, %v11542_v60  ;;  %v4643_v1 = vadd.f32 %v13136_v20, %v9711_v6  ;;  %5973 = vadd.xlane.f32.xlu1 %v5972_v27  ;;  %v7021_v10 = vsel %vm6700_vm1, %v7020_v42, %v7016_v31  ;;  %v5317_v48 = vpop.xlane.xlu0 %5316 }
 0x382   :  { %v9717_v39 = vpop.f32.mrb[226].mxu1  ;;  %v6094_v23 = vadd.f32 %v11535_v46, %v5320_v47  ;;  %v5020_v14 = vmax.f32 %v4638_v4, 0.0  ;;  %5964 = vadd.xlane.f32.xlu0 %v5963_v3  ;;  %v4653_v41 = vadd.f32 %v13136_v20, %v9714_v26  ;;  %v6951_v62 = vrot.slane %v12837_v63, %v13847_v40 }
 0x383   :  { %v4657_v52 = vpop.f32.mrb[227].mxu1  ;;  %v7030_v0 = vrot.slane %v6172_v36, %v13847_v40  ;;  %v7366_v57 = vsel %vm6630_vm7, %v7365_v50, %v7361_v37  ;;  %v4648_v6 = vadd.f32 %v13136_v20, %v4647_v49  ;;  %v6947_v31 = vsel %vm6707_vm2, %v6946_v15, %v12829_v44  ;;  %v5770_v43 = vpop.xlane.xlu1 %5769  ;;  %v13874_v50 = vld [vmem:[#allocation34_spill] sm:$0xff] }
 0x384   :  { %v5281_v9 = vmul.f32 %v13147_v16, %v5018_v56  ;;  %v6093_v26 = vadd.f32 %v11535_v46, %v5317_v48  ;;  %v5978_v42 = vsel %vm2682_vm4, %v5280_v24, 0.0  ;;  %v7026_v21 = vsel %vm6707_vm2, %v7025_v34, %v7021_v10 }
 0x385   :  { %v5279_v29 = vmul.f32 %v13147_v16, %v5016_v7  ;;  %v5021_v4 = vmax.f32 %v4643_v1, 0.0  ;;  %5979 = vadd.xlane.f32.xlu1 %v5978_v42  ;;  %v5969_v49 = vsel %vm2682_vm4, %v5277_v51, 0.0  ;;  %v6615_v17 = vrot.slane %v6094_v23, %v13845_v5  ;;  %v5761_v24 = vpop.xlane.xlu0 %5760 }
 0x386   :  { %v9720_v63 = vpop.f32.mrb[228].mxu1  ;;  %v5283_v44 = vmul.f32 %v13147_v16, %v5020_v14  ;;  %v6610_v15 = vrot.slane %v6093_v26, %v13849_v30  ;;  %v5023_v36 = vmax.f32 %v4653_v41, 0.0  ;;  %5970 = vadd.xlane.f32.xlu0 %v5969_v49  ;;  %v13180_v19 = vsel %vm6714_vm3, %v6951_v62, %v6947_v31  ;;  %v13876_v41 = vld [vmem:[#allocation32_spill] sm:$0xff] }
 0x387   :  { %v13174_v13 = vpop.f32.mrb[229].mxu1  ;;  %v13183_v34 = vsel %vm6714_vm3, %v7030_v0, %v7026_v21  ;;  %v6242_v47 = vadd.f32 %v11535_v46, %v5764_v61  ;;  %v5022_v3 = vmax.f32 %v4648_v6, 0.0  ;;  %v6241_v56 = vadd.f32 %v11535_v46, %v5761_v24  ;;  %v5776_v6 = vpop.xlane.xlu1 %5775 }
 0x388   :  { %v6617_v37 = vsel %vm6616_vm5, %v6615_v17, %v6610_v15  ;;  %v5981_v27 = vsel %vm2682_vm4, %v5281_v9, 0.0  ;;  %v4663_v51 = vadd.f32 %v13136_v20, %v9717_v39  ;;  %v5284_v7 = vmul.f32 %v13147_v16, %v5021_v4  ;;  %v13880_v17 = vld [vmem:[#allocation37_spill] sm:$0xff] }
 0x389   :  { %v13875_v1 = vrot.slane %v13874_v50, %v11547_v54  ;;  %5982 = vadd.xlane.f32.xlu1 %v5981_v27  ;;  %v5975_v23 = vsel %vm2682_vm4, %v5279_v29, 0.0  ;;  %v4658_v14 = vadd.f32 %v13136_v20, %v4657_v52  ;;  %v13877_v62 = vrot.slane %v13876_v41, %v11542_v60  ;;  %v13878_v52 = vld [vmem:[#allocation36_spill] sm:$0xff]  ;;  %v5767_v49 = vpop.xlane.xlu0 %5766 }
 0x38a   :  { %v13197_v61 = vpop.f32.mrb[230].mxu1  ;;  %v5286_v39 = vmul.f32 %v13147_v16, %v5023_v36  ;;  %v7370_v48 = vrot.slane %v6241_v56, %v11559_v8  ;;  %5976 = vadd.xlane.f32.xlu0 %v5975_v23  ;;  %v5987_v31 = vsel %vm2682_vm4, %v5283_v44, 0.0  ;;  %v7375_v26 = vrot.slane %v6242_v47, %v11572_v22 }
 0x38b   :  { %v6624_v10 = vsel %vm6623_vm6, %v13875_v1, %v6617_v37  ;;  %v13206_v9 = vpop.f32.mrb[231].mxu1  ;;  %v13879_v42 = vrot.slane %v13878_v52, %v11559_v8  ;;  %v5285_v29 = vmul.f32 %v13147_v16, %v5022_v3  ;;  %v6244_v4 = vadd.f32 %v11535_v46, %v5770_v43  ;;  %v13882_v37 = vld [vmem:[#allocation38_spill] sm:$0xff]  ;;  %v5782_v41 = vpop.xlane.xlu1 %5781 }
 0x38c   :  { %v6631_v0 = vsel %vm6630_vm7, %v13877_v62, %v6624_v10  ;;  %v13881_v15 = vrot.slane %v13880_v17, %v11572_v22  ;;  %v7371_v44 = vsel %vm13786_vm8, %v7370_v48, %v7366_v57  ;;  %v5025_v24 = vmax.f32 %v4663_v51, 0.0  ;;  %v13884_v10 = vld [vmem:[#allocation39_spill] sm:$0xff] }
 0x38d   :  { %v6638_v21 = vsel %vm13786_vm8, %v13879_v42, %v6631_v0  ;;  %v6243_v47 = vadd.f32 %v11535_v46, %v5767_v49  ;;  %v13883_v56 = vrot.slane %v13882_v37, %v11586_v38  ;;  %v5024_v50 = vmax.f32 %v4658_v14, 0.0  ;;  %5988 = vadd.xlane.f32.xlu1 %v5987_v31  ;;  %v13886_v14 = vld [vmem:[#allocation40_spill] sm:$0xff]  ;;  %v5773_v52 = vpop.xlane.xlu0 %5772 }
 0x38e   :  { %v6645_v36 = vsel %vm6644_vm9, %v13881_v15, %v6638_v21  ;;  %v7376_v3 = vsel %vm6644_vm9, %v7375_v26, %v7371_v44  ;;  %v5990_v43 = vsel %vm2682_vm4, %v5284_v7, 0.0  ;;  %v13227_v1 = vpop.f32.mrb[232].mxu1  ;;  %v13885_v23 = vrot.slane %v13884_v10, %v11589_v53  ;;  %v13888_v21 = vld [vmem:[#allocation41_spill] sm:$0xff]  ;;  %v13890_v44 = vld [vmem:[#allocation42_spill] sm:$0xff]  ;;  %v13892_v10 = vld [vmem:[#allocation43_spill] sm:$0xff] }
 0x38f   :  { %v6652_v27 = vsel %vm6651_vm10, %v13883_v56, %v6645_v36  ;;  %v7380_v51 = vrot.slane %v6243_v47, %v11586_v38  ;;  %5991 = vadd.xlane.f32.xlu0 %v5990_v43  ;;  %v4673_v62 = vadd.f32 %v13136_v20, %v9720_v63  ;;  %v13235_v0 = vpop.f32.mrb[233].mxu1  ;;  %vm7901_vm8 = vcmask 1041409  }
 0x390   :  { %v6659_v57 = vsel %vm13789_vm11, %v13885_v23, %v6652_v27  ;;  %v13887_v48 = vrot.slane %v13886_v14, %v11608_v59  ;;  %v7385_v31 = vrot.slane %v6244_v4, %v11589_v53  ;;  %v6246_v26 = vadd.f32 %v11535_v46, %v5776_v6 }
 0x391   :  { %v5993_v42 = vsel %vm2682_vm4, %v5285_v29, 0.0  ;;  %v13889_v49 = vrot.slane %v13888_v21, %v11621_v11  ;;  %v5288_v17 = vmul.f32 %v13147_v16, %v5025_v24  ;;  %v7381_v15 = vsel %vm6651_vm10, %v7380_v51, %v7376_v3  ;;  %v5788_v24 = vpop.xlane.xlu1 %5787  ;;  %v5779_v14 = vpop.xlane.xlu0 %5778  ;;  %v13896_v21 = vld [vmem:[#allocation46_spill] sm:$0xff] }
 0x392   :  { %v6666_v7 = vsel %vm13788_vm12, %v13887_v48, %v6659_v57  ;;  %v6245_v36 = vadd.f32 %v11535_v46, %v5773_v52  ;;  %v13891_v47 = vrot.slane %v13890_v44, %v11635_v32  ;;  %v5287_v6 = vmul.f32 %v13147_v16, %v5024_v50  ;;  %5994 = vadd.xlane.f32.xlu1 %v5993_v42  ;;  %v13894_v48 = vld [vmem:[#allocation44_spill] sm:$0xff] }
 0x393   :  { %v6673_v63 = vsel %vm13787_vm13, %v13889_v49, %v6666_v7  ;;  %v7386_v29 = vsel %vm13789_vm11, %v7385_v31, %v7381_v15  ;;  %v5996_v37 = vsel %vm2682_vm4, %v5286_v39, 0.0  ;;  %v5027_v27 = vmax.f32 %v4673_v62, 0.0  ;;  %v9729_v43 = vpop.f32.mrb[234].mxu1 }
 0x394   :  { %v6680_v4 = vsel %vm13790_vm14, %v13891_v47, %v6673_v63  ;;  %v7390_v56 = vrot.slane %v6245_v36, %v11608_v59  ;;  %5997 = vadd.xlane.f32.xlu0 %v5996_v37  ;;  %v4668_v3 = vadd.f32 %v13136_v20, %v13174_v13  ;;  %v13893_v23 = vrot.slane %v13892_v10, %v11638_v33  ;;  %v13272_v31 = vpop.f32.mrb[235].mxu1  ;;  %v13898_v36 = vld [vmem:[#allocation47_spill] sm:$0xff] }
 0x395   :  { %v7395_v50 = vrot.slane %v6246_v26, %v11621_v11  ;;  %v6248_v51 = vadd.f32 %v11535_v46, %v5782_v41  ;;  %v4703_v39 = vadd.f32 %v13136_v20, %v9729_v43  ;;  %v13895_v62 = vrot.slane %v13894_v48, %v11652_v55  ;;  %v5794_v37 = vpop.xlane.xlu1 %5793 }
 0x396   :  { %v6687_v57 = vsel %vm13792_vm15, %v13893_v23, %v6680_v4  ;;  %v7391_v13 = vsel %vm13788_vm12, %v7390_v56, %v7386_v29  ;;  %v6247_v52 = vadd.f32 %v11535_v46, %v5779_v14  ;;  %v6002_v42 = vsel %vm2682_vm4, %v5288_v17, 0.0  ;;  %v13900_v56 = vld [vmem:[#allocation6_spill] sm:$0xff]  ;;  %v13902_v14 = vld [vmem:[#allocation7_spill] sm:$0xff] }
 0x397   :  { %v6694_v7 = vsel %vm13791_vm0, %v13895_v62, %v6687_v57  ;;  %v13897_v26 = vrot.slane %v13896_v21, %v11665_v12  ;;  %v13283_v49 = vadd.f32 %v13136_v20, %v13083_v28  ;;  %v7396_v63 = vsel %vm13787_vm13, %v7395_v50, %v7391_v13  ;;  %6003 = vadd.xlane.f32.xlu1 %v6002_v42  ;;  %v13297_v10 = vpop.f32.mrb[236].mxu1  ;;  %v5785_v50 = vpop.xlane.xlu0 %5784 }
 0x398   :  { %v5033_v15 = vmax.f32 %v4703_v39, 0.0  ;;  %v13899_v44 = vrot.slane %v13898_v36, %v11679_v35  ;;  %v5026_v4 = vmax.f32 %v4668_v3, 0.0  ;;  %v7400_v17 = vrot.slane %v6247_v52, %v11635_v32  ;;  %v13304_v48 = vpop.f32.mrb[237].mxu1 }
 0x399   :  { %v6701_v41 = vsel %vm6700_vm1, %v13897_v26, %v6694_v7  ;;  %v4683_v29 = vadd.f32 %v13136_v20, %v13197_v61  ;;  %v13901_v28 = vrot.slane %v13900_v56, %v13847_v40  ;;  %v7405_v23 = vrot.slane %v6248_v51, %v11638_v33  ;;  %v5800_v21 = vpop.xlane.xlu1 %5799 }
 0x39a   :  { %v6708_v47 = vsel %vm6707_vm2, %v13899_v44, %v6701_v41  ;;  %v6250_v57 = vadd.f32 %v11535_v46, %v5788_v24  ;;  %v5296_v3 = vmul.f32 %v13147_v16, %v5033_v15  ;;  %v5290_v61 = vmul.f32 %v13147_v16, %v5027_v27 }
 0x39b   :  { %v6715_v43 = vsel %vm6714_vm3, %v13901_v28, %v6708_v47  ;;  %v7401_v62 = vsel %vm13790_vm14, %v7400_v17, %v7396_v63  ;;  %v6249_v7 = vadd.f32 %v11535_v46, %v5785_v50  ;;  %v5999_v13 = vsel %vm2682_vm4, %v5287_v6, 0.0  ;;  %v5791_v41 = vpop.xlane.xlu0 %5790  ;;  %v13318_v63 = vpop.f32.mrb[238].mxu1 }
 0x39c   :  { %v7902_v39 = vsel %vm7901_vm8, %v13902_v14, %v6715_v43  ;;  %v4678_v51 = vadd.f32 %v13136_v20, %v13206_v9  ;;  %v7406_v24 = vsel %vm13792_vm15, %v7405_v23, %v7401_v62  ;;  %6000 = vadd.xlane.f32.xlu1 %v5999_v13  ;;  %v6026_v52 = vsel %vm2682_vm4, %v5296_v3, 0.0  ;;  %v4717_v17 = vpop.f32.mrb[239].mxu1 }
 0x39d   :  { %vm7903_vm13 = vcmask 1042434   ;;  %v7410_v42 = vrot.slane %v6249_v7, %v11652_v55  ;;  %6027 = vadd.xlane.f32.xlu0 %v6026_v52  ;;  %vm7905_vm12 = vcmask 1043459   ;;  %vm7907_vm11 = vcmask 1044484   ;;  %v5806_v43 = vpop.xlane.xlu1 %5805 }
 0x39e   :  { %vm7909_vm14 = vcmask 1045509   ;;  %v5019_v27 = vmax.f32 %v13283_v49, 0.0  ;;  %v7415_v6 = vrot.slane %v6250_v57, %v11665_v12  ;;  %v5029_v26 = vmax.f32 %v4683_v29, 0.0 }
 0x39f   :  { %v6252_v9 = vadd.f32 %v11535_v46, %v5794_v37  ;;  %v5289_v15 = vmul.f32 %v13147_v16, %v5026_v4  ;;  %v7411_v36 = vsel %vm13791_vm0, %v7410_v42, %v7406_v24  ;;  %v6251_v44 = vadd.f32 %v11535_v46, %v5791_v41  ;;  %v5797_v3 = vpop.xlane.xlu0 %5796 }
 0x3a0   :  { %v6008_v47 = vsel %vm2682_vm4, %v5290_v61, 0.0  ;;  %v5028_v56 = vmax.f32 %v4678_v51, 0.0  ;;  %v7416_v49 = vsel %vm6700_vm1, %v7415_v6, %v7411_v36  ;;  %v4718_v29 = vadd.f32 %v13136_v20, %v4717_v17  ;;  %v13334_v61 = vpop.f32.mrb[240].mxu1 }
 0x3a1   :  { %6009 = vadd.xlane.f32.xlu1 %v6008_v47  ;;  %v7904_v37 = vsel %vm7903_vm13, %v12780_v2, %v7902_v39  ;;  %v6254_v28 = vadd.f32 %v11535_v46, %v5800_v21  ;;  %v7420_v4 = vrot.slane %v6251_v44, %v11679_v35  ;;  %vm7911_vm0 = vcmask 1046534   ;;  %v13339_v7 = vpop.f32.mrb[241].mxu1 }
 0x3a2   :  { %vm13793_vm15 = vcmask 1047559   ;;  %v5292_v23 = vmul.f32 %v13147_v16, %v5029_v26  ;;  %v7425_v57 = vrot.slane %v6252_v9, %v13847_v40  ;;  %v4693_v50 = vadd.f32 %v13136_v20, %v13227_v1  ;;  %v5812_v26 = vpop.xlane.xlu1 %5811 }
 0x3a3   :  { %v5036_v14 = vmax.f32 %v4718_v29, 0.0  ;;  %v7421_v2 = vsel %vm6707_vm2, %v7420_v4, %v7416_v49  ;;  %v6253_v39 = vadd.f32 %v11535_v46, %v5797_v3  ;;  %v6005_v62 = vsel %vm2682_vm4, %v5289_v15, 0.0  ;;  %v5803_v41 = vpop.xlane.xlu0 %5802 }
 0x3a4   :  { %v7906_v13 = vsel %vm7905_vm12, %v13180_v19, %v7904_v37  ;;  %v5282_v51 = vmul.f32 %v13147_v16, %v5019_v27  ;;  %v5291_v24 = vmul.f32 %v13147_v16, %v5028_v56  ;;  %v7426_v1 = vsel %vm6714_vm3, %v7425_v57, %v7421_v2 }
 0x3a5   :  { %6006 = vadd.xlane.f32.xlu1 %v6005_v62  ;;  %v5299_v52 = vmul.f32 %v13147_v16, %v5036_v14  ;;  %v4688_v42 = vadd.f32 %v13136_v20, %v13235_v0  ;;  %v7434_v21 = vrot.slane %v6254_v28, %v13845_v5  ;;  %v13352_v6 = vsel %vm7901_vm8, %v7426_v1, %v13117_v58  ;;  %v13362_v58 = vpop.f32.mrb[242].mxu1 }
 0x3a6   :  { %v7430_v19 = vrot.slane %v6253_v39, %v13849_v30  ;;  %v5031_v27 = vmax.f32 %v4693_v50, 0.0  ;;  %v6256_v9 = vadd.f32 %v11535_v46, %v5806_v43  ;;  %v7908_v36 = vsel %vm7907_vm11, %v13183_v34, %v7906_v13  ;;  %v13366_v56 = vpop.f32.mrb[243].mxu1  ;;  %v5818_v29 = vpop.xlane.xlu1 %5817 }
 0x3a7   :  { %v6035_v15 = vsel %vm2682_vm4, %v5299_v52, 0.0  ;;  %v6255_v44 = vadd.f32 %v11535_v46, %v5803_v41  ;;  %v6014_v47 = vsel %vm2682_vm4, %v5292_v23, 0.0  ;;  %v7910_v17 = vsel %vm7909_vm14, %v12569_v18, %v7908_v36  ;;  %v5809_v57 = vpop.xlane.xlu0 %5808 }
 0x3a8   :  { %v7435_v0 = vsel %vm6616_vm5, %v7434_v21, %v7430_v19  ;;  %6036 = vadd.xlane.f32.xlu0 %v6035_v15  ;;  %v7912_v49 = vsel %vm7911_vm0, %v12749_v45, %v7910_v17  ;;  %v5984_v37 = vsel %vm2682_vm4, %v5282_v51, 0.0  ;;  %v5030_v4 = vmax.f32 %v4688_v42, 0.0 }
 0x3a9   :  { %6015 = vadd.xlane.f32.xlu1 %v6014_v47  ;;  %v7439_v34 = vrot.slane %v6255_v44, %v11547_v54  ;;  %v7914_v28 = vsel %vm13793_vm15, %v12952_v25, %v7912_v49  ;;  %v4698_v43 = vadd.f32 %v13136_v20, %v13272_v31  ;;  %v7444_v18 = vrot.slane %v6256_v9, %v11542_v60  ;;  %v13385_v14 = vpop.f32.mrb[244].mxu1 }
 0x3aa   :  { %v6258_v23 = vadd.f32 %v11535_v46, %v5812_v26  ;;  %7924 = vst [vmem:[%s13765_s7] sm:$0xff] %v7914_v28  ;;  %v5294_v45 = vmul.f32 %v13147_v16, %v5031_v27  ;;  %v6257_v3 = vadd.f32 %v11535_v46, %v5809_v57  ;;  %v6011_v25 = vsel %vm2682_vm4, %v5291_v24, 0.0  ;;  %v13388_v2 = vpop.f32.mrb[245].mxu1  ;;  %v5824_v62 = vpop.xlane.xlu1 %5823 }
 0x3ab   :  { %v7440_v50 = vsel %vm6623_vm6, %v7439_v34, %v7435_v0  ;;  %v5293_v13 = vmul.f32 %v13147_v16, %v5030_v4  ;;  %v5032_v51 = vmax.f32 %v4698_v43, 0.0  ;;  %v6260_v52 = vadd.f32 %v11535_v46, %v5818_v29  ;;  %v5815_v42 = vpop.xlane.xlu0 %5814 }
 0x3ac   :  { %5985 = vadd.xlane.f32.xlu0 %v5984_v37  ;;  %v7445_v31 = vsel %vm6630_vm7, %v7444_v18, %v7440_v50  ;;  %v7449_v39 = vrot.slane %v6257_v3, %v11559_v8  ;;  %v7454_v1 = vrot.slane %v6258_v23, %v11572_v22  ;;  %v4723_v24 = vadd.f32 %v13136_v20, %v13318_v63 }
 0x3ad   :  { %6012 = vadd.xlane.f32.xlu1 %v6011_v25  ;;  %vm13903_vm8 = vcmask 326912   ;;  %v6259_v19 = vadd.f32 %v11535_v46, %v5815_v42  ;;  %v6020_v26 = vsel %vm2682_vm4, %v5294_v45, 0.0  ;;  %v13400_v9 = vpop.f32.mrb[246].mxu1  ;;  %v4708_v41 = vadd.f32 %v13136_v20, %v13304_v48 }
 0x3ae   :  { %v7450_v21 = vsel %vm13903_vm8, %v7449_v39, %v7445_v31  ;;  %v5830_v36 = vpop.xlane.xlu1 %5829  ;;  %v4757_v0 = vpop.f32.mrb[247].mxu1  ;;  %v5295_v63 = vmul.f32 %v13147_v16, %v5032_v51  ;;  %v7464_v44 = vrot.slane %v6260_v52, %v11589_v53  ;;  %v6262_v47 = vadd.f32 %v11535_v46, %v5824_v62 }
 0x3af   :  { %v7455_v27 = vsel %vm6644_vm9, %v7454_v1, %v7450_v21  ;;  %v7459_v15 = vrot.slane %v6259_v19, %v11586_v38  ;;  %v5821_v17 = vpop.xlane.xlu0 %5820  ;;  %v4758_v49 = vadd.f32 %v13136_v20, %v4757_v0  ;;  %v5037_v34 = vmax.f32 %v4723_v24, 0.0 }
 0x3b0   :  { %v6261_v37 = vadd.f32 %v11535_v46, %v5821_v17  ;;  %v6017_v48 = vsel %vm2682_vm4, %v5293_v13, 0.0  ;;  %vm13904_vm8 = vcmask 523712   ;;  %v4713_v18 = vadd.f32 %v13136_v20, %v13297_v10 }
 0x3b1   :  { %6021 = vadd.xlane.f32.xlu1 %v6020_v26  ;;  %v7460_v29 = vsel %vm6651_vm10, %v7459_v15, %v7455_v27  ;;  %v5044_v4 = vmax.f32 %v4758_v49, 0.0  ;;  %v13413_v43 = vpop.f32.mrb[248].mxu1  ;;  %v5034_v23 = vmax.f32 %v4708_v41, 0.0  ;;  %v7474_v3 = vrot.slane %v6262_v47, %v11621_v11 }
 0x3b2   :  { %v7465_v28 = vsel %vm13904_vm8, %v7464_v44, %v7460_v29  ;;  %v7469_v57 = vrot.slane %v6261_v37, %v11608_v59  ;;  %v5836_v45 = vpop.xlane.xlu1 %5835  ;;  %v13418_v50 = vpop.f32.mrb[249].mxu1  ;;  %v6264_v25 = vadd.f32 %v11535_v46, %v5830_v36  ;;  %v5300_v62 = vmul.f32 %v13147_v16, %v5037_v34 }
 0x3b3   :  { %v5307_v31 = vmul.f32 %v13147_v16, %v5044_v4  ;;  %v5827_v39 = vpop.xlane.xlu0 %5826  ;;  %vm13905_vm8 = vcmask 589312   ;;  %v6023_v10 = vsel %vm2682_vm4, %v5295_v63, 0.0  ;;  %vm13906_vm15 = vcmask 654912  }
 0x3b4   :  { %v7470_v13 = vsel %vm13905_vm8, %v7469_v57, %v7465_v28  ;;  %v6263_v51 = vadd.f32 %v11535_v46, %v5827_v39  ;;  %v5035_v24 = vmax.f32 %v4713_v18, 0.0  ;;  %v5297_v21 = vmul.f32 %v13147_v16, %v5034_v23 }
 0x3b5   :  { %6018 = vadd.xlane.f32.xlu1 %v6017_v48  ;;  %v7475_v1 = vsel %vm13906_vm15, %v7474_v3, %v7470_v13  ;;  %v9753_v52 = vpop.f32.mrb[250].mxu1  ;;  %v6059_v42 = vsel %vm2682_vm4, %v5307_v31, 0.0  ;;  %v4733_v15 = vadd.f32 %v13136_v20, %v13334_v61  ;;  %v7484_v36 = vrot.slane %v6264_v25, %v11638_v33 }
 0x3b6   :  { %v7479_v19 = vrot.slane %v6263_v51, %v11635_v32  ;;  %v5842_v26 = vpop.xlane.xlu1 %5841  ;;  %v4783_v27 = vadd.f32 %v13136_v20, %v9753_v52  ;;  %6060 = vadd.xlane.f32.xlu0 %v6059_v42  ;;  %v13432_v41 = vpop.f32.mrb[251].mxu1  ;;  %v6266_v0 = vadd.f32 %v11535_v46, %v5836_v45  ;;  %vm13907_vm15 = vcmask 720512  }
 0x3b7   :  { %v5833_v63 = vpop.xlane.xlu0 %5832  ;;  %v6038_v49 = vsel %vm2682_vm4, %v5300_v62, 0.0  ;;  %vm13908_vm8 = vcmask 786112   ;;  %v5298_v29 = vmul.f32 %v13147_v16, %v5035_v24  ;;  %v6029_v4 = vsel %vm2682_vm4, %v5297_v21, 0.0 }
 0x3b8   :  { %v7480_v44 = vsel %vm13907_vm15, %v7479_v19, %v7475_v1  ;;  %v6265_v47 = vadd.f32 %v11535_v46, %v5833_v63  ;;  %v5049_v17 = vmax.f32 %v4783_v27, 0.0  ;;  %v5039_v18 = vmax.f32 %v4733_v15, 0.0 }
 0x3b9   :  { %6024 = vadd.xlane.f32.xlu1 %v6023_v10  ;;  %v7485_v34 = vsel %vm13908_vm8, %v7484_v36, %v7480_v44  ;;  %v13445_v28 = vpop.f32.mrb[252].mxu1  ;;  %v4728_v23 = vadd.f32 %v13136_v20, %v13339_v7  ;;  %v7494_v57 = vrot.slane %v6266_v0, %v11665_v12  ;;  %v6268_v45 = vadd.f32 %v11535_v46, %v5842_v26 }
 0x3ba   :  { %v7489_v37 = vrot.slane %v6265_v47, %v11652_v55  ;;  %v5312_v61 = vmul.f32 %v13147_v16, %v5049_v17  ;;  %v5848_v48 = vpop.xlane.xlu1 %5847  ;;  %v4787_v25 = vpop.f32.mrb[253].mxu1  ;;  %vm13909_vm15 = vcmask 851712   ;;  %v5302_v42 = vmul.f32 %v13147_v16, %v5039_v18 }
 0x3bb   :  { %v5839_v3 = vpop.xlane.xlu0 %5838  ;;  %v4788_v62 = vadd.f32 %v13136_v20, %v4787_v25  ;;  %v6270_v7 = vadd.f32 %v11535_v46, %v5848_v48  ;;  %v5038_v24 = vmax.f32 %v4728_v23, 0.0  ;;  %v7504_v21 = vrot.slane %v6268_v45, %v13847_v40 }
 0x3bc   :  { %v7490_v31 = vsel %vm13909_vm15, %v7489_v37, %v7485_v34  ;;  %v6267_v39 = vadd.f32 %v11535_v46, %v5839_v3  ;;  %v6074_v13 = vsel %vm2682_vm4, %v5312_v61, 0.0  ;;  %v6032_v26 = vsel %vm2682_vm4, %v5298_v29, 0.0 }
 0x3bd   :  { %6039 = vadd.xlane.f32.xlu1 %v6038_v49  ;;  %v7495_v51 = vsel %vm6700_vm1, %v7494_v57, %v7490_v31  ;;  %6075 = vadd.xlane.f32.xlu0 %v6074_v13  ;;  %v5050_v1 = vmax.f32 %v4788_v62, 0.0  ;;  %v4743_v27 = vadd.f32 %v13136_v20, %v13362_v58  ;;  %v7513_v44 = vrot.slane %v6270_v7, %v13845_v5 }
 0x3be   :  { %v7499_v10 = vrot.slane %v6267_v39, %v11679_v35  ;;  %v5854_v52 = vpop.xlane.xlu1 %5853  ;;  %v5301_v34 = vmul.f32 %v13147_v16, %v5038_v24  ;;  %v4738_v29 = vadd.f32 %v13136_v20, %v13366_v56  ;;  %v6044_v18 = vsel %vm2682_vm4, %v5302_v42, 0.0 }
 0x3bf   :  { %v5845_v19 = vpop.xlane.xlu0 %5844  ;;  %v5313_v36 = vmul.f32 %v13147_v16, %v5050_v1  ;;  %v6272_v37 = vadd.f32 %v11535_v46, %v5854_v52  ;;  %v5041_v48 = vmax.f32 %v4743_v27, 0.0  ;;  %v4753_v62 = vadd.f32 %v13136_v20, %v13385_v14 }
 0x3c0   :  { %v7500_v15 = vsel %vm6707_vm2, %v7499_v10, %v7495_v51  ;;  %v6269_v0 = vadd.f32 %v11535_v46, %v5845_v19  ;;  %v5040_v45 = vmax.f32 %v4738_v29, 0.0  ;;  %v6041_v31 = vsel %vm2682_vm4, %v5301_v34, 0.0 }
 0x3c1   :  { %6030 = vadd.xlane.f32.xlu1 %v6029_v4  ;;  %v7505_v63 = vsel %vm6714_vm3, %v7504_v21, %v7500_v15  ;;  %v6077_v58 = vsel %vm2682_vm4, %v5313_v36, 0.0  ;;  %v7523_v3 = vrot.slane %v6272_v37, %v11542_v60  ;;  %v5304_v39 = vmul.f32 %v13147_v16, %v5041_v48 }
 0x3c2   :  { %v13471_v47 = vsel %vm7903_vm13, %v7505_v63, %v13352_v6  ;;  %v7509_v17 = vrot.slane %v6269_v0, %v13849_v30  ;;  %v5860_v49 = vpop.xlane.xlu1 %5859  ;;  %6078 = vadd.xlane.f32.xlu0 %v6077_v58  ;;  %v5303_v52 = vmul.f32 %v13147_v16, %v5040_v45  ;;  %v4748_v42 = vadd.f32 %v13136_v20, %v13388_v2 }
 0x3c3   :  { %v5851_v61 = vpop.xlane.xlu0 %5850  ;;  %v6274_v56 = vadd.f32 %v11535_v46, %v5860_v49  ;;  %v5043_v19 = vmax.f32 %v4753_v62, 0.0  ;;  %vm13910_vm13 = vcmask 326912   ;;  %v6050_v15 = vsel %vm2682_vm4, %v5304_v39, 0.0 }
 0x3c4   :  { %v7514_v4 = vsel %vm6616_vm5, %v7513_v44, %v7509_v17  ;;  %v6271_v6 = vadd.f32 %v11535_v46, %v5851_v61  ;;  %v5042_v44 = vmax.f32 %v4748_v42, 0.0  ;;  %v6047_v58 = vsel %vm2682_vm4, %v5303_v52, 0.0 }
 0x3c5   :  { %6033 = vadd.xlane.f32.xlu1 %v6032_v26  ;;  %v7533_v24 = vrot.slane %v6274_v56, %v11572_v22  ;;  %v5306_v34 = vmul.f32 %v13147_v16, %v5043_v19  ;;  %v4763_v29 = vadd.f32 %v13136_v20, %v13400_v9  ;;  %vm13911_vm8 = vcmask 523712  }
 0x3c6   :  { %v7518_v23 = vrot.slane %v6271_v6, %v11547_v54  ;;  %v5866_v57 = vpop.xlane.xlu1 %5865  ;;  %vm13912_vm15 = vcmask 589312  }
 0x3c7   :  { %v5857_v25 = vpop.xlane.xlu0 %5856  ;;  %v6276_v21 = vadd.f32 %v11535_v46, %v5866_v57 }
 0x3c8   :  { %v7519_v13 = vsel %vm6623_vm6, %v7518_v23, %v7514_v4  ;;  %v6273_v51 = vadd.f32 %v11535_v46, %v5857_v25  ;;  %v4773_v23 = vadd.f32 %v13136_v20, %v13413_v43  ;;  %v4768_v43 = vadd.f32 %v13136_v20, %v13418_v50 }
 0x3c9   :  { %6045 = vadd.xlane.f32.xlu1 %v6044_v18  ;;  %v7524_v7 = vsel %vm6630_vm7, %v7523_v3, %v7519_v13  ;;  %v7543_v2 = vrot.slane %v6276_v21, %v11589_v53  ;;  %v5305_v18 = vmul.f32 %v13147_v16, %v5042_v44  ;;  %v5045_v3 = vmax.f32 %v4763_v29, 0.0 }
 0x3ca   :  { %v7528_v10 = vrot.slane %v6273_v51, %v11559_v8  ;;  %v5872_v1 = vpop.xlane.xlu1 %5871  ;;  %v5047_v51 = vmax.f32 %v4773_v23, 0.0 }
 0x3cb   :  { %v5863_v14 = vpop.xlane.xlu0 %5862  ;;  %v6278_v17 = vadd.f32 %v11535_v46, %v5872_v1  ;;  %v5308_v52 = vmul.f32 %v13147_v16, %v5045_v3  ;;  %v6053_v21 = vsel %vm2682_vm4, %v5305_v18, 0.0 }
 0x3cc   :  { %v7529_v26 = vsel %vm13910_vm13, %v7528_v10, %v7524_v7  ;;  %v6275_v27 = vadd.f32 %v11535_v46, %v5863_v14  ;;  %vm13913_vm13 = vcmask 654912   ;;  %v5310_v50 = vmul.f32 %v13147_v16, %v5047_v51 }
 0x3cd   :  { %6042 = vadd.xlane.f32.xlu1 %v6041_v31  ;;  %v7534_v36 = vsel %vm6644_vm9, %v7533_v24, %v7529_v26  ;;  %v7553_v57 = vrot.slane %v6278_v17, %v11621_v11  ;;  %v6056_v31 = vsel %vm2682_vm4, %v5306_v34, 0.0  ;;  %v6062_v17 = vsel %vm2682_vm4, %v5308_v52, 0.0 }
 0x3ce   :  { %v7538_v0 = vrot.slane %v6275_v27, %v11586_v38  ;;  %v5878_v63 = vpop.xlane.xlu1 %5877  ;;  %v5046_v27 = vmax.f32 %v4768_v43, 0.0 }
 0x3cf   :  { %v5869_v49 = vpop.xlane.xlu0 %5868  ;;  %v6280_v45 = vadd.f32 %v11535_v46, %v5878_v63  ;;  %v4778_v63 = vadd.f32 %v13136_v20, %v13432_v41  ;;  %v6068_v41 = vsel %vm2682_vm4, %v5310_v50, 0.0 }
 0x3d0   :  { %v7539_v37 = vsel %vm6651_vm10, %v7538_v0, %v7534_v36  ;;  %v6277_v61 = vadd.f32 %v11535_v46, %v5869_v49 }
 0x3d1   :  { %6051 = vadd.xlane.f32.xlu1 %v6050_v15  ;;  %v7544_v48 = vsel %vm13911_vm8, %v7543_v2, %v7539_v37  ;;  %v7563_v7 = vrot.slane %v6280_v45, %v11638_v33  ;;  %vm13914_vm8 = vcmask 720512   ;;  %v5309_v37 = vmul.f32 %v13147_v16, %v5046_v27 }
 0x3d2   :  { %v7548_v4 = vrot.slane %v6277_v61, %v11608_v59  ;;  %v5884_v6 = vpop.xlane.xlu1 %5883 }
 0x3d3   :  { %v5875_v9 = vpop.xlane.xlu0 %5874  ;;  %v6282_v10 = vadd.f32 %v11535_v46, %v5884_v6  ;;  %v4793_v6 = vadd.f32 %v13136_v20, %v13445_v28  ;;  %v6065_v20 = vsel %vm2682_vm4, %v5309_v37, 0.0 }
 0x3d4   :  { %v7549_v56 = vsel %vm13912_vm15, %v7548_v4, %v7544_v48  ;;  %v6279_v25 = vadd.f32 %v11535_v46, %v5875_v9  ;;  %vm13915_vm15 = vcmask 786112   ;;  %v5048_v4 = vmax.f32 %v4778_v63, 0.0 }
 0x3d5   :  { %6048 = vadd.xlane.f32.xlu1 %v6047_v58  ;;  %v7554_v39 = vsel %vm13913_vm13, %v7553_v57, %v7549_v56  ;;  %v7573_v15 = vrot.slane %v6282_v10, %v11665_v12  ;;  %vm13916_vm13 = vcmask 851712  }
 0x3d6   :  { %v7558_v62 = vrot.slane %v6279_v25, %v11635_v32  ;;  %v5890_v13 = vpop.xlane.xlu1 %5889  ;;  %v5311_v28 = vmul.f32 %v13147_v16, %v5048_v4 }
 0x3d7   :  { %v5881_v1 = vpop.xlane.xlu0 %5880  ;;  %v6284_v36 = vadd.f32 %v11535_v46, %v5890_v13 }
 0x3d8   :  { %v7559_v42 = vsel %vm13914_vm8, %v7558_v62, %v7554_v39  ;;  %v6281_v24 = vadd.f32 %v11535_v46, %v5881_v1  ;;  %v5051_v39 = vmax.f32 %v4793_v6, 0.0  ;;  %vm13918_vm8 = vcmask 523712  }
 0x3d9   :  { %6057 = vadd.xlane.f32.xlu1 %v6056_v31  ;;  %v7564_v14 = vsel %vm13915_vm15, %v7563_v7, %v7559_v42  ;;  %v7583_v61 = vrot.slane %v6284_v36, %v13847_v40  ;;  %vm13920_vm15 = vcmask 654912  }
 0x3da   :  { %v7568_v19 = vrot.slane %v6281_v24, %v11652_v55  ;;  %v5896_v26 = vpop.xlane.xlu1 %5895  ;;  %v5314_v1 = vmul.f32 %v13147_v16, %v5051_v39  ;;  %v6071_v24 = vsel %vm2682_vm4, %v5311_v28, 0.0 }
 0x3db   :  { %v5887_v0 = vpop.xlane.xlu0 %5886  ;;  %v6286_v58 = vadd.f32 %v11535_v46, %v5896_v26 }
 0x3dc   :  { %v7569_v44 = vsel %vm13916_vm13, %v7568_v19, %v7564_v14  ;;  %v6283_v2 = vadd.f32 %v11535_v46, %v5887_v0  ;;  %v6080_v36 = vsel %vm2682_vm4, %v5314_v1, 0.0  ;;  %vm13919_vm4 = vcmask 589312  }
 0x3dd   :  { %6054 = vadd.xlane.f32.xlu1 %v6053_v21  ;;  %v7574_v49 = vsel %vm6700_vm1, %v7573_v15, %v7569_v44  ;;  %v7592_v45 = vrot.slane %v6286_v58, %v13845_v5  ;;  %vm13921_vm13 = vcmask 720512  }
 0x3de   :  { %v7578_v34 = vrot.slane %v6283_v2, %v11679_v35  ;;  %v5902_v29 = vpop.xlane.xlu1 %5901 }
 0x3df   :  { %v5893_v48 = vpop.xlane.xlu0 %5892  ;;  %v6288_v25 = vadd.f32 %v11535_v46, %v5902_v29 }
 0x3e0   :  { %v7579_v18 = vsel %vm6707_vm2, %v7578_v34, %v7574_v49  ;;  %v6285_v23 = vadd.f32 %v11535_v46, %v5893_v48 }
 0x3e1   :  { %6063 = vadd.xlane.f32.xlu1 %v6062_v17  ;;  %v7584_v57 = vsel %vm6714_vm3, %v7583_v61, %v7579_v18  ;;  %v7602_v43 = vrot.slane %v6288_v25, %v11542_v60 }
 0x3e2   :  { %v13555_v9 = vsel %vm7905_vm12, %v7584_v57, %v13471_v47  ;;  %v7588_v3 = vrot.slane %v6285_v23, %v13849_v30  ;;  %v5908_v56 = vpop.xlane.xlu1 %5907  ;;  %vm13917_vm12 = vcmask 326912  }
 0x3e3   :  { %v5899_v31 = vpop.xlane.xlu0 %5898  ;;  %v6290_v7 = vadd.f32 %v11535_v46, %v5908_v56 }
 0x3e4   :  { %v7593_v62 = vsel %vm6616_vm5, %v7592_v45, %v7588_v3  ;;  %v6287_v13 = vadd.f32 %v11535_v46, %v5899_v31 }
 0x3e5   :  { %6069 = vadd.xlane.f32.xlu1 %v6068_v41  ;;  %v7612_v26 = vrot.slane %v6290_v7, %v11572_v22 }
 0x3e6   :  { %v7597_v51 = vrot.slane %v6287_v13, %v11547_v54  ;;  %v5914_v47 = vpop.xlane.xlu1 %5913 }
 0x3e7   :  { %v5905_v10 = vpop.xlane.xlu0 %5904  ;;  %v6292_v50 = vadd.f32 %v11535_v46, %v5914_v47 }
 0x3e8   :  { %v7598_v52 = vsel %vm6623_vm6, %v7597_v51, %v7593_v62  ;;  %v6289_v42 = vadd.f32 %v11535_v46, %v5905_v10 }
 0x3e9   :  { %6066 = vadd.xlane.f32.xlu1 %v6065_v20  ;;  %v7603_v21 = vsel %vm6630_vm7, %v7602_v43, %v7598_v52  ;;  %v7622_v2 = vrot.slane %v6292_v50, %v11589_v53 }
 0x3ea   :  { %v7607_v14 = vrot.slane %v6289_v42, %v11559_v8  ;;  %v5920_v19 = vpop.xlane.xlu1 %5919 }
 0x3eb   :  { %v5911_v27 = vpop.xlane.xlu0 %5910  ;;  %v6294_v17 = vadd.f32 %v11535_v46, %v5920_v19 }
 0x3ec   :  { %v7608_v15 = vsel %vm13917_vm12, %v7607_v14, %v7603_v21  ;;  %v6291_v16 = vadd.f32 %v11535_v46, %v5911_v27  ;;  %vm13922_vm12 = vcmask 786112  }
 0x3ed   :  { %6072 = vadd.xlane.f32.xlu1 %v6071_v24  ;;  %v7613_v0 = vsel %vm6644_vm9, %v7612_v26, %v7608_v15  ;;  %v7632_v48 = vrot.slane %v6294_v17, %v11621_v11 }
 0x3ee   :  { %v7617_v63 = vrot.slane %v6291_v16, %v11586_v38  ;;  %v5926_v44 = vpop.xlane.xlu1 %5925 }
 0x3ef   :  { %v5917_v49 = vpop.xlane.xlu0 %5916  ;;  %v6296_v41 = vadd.f32 %v11535_v46, %v5926_v44 }
 0x3f0   :  { %v7618_v58 = vsel %vm6651_vm10, %v7617_v63, %v7613_v0  ;;  %v6293_v34 = vadd.f32 %v11535_v46, %v5917_v49 }
 0x3f1   :  { %6081 = vadd.xlane.f32.xlu1 %v6080_v36  ;;  %v7623_v29 = vsel %vm13918_vm8, %v7622_v2, %v7618_v58  ;;  %v7642_v3 = vrot.slane %v6296_v41, %v11638_v33  ;;  %vm13923_vm8 = vcmask 851712  }
 0x3f2   :  { %v7627_v37 = vrot.slane %v6293_v34, %v11608_v59  ;;  %v5932_v61 = vpop.xlane.xlu1 %5931 }
 0x3f3   :  { %v5923_v4 = vpop.xlane.xlu0 %5922  ;;  %v6298_v56 = vadd.f32 %v11535_v46, %v5932_v61 }
 0x3f4   :  { %v7628_v6 = vsel %vm13919_vm4, %v7627_v37, %v7623_v29  ;;  %v6295_v18 = vadd.f32 %v11535_v46, %v5923_v4  ;;  %vm13925_vm4 = vcmask 523712  }
 0x3f5   :  { %v7633_v23 = vsel %vm13920_vm15, %v7632_v48, %v7628_v6  ;;  %v7652_v13 = vrot.slane %v6298_v56, %v11665_v12  ;;  %vm13926_vm15 = vcmask 589312  }
 0x3f6   :  { %v7637_v57 = vrot.slane %v6295_v18, %v11635_v32  ;;  %v5938_v45 = vpop.xlane.xlu1 %5937 }
 0x3f7   :  { %v5929_v25 = vpop.xlane.xlu0 %5928  ;;  %v6300_v51 = vadd.f32 %v11535_v46, %v5938_v45 }
 0x3f8   :  { %v7638_v31 = vsel %vm13921_vm13, %v7637_v57, %v7633_v23  ;;  %v6297_v20 = vadd.f32 %v11535_v46, %v5929_v25  ;;  %vm13927_vm13 = vcmask 654912  }
 0x3f9   :  { %v7643_v28 = vsel %vm13922_vm12, %v7642_v3, %v7638_v31  ;;  %v7662_v42 = vrot.slane %v6300_v51, %v13847_v40  ;;  %vm13928_vm12 = vcmask 720512  }
 0x3fa   :  { %v7647_v39 = vrot.slane %v6297_v20, %v11652_v55  ;;  %v5944_v62 = vpop.xlane.xlu1 %5943 }
 0x3fb   :  { %v5935_v47 = vpop.xlane.xlu0 %5934  ;;  %v6302_v19 = vadd.f32 %v11535_v46, %v5944_v62 }
 0x3fc   :  { %v7648_v43 = vsel %vm13923_vm8, %v7647_v39, %v7643_v28  ;;  %v6299_v7 = vadd.f32 %v11535_v46, %v5935_v47  ;;  %vm13929_vm8 = vcmask 786112  }
 0x3fd   :  { %v7653_v10 = vsel %vm6700_vm1, %v7652_v13, %v7648_v43  ;;  %v7671_v63 = vrot.slane %v6302_v19, %v13845_v5 }
 0x3fe   :  { %v7657_v1 = vrot.slane %v6299_v7, %v11679_v35  ;;  %v5950_v52 = vpop.xlane.xlu1 %5949 }
 0x3ff   :  { %v5941_v24 = vpop.xlane.xlu0 %5940  ;;  %v6304_v15 = vadd.f32 %v11535_v46, %v5950_v52 }
 0x400   :  { %v7658_v21 = vsel %vm6707_vm2, %v7657_v1, %v7653_v10  ;;  %v6301_v14 = vadd.f32 %v11535_v46, %v5941_v24 }
 0x401   :  { %v7663_v26 = vsel %vm6714_vm3, %v7662_v42, %v7658_v21  ;;  %v7681_v17 = vrot.slane %v6304_v15, %v11542_v60 }
 0x402   :  { %v5956_v50 = vpop.xlane.xlu1 %5955  ;;  %v13610_v27 = vsel %vm7907_vm11, %v7663_v26, %v13555_v9  ;;  %v7667_v16 = vrot.slane %v6301_v14, %v13849_v30  ;;  %vm13924_vm11 = vcmask 326912  }
 0x403   :  { %v5947_v36 = vpop.xlane.xlu0 %5946  ;;  %v6306_v58 = vadd.f32 %v11535_v46, %v5956_v50 }
 0x404   :  { %v6303_v0 = vadd.f32 %v11535_v46, %v5947_v36  ;;  %v7672_v49 = vsel %vm6616_vm5, %v7671_v63, %v7667_v16 }
 0x405   :  { %v7691_v41 = vrot.slane %v6306_v58, %v11572_v22 }
 0x406   :  { %v7676_v44 = vrot.slane %v6303_v0, %v11547_v54  ;;  %v5962_v2 = vpop.xlane.xlu1 %5961 }
 0x407   :  { %v5953_v9 = vpop.xlane.xlu0 %5952  ;;  %v6308_v4 = vadd.f32 %v11535_v46, %v5962_v2 }
 0x408   :  { %v7677_v34 = vsel %vm6623_vm6, %v7676_v44, %v7672_v49  ;;  %v6305_v29 = vadd.f32 %v11535_v46, %v5953_v9 }
 0x409   :  { %v7682_v37 = vsel %vm6630_vm7, %v7681_v17, %v7677_v34  ;;  %v7701_v56 = vrot.slane %v6308_v4, %v11589_v53 }
 0x40a   :  { %v7686_v61 = vrot.slane %v6305_v29, %v11559_v8  ;;  %v5968_v48 = vpop.xlane.xlu1 %5967 }
 0x40b   :  { %v5959_v6 = vpop.xlane.xlu0 %5958  ;;  %v6310_v25 = vadd.f32 %v11535_v46, %v5968_v48 }
 0x40c   :  { %v7687_v18 = vsel %vm13924_vm11, %v7686_v61, %v7682_v37  ;;  %v6307_v23 = vadd.f32 %v11535_v46, %v5959_v6  ;;  %vm13930_vm11 = vcmask 851712  }
 0x40d   :  { %v7692_v57 = vsel %vm6644_vm9, %v7691_v41, %v7687_v18  ;;  %v7711_v51 = vrot.slane %v6310_v25, %v11621_v11 }
 0x40e   :  { %v7696_v45 = vrot.slane %v6307_v23, %v11586_v38  ;;  %v5974_v3 = vpop.xlane.xlu1 %5973 }
 0x40f   :  { %v5965_v31 = vpop.xlane.xlu0 %5964  ;;  %v6312_v47 = vadd.f32 %v11535_v46, %v5974_v3 }
 0x410   :  { %v7697_v20 = vsel %vm6651_vm10, %v7696_v45, %v7692_v57  ;;  %v6309_v28 = vadd.f32 %v11535_v46, %v5965_v31 }
 0x411   :  { %v7702_v39 = vsel %vm13925_vm4, %v7701_v56, %v7697_v20  ;;  %v7721_v24 = vrot.slane %v6312_v47, %v11638_v33  ;;  %vm13931_vm4 = vcmask 326912  }
 0x412   :  { %v7706_v62 = vrot.slane %v6309_v28, %v11608_v59  ;;  %v5980_v13 = vpop.xlane.xlu1 %5979 }
 0x413   :  { %v5971_v43 = vpop.xlane.xlu0 %5970  ;;  %v6314_v21 = vadd.f32 %v11535_v46, %v5980_v13 }
 0x414   :  { %v7707_v7 = vsel %vm13926_vm15, %v7706_v62, %v7702_v39  ;;  %v6311_v10 = vadd.f32 %v11535_v46, %v5971_v43  ;;  %vm13932_vm15 = vcmask 523712  }
 0x415   :  { %v7712_v1 = vsel %vm13927_vm13, %v7711_v51, %v7707_v7  ;;  %v7731_v0 = vrot.slane %v6314_v21, %v11665_v12  ;;  %vm13933_vm13 = vcmask 589312  }
 0x416   :  { %v7716_v52 = vrot.slane %v6311_v10, %v11635_v32  ;;  %v5983_v42 = vpop.xlane.xlu1 %5982 }
 0x417   :  { %v5977_v14 = vpop.xlane.xlu0 %5976  ;;  %v6315_v26 = vadd.f32 %v11535_v46, %v5983_v42 }
 0x418   :  { %v7717_v19 = vsel %vm13928_vm12, %v7716_v52, %v7712_v1  ;;  %v6313_v50 = vadd.f32 %v11535_v46, %v5977_v14  ;;  %vm13934_vm12 = vcmask 654912  }
 0x419   :  { %v7722_v15 = vsel %vm13929_vm8, %v7721_v24, %v7717_v19  ;;  %v7736_v2 = vrot.slane %v6315_v26, %v11679_v35  ;;  %vm13935_vm8 = vcmask 720512  }
 0x41a   :  { %v7726_v16 = vrot.slane %v6313_v50, %v11652_v55  ;;  %v5989_v36 = vpop.xlane.xlu1 %5988 }
 0x41b   :  { %v6317_v63 = vadd.f32 %v11535_v46, %v5989_v36 }
 0x41c   :  { %v5992_v44 = vpop.xlane.xlu0 %5991  ;;  %v7727_v17 = vsel %vm13930_vm11, %v7726_v16, %v7722_v15 }
 0x41d   :  { %v6318_v49 = vadd.f32 %v11535_v46, %v5992_v44  ;;  %v7732_v58 = vsel %vm6700_vm1, %v7731_v0, %v7727_v17  ;;  %v7746_v9 = vrot.slane %v6317_v63, %v13849_v30 }
 0x41e   :  { %v7737_v37 = vsel %vm6707_vm2, %v7736_v2, %v7732_v58 }
 0x41f   :  { %v7750_v34 = vrot.slane %v6318_v49, %v13845_v5  ;;  %v5995_v29 = vpop.xlane.xlu1 %5994 }
 0x420   :  { %v6319_v61 = vadd.f32 %v11535_v46, %v5995_v29 }
 0x421   :  { %v5998_v48 = vpop.xlane.xlu0 %5997  ;;  %v7751_v4 = vsel %vm6616_vm5, %v7750_v34, %v7746_v9 }
 0x422   :  { %v7755_v41 = vrot.slane %v6319_v61, %v11547_v54  ;;  %v6320_v6 = vadd.f32 %v11535_v46, %v5998_v48 }
 0x424   :  { %v6004_v18 = vpop.xlane.xlu1 %6003  ;;  %v7756_v23 = vsel %vm6623_vm6, %v7755_v41, %v7751_v4  ;;  %v7760_v57 = vrot.slane %v6320_v6, %v11542_v60 }
 0x425   :  { %v6322_v45 = vadd.f32 %v11535_v46, %v6004_v18 }
 0x426   :  { %v7761_v31 = vsel %vm6630_vm7, %v7760_v57, %v7756_v23 }
 0x427   :  { %v7770_v20 = vrot.slane %v6322_v45, %v11572_v22 }
 0x429   :  { %v6001_v3 = vpop.xlane.xlu1 %6000 }
 0x42a   :  { %v6321_v56 = vadd.f32 %v11535_v46, %v6001_v3  ;;  %v6028_v13 = vpop.xlane.xlu0 %6027 }
 0x42c   :  { %v7765_v25 = vrot.slane %v6321_v56, %v11559_v8 }
 0x42e   :  { %v6010_v28 = vpop.xlane.xlu1 %6009  ;;  %v7766_v39 = vsel %vm13931_vm4, %v7765_v25, %v7761_v31 }
 0x42f   :  { %v7771_v62 = vsel %vm6644_vm9, %v7770_v20, %v7766_v39  ;;  %v6324_v51 = vadd.f32 %v11535_v46, %v6010_v28 }
 0x431   :  { %v7780_v1 = vrot.slane %v6324_v51, %v11589_v53 }
 0x432   :  { %v6007_v47 = vpop.xlane.xlu1 %6006 }
 0x433   :  { %v6323_v43 = vadd.f32 %v11535_v46, %v6007_v47 }
 0x435   :  { %v7775_v7 = vrot.slane %v6323_v43, %v11586_v38  ;;  %v6037_v10 = vpop.xlane.xlu0 %6036 }
 0x436   :  { %v6016_v52 = vpop.xlane.xlu1 %6015 }
 0x437   :  { %v7776_v42 = vsel %vm6651_vm10, %v7775_v7, %v7771_v62  ;;  %v6326_v14 = vadd.f32 %v11535_v46, %v6016_v52 }
 0x438   :  { %v7781_v24 = vsel %vm13932_vm15, %v7780_v1, %v7776_v42  ;;  %v6333_v1 = vadd.f32 %v11535_v46, %v6037_v10 }
 0x439   :  { %v5986_v21 = vpop.xlane.xlu0 %5985  ;;  %v7790_v36 = vrot.slane %v6326_v14, %v11621_v11 }
 0x43a   :  { %v6013_v19 = vpop.xlane.xlu1 %6012  ;;  %v6316_v26 = vadd.f32 %v11535_v46, %v5986_v21  ;;  %v7825_v14 = vrot.slane %v6333_v1, %v13849_v30 }
 0x43b   :  { %v6325_v50 = vadd.f32 %v11535_v46, %v6013_v19 }
 0x43c   :  { %v7741_v15 = vrot.slane %v6316_v26, %v13847_v40 }
 0x43d   :  { %v7785_v16 = vrot.slane %v6325_v50, %v11608_v59 }
 0x43e   :  { %v6022_v0 = vpop.xlane.xlu1 %6021  ;;  %v7742_v63 = vsel %vm6714_vm3, %v7741_v15, %v7737_v37 }
 0x43f   :  { %v7786_v44 = vsel %vm13933_vm13, %v7785_v16, %v7781_v24  ;;  %v7919_v2 = vsel %vm7909_vm14, %v7742_v63, %v13610_v27  ;;  %v6328_v48 = vadd.f32 %v11535_v46, %v6022_v0  ;;  %v6330_v27 = vadd.f32 %v11535_v46, %v6028_v13 }
 0x440   :  { %v7791_v17 = vsel %vm13934_vm12, %v7790_v36, %v7786_v44  ;;  %vm13936_vm14 = vcmask 786112  }
 0x441   :  { %v7800_v6 = vrot.slane %v6328_v48, %v11638_v33  ;;  %v7810_v56 = vrot.slane %v6330_v27, %v11665_v12 }
 0x442   :  { %v6019_v49 = vpop.xlane.xlu1 %6018 }
 0x443   :  { %v6327_v58 = vadd.f32 %v11535_v46, %v6019_v49  ;;  %v6061_v44 = vpop.xlane.xlu0 %6060 }
 0x445   :  { %v7795_v34 = vrot.slane %v6327_v58, %v11635_v32 }
 0x446   :  { %v6025_v9 = vpop.xlane.xlu1 %6024 }
 0x447   :  { %v6329_v29 = vadd.f32 %v11535_v46, %v6025_v9  ;;  %v7796_v37 = vsel %vm13935_vm8, %v7795_v34, %v7791_v17 }
 0x448   :  { %v7801_v23 = vsel %vm13936_vm14, %v7800_v6, %v7796_v37 }
 0x449   :  { %v7805_v41 = vrot.slane %v6329_v29, %v11652_v55 }
 0x44a   :  { %v6040_v61 = vpop.xlane.xlu1 %6039  ;;  %v6076_v9 = vpop.xlane.xlu0 %6075 }
 0x44b   :  { %v7806_v57 = vsel %vm13930_vm11, %v7805_v41, %v7801_v23  ;;  %v6334_v43 = vadd.f32 %v11535_v46, %v6040_v61 }
 0x44c   :  { %v7811_v31 = vsel %vm6700_vm1, %v7810_v56, %v7806_v57 }
 0x44d   :  { %v7829_v42 = vrot.slane %v6334_v43, %v13845_v5 }
 0x44e   :  { %v6031_v4 = vpop.xlane.xlu1 %6030 }
 0x44f   :  { %v6331_v18 = vadd.f32 %v11535_v46, %v6031_v4  ;;  %v7830_v50 = vsel %vm6616_vm5, %v7829_v42, %v7825_v14  ;;  %vm13938_vm5 = vmmov %vm13932_vm15  ;;  %v6079_v27 = vpop.xlane.xlu0 %6078  ;;  %vm13944_vm15 = vcmask 1047559  }
 0x451   :  { %v7815_v45 = vrot.slane %v6331_v18, %v11679_v35 }
 0x452   :  { %v6034_v3 = vpop.xlane.xlu1 %6033 }
 0x453   :  { %v6332_v25 = vadd.f32 %v11535_v46, %v6034_v3  ;;  %v7816_v28 = vsel %vm6707_vm2, %v7815_v45, %v7811_v31  ;;  %v6347_v45 = vadd.f32 %v11535_v46, %v6079_v27 }
 0x455   :  { %v7820_v20 = vrot.slane %v6332_v25, %v13847_v40 }
 0x456   :  { %v6046_v39 = vpop.xlane.xlu1 %6045 }
 0x457   :  { %v7821_v62 = vsel %vm6714_vm3, %v7820_v20, %v7816_v28  ;;  %v6336_v19 = vadd.f32 %v11535_v46, %v6046_v39  ;;  %v7894_v20 = vrot.slane %v6347_v45, %v11679_v35 }
 0x458   :  { %v7920_v13 = vsel %vm7911_vm0, %v7821_v62, %v7919_v2  ;;  %vm13937_vm0 = vmmov %vm13931_vm4 }
 0x459   :  { %v7839_v10 = vrot.slane %v6336_v19, %v11542_v60  ;;  %v6341_v60 = vadd.f32 %v11535_v46, %v6061_v44  ;;  %vm13943_vm4 = vmmov %vm13930_vm11 }
 0x45a   :  { %v6043_v51 = vpop.xlane.xlu1 %6042 }
 0x45b   :  { %v6335_v7 = vadd.f32 %v11535_v46, %v6043_v51  ;;  %v7864_v48 = vrot.slane %v6341_v60, %v11608_v59 }
 0x45d   :  { %v7834_v24 = vrot.slane %v6335_v7, %v11547_v54 }
 0x45e   :  { %v6052_v47 = vpop.xlane.xlu1 %6051 }
 0x45f   :  { %v7835_v15 = vsel %vm6623_vm6, %v7834_v24, %v7830_v50  ;;  %v6338_v36 = vadd.f32 %v11535_v46, %v6052_v47  ;;  %vm13939_vm6 = vmmov %vm13933_vm13 }
 0x460   :  { %v7840_v0 = vsel %vm6630_vm7, %v7839_v10, %v7835_v15  ;;  %vm13940_vm7 = vmmov %vm13934_vm12 }
 0x461   :  { %v7849_v2 = vrot.slane %v6338_v36, %v11572_v22 }
 0x462   :  { %v6049_v52 = vpop.xlane.xlu1 %6048 }
 0x463   :  { %v6337_v21 = vadd.f32 %v11535_v46, %v6049_v52 }
 0x465   :  { %v7844_v16 = vrot.slane %v6337_v21, %v11559_v8 }
 0x466   :  { %v6058_v26 = vpop.xlane.xlu1 %6057 }
 0x467   :  { %v7845_v30 = vsel %vm13937_vm0, %v7844_v16, %v7840_v0  ;;  %v6340_v17 = vadd.f32 %v11535_v46, %v6058_v26 }
 0x468   :  { %v7850_v8 = vsel %vm6644_vm9, %v7849_v2, %v7845_v30  ;;  %vm13941_vm9 = vmmov %vm13935_vm8 }
 0x469   :  { %v7859_v34 = vrot.slane %v6340_v17, %v11589_v53  ;;  %v6346_v53 = vadd.f32 %v11535_v46, %v6076_v9 }
 0x46a   :  { %v6055_v5 = vpop.xlane.xlu1 %6054 }
 0x46b   :  { %v6339_v54 = vadd.f32 %v11535_v46, %v6055_v5  ;;  %v7889_v25 = vrot.slane %v6346_v53, %v11665_v12 }
 0x46d   :  { %v7854_v63 = vrot.slane %v6339_v54, %v11586_v38 }
 0x46e   :  { %v6064_v49 = vpop.xlane.xlu1 %6063 }
 0x46f   :  { %v7855_v58 = vsel %vm6651_vm10, %v7854_v63, %v7850_v8  ;;  %v6342_v29 = vadd.f32 %v11535_v46, %v6064_v49  ;;  %vm13942_vm10 = vmmov %vm13936_vm14 }
 0x470   :  { %v7860_v38 = vsel %vm13938_vm5, %v7859_v34, %v7855_v58 }
 0x471   :  { %v7869_v22 = vrot.slane %v6342_v29, %v11621_v11  ;;  %v7865_v41 = vsel %vm13939_vm6, %v7864_v48, %v7860_v38 }
 0x472   :  { %v6070_v61 = vpop.xlane.xlu1 %6069 }
 0x473   :  { %v6344_v6 = vadd.f32 %v11535_v46, %v6070_v61  ;;  %v7870_v23 = vsel %vm13940_vm7, %v7869_v22, %v7865_v41 }
 0x475   :  { %v7879_v3 = vrot.slane %v6344_v6, %v11638_v33 }
 0x476   :  { %v6067_v37 = vpop.xlane.xlu1 %6066 }
 0x477   :  { %v6343_v4 = vadd.f32 %v11535_v46, %v6067_v37 }
 0x479   :  { %v7874_v18 = vrot.slane %v6343_v4, %v11635_v32 }
 0x47a   :  { %v6073_v57 = vpop.xlane.xlu1 %6072 }
 0x47b   :  { %v7875_v59 = vsel %vm13941_vm9, %v7874_v18, %v7870_v23  ;;  %v6345_v11 = vadd.f32 %v11535_v46, %v6073_v57 }
 0x47c   :  { %v7880_v31 = vsel %vm13942_vm10, %v7879_v3, %v7875_v59 }
 0x47d   :  { %v7884_v56 = vrot.slane %v6345_v11, %v11652_v55 }
 0x47e   :  { %v6082_v32 = vpop.xlane.xlu1 %6081 }
 0x47f   :  { %v7885_v28 = vsel %vm13943_vm4, %v7884_v56, %v7880_v31  ;;  %v6348_v39 = vadd.f32 %v11535_v46, %v6082_v32 }
 0x480   :  { %v7890_v62 = vsel %vm6700_vm1, %v7889_v25, %v7885_v28 }
 0x481   :  { %v7895_v51 = vsel %vm6707_vm2, %v7894_v20, %v7890_v62  ;;  %v7899_v47 = vrot.slane %v6348_v39, %v13847_v40 }
 0x483   :  { %v7900_v33 = vsel %vm6714_vm3, %v7899_v47, %v7895_v51 }
 0x484   :  { %v7921_v55 = vsel %vm13944_vm15, %v7900_v33, %v7920_v13 }
 0x485   :  { %7925 = vst [vmem:[%s13765_s7 + $0x8] sm:$0xff] %v7921_v55 }

</bundles_post_ra>
